<compile_context>
chip_gen: v7x
topology: tpu7x:2x2x1
jax: 0.10.0
libtpu: 0.0.40
codegen_flags: <defaults>
</compile_context>

<pallas_src>
import functools

import jax
import jax.numpy as jnp
from jax import lax
from jax.experimental import pallas as pl
from jax.experimental.pallas import tpu as pltpu


def _silu(x):
    return x * jax.nn.sigmoid(x)


def _pick_row_tile(h):
    """Largest row tile in {64,32,16,8} that divides h and gives >= 2 tiles."""
    for d in (64, 32, 16, 8):
        if h % d == 0 and h // d >= 2:
            return d
    return h


# --------------------- fused GhostConv (1x1 + 5x5 DW + concat) ---------------

def _ghost_fused_kernel(x_ref, w1_ref, b1_ref, wdw_ref, bdw_ref, *rest,
                        kdw, th, p, H, W, act, has_res):
    """One (batch, output-row-tile) per grid step.

    out[..., :C]  = y              = act(1x1(x) + b1)
    out[..., C:]  = act(dw5(y)+b2) (+ residual on both halves if has_res)
    """
    if has_res:
        res_ref, o_ref, ypad_ref = rest
    else:
        o_ref, ypad_ref = rest
        res_ref = None
    t = pl.program_id(1)
    C1 = x_ref.shape[3]
    C = w1_ref.shape[1]

    w1_bf16 = w1_ref[...].astype(jnp.bfloat16)          # hoisted (reused 3x)
    b1 = b1_ref[...]

    def conv1x1(x_slab):                                 # (rows, W, C1)->(rows, W, C)
        rows = x_slab.shape[0]
        y = jnp.dot(x_slab.reshape(rows * W, C1).astype(jnp.bfloat16), w1_bf16,
                    preferred_element_type=jnp.float32)
        y = y + b1
        if act:
            y = _silu(y)
        return y.reshape(rows, W, C)

    # Zero-padded y scratch: the borders provide the 5x5 conv's zero padding
    # entirely in VMEM (no wrapper-side jnp.pad / HBM round trip).
    ypad_ref[...] = jnp.zeros_like(ypad_ref)
    row0 = pl.multiple_of(t * th, th)
    y_body = conv1x1(x_ref[0, pl.ds(row0, th), :, :])
    ypad_ref[p:p + th, p:p + W, :] = y_body

    @pl.when(t > 0)                                      # top halo (recomputed)
    def _():
        ypad_ref[0:p, p:p + W, :] = conv1x1(x_ref[0, pl.ds(row0 - p, p), :, :])

    @pl.when(row0 + th + p <= H)                         # bottom halo (recomputed)
    def _():
        ypad_ref[p + th:p + th + p, p:p + W, :] = conv1x1(
            x_ref[0, pl.ds(row0 + th, p), :, :])

    # kdw x kdw depthwise conv; per-row tap chains keep partial sums in vregs.
    acc = None
    for di in range(kdw):
        row_sum = None
        for dj in range(kdw):
            idx = di * kdw + dj
            tap = ypad_ref[di:di + th, dj:dj + W, :] * wdw_ref[idx:idx + 1, :]
            row_sum = tap if row_sum is None else row_sum + tap
        acc = row_sum if acc is None else acc + row_sum
    dwh = acc + bdw_ref[...]
    if act:
        dwh = _silu(dwh)

    prim = y_body
    if has_res:                                          # fused residual add
        prim = prim + res_ref[0, :, :, 0:C]
        dwh = dwh + res_ref[0, :, :, C:2 * C]
    # Two stores; no (th, W, 2C) concat temporary.
    o_ref[0, :, :, 0:C] = prim
    o_ref[0, :, :, C:2 * C] = dwh


def ghost_conv_fused(x, w1, b1, wdw, bdw, *, kdw, act, residual=None):
    """GhostConv: concat([y, dw_kxk(y)], -1) with y = 1x1(x); BN/act folded."""
    B, H, W, C1 = x.shape
    C = w1.shape[1]
    p = kdw // 2
    th = _pick_row_tile(H)
    nt = H // th
    in_specs = [
        pl.BlockSpec((1, H, W, C1), lambda b, t: (b, 0, 0, 0)),  # resident per b
        pl.BlockSpec((C1, C), lambda b, t: (0, 0)),
        pl.BlockSpec((1, C), lambda b, t: (0, 0)),
        pl.BlockSpec((kdw * kdw, C), lambda b, t: (0, 0)),
        pl.BlockSpec((1, C), lambda b, t: (0, 0)),
    ]
    args = [x, w1, b1, wdw, bdw]
    if residual is not None:
        in_specs.append(pl.BlockSpec((1, th, W, 2 * C), lambda b, t: (b, t, 0, 0)))
        args.append(residual)
    return pl.pallas_call(
        functools.partial(_ghost_fused_kernel, kdw=kdw, th=th, p=p, H=H, W=W,
                          act=act, has_res=residual is not None),
        out_shape=jax.ShapeDtypeStruct((B, H, W, 2 * C), jnp.float32),
        grid=(B, nt),
        in_specs=in_specs,
        out_specs=pl.BlockSpec((1, th, W, 2 * C), lambda b, t: (b, t, 0, 0)),
        scratch_shapes=[pltpu.VMEM((th + 2 * p, W + 2 * p, C), jnp.float32)],
        compiler_params=pltpu.CompilerParams(
            dimension_semantics=("parallel", "parallel"),
            vmem_limit_bytes=32 * 1024 * 1024),
    )(*args)


# --------------------- stride-2 depthwise conv (+ optional fused 1x1) --------

def _dw_s2_fused_kernel(x_ref, wdw_ref, bdw_ref, *rest, k, tho, H, W, has_pw):
    """k x k stride-2 depthwise conv (+folded BN), optionally fused with a
    following 1x1 conv (+folded BN); act=False.  One (batch, out-row-tile)/step."""
    if has_pw:
        wpw_ref, bpw_ref, o_ref, xpad_ref = rest
    else:
        o_ref, xpad_ref = rest
    t = pl.program_id(1)
    C = x_ref.shape[3]
    pad = k // 2
    Wo = W // 2
    nbot = k - 2 - pad                       # extra bottom halo rows (0 for k=3)

    # Zero-padded input scratch (in-VMEM conv padding, no wrapper relayout).
    xpad_ref[...] = jnp.zeros_like(xpad_ref)
    r0 = pl.multiple_of(2 * t * tho, 2 * tho)
    xpad_ref[pad:pad + 2 * tho, pad:pad + W, :] = x_ref[0, pl.ds(r0, 2 * tho), :, :]

    @pl.when(t > 0)                          # top halo rows exist
    def _():
        xpad_ref[0:pad, pad:pad + W, :] = x_ref[0, pl.ds(r0 - pad, pad), :, :]

    if nbot > 0:
        @pl.when(r0 + 2 * tho + nbot <= H)   # bottom halo rows exist
        def _():
            xpad_ref[pad + 2 * tho:pad + 2 * tho + nbot, pad:pad + W, :] = (
                x_ref[0, pl.ds(r0 + 2 * tho, nbot), :, :])

    # Strided taps: every tap is a static-start stride-2 slice of the scratch.
    acc = None
    for di in range(k):
        row_sum = None
        for dj in range(k):
            idx = di * k + dj
            tap = (xpad_ref[pl.ds(di, tho, stride=2), pl.ds(dj, Wo, stride=2), :]
                   * wdw_ref[idx:idx + 1, :])
            row_sum = tap if row_sum is None else row_sum + tap
        acc = row_sum if acc is None else acc + row_sum
    z = acc + bdw_ref[...]

    if has_pw:                               # fused shortcut 1x1 conv
        C2 = wpw_ref.shape[1]
        u = jnp.dot(z.reshape(tho * Wo, C).astype(jnp.bfloat16),
                    wpw_ref[...].astype(jnp.bfloat16),
                    preferred_element_type=jnp.float32)
        u = u + bpw_ref[...]
        o_ref[0] = u.reshape(tho, Wo, C2)
    else:
        o_ref[0] = z


def dw_conv_s2(x, wdw, bdw, *, k, pw=None):
    """DWConv(C, C, k, s=2, act=False) (+ optional fused Conv(C, C2, 1, 1))."""
    B, H, W, C = x.shape
    assert H % 2 == 0 and W % 2 == 0, "stride-2 path assumes even H, W"
    # TODO(synk): odd spatial sizes need extra bottom/right-pad-row handling.
    Ho, Wo = H // 2, W // 2
    pad = k // 2
    tho = _pick_row_tile(Ho)
    nto = Ho // tho
    Cout = C if pw is None else pw[0].shape[1]
    in_specs = [
        pl.BlockSpec((1, H, W, C), lambda b, t: (b, 0, 0, 0)),
        pl.BlockSpec((k * k, C), lambda b, t: (0, 0)),
        pl.BlockSpec((1, C), lambda b, t: (0, 0)),
    ]
    args = [x, wdw, bdw]
    if pw is not None:
        in_specs += [pl.BlockSpec((C, Cout), lambda b, t: (0, 0)),
                     pl.BlockSpec((1, Cout), lambda b, t: (0, 0))]
        args += [pw[0], pw[1]]
    return pl.pallas_call(
        functools.partial(_dw_s2_fused_kernel, k=k, tho=tho, H=H, W=W,
                          has_pw=pw is not None),
        out_shape=jax.ShapeDtypeStruct((B, Ho, Wo, Cout), jnp.float32),
        grid=(B, nto),
        in_specs=in_specs,
        out_specs=pl.BlockSpec((1, tho, Wo, Cout), lambda b, t: (b, t, 0, 0)),
        scratch_shapes=[pltpu.VMEM((2 * tho + 2 * pad, W + 2 * pad, C),
                                   jnp.float32)],
        compiler_params=pltpu.CompilerParams(
            dimension_semantics=("parallel", "parallel"),
            vmem_limit_bytes=32 * 1024 * 1024),
    )(*args)


# ------------------------------ parameters -----------------------------------

def _make_conv_params(key, c_in, c_out, k, groups):
    kw, kg, kb, km, kv = jax.random.split(key, 5)
    fan_in = (c_in // groups) * k * k
    w = jax.random.normal(kw, (c_out, c_in // groups, k, k), jnp.float32) * (fan_in ** -0.5)
    gamma = 1.0 + 0.1 * jax.random.normal(kg, (c_out,), jnp.float32)
    beta = 0.1 * jax.random.normal(kb, (c_out,), jnp.float32)
    mean = 0.1 * jax.random.normal(km, (c_out,), jnp.float32)
    var = jax.random.uniform(kv, (c_out,), jnp.float32, minval=0.5, maxval=1.5)
    scale = gamma * lax.rsqrt(var + 1e-5)        # folded inference BatchNorm
    bias = beta - mean * scale
    return {"w": w, "scale": scale, "bias": bias}


def make_ghost_bottleneck_params(key, c1, c2, k, s):
    c_ = c2 // 2
    ks = jax.random.split(key, 7)
    p = {
        "g1_cv1": _make_conv_params(ks[0], c1, c_ // 2, 1, 1),
        "g1_cv2": _make_conv_params(ks[1], c_ // 2, c_ // 2, 5, c_ // 2),
        "g2_cv1": _make_conv_params(ks[2], c_, c2 // 2, 1, 1),
        "g2_cv2": _make_conv_params(ks[3], c2 // 2, c2 // 2, 5, c2 // 2),
    }
    if s == 2:
        p["dw_mid"] = _make_conv_params(ks[4], c_, c_, k, c_)
        p["sc_dw"] = _make_conv_params(ks[5], c1, c1, k, c1)
        p["sc_pw"] = _make_conv_params(ks[6], c1, c2, 1, 1)
    return p


# ------------------------------ forward (Pallas) -----------------------------

def ghost_bottleneck_forward(params, x_nchw, *, k, s):
    """GhostBottleneck(c1, c2, k, s).forward — x is NCHW like PyTorch."""
    x = jnp.transpose(x_nchw, (0, 2, 3, 1)).astype(jnp.float32)   # NHWC
    B, H, W, c1 = x.shape

    def pw_wb(name):                       # 1x1 conv: (Cin, Cout) weights, scale folded
        p = params[name]
        w = jnp.transpose(p["w"][:, :, 0, 0]) * p["scale"][None, :]
        return w, p["bias"].reshape(1, -1)

    def dw_wb(name):                       # depthwise: (k*k, C) weights, scale folded
        p = params[name]
        cout, _, kk, _ = p["w"].shape
        w = jnp.transpose(p["w"].reshape(cout, kk * kk)) * p["scale"][None, :]
        return w, p["bias"].reshape(1, -1)

    # ---- main: GhostConv(c1, c_, 1, 1)  (SiLU on both convs), fully fused ----
    w1, b1 = pw_wb("g1_cv1")
    wd1, bd1 = dw_wb("g1_cv2")
    g1 = ghost_conv_fused(x, w1, b1, wd1, bd1, kdw=5, act=True)

    if s == 2:
        # ---- main: DWConv(c_, c_, k, 2, act=False) ----
        wdm, bdm = dw_wb("dw_mid")
        z = dw_conv_s2(g1, wdm, bdm, k=k)
        # ---- shortcut: DWConv(c1, c1, k, 2) fused with Conv(c1, c2, 1, 1) ----
        wds, bds = dw_wb("sc_dw")
        wps, bps = pw_wb("sc_pw")
        sc = dw_conv_s2(x, wds, bds, k=k, pw=(wps, bps))
    else:
        z = g1
        sc = x                                                    # Identity shortcut

    # ---- main: GhostConv(c_, c2, 1, 1, act=False), residual add fused in ----
    w2, b2 = pw_wb("g2_cv1")
    wd2, bd2 = dw_wb("g2_cv2")
    c2 = 2 * w2.shape[1]
    if s == 1:
        assert c1 == c2, "identity shortcut requires c1 == c2"
    out = ghost_conv_fused(z, w2, b2, wd2, bd2, kdw=5, act=False, residual=sc)
    return jnp.transpose(out, (0, 3, 1, 2))                       # back to NCHW


# ------------------------------ pure-JAX reference ---------------------------

def _ref_conv(x, p, *, s, groups, act):
    kh = p["w"].shape[2]
    pad = kh // 2
    w_hwio = jnp.transpose(p["w"], (2, 3, 1, 0))
    y = lax.conv_general_dilated(
        x, w_hwio, window_strides=(s, s), padding=[(pad, pad), (pad, pad)],
        dimension_numbers=("NHWC", "HWIO", "NHWC"), feature_group_count=groups,
        precision=lax.Precision.HIGHEST)
    y = y * p["scale"] + p["bias"]
    return _silu(y) if act else y


def ghost_bottleneck_reference(params, x_nchw, *, k, s):
    x = jnp.transpose(x_nchw, (0, 2, 3, 1)).astype(jnp.float32)
    c1 = x.shape[-1]
    y1 = _ref_conv(x, params["g1_cv1"], s=1, groups=1, act=True)
    y2 = _ref_conv(y1, params["g1_cv2"], s=1, groups=y1.shape[-1], act=True)
    g1 = jnp.concatenate([y1, y2], axis=-1)
    z = _ref_conv(g1, params["dw_mid"], s=s, groups=g1.shape[-1], act=False) if s == 2 else g1
    u1 = _ref_conv(z, params["g2_cv1"], s=1, groups=1, act=False)
    u2 = _ref_conv(u1, params["g2_cv2"], s=1, groups=u1.shape[-1], act=False)
    main = jnp.concatenate([u1, u2], axis=-1)
    if s == 2:
        sc = _ref_conv(x, params["sc_dw"], s=s, groups=c1, act=False)
        sc = _ref_conv(sc, params["sc_pw"], s=1, groups=1, act=False)
    else:
        sc = x
    return jnp.transpose(main + sc, (0, 3, 1, 2))


# ------------------------------ demo / check ---------------------------------

if __name__ == "__main__":
    key = jax.random.PRNGKey(0)
    kp, kx, kp2, kx2 = jax.random.split(key, 4)

    # Config 1: full GhostBottleneck (stride-2 path, DWConv + conv shortcut).
    B, C1, C2, H, W, K, S = 2, 32, 64, 16, 16, 3, 2
    params = make_ghost_bottleneck_params(kp, C1, C2, K, S)
    x = jax.random.uniform(kx, (B, C1, H, W), jnp.float32)
    fwd = jax.jit(functools.partial(ghost_bottleneck_forward, k=K, s=S))
    out = fwd(params, x)
    jax.block_until_ready(out)
    assert out.shape == (B, C2, H // S, W // S), out.shape
    ref = jax.jit(functools.partial(ghost_bottleneck_reference, k=K, s=S))(params, x)
    err = float(jnp.max(jnp.abs(out - ref)))
    tol = 3e-2 * (1.0 + float(jnp.max(jnp.abs(ref))))
    assert bool(jnp.all(jnp.isfinite(out))), "non-finite output"
    assert err < tol, f"s=2 mismatch vs reference: {err} (tol {tol})"

    # Config 2: stride-1 path (identity shortcut; requires c1 == c2).
    C = 32
    params2 = make_ghost_bottleneck_params(kp2, C, C, K, 1)
    x2 = jax.random.uniform(kx2, (B, C, H, W), jnp.float32)
    fwd2 = jax.jit(functools.partial(ghost_bottleneck_forward, k=K, s=1))
    out2 = fwd2(params2, x2)
    jax.block_until_ready(out2)
    assert out2.shape == (B, C, H, W), out2.shape
    ref2 = jax.jit(functools.partial(ghost_bottleneck_reference, k=K, s=1))(params2, x2)
    err2 = float(jnp.max(jnp.abs(out2 - ref2)))
    tol2 = 3e-2 * (1.0 + float(jnp.max(jnp.abs(ref2))))
    assert err2 < tol2, f"s=1 mismatch vs reference: {err2} (tol {tol2})"

    print("KERNEL_OK")
</pallas_src>

<mosaic_0001>
module attributes {stable_mosaic.version = 11 : i64} {
  func.func @_ghost_fused_kernel(%arg0: i32, %arg1: i32, %arg2: memref<1x16x16x32xf32, #tpu.memory_space<vmem>>, %arg3: memref<32x16xf32, #tpu.memory_space<vmem>>, %arg4: memref<1x16xf32, #tpu.memory_space<vmem>>, %arg5: memref<25x16xf32, #tpu.memory_space<vmem>>, %arg6: memref<1x16xf32, #tpu.memory_space<vmem>>, %arg7: memref<1x8x16x32xf32, #tpu.memory_space<vmem>>, %arg8: memref<12x20x16xf32, #tpu.memory_space<vmem>>) attributes {dimension_semantics = [#tpu.dimension_semantics<parallel>, #tpu.dimension_semantics<parallel>], iteration_bounds = array<i64: 2, 2>, scalar_prefetch = 0 : i64, scratch_operands = 1 : i64, tpu.core_type = #tpu.core_type<tc>, window_params = [{transform_indices = @transform_0, window_bounds = array<i64: 1, 16, 16, 32>}, {pipeline_mode = #tpu.pipeline_mode<synchronous>, transform_indices = @transform_1, window_bounds = array<i64: 32, 16>}, {pipeline_mode = #tpu.pipeline_mode<synchronous>, transform_indices = @transform_2, window_bounds = array<i64: 1, 16>}, {pipeline_mode = #tpu.pipeline_mode<synchronous>, transform_indices = @transform_3, window_bounds = array<i64: 25, 16>}, {pipeline_mode = #tpu.pipeline_mode<synchronous>, transform_indices = @transform_4, window_bounds = array<i64: 1, 16>}, {transform_indices = @transform_5, window_bounds = array<i64: 1, 8, 16, 32>}]} {
    %c0 = arith.constant 0 : index
    %c0_0 = arith.constant 0 : index
    %0 = vector.load %arg3[%c0, %c0_0] : memref<32x16xf32, #tpu.memory_space<vmem>>, vector<32x16xf32>
    %1 = arith.truncf %0 : vector<32x16xf32> to vector<32x16xbf16>
    %c0_1 = arith.constant 0 : index
    %c0_2 = arith.constant 0 : index
    %2 = vector.load %arg4[%c0_1, %c0_2] : memref<1x16xf32, #tpu.memory_space<vmem>>, vector<1x16xf32>
    %cst = arith.constant 0.000000e+00 : f32
    %3 = vector.broadcast %cst : f32 to vector<12x20x16xf32>
    %c0_3 = arith.constant 0 : index
    %c0_4 = arith.constant 0 : index
    %c0_5 = arith.constant 0 : index
    %4 = vector.load %arg8[%c0_3, %c0_4, %c0_5] : memref<12x20x16xf32, #tpu.memory_space<vmem>>, vector<12x20x16xf32>
    tpu.vector_store %arg8[%c0_3, %c0_4, %c0_5], %3 {strides = array<i32>} : memref<12x20x16xf32, #tpu.memory_space<vmem>>, vector<12x20x16xf32>,
    %c8_i32 = arith.constant 8 : i32
    %5 = arith.muli %arg1, %c8_i32 : i32
    %6 = tpu.assume_multiple %5, 8 : i32
    %c0_6 = arith.constant 0 : index
    %7 = arith.index_cast %6 : i32 to index
    %c0_7 = arith.constant 0 : index
    %c0_8 = arith.constant 0 : index
    %8 = vector.load %arg2[%c0_6, %7, %c0_7, %c0_8] : memref<1x16x16x32xf32, #tpu.memory_space<vmem>>, vector<1x8x16x32xf32>
    %9 = vector.shape_cast %8 : vector<1x8x16x32xf32> to vector<8x16x32xf32>
    %10 = vector.shape_cast %9 : vector<8x16x32xf32> to vector<128x32xf32>
    %11 = arith.truncf %10 : vector<128x32xf32> to vector<128x32xbf16>
    %cst_9 = arith.constant dense<0.000000e+00> : vector<128x16xf32>
    %12 = tpu.matmul %11, %1, %cst_9 {dimension_numbers = #tpu.dot_dimension_numbers<[1], [0], [0], [1], [0, 0, 1, 1], [], []>} : vector<128x32xbf16>, vector<32x16xbf16>, vector<128x16xf32> -> vector<128x16xf32>
    %13 = vector.broadcast %2 : vector<1x16xf32> to vector<128x16xf32>
    %14 = arith.addf %12, %13 : vector<128x16xf32>
    %15 = arith.negf %14 : vector<128x16xf32>
    %16 = math.exp %15 : vector<128x16xf32>
    %cst_10 = arith.constant 1.000000e+00 : f32
    %17 = vector.broadcast %cst_10 : f32 to vector<128x16xf32>
    %18 = arith.addf %17, %16 : vector<128x16xf32>
    %19 = arith.divf %17, %18 : vector<128x16xf32>
    %20 = arith.mulf %14, %19 : vector<128x16xf32>
    %21 = vector.shape_cast %20 : vector<128x16xf32> to vector<8x16x16xf32>
    %c2 = arith.constant 2 : index
    %c2_11 = arith.constant 2 : index
    %c0_12 = arith.constant 0 : index
    %22 = vector.load %arg8[%c2, %c2_11, %c0_12] : memref<12x20x16xf32, #tpu.memory_space<vmem>>, vector<8x16x16xf32>
    tpu.vector_store %arg8[%c2, %c2_11, %c0_12], %21 {strides = array<i32>} : memref<12x20x16xf32, #tpu.memory_space<vmem>>, vector<8x16x16xf32>,
    %c0_i32 = arith.constant 0 : i32
    %23 = arith.cmpi sgt, %arg1, %c0_i32 : i32
    %24 = arith.extui %23 : i1 to i32
    %c0_i32_13 = arith.constant 0 : i32
    %25 = arith.cmpi ne, %24, %c0_i32_13 : i32
    scf.if %25 {
      %c2_i32_129 = arith.constant 2 : i32
      %196 = arith.subi %6, %c2_i32_129 : i32
      %c0_130 = arith.constant 0 : index
      %197 = arith.index_cast %196 : i32 to index
      %c0_131 = arith.constant 0 : index
      %c0_132 = arith.constant 0 : index
      %198 = vector.load %arg2[%c0_130, %197, %c0_131, %c0_132] : memref<1x16x16x32xf32, #tpu.memory_space<vmem>>, vector<1x2x16x32xf32>
      %199 = vector.shape_cast %198 : vector<1x2x16x32xf32> to vector<2x16x32xf32>
      %200 = vector.shape_cast %199 : vector<2x16x32xf32> to vector<32x32xf32>
      %201 = arith.truncf %200 : vector<32x32xf32> to vector<32x32xbf16>
      %cst_133 = arith.constant dense<0.000000e+00> : vector<32x16xf32>
      %202 = tpu.matmul %201, %1, %cst_133 {dimension_numbers = #tpu.dot_dimension_numbers<[1], [0], [0], [1], [0, 0, 1, 1], [], []>} : vector<32x32xbf16>, vector<32x16xbf16>, vector<32x16xf32> -> vector<32x16xf32>
      %203 = vector.broadcast %2 : vector<1x16xf32> to vector<32x16xf32>
      %204 = arith.addf %202, %203 : vector<32x16xf32>
      %205 = arith.negf %204 : vector<32x16xf32>
      %206 = math.exp %205 : vector<32x16xf32>
      %cst_134 = arith.constant 1.000000e+00 : f32
      %207 = vector.broadcast %cst_134 : f32 to vector<32x16xf32>
      %208 = arith.addf %207, %206 : vector<32x16xf32>
      %209 = arith.divf %207, %208 : vector<32x16xf32>
      %210 = arith.mulf %204, %209 : vector<32x16xf32>
      %211 = vector.shape_cast %210 : vector<32x16xf32> to vector<2x16x16xf32>
      %c0_135 = arith.constant 0 : index
      %c2_136 = arith.constant 2 : index
      %c0_137 = arith.constant 0 : index
      %212 = vector.load %arg8[%c0_135, %c2_136, %c0_137] : memref<12x20x16xf32, #tpu.memory_space<vmem>>, vector<2x16x16xf32>
      tpu.vector_store %arg8[%c0_135, %c2_136, %c0_137], %211 {strides = array<i32>} : memref<12x20x16xf32, #tpu.memory_space<vmem>>, vector<2x16x16xf32>,
    } else {
    }
    %c8_i32_14 = arith.constant 8 : i32
    %26 = arith.addi %6, %c8_i32_14 : i32
    %c2_i32 = arith.constant 2 : i32
    %27 = arith.addi %26, %c2_i32 : i32
    %c16_i32 = arith.constant 16 : i32
    %28 = arith.cmpi sle, %27, %c16_i32 : i32
    %29 = arith.extui %28 : i1 to i32
    %c0_i32_15 = arith.constant 0 : i32
    %30 = arith.cmpi ne, %29, %c0_i32_15 : i32
    scf.if %30 {
      %c8_i32_129 = arith.constant 8 : i32
      %196 = arith.addi %6, %c8_i32_129 : i32
      %c0_130 = arith.constant 0 : index
      %197 = arith.index_cast %196 : i32 to index
      %c0_131 = arith.constant 0 : index
      %c0_132 = arith.constant 0 : index
      %198 = vector.load %arg2[%c0_130, %197, %c0_131, %c0_132] : memref<1x16x16x32xf32, #tpu.memory_space<vmem>>, vector<1x2x16x32xf32>
      %199 = vector.shape_cast %198 : vector<1x2x16x32xf32> to vector<2x16x32xf32>
      %200 = vector.shape_cast %199 : vector<2x16x32xf32> to vector<32x32xf32>
      %201 = arith.truncf %200 : vector<32x32xf32> to vector<32x32xbf16>
      %cst_133 = arith.constant dense<0.000000e+00> : vector<32x16xf32>
      %202 = tpu.matmul %201, %1, %cst_133 {dimension_numbers = #tpu.dot_dimension_numbers<[1], [0], [0], [1], [0, 0, 1, 1], [], []>} : vector<32x32xbf16>, vector<32x16xbf16>, vector<32x16xf32> -> vector<32x16xf32>
      %203 = vector.broadcast %2 : vector<1x16xf32> to vector<32x16xf32>
      %204 = arith.addf %202, %203 : vector<32x16xf32>
      %205 = arith.negf %204 : vector<32x16xf32>
      %206 = math.exp %205 : vector<32x16xf32>
      %cst_134 = arith.constant 1.000000e+00 : f32
      %207 = vector.broadcast %cst_134 : f32 to vector<32x16xf32>
      %208 = arith.addf %207, %206 : vector<32x16xf32>
      %209 = arith.divf %207, %208 : vector<32x16xf32>
      %210 = arith.mulf %204, %209 : vector<32x16xf32>
      %211 = vector.shape_cast %210 : vector<32x16xf32> to vector<2x16x16xf32>
      %c10_135 = arith.constant 10 : index
      %c2_136 = arith.constant 2 : index
      %c0_137 = arith.constant 0 : index
      %212 = vector.load %arg8[%c10_135, %c2_136, %c0_137] : memref<12x20x16xf32, #tpu.memory_space<vmem>>, vector<2x16x16xf32>
      tpu.vector_store %arg8[%c10_135, %c2_136, %c0_137], %211 {strides = array<i32>} : memref<12x20x16xf32, #tpu.memory_space<vmem>>, vector<2x16x16xf32>,
    } else {
    }
    %c0_16 = arith.constant 0 : index
    %c0_17 = arith.constant 0 : index
    %c0_18 = arith.constant 0 : index
    %31 = vector.load %arg8[%c0_16, %c0_17, %c0_18] : memref<12x20x16xf32, #tpu.memory_space<vmem>>, vector<8x16x16xf32>
    %c0_19 = arith.constant 0 : index
    %c0_20 = arith.constant 0 : index
    %32 = vector.load %arg5[%c0_19, %c0_20] : memref<25x16xf32, #tpu.memory_space<vmem>>, vector<1x16xf32>
    %33 = vector.shape_cast %32 : vector<1x16xf32> to vector<1x1x16xf32>
    %34 = vector.broadcast %33 : vector<1x1x16xf32> to vector<8x16x16xf32>
    %35 = arith.mulf %31, %34 : vector<8x16x16xf32>
    %c0_21 = arith.constant 0 : index
    %c1 = arith.constant 1 : index
    %c0_22 = arith.constant 0 : index
    %36 = vector.load %arg8[%c0_21, %c1, %c0_22] : memref<12x20x16xf32, #tpu.memory_space<vmem>>, vector<8x16x16xf32>
    %c1_23 = arith.constant 1 : index
    %c0_24 = arith.constant 0 : index
    %37 = vector.load %arg5[%c1_23, %c0_24] : memref<25x16xf32, #tpu.memory_space<vmem>>, vector<1x16xf32>
    %38 = vector.shape_cast %37 : vector<1x16xf32> to vector<1x1x16xf32>
    %39 = vector.broadcast %38 : vector<1x1x16xf32> to vector<8x16x16xf32>
    %40 = arith.mulf %36, %39 : vector<8x16x16xf32>
    %41 = arith.addf %35, %40 : vector<8x16x16xf32>
    %c0_25 = arith.constant 0 : index
    %c2_26 = arith.constant 2 : index
    %c0_27 = arith.constant 0 : index
    %42 = vector.load %arg8[%c0_25, %c2_26, %c0_27] : memref<12x20x16xf32, #tpu.memory_space<vmem>>, vector<8x16x16xf32>
    %c2_28 = arith.constant 2 : index
    %c0_29 = arith.constant 0 : index
    %43 = vector.load %arg5[%c2_28, %c0_29] : memref<25x16xf32, #tpu.memory_space<vmem>>, vector<1x16xf32>
    %44 = vector.shape_cast %43 : vector<1x16xf32> to vector<1x1x16xf32>
    %45 = vector.broadcast %44 : vector<1x1x16xf32> to vector<8x16x16xf32>
    %46 = arith.mulf %42, %45 : vector<8x16x16xf32>
    %47 = arith.addf %41, %46 : vector<8x16x16xf32>
    %c0_30 = arith.constant 0 : index
    %c3 = arith.constant 3 : index
    %c0_31 = arith.constant 0 : index
    %48 = vector.load %arg8[%c0_30, %c3, %c0_31] : memref<12x20x16xf32, #tpu.memory_space<vmem>>, vector<8x16x16xf32>
    %c3_32 = arith.constant 3 : index
    %c0_33 = arith.constant 0 : index
    %49 = vector.load %arg5[%c3_32, %c0_33] : memref<25x16xf32, #tpu.memory_space<vmem>>, vector<1x16xf32>
    %50 = vector.shape_cast %49 : vector<1x16xf32> to vector<1x1x16xf32>
    %51 = vector.broadcast %50 : vector<1x1x16xf32> to vector<8x16x16xf32>
    %52 = arith.mulf %48, %51 : vector<8x16x16xf32>
    %53 = arith.addf %47, %52 : vector<8x16x16xf32>
    %c0_34 = arith.constant 0 : index
    %c4 = arith.constant 4 : index
    %c0_35 = arith.constant 0 : index
    %54 = vector.load %arg8[%c0_34, %c4, %c0_35] : memref<12x20x16xf32, #tpu.memory_space<vmem>>, vector<8x16x16xf32>
    %c4_36 = arith.constant 4 : index
    %c0_37 = arith.constant 0 : index
    %55 = vector.load %arg5[%c4_36, %c0_37] : memref<25x16xf32, #tpu.memory_space<vmem>>, vector<1x16xf32>
    %56 = vector.shape_cast %55 : vector<1x16xf32> to vector<1x1x16xf32>
    %57 = vector.broadcast %56 : vector<1x1x16xf32> to vector<8x16x16xf32>
    %58 = arith.mulf %54, %57 : vector<8x16x16xf32>
    %59 = arith.addf %53, %58 : vector<8x16x16xf32>
    %c1_38 = arith.constant 1 : index
    %c0_39 = arith.constant 0 : index
    %c0_40 = arith.constant 0 : index
    %60 = vector.load %arg8[%c1_38, %c0_39, %c0_40] : memref<12x20x16xf32, #tpu.memory_space<vmem>>, vector<8x16x16xf32>
    %c5 = arith.constant 5 : index
    %c0_41 = arith.constant 0 : index
    %61 = vector.load %arg5[%c5, %c0_41] : memref<25x16xf32, #tpu.memory_space<vmem>>, vector<1x16xf32>
    %62 = vector.shape_cast %61 : vector<1x16xf32> to vector<1x1x16xf32>
    %63 = vector.broadcast %62 : vector<1x1x16xf32> to vector<8x16x16xf32>
    %64 = arith.mulf %60, %63 : vector<8x16x16xf32>
    %c1_42 = arith.constant 1 : index
    %c1_43 = arith.constant 1 : index
    %c0_44 = arith.constant 0 : index
    %65 = vector.load %arg8[%c1_42, %c1_43, %c0_44] : memref<12x20x16xf32, #tpu.memory_space<vmem>>, vector<8x16x16xf32>
    %c6 = arith.constant 6 : index
    %c0_45 = arith.constant 0 : index
    %66 = vector.load %arg5[%c6, %c0_45] : memref<25x16xf32, #tpu.memory_space<vmem>>, vector<1x16xf32>
    %67 = vector.shape_cast %66 : vector<1x16xf32> to vector<1x1x16xf32>
    %68 = vector.broadcast %67 : vector<1x1x16xf32> to vector<8x16x16xf32>
    %69 = arith.mulf %65, %68 : vector<8x16x16xf32>
    %70 = arith.addf %64, %69 : vector<8x16x16xf32>
    %c1_46 = arith.constant 1 : index
    %c2_47 = arith.constant 2 : index
    %c0_48 = arith.constant 0 : index
    %71 = vector.load %arg8[%c1_46, %c2_47, %c0_48] : memref<12x20x16xf32, #tpu.memory_space<vmem>>, vector<8x16x16xf32>
    %c7 = arith.constant 7 : index
    %c0_49 = arith.constant 0 : index
    %72 = vector.load %arg5[%c7, %c0_49] : memref<25x16xf32, #tpu.memory_space<vmem>>, vector<1x16xf32>
    %73 = vector.shape_cast %72 : vector<1x16xf32> to vector<1x1x16xf32>
    %74 = vector.broadcast %73 : vector<1x1x16xf32> to vector<8x16x16xf32>
    %75 = arith.mulf %71, %74 : vector<8x16x16xf32>
    %76 = arith.addf %70, %75 : vector<8x16x16xf32>
    %c1_50 = arith.constant 1 : index
    %c3_51 = arith.constant 3 : index
    %c0_52 = arith.constant 0 : index
    %77 = vector.load %arg8[%c1_50, %c3_51, %c0_52] : memref<12x20x16xf32, #tpu.memory_space<vmem>>, vector<8x16x16xf32>
    %c8 = arith.constant 8 : index
    %c0_53 = arith.constant 0 : index
    %78 = vector.load %arg5[%c8, %c0_53] : memref<25x16xf32, #tpu.memory_space<vmem>>, vector<1x16xf32>
    %79 = vector.shape_cast %78 : vector<1x16xf32> to vector<1x1x16xf32>
    %80 = vector.broadcast %79 : vector<1x1x16xf32> to vector<8x16x16xf32>
    %81 = arith.mulf %77, %80 : vector<8x16x16xf32>
    %82 = arith.addf %76, %81 : vector<8x16x16xf32>
    %c1_54 = arith.constant 1 : index
    %c4_55 = arith.constant 4 : index
    %c0_56 = arith.constant 0 : index
    %83 = vector.load %arg8[%c1_54, %c4_55, %c0_56] : memref<12x20x16xf32, #tpu.memory_space<vmem>>, vector<8x16x16xf32>
    %c9 = arith.constant 9 : index
    %c0_57 = arith.constant 0 : index
    %84 = vector.load %arg5[%c9, %c0_57] : memref<25x16xf32, #tpu.memory_space<vmem>>, vector<1x16xf32>
    %85 = vector.shape_cast %84 : vector<1x16xf32> to vector<1x1x16xf32>
    %86 = vector.broadcast %85 : vector<1x1x16xf32> to vector<8x16x16xf32>
    %87 = arith.mulf %83, %86 : vector<8x16x16xf32>
    %88 = arith.addf %82, %87 : vector<8x16x16xf32>
    %89 = arith.addf %59, %88 : vector<8x16x16xf32>
    %c2_58 = arith.constant 2 : index
    %c0_59 = arith.constant 0 : index
    %c0_60 = arith.constant 0 : index
    %90 = vector.load %arg8[%c2_58, %c0_59, %c0_60] : memref<12x20x16xf32, #tpu.memory_space<vmem>>, vector<8x16x16xf32>
    %c10 = arith.constant 10 : index
    %c0_61 = arith.constant 0 : index
    %91 = vector.load %arg5[%c10, %c0_61] : memref<25x16xf32, #tpu.memory_space<vmem>>, vector<1x16xf32>
    %92 = vector.shape_cast %91 : vector<1x16xf32> to vector<1x1x16xf32>
    %93 = vector.broadcast %92 : vector<1x1x16xf32> to vector<8x16x16xf32>
    %94 = arith.mulf %90, %93 : vector<8x16x16xf32>
    %c2_62 = arith.constant 2 : index
    %c1_63 = arith.constant 1 : index
    %c0_64 = arith.constant 0 : index
    %95 = vector.load %arg8[%c2_62, %c1_63, %c0_64] : memref<12x20x16xf32, #tpu.memory_space<vmem>>, vector<8x16x16xf32>
    %c11 = arith.constant 11 : index
    %c0_65 = arith.constant 0 : index
    %96 = vector.load %arg5[%c11, %c0_65] : memref<25x16xf32, #tpu.memory_space<vmem>>, vector<1x16xf32>
    %97 = vector.shape_cast %96 : vector<1x16xf32> to vector<1x1x16xf32>
    %98 = vector.broadcast %97 : vector<1x1x16xf32> to vector<8x16x16xf32>
    %99 = arith.mulf %95, %98 : vector<8x16x16xf32>
    %100 = arith.addf %94, %99 : vector<8x16x16xf32>
    %c2_66 = arith.constant 2 : index
    %c2_67 = arith.constant 2 : index
    %c0_68 = arith.constant 0 : index
    %101 = vector.load %arg8[%c2_66, %c2_67, %c0_68] : memref<12x20x16xf32, #tpu.memory_space<vmem>>, vector<8x16x16xf32>
    %c12 = arith.constant 12 : index
    %c0_69 = arith.constant 0 : index
    %102 = vector.load %arg5[%c12, %c0_69] : memref<25x16xf32, #tpu.memory_space<vmem>>, vector<1x16xf32>
    %103 = vector.shape_cast %102 : vector<1x16xf32> to vector<1x1x16xf32>
    %104 = vector.broadcast %103 : vector<1x1x16xf32> to vector<8x16x16xf32>
    %105 = arith.mulf %101, %104 : vector<8x16x16xf32>
    %106 = arith.addf %100, %105 : vector<8x16x16xf32>
    %c2_70 = arith.constant 2 : index
    %c3_71 = arith.constant 3 : index
    %c0_72 = arith.constant 0 : index
    %107 = vector.load %arg8[%c2_70, %c3_71, %c0_72] : memref<12x20x16xf32, #tpu.memory_space<vmem>>, vector<8x16x16xf32>
    %c13 = arith.constant 13 : index
    %c0_73 = arith.constant 0 : index
    %108 = vector.load %arg5[%c13, %c0_73] : memref<25x16xf32, #tpu.memory_space<vmem>>, vector<1x16xf32>
    %109 = vector.shape_cast %108 : vector<1x16xf32> to vector<1x1x16xf32>
    %110 = vector.broadcast %109 : vector<1x1x16xf32> to vector<8x16x16xf32>
    %111 = arith.mulf %107, %110 : vector<8x16x16xf32>
    %112 = arith.addf %106, %111 : vector<8x16x16xf32>
    %c2_74 = arith.constant 2 : index
    %c4_75 = arith.constant 4 : index
    %c0_76 = arith.constant 0 : index
    %113 = vector.load %arg8[%c2_74, %c4_75, %c0_76] : memref<12x20x16xf32, #tpu.memory_space<vmem>>, vector<8x16x16xf32>
    %c14 = arith.constant 14 : index
    %c0_77 = arith.constant 0 : index
    %114 = vector.load %arg5[%c14, %c0_77] : memref<25x16xf32, #tpu.memory_space<vmem>>, vector<1x16xf32>
    %115 = vector.shape_cast %114 : vector<1x16xf32> to vector<1x1x16xf32>
    %116 = vector.broadcast %115 : vector<1x1x16xf32> to vector<8x16x16xf32>
    %117 = arith.mulf %113, %116 : vector<8x16x16xf32>
    %118 = arith.addf %112, %117 : vector<8x16x16xf32>
    %119 = arith.addf %89, %118 : vector<8x16x16xf32>
    %c3_78 = arith.constant 3 : index
    %c0_79 = arith.constant 0 : index
    %c0_80 = arith.constant 0 : index
    %120 = vector.load %arg8[%c3_78, %c0_79, %c0_80] : memref<12x20x16xf32, #tpu.memory_space<vmem>>, vector<8x16x16xf32>
    %c15 = arith.constant 15 : index
    %c0_81 = arith.constant 0 : index
    %121 = vector.load %arg5[%c15, %c0_81] : memref<25x16xf32, #tpu.memory_space<vmem>>, vector<1x16xf32>
    %122 = vector.shape_cast %121 : vector<1x16xf32> to vector<1x1x16xf32>
    %123 = vector.broadcast %122 : vector<1x1x16xf32> to vector<8x16x16xf32>
    %124 = arith.mulf %120, %123 : vector<8x16x16xf32>
    %c3_82 = arith.constant 3 : index
    %c1_83 = arith.constant 1 : index
    %c0_84 = arith.constant 0 : index
    %125 = vector.load %arg8[%c3_82, %c1_83, %c0_84] : memref<12x20x16xf32, #tpu.memory_space<vmem>>, vector<8x16x16xf32>
    %c16 = arith.constant 16 : index
    %c0_85 = arith.constant 0 : index
    %126 = vector.load %arg5[%c16, %c0_85] : memref<25x16xf32, #tpu.memory_space<vmem>>, vector<1x16xf32>
    %127 = vector.shape_cast %126 : vector<1x16xf32> to vector<1x1x16xf32>
    %128 = vector.broadcast %127 : vector<1x1x16xf32> to vector<8x16x16xf32>
    %129 = arith.mulf %125, %128 : vector<8x16x16xf32>
    %130 = arith.addf %124, %129 : vector<8x16x16xf32>
    %c3_86 = arith.constant 3 : index
    %c2_87 = arith.constant 2 : index
    %c0_88 = arith.constant 0 : index
    %131 = vector.load %arg8[%c3_86, %c2_87, %c0_88] : memref<12x20x16xf32, #tpu.memory_space<vmem>>, vector<8x16x16xf32>
    %c17 = arith.constant 17 : index
    %c0_89 = arith.constant 0 : index
    %132 = vector.load %arg5[%c17, %c0_89] : memref<25x16xf32, #tpu.memory_space<vmem>>, vector<1x16xf32>
    %133 = vector.shape_cast %132 : vector<1x16xf32> to vector<1x1x16xf32>
    %134 = vector.broadcast %133 : vector<1x1x16xf32> to vector<8x16x16xf32>
    %135 = arith.mulf %131, %134 : vector<8x16x16xf32>
    %136 = arith.addf %130, %135 : vector<8x16x16xf32>
    %c3_90 = arith.constant 3 : index
    %c3_91 = arith.constant 3 : index
    %c0_92 = arith.constant 0 : index
    %137 = vector.load %arg8[%c3_90, %c3_91, %c0_92] : memref<12x20x16xf32, #tpu.memory_space<vmem>>, vector<8x16x16xf32>
    %c18 = arith.constant 18 : index
    %c0_93 = arith.constant 0 : index
    %138 = vector.load %arg5[%c18, %c0_93] : memref<25x16xf32, #tpu.memory_space<vmem>>, vector<1x16xf32>
    %139 = vector.shape_cast %138 : vector<1x16xf32> to vector<1x1x16xf32>
    %140 = vector.broadcast %139 : vector<1x1x16xf32> to vector<8x16x16xf32>
    %141 = arith.mulf %137, %140 : vector<8x16x16xf32>
    %142 = arith.addf %136, %141 : vector<8x16x16xf32>
    %c3_94 = arith.constant 3 : index
    %c4_95 = arith.constant 4 : index
    %c0_96 = arith.constant 0 : index
    %143 = vector.load %arg8[%c3_94, %c4_95, %c0_96] : memref<12x20x16xf32, #tpu.memory_space<vmem>>, vector<8x16x16xf32>
    %c19 = arith.constant 19 : index
    %c0_97 = arith.constant 0 : index
    %144 = vector.load %arg5[%c19, %c0_97] : memref<25x16xf32, #tpu.memory_space<vmem>>, vector<1x16xf32>
    %145 = vector.shape_cast %144 : vector<1x16xf32> to vector<1x1x16xf32>
    %146 = vector.broadcast %145 : vector<1x1x16xf32> to vector<8x16x16xf32>
    %147 = arith.mulf %143, %146 : vector<8x16x16xf32>
    %148 = arith.addf %142, %147 : vector<8x16x16xf32>
    %149 = arith.addf %119, %148 : vector<8x16x16xf32>
    %c4_98 = arith.constant 4 : index
    %c0_99 = arith.constant 0 : index
    %c0_100 = arith.constant 0 : index
    %150 = vector.load %arg8[%c4_98, %c0_99, %c0_100] : memref<12x20x16xf32, #tpu.memory_space<vmem>>, vector<8x16x16xf32>
    %c20 = arith.constant 20 : index
    %c0_101 = arith.constant 0 : index
    %151 = vector.load %arg5[%c20, %c0_101] : memref<25x16xf32, #tpu.memory_space<vmem>>, vector<1x16xf32>
    %152 = vector.shape_cast %151 : vector<1x16xf32> to vector<1x1x16xf32>
    %153 = vector.broadcast %152 : vector<1x1x16xf32> to vector<8x16x16xf32>
    %154 = arith.mulf %150, %153 : vector<8x16x16xf32>
    %c4_102 = arith.constant 4 : index
    %c1_103 = arith.constant 1 : index
    %c0_104 = arith.constant 0 : index
    %155 = vector.load %arg8[%c4_102, %c1_103, %c0_104] : memref<12x20x16xf32, #tpu.memory_space<vmem>>, vector<8x16x16xf32>
    %c21 = arith.constant 21 : index
    %c0_105 = arith.constant 0 : index
    %156 = vector.load %arg5[%c21, %c0_105] : memref<25x16xf32, #tpu.memory_space<vmem>>, vector<1x16xf32>
    %157 = vector.shape_cast %156 : vector<1x16xf32> to vector<1x1x16xf32>
    %158 = vector.broadcast %157 : vector<1x1x16xf32> to vector<8x16x16xf32>
    %159 = arith.mulf %155, %158 : vector<8x16x16xf32>
    %160 = arith.addf %154, %159 : vector<8x16x16xf32>
    %c4_106 = arith.constant 4 : index
    %c2_107 = arith.constant 2 : index
    %c0_108 = arith.constant 0 : index
    %161 = vector.load %arg8[%c4_106, %c2_107, %c0_108] : memref<12x20x16xf32, #tpu.memory_space<vmem>>, vector<8x16x16xf32>
    %c22 = arith.constant 22 : index
    %c0_109 = arith.constant 0 : index
    %162 = vector.load %arg5[%c22, %c0_109] : memref<25x16xf32, #tpu.memory_space<vmem>>, vector<1x16xf32>
    %163 = vector.shape_cast %162 : vector<1x16xf32> to vector<1x1x16xf32>
    %164 = vector.broadcast %163 : vector<1x1x16xf32> to vector<8x16x16xf32>
    %165 = arith.mulf %161, %164 : vector<8x16x16xf32>
    %166 = arith.addf %160, %165 : vector<8x16x16xf32>
    %c4_110 = arith.constant 4 : index
    %c3_111 = arith.constant 3 : index
    %c0_112 = arith.constant 0 : index
    %167 = vector.load %arg8[%c4_110, %c3_111, %c0_112] : memref<12x20x16xf32, #tpu.memory_space<vmem>>, vector<8x16x16xf32>
    %c23 = arith.constant 23 : index
    %c0_113 = arith.constant 0 : index
    %168 = vector.load %arg5[%c23, %c0_113] : memref<25x16xf32, #tpu.memory_space<vmem>>, vector<1x16xf32>
    %169 = vector.shape_cast %168 : vector<1x16xf32> to vector<1x1x16xf32>
    %170 = vector.broadcast %169 : vector<1x1x16xf32> to vector<8x16x16xf32>
    %171 = arith.mulf %167, %170 : vector<8x16x16xf32>
    %172 = arith.addf %166, %171 : vector<8x16x16xf32>
    %c4_114 = arith.constant 4 : index
    %c4_115 = arith.constant 4 : index
    %c0_116 = arith.constant 0 : index
    %173 = vector.load %arg8[%c4_114, %c4_115, %c0_116] : memref<12x20x16xf32, #tpu.memory_space<vmem>>, vector<8x16x16xf32>
    %c24 = arith.constant 24 : index
    %c0_117 = arith.constant 0 : index
    %174 = vector.load %arg5[%c24, %c0_117] : memref<25x16xf32, #tpu.memory_space<vmem>>, vector<1x16xf32>
    %175 = vector.shape_cast %174 : vector<1x16xf32> to vector<1x1x16xf32>
    %176 = vector.broadcast %175 : vector<1x1x16xf32> to vector<8x16x16xf32>
    %177 = arith.mulf %173, %176 : vector<8x16x16xf32>
    %178 = arith.addf %172, %177 : vector<8x16x16xf32>
    %179 = arith.addf %149, %178 : vector<8x16x16xf32>
    %c0_118 = arith.constant 0 : index
    %c0_119 = arith.constant 0 : index
    %180 = vector.load %arg6[%c0_118, %c0_119] : memref<1x16xf32, #tpu.memory_space<vmem>>, vector<1x16xf32>
    %181 = vector.shape_cast %180 : vector<1x16xf32> to vector<1x1x16xf32>
    %182 = vector.broadcast %181 : vector<1x1x16xf32> to vector<8x16x16xf32>
    %183 = arith.addf %179, %182 : vector<8x16x16xf32>
    %184 = arith.negf %183 : vector<8x16x16xf32>
    %185 = math.exp %184 : vector<8x16x16xf32>
    %cst_120 = arith.constant 1.000000e+00 : f32
    %186 = vector.broadcast %cst_120 : f32 to vector<8x16x16xf32>
    %187 = arith.addf %186, %185 : vector<8x16x16xf32>
    %188 = arith.divf %186, %187 : vector<8x16x16xf32>
    %189 = arith.mulf %183, %188 : vector<8x16x16xf32>
    %c0_121 = arith.constant 0 : index
    %c0_122 = arith.constant 0 : index
    %c0_123 = arith.constant 0 : index
    %c0_124 = arith.constant 0 : index
    %190 = vector.load %arg7[%c0_121, %c0_122, %c0_123, %c0_124] : memref<1x8x16x32xf32, #tpu.memory_space<vmem>>, vector<1x8x16x16xf32>
    %191 = vector.shape_cast %190 : vector<1x8x16x16xf32> to vector<8x16x16xf32>
    %192 = vector.shape_cast %21 : vector<8x16x16xf32> to vector<1x8x16x16xf32>
    tpu.vector_store %arg7[%c0_121, %c0_122, %c0_123, %c0_124], %192 {strides = array<i32>} : memref<1x8x16x32xf32, #tpu.memory_space<vmem>>, vector<1x8x16x16xf32>,
    %c0_125 = arith.constant 0 : index
    %c0_126 = arith.constant 0 : index
    %c0_127 = arith.constant 0 : index
    %c16_128 = arith.constant 16 : index
    %193 = vector.load %arg7[%c0_125, %c0_126, %c0_127, %c16_128] : memref<1x8x16x32xf32, #tpu.memory_space<vmem>>, vector<1x8x16x16xf32>
    %194 = vector.shape_cast %193 : vector<1x8x16x16xf32> to vector<8x16x16xf32>
    %195 = vector.shape_cast %189 : vector<8x16x16xf32> to vector<1x8x16x16xf32>
    tpu.vector_store %arg7[%c0_125, %c0_126, %c0_127, %c16_128], %195 {strides = array<i32>} : memref<1x8x16x32xf32, #tpu.memory_space<vmem>>, vector<1x8x16x16xf32>,
    return
  }
  func.func @transform_0(%arg0: i32, %arg1: i32) -> (i32, i32, i32, i32) {
    %c0_i32 = arith.constant 0 : i32
    %c0_i32_0 = arith.constant 0 : i32
    %c0_i32_1 = arith.constant 0 : i32
    %c0_i32_2 = arith.constant 0 : i32
    return %arg0, %c0_i32, %c0_i32_0, %c0_i32_1 : i32, i32, i32, i32
  }
  func.func @transform_1(%arg0: i32, %arg1: i32) -> (i32, i32) {
    %c0_i32 = arith.constant 0 : i32
    %c0_i32_0 = arith.constant 0 : i32
    %c0_i32_1 = arith.constant 0 : i32
    return %c0_i32, %c0_i32_0 : i32, i32
  }
  func.func @transform_2(%arg0: i32, %arg1: i32) -> (i32, i32) {
    %c0_i32 = arith.constant 0 : i32
    %c0_i32_0 = arith.constant 0 : i32
    %c0_i32_1 = arith.constant 0 : i32
    return %c0_i32, %c0_i32_0 : i32, i32
  }
  func.func @transform_3(%arg0: i32, %arg1: i32) -> (i32, i32) {
    %c0_i32 = arith.constant 0 : i32
    %c0_i32_0 = arith.constant 0 : i32
    %c0_i32_1 = arith.constant 0 : i32
    return %c0_i32, %c0_i32_0 : i32, i32
  }
  func.func @transform_4(%arg0: i32, %arg1: i32) -> (i32, i32) {
    %c0_i32 = arith.constant 0 : i32
    %c0_i32_0 = arith.constant 0 : i32
    %c0_i32_1 = arith.constant 0 : i32
    return %c0_i32, %c0_i32_0 : i32, i32
  }
  func.func @transform_5(%arg0: i32, %arg1: i32) -> (i32, i32, i32, i32) {
    %c0_i32 = arith.constant 0 : i32
    %c0_i32_0 = arith.constant 0 : i32
    %c0_i32_1 = arith.constant 0 : i32
    return %arg0, %arg1, %c0_i32, %c0_i32_0 : i32, i32, i32, i32
  }
}

module attributes {stable_mosaic.version = 11 : i64} {
  func.func @_dw_s2_fused_kernel(%arg0: i32, %arg1: i32, %arg2: memref<1x16x16x32xf32, #tpu.memory_space<vmem>>, %arg3: memref<9x32xf32, #tpu.memory_space<vmem>>, %arg4: memref<1x32xf32, #tpu.memory_space<vmem>>, %arg5: memref<32x64xf32, #tpu.memory_space<vmem>>, %arg6: memref<1x64xf32, #tpu.memory_space<vmem>>, %arg7: memref<1x8x8x64xf32, #tpu.memory_space<vmem>>, %arg8: memref<18x18x32xf32, #tpu.memory_space<vmem>>) attributes {dimension_semantics = [#tpu.dimension_semantics<parallel>, #tpu.dimension_semantics<parallel>], iteration_bounds = array<i64: 2, 1>, scalar_prefetch = 0 : i64, scratch_operands = 1 : i64, tpu.core_type = #tpu.core_type<tc>, window_params = [{transform_indices = @transform_0, window_bounds = array<i64: 1, 16, 16, 32>}, {pipeline_mode = #tpu.pipeline_mode<synchronous>, transform_indices = @transform_1, window_bounds = array<i64: 9, 32>}, {pipeline_mode = #tpu.pipeline_mode<synchronous>, transform_indices = @transform_2, window_bounds = array<i64: 1, 32>}, {pipeline_mode = #tpu.pipeline_mode<synchronous>, transform_indices = @transform_3, window_bounds = array<i64: 32, 64>}, {pipeline_mode = #tpu.pipeline_mode<synchronous>, transform_indices = @transform_4, window_bounds = array<i64: 1, 64>}, {transform_indices = @transform_5, window_bounds = array<i64: 1, 8, 8, 64>}]} {
    %cst = arith.constant 0.000000e+00 : f32
    %0 = vector.broadcast %cst : f32 to vector<18x18x32xf32>
    %c0 = arith.constant 0 : index
    %c0_0 = arith.constant 0 : index
    %c0_1 = arith.constant 0 : index
    %1 = vector.load %arg8[%c0, %c0_0, %c0_1] : memref<18x18x32xf32, #tpu.memory_space<vmem>>, vector<18x18x32xf32>
    tpu.vector_store %arg8[%c0, %c0_0, %c0_1], %0 {strides = array<i32>} : memref<18x18x32xf32, #tpu.memory_space<vmem>>, vector<18x18x32xf32>,
    %c2_i32 = arith.constant 2 : i32
    %2 = arith.muli %c2_i32, %arg1 : i32
    %c8_i32 = arith.constant 8 : i32
    %3 = arith.muli %2, %c8_i32 : i32
    %4 = tpu.assume_multiple %3, 16 : i32
    %c0_2 = arith.constant 0 : index
    %5 = arith.index_cast %4 : i32 to index
    %c0_3 = arith.constant 0 : index
    %c0_4 = arith.constant 0 : index
    %6 = vector.load %arg2[%c0_2, %5, %c0_3, %c0_4] : memref<1x16x16x32xf32, #tpu.memory_space<vmem>>, vector<1x16x16x32xf32>
    %7 = vector.shape_cast %6 : vector<1x16x16x32xf32> to vector<16x16x32xf32>
    %c1 = arith.constant 1 : index
    %c1_5 = arith.constant 1 : index
    %c0_6 = arith.constant 0 : index
    %8 = vector.load %arg8[%c1, %c1_5, %c0_6] : memref<18x18x32xf32, #tpu.memory_space<vmem>>, vector<16x16x32xf32>
    tpu.vector_store %arg8[%c1, %c1_5, %c0_6], %7 {strides = array<i32>} : memref<18x18x32xf32, #tpu.memory_space<vmem>>, vector<16x16x32xf32>,
    %c0_i32 = arith.constant 0 : i32
    %9 = arith.cmpi sgt, %arg1, %c0_i32 : i32
    %10 = arith.extui %9 : i1 to i32
    %c0_i32_7 = arith.constant 0 : i32
    %11 = arith.cmpi ne, %10, %c0_i32_7 : i32
    scf.if %11 {
      %c1_i32 = arith.constant 1 : i32
      %81 = arith.subi %4, %c1_i32 : i32
      %c0_57 = arith.constant 0 : index
      %82 = arith.index_cast %81 : i32 to index
      %c0_58 = arith.constant 0 : index
      %c0_59 = arith.constant 0 : index
      %83 = vector.load %arg2[%c0_57, %82, %c0_58, %c0_59] : memref<1x16x16x32xf32, #tpu.memory_space<vmem>>, vector<1x1x16x32xf32>
      %84 = vector.shape_cast %83 : vector<1x1x16x32xf32> to vector<1x16x32xf32>
      %c0_60 = arith.constant 0 : index
      %c1_61 = arith.constant 1 : index
      %c0_62 = arith.constant 0 : index
      %85 = vector.load %arg8[%c0_60, %c1_61, %c0_62] : memref<18x18x32xf32, #tpu.memory_space<vmem>>, vector<1x16x32xf32>
      tpu.vector_store %arg8[%c0_60, %c1_61, %c0_62], %84 {strides = array<i32>} : memref<18x18x32xf32, #tpu.memory_space<vmem>>, vector<1x16x32xf32>,
    } else {
    }
    %c0_8 = arith.constant 0 : index
    %c0_9 = arith.constant 0 : index
    %c0_10 = arith.constant 0 : index
    %12 = tpu.strided_load %arg8[%c0_8, %c0_9, %c0_10] {strides = array<i32: 2, 2, 1>} : memref<18x18x32xf32, #tpu.memory_space<vmem>>, vector<8x8x32xf32>
    %c0_11 = arith.constant 0 : index
    %c0_12 = arith.constant 0 : index
    %13 = vector.load %arg3[%c0_11, %c0_12] : memref<9x32xf32, #tpu.memory_space<vmem>>, vector<1x32xf32>
    %14 = vector.shape_cast %13 : vector<1x32xf32> to vector<1x1x32xf32>
    %15 = vector.broadcast %14 : vector<1x1x32xf32> to vector<8x8x32xf32>
    %16 = arith.mulf %12, %15 : vector<8x8x32xf32>
    %c0_13 = arith.constant 0 : index
    %c1_14 = arith.constant 1 : index
    %c0_15 = arith.constant 0 : index
    %17 = tpu.strided_load %arg8[%c0_13, %c1_14, %c0_15] {strides = array<i32: 2, 2, 1>} : memref<18x18x32xf32, #tpu.memory_space<vmem>>, vector<8x8x32xf32>
    %c1_16 = arith.constant 1 : index
    %c0_17 = arith.constant 0 : index
    %18 = vector.load %arg3[%c1_16, %c0_17] : memref<9x32xf32, #tpu.memory_space<vmem>>, vector<1x32xf32>
    %19 = vector.shape_cast %18 : vector<1x32xf32> to vector<1x1x32xf32>
    %20 = vector.broadcast %19 : vector<1x1x32xf32> to vector<8x8x32xf32>
    %21 = arith.mulf %17, %20 : vector<8x8x32xf32>
    %22 = arith.addf %16, %21 : vector<8x8x32xf32>
    %c0_18 = arith.constant 0 : index
    %c2 = arith.constant 2 : index
    %c0_19 = arith.constant 0 : index
    %23 = tpu.strided_load %arg8[%c0_18, %c2, %c0_19] {strides = array<i32: 2, 2, 1>} : memref<18x18x32xf32, #tpu.memory_space<vmem>>, vector<8x8x32xf32>
    %c2_20 = arith.constant 2 : index
    %c0_21 = arith.constant 0 : index
    %24 = vector.load %arg3[%c2_20, %c0_21] : memref<9x32xf32, #tpu.memory_space<vmem>>, vector<1x32xf32>
    %25 = vector.shape_cast %24 : vector<1x32xf32> to vector<1x1x32xf32>
    %26 = vector.broadcast %25 : vector<1x1x32xf32> to vector<8x8x32xf32>
    %27 = arith.mulf %23, %26 : vector<8x8x32xf32>
    %28 = arith.addf %22, %27 : vector<8x8x32xf32>
    %c1_22 = arith.constant 1 : index
    %c0_23 = arith.constant 0 : index
    %c0_24 = arith.constant 0 : index
    %29 = tpu.strided_load %arg8[%c1_22, %c0_23, %c0_24] {strides = array<i32: 2, 2, 1>} : memref<18x18x32xf32, #tpu.memory_space<vmem>>, vector<8x8x32xf32>
    %c3 = arith.constant 3 : index
    %c0_25 = arith.constant 0 : index
    %30 = vector.load %arg3[%c3, %c0_25] : memref<9x32xf32, #tpu.memory_space<vmem>>, vector<1x32xf32>
    %31 = vector.shape_cast %30 : vector<1x32xf32> to vector<1x1x32xf32>
    %32 = vector.broadcast %31 : vector<1x1x32xf32> to vector<8x8x32xf32>
    %33 = arith.mulf %29, %32 : vector<8x8x32xf32>
    %c1_26 = arith.constant 1 : index
    %c1_27 = arith.constant 1 : index
    %c0_28 = arith.constant 0 : index
    %34 = tpu.strided_load %arg8[%c1_26, %c1_27, %c0_28] {strides = array<i32: 2, 2, 1>} : memref<18x18x32xf32, #tpu.memory_space<vmem>>, vector<8x8x32xf32>
    %c4 = arith.constant 4 : index
    %c0_29 = arith.constant 0 : index
    %35 = vector.load %arg3[%c4, %c0_29] : memref<9x32xf32, #tpu.memory_space<vmem>>, vector<1x32xf32>
    %36 = vector.shape_cast %35 : vector<1x32xf32> to vector<1x1x32xf32>
    %37 = vector.broadcast %36 : vector<1x1x32xf32> to vector<8x8x32xf32>
    %38 = arith.mulf %34, %37 : vector<8x8x32xf32>
    %39 = arith.addf %33, %38 : vector<8x8x32xf32>
    %c1_30 = arith.constant 1 : index
    %c2_31 = arith.constant 2 : index
    %c0_32 = arith.constant 0 : index
    %40 = tpu.strided_load %arg8[%c1_30, %c2_31, %c0_32] {strides = array<i32: 2, 2, 1>} : memref<18x18x32xf32, #tpu.memory_space<vmem>>, vector<8x8x32xf32>
    %c5 = arith.constant 5 : index
    %c0_33 = arith.constant 0 : index
    %41 = vector.load %arg3[%c5, %c0_33] : memref<9x32xf32, #tpu.memory_space<vmem>>, vector<1x32xf32>
    %42 = vector.shape_cast %41 : vector<1x32xf32> to vector<1x1x32xf32>
    %43 = vector.broadcast %42 : vector<1x1x32xf32> to vector<8x8x32xf32>
    %44 = arith.mulf %40, %43 : vector<8x8x32xf32>
    %45 = arith.addf %39, %44 : vector<8x8x32xf32>
    %46 = arith.addf %28, %45 : vector<8x8x32xf32>
    %c2_34 = arith.constant 2 : index
    %c0_35 = arith.constant 0 : index
    %c0_36 = arith.constant 0 : index
    %47 = tpu.strided_load %arg8[%c2_34, %c0_35, %c0_36] {strides = array<i32: 2, 2, 1>} : memref<18x18x32xf32, #tpu.memory_space<vmem>>, vector<8x8x32xf32>
    %c6 = arith.constant 6 : index
    %c0_37 = arith.constant 0 : index
    %48 = vector.load %arg3[%c6, %c0_37] : memref<9x32xf32, #tpu.memory_space<vmem>>, vector<1x32xf32>
    %49 = vector.shape_cast %48 : vector<1x32xf32> to vector<1x1x32xf32>
    %50 = vector.broadcast %49 : vector<1x1x32xf32> to vector<8x8x32xf32>
    %51 = arith.mulf %47, %50 : vector<8x8x32xf32>
    %c2_38 = arith.constant 2 : index
    %c1_39 = arith.constant 1 : index
    %c0_40 = arith.constant 0 : index
    %52 = tpu.strided_load %arg8[%c2_38, %c1_39, %c0_40] {strides = array<i32: 2, 2, 1>} : memref<18x18x32xf32, #tpu.memory_space<vmem>>, vector<8x8x32xf32>
    %c7 = arith.constant 7 : index
    %c0_41 = arith.constant 0 : index
    %53 = vector.load %arg3[%c7, %c0_41] : memref<9x32xf32, #tpu.memory_space<vmem>>, vector<1x32xf32>
    %54 = vector.shape_cast %53 : vector<1x32xf32> to vector<1x1x32xf32>
    %55 = vector.broadcast %54 : vector<1x1x32xf32> to vector<8x8x32xf32>
    %56 = arith.mulf %52, %55 : vector<8x8x32xf32>
    %57 = arith.addf %51, %56 : vector<8x8x32xf32>
    %c2_42 = arith.constant 2 : index
    %c2_43 = arith.constant 2 : index
    %c0_44 = arith.constant 0 : index
    %58 = tpu.strided_load %arg8[%c2_42, %c2_43, %c0_44] {strides = array<i32: 2, 2, 1>} : memref<18x18x32xf32, #tpu.memory_space<vmem>>, vector<8x8x32xf32>
    %c8 = arith.constant 8 : index
    %c0_45 = arith.constant 0 : index
    %59 = vector.load %arg3[%c8, %c0_45] : memref<9x32xf32, #tpu.memory_space<vmem>>, vector<1x32xf32>
    %60 = vector.shape_cast %59 : vector<1x32xf32> to vector<1x1x32xf32>
    %61 = vector.broadcast %60 : vector<1x1x32xf32> to vector<8x8x32xf32>
    %62 = arith.mulf %58, %61 : vector<8x8x32xf32>
    %63 = arith.addf %57, %62 : vector<8x8x32xf32>
    %64 = arith.addf %46, %63 : vector<8x8x32xf32>
    %c0_46 = arith.constant 0 : index
    %c0_47 = arith.constant 0 : index
    %65 = vector.load %arg4[%c0_46, %c0_47] : memref<1x32xf32, #tpu.memory_space<vmem>>, vector<1x32xf32>
    %66 = vector.shape_cast %65 : vector<1x32xf32> to vector<1x1x32xf32>
    %67 = vector.broadcast %66 : vector<1x1x32xf32> to vector<8x8x32xf32>
    %68 = arith.addf %64, %67 : vector<8x8x32xf32>
    %69 = vector.shape_cast %68 : vector<8x8x32xf32> to vector<64x32xf32>
    %70 = arith.truncf %69 : vector<64x32xf32> to vector<64x32xbf16>
    %c0_48 = arith.constant 0 : index
    %c0_49 = arith.constant 0 : index
    %71 = vector.load %arg5[%c0_48, %c0_49] : memref<32x64xf32, #tpu.memory_space<vmem>>, vector<32x64xf32>
    %72 = arith.truncf %71 : vector<32x64xf32> to vector<32x64xbf16>
    %cst_50 = arith.constant dense<0.000000e+00> : vector<64x64xf32>
    %73 = tpu.matmul %70, %72, %cst_50 {dimension_numbers = #tpu.dot_dimension_numbers<[1], [0], [0], [1], [0, 0, 1, 1], [], []>} : vector<64x32xbf16>, vector<32x64xbf16>, vector<64x64xf32> -> vector<64x64xf32>
    %c0_51 = arith.constant 0 : index
    %c0_52 = arith.constant 0 : index
    %74 = vector.load %arg6[%c0_51, %c0_52] : memref<1x64xf32, #tpu.memory_space<vmem>>, vector<1x64xf32>
    %75 = vector.broadcast %74 : vector<1x64xf32> to vector<64x64xf32>
    %76 = arith.addf %73, %75 : vector<64x64xf32>
    %77 = vector.shape_cast %76 : vector<64x64xf32> to vector<8x8x64xf32>
    %c0_53 = arith.constant 0 : index
    %c0_54 = arith.constant 0 : index
    %c0_55 = arith.constant 0 : index
    %c0_56 = arith.constant 0 : index
    %78 = vector.load %arg7[%c0_53, %c0_54, %c0_55, %c0_56] : memref<1x8x8x64xf32, #tpu.memory_space<vmem>>, vector<1x8x8x64xf32>
    %79 = vector.shape_cast %78 : vector<1x8x8x64xf32> to vector<8x8x64xf32>
    %80 = vector.shape_cast %77 : vector<8x8x64xf32> to vector<1x8x8x64xf32>
    tpu.vector_store %arg7[%c0_53, %c0_54, %c0_55, %c0_56], %80 {strides = array<i32>} : memref<1x8x8x64xf32, #tpu.memory_space<vmem>>, vector<1x8x8x64xf32>,
    return
  }
  func.func @transform_0(%arg0: i32, %arg1: i32) -> (i32, i32, i32, i32) {
    %c0_i32 = arith.constant 0 : i32
    %c0_i32_0 = arith.constant 0 : i32
    %c0_i32_1 = arith.constant 0 : i32
    %c0_i32_2 = arith.constant 0 : i32
    return %arg0, %c0_i32, %c0_i32_0, %c0_i32_1 : i32, i32, i32, i32
  }
  func.func @transform_1(%arg0: i32, %arg1: i32) -> (i32, i32) {
    %c0_i32 = arith.constant 0 : i32
    %c0_i32_0 = arith.constant 0 : i32
    %c0_i32_1 = arith.constant 0 : i32
    return %c0_i32, %c0_i32_0 : i32, i32
  }
  func.func @transform_2(%arg0: i32, %arg1: i32) -> (i32, i32) {
    %c0_i32 = arith.constant 0 : i32
    %c0_i32_0 = arith.constant 0 : i32
    %c0_i32_1 = arith.constant 0 : i32
    return %c0_i32, %c0_i32_0 : i32, i32
  }
  func.func @transform_3(%arg0: i32, %arg1: i32) -> (i32, i32) {
    %c0_i32 = arith.constant 0 : i32
    %c0_i32_0 = arith.constant 0 : i32
    %c0_i32_1 = arith.constant 0 : i32
    return %c0_i32, %c0_i32_0 : i32, i32
  }
  func.func @transform_4(%arg0: i32, %arg1: i32) -> (i32, i32) {
    %c0_i32 = arith.constant 0 : i32
    %c0_i32_0 = arith.constant 0 : i32
    %c0_i32_1 = arith.constant 0 : i32
    return %c0_i32, %c0_i32_0 : i32, i32
  }
  func.func @transform_5(%arg0: i32, %arg1: i32) -> (i32, i32, i32, i32) {
    %c0_i32 = arith.constant 0 : i32
    %c0_i32_0 = arith.constant 0 : i32
    %c0_i32_1 = arith.constant 0 : i32
    return %arg0, %arg1, %c0_i32, %c0_i32_0 : i32, i32, i32, i32
  }
}

module attributes {stable_mosaic.version = 11 : i64} {
  func.func @_dw_s2_fused_kernel(%arg0: i32, %arg1: i32, %arg2: memref<1x16x16x32xf32, #tpu.memory_space<vmem>>, %arg3: memref<9x32xf32, #tpu.memory_space<vmem>>, %arg4: memref<1x32xf32, #tpu.memory_space<vmem>>, %arg5: memref<1x8x8x32xf32, #tpu.memory_space<vmem>>, %arg6: memref<18x18x32xf32, #tpu.memory_space<vmem>>) attributes {dimension_semantics = [#tpu.dimension_semantics<parallel>, #tpu.dimension_semantics<parallel>], iteration_bounds = array<i64: 2, 1>, scalar_prefetch = 0 : i64, scratch_operands = 1 : i64, tpu.core_type = #tpu.core_type<tc>, window_params = [{transform_indices = @transform_0, window_bounds = array<i64: 1, 16, 16, 32>}, {pipeline_mode = #tpu.pipeline_mode<synchronous>, transform_indices = @transform_1, window_bounds = array<i64: 9, 32>}, {pipeline_mode = #tpu.pipeline_mode<synchronous>, transform_indices = @transform_2, window_bounds = array<i64: 1, 32>}, {transform_indices = @transform_3, window_bounds = array<i64: 1, 8, 8, 32>}]} {
    %cst = arith.constant 0.000000e+00 : f32
    %0 = vector.broadcast %cst : f32 to vector<18x18x32xf32>
    %c0 = arith.constant 0 : index
    %c0_0 = arith.constant 0 : index
    %c0_1 = arith.constant 0 : index
    %1 = vector.load %arg6[%c0, %c0_0, %c0_1] : memref<18x18x32xf32, #tpu.memory_space<vmem>>, vector<18x18x32xf32>
    tpu.vector_store %arg6[%c0, %c0_0, %c0_1], %0 {strides = array<i32>} : memref<18x18x32xf32, #tpu.memory_space<vmem>>, vector<18x18x32xf32>,
    %c2_i32 = arith.constant 2 : i32
    %2 = arith.muli %c2_i32, %arg1 : i32
    %c8_i32 = arith.constant 8 : i32
    %3 = arith.muli %2, %c8_i32 : i32
    %4 = tpu.assume_multiple %3, 16 : i32
    %c0_2 = arith.constant 0 : index
    %5 = arith.index_cast %4 : i32 to index
    %c0_3 = arith.constant 0 : index
    %c0_4 = arith.constant 0 : index
    %6 = vector.load %arg2[%c0_2, %5, %c0_3, %c0_4] : memref<1x16x16x32xf32, #tpu.memory_space<vmem>>, vector<1x16x16x32xf32>
    %7 = vector.shape_cast %6 : vector<1x16x16x32xf32> to vector<16x16x32xf32>
    %c1 = arith.constant 1 : index
    %c1_5 = arith.constant 1 : index
    %c0_6 = arith.constant 0 : index
    %8 = vector.load %arg6[%c1, %c1_5, %c0_6] : memref<18x18x32xf32, #tpu.memory_space<vmem>>, vector<16x16x32xf32>
    tpu.vector_store %arg6[%c1, %c1_5, %c0_6], %7 {strides = array<i32>} : memref<18x18x32xf32, #tpu.memory_space<vmem>>, vector<16x16x32xf32>,
    %c0_i32 = arith.constant 0 : i32
    %9 = arith.cmpi sgt, %arg1, %c0_i32 : i32
    %10 = arith.extui %9 : i1 to i32
    %c0_i32_7 = arith.constant 0 : i32
    %11 = arith.cmpi ne, %10, %c0_i32_7 : i32
    scf.if %11 {
      %c1_i32 = arith.constant 1 : i32
      %72 = arith.subi %4, %c1_i32 : i32
      %c0_52 = arith.constant 0 : index
      %73 = arith.index_cast %72 : i32 to index
      %c0_53 = arith.constant 0 : index
      %c0_54 = arith.constant 0 : index
      %74 = vector.load %arg2[%c0_52, %73, %c0_53, %c0_54] : memref<1x16x16x32xf32, #tpu.memory_space<vmem>>, vector<1x1x16x32xf32>
      %75 = vector.shape_cast %74 : vector<1x1x16x32xf32> to vector<1x16x32xf32>
      %c0_55 = arith.constant 0 : index
      %c1_56 = arith.constant 1 : index
      %c0_57 = arith.constant 0 : index
      %76 = vector.load %arg6[%c0_55, %c1_56, %c0_57] : memref<18x18x32xf32, #tpu.memory_space<vmem>>, vector<1x16x32xf32>
      tpu.vector_store %arg6[%c0_55, %c1_56, %c0_57], %75 {strides = array<i32>} : memref<18x18x32xf32, #tpu.memory_space<vmem>>, vector<1x16x32xf32>,
    } else {
    }
    %c0_8 = arith.constant 0 : index
    %c0_9 = arith.constant 0 : index
    %c0_10 = arith.constant 0 : index
    %12 = tpu.strided_load %arg6[%c0_8, %c0_9, %c0_10] {strides = array<i32: 2, 2, 1>} : memref<18x18x32xf32, #tpu.memory_space<vmem>>, vector<8x8x32xf32>
    %c0_11 = arith.constant 0 : index
    %c0_12 = arith.constant 0 : index
    %13 = vector.load %arg3[%c0_11, %c0_12] : memref<9x32xf32, #tpu.memory_space<vmem>>, vector<1x32xf32>
    %14 = vector.shape_cast %13 : vector<1x32xf32> to vector<1x1x32xf32>
    %15 = vector.broadcast %14 : vector<1x1x32xf32> to vector<8x8x32xf32>
    %16 = arith.mulf %12, %15 : vector<8x8x32xf32>
    %c0_13 = arith.constant 0 : index
    %c1_14 = arith.constant 1 : index
    %c0_15 = arith.constant 0 : index
    %17 = tpu.strided_load %arg6[%c0_13, %c1_14, %c0_15] {strides = array<i32: 2, 2, 1>} : memref<18x18x32xf32, #tpu.memory_space<vmem>>, vector<8x8x32xf32>
    %c1_16 = arith.constant 1 : index
    %c0_17 = arith.constant 0 : index
    %18 = vector.load %arg3[%c1_16, %c0_17] : memref<9x32xf32, #tpu.memory_space<vmem>>, vector<1x32xf32>
    %19 = vector.shape_cast %18 : vector<1x32xf32> to vector<1x1x32xf32>
    %20 = vector.broadcast %19 : vector<1x1x32xf32> to vector<8x8x32xf32>
    %21 = arith.mulf %17, %20 : vector<8x8x32xf32>
    %22 = arith.addf %16, %21 : vector<8x8x32xf32>
    %c0_18 = arith.constant 0 : index
    %c2 = arith.constant 2 : index
    %c0_19 = arith.constant 0 : index
    %23 = tpu.strided_load %arg6[%c0_18, %c2, %c0_19] {strides = array<i32: 2, 2, 1>} : memref<18x18x32xf32, #tpu.memory_space<vmem>>, vector<8x8x32xf32>
    %c2_20 = arith.constant 2 : index
    %c0_21 = arith.constant 0 : index
    %24 = vector.load %arg3[%c2_20, %c0_21] : memref<9x32xf32, #tpu.memory_space<vmem>>, vector<1x32xf32>
    %25 = vector.shape_cast %24 : vector<1x32xf32> to vector<1x1x32xf32>
    %26 = vector.broadcast %25 : vector<1x1x32xf32> to vector<8x8x32xf32>
    %27 = arith.mulf %23, %26 : vector<8x8x32xf32>
    %28 = arith.addf %22, %27 : vector<8x8x32xf32>
    %c1_22 = arith.constant 1 : index
    %c0_23 = arith.constant 0 : index
    %c0_24 = arith.constant 0 : index
    %29 = tpu.strided_load %arg6[%c1_22, %c0_23, %c0_24] {strides = array<i32: 2, 2, 1>} : memref<18x18x32xf32, #tpu.memory_space<vmem>>, vector<8x8x32xf32>
    %c3 = arith.constant 3 : index
    %c0_25 = arith.constant 0 : index
    %30 = vector.load %arg3[%c3, %c0_25] : memref<9x32xf32, #tpu.memory_space<vmem>>, vector<1x32xf32>
    %31 = vector.shape_cast %30 : vector<1x32xf32> to vector<1x1x32xf32>
    %32 = vector.broadcast %31 : vector<1x1x32xf32> to vector<8x8x32xf32>
    %33 = arith.mulf %29, %32 : vector<8x8x32xf32>
    %c1_26 = arith.constant 1 : index
    %c1_27 = arith.constant 1 : index
    %c0_28 = arith.constant 0 : index
    %34 = tpu.strided_load %arg6[%c1_26, %c1_27, %c0_28] {strides = array<i32: 2, 2, 1>} : memref<18x18x32xf32, #tpu.memory_space<vmem>>, vector<8x8x32xf32>
    %c4 = arith.constant 4 : index
    %c0_29 = arith.constant 0 : index
    %35 = vector.load %arg3[%c4, %c0_29] : memref<9x32xf32, #tpu.memory_space<vmem>>, vector<1x32xf32>
    %36 = vector.shape_cast %35 : vector<1x32xf32> to vector<1x1x32xf32>
    %37 = vector.broadcast %36 : vector<1x1x32xf32> to vector<8x8x32xf32>
    %38 = arith.mulf %34, %37 : vector<8x8x32xf32>
    %39 = arith.addf %33, %38 : vector<8x8x32xf32>
    %c1_30 = arith.constant 1 : index
    %c2_31 = arith.constant 2 : index
    %c0_32 = arith.constant 0 : index
    %40 = tpu.strided_load %arg6[%c1_30, %c2_31, %c0_32] {strides = array<i32: 2, 2, 1>} : memref<18x18x32xf32, #tpu.memory_space<vmem>>, vector<8x8x32xf32>
    %c5 = arith.constant 5 : index
    %c0_33 = arith.constant 0 : index
    %41 = vector.load %arg3[%c5, %c0_33] : memref<9x32xf32, #tpu.memory_space<vmem>>, vector<1x32xf32>
    %42 = vector.shape_cast %41 : vector<1x32xf32> to vector<1x1x32xf32>
    %43 = vector.broadcast %42 : vector<1x1x32xf32> to vector<8x8x32xf32>
    %44 = arith.mulf %40, %43 : vector<8x8x32xf32>
    %45 = arith.addf %39, %44 : vector<8x8x32xf32>
    %46 = arith.addf %28, %45 : vector<8x8x32xf32>
    %c2_34 = arith.constant 2 : index
    %c0_35 = arith.constant 0 : index
    %c0_36 = arith.constant 0 : index
    %47 = tpu.strided_load %arg6[%c2_34, %c0_35, %c0_36] {strides = array<i32: 2, 2, 1>} : memref<18x18x32xf32, #tpu.memory_space<vmem>>, vector<8x8x32xf32>
    %c6 = arith.constant 6 : index
    %c0_37 = arith.constant 0 : index
    %48 = vector.load %arg3[%c6, %c0_37] : memref<9x32xf32, #tpu.memory_space<vmem>>, vector<1x32xf32>
    %49 = vector.shape_cast %48 : vector<1x32xf32> to vector<1x1x32xf32>
    %50 = vector.broadcast %49 : vector<1x1x32xf32> to vector<8x8x32xf32>
    %51 = arith.mulf %47, %50 : vector<8x8x32xf32>
    %c2_38 = arith.constant 2 : index
    %c1_39 = arith.constant 1 : index
    %c0_40 = arith.constant 0 : index
    %52 = tpu.strided_load %arg6[%c2_38, %c1_39, %c0_40] {strides = array<i32: 2, 2, 1>} : memref<18x18x32xf32, #tpu.memory_space<vmem>>, vector<8x8x32xf32>
    %c7 = arith.constant 7 : index
    %c0_41 = arith.constant 0 : index
    %53 = vector.load %arg3[%c7, %c0_41] : memref<9x32xf32, #tpu.memory_space<vmem>>, vector<1x32xf32>
    %54 = vector.shape_cast %53 : vector<1x32xf32> to vector<1x1x32xf32>
    %55 = vector.broadcast %54 : vector<1x1x32xf32> to vector<8x8x32xf32>
    %56 = arith.mulf %52, %55 : vector<8x8x32xf32>
    %57 = arith.addf %51, %56 : vector<8x8x32xf32>
    %c2_42 = arith.constant 2 : index
    %c2_43 = arith.constant 2 : index
    %c0_44 = arith.constant 0 : index
    %58 = tpu.strided_load %arg6[%c2_42, %c2_43, %c0_44] {strides = array<i32: 2, 2, 1>} : memref<18x18x32xf32, #tpu.memory_space<vmem>>, vector<8x8x32xf32>
    %c8 = arith.constant 8 : index
    %c0_45 = arith.constant 0 : index
    %59 = vector.load %arg3[%c8, %c0_45] : memref<9x32xf32, #tpu.memory_space<vmem>>, vector<1x32xf32>
    %60 = vector.shape_cast %59 : vector<1x32xf32> to vector<1x1x32xf32>
    %61 = vector.broadcast %60 : vector<1x1x32xf32> to vector<8x8x32xf32>
    %62 = arith.mulf %58, %61 : vector<8x8x32xf32>
    %63 = arith.addf %57, %62 : vector<8x8x32xf32>
    %64 = arith.addf %46, %63 : vector<8x8x32xf32>
    %c0_46 = arith.constant 0 : index
    %c0_47 = arith.constant 0 : index
    %65 = vector.load %arg4[%c0_46, %c0_47] : memref<1x32xf32, #tpu.memory_space<vmem>>, vector<1x32xf32>
    %66 = vector.shape_cast %65 : vector<1x32xf32> to vector<1x1x32xf32>
    %67 = vector.broadcast %66 : vector<1x1x32xf32> to vector<8x8x32xf32>
    %68 = arith.addf %64, %67 : vector<8x8x32xf32>
    %c0_48 = arith.constant 0 : index
    %c0_49 = arith.constant 0 : index
    %c0_50 = arith.constant 0 : index
    %c0_51 = arith.constant 0 : index
    %69 = vector.load %arg5[%c0_48, %c0_49, %c0_50, %c0_51] : memref<1x8x8x32xf32, #tpu.memory_space<vmem>>, vector<1x8x8x32xf32>
    %70 = vector.shape_cast %69 : vector<1x8x8x32xf32> to vector<8x8x32xf32>
    %71 = vector.shape_cast %68 : vector<8x8x32xf32> to vector<1x8x8x32xf32>
    tpu.vector_store %arg5[%c0_48, %c0_49, %c0_50, %c0_51], %71 {strides = array<i32>} : memref<1x8x8x32xf32, #tpu.memory_space<vmem>>, vector<1x8x8x32xf32>,
    return
  }
  func.func @transform_0(%arg0: i32, %arg1: i32) -> (i32, i32, i32, i32) {
    %c0_i32 = arith.constant 0 : i32
    %c0_i32_0 = arith.constant 0 : i32
    %c0_i32_1 = arith.constant 0 : i32
    %c0_i32_2 = arith.constant 0 : i32
    return %arg0, %c0_i32, %c0_i32_0, %c0_i32_1 : i32, i32, i32, i32
  }
  func.func @transform_1(%arg0: i32, %arg1: i32) -> (i32, i32) {
    %c0_i32 = arith.constant 0 : i32
    %c0_i32_0 = arith.constant 0 : i32
    %c0_i32_1 = arith.constant 0 : i32
    return %c0_i32, %c0_i32_0 : i32, i32
  }
  func.func @transform_2(%arg0: i32, %arg1: i32) -> (i32, i32) {
    %c0_i32 = arith.constant 0 : i32
    %c0_i32_0 = arith.constant 0 : i32
    %c0_i32_1 = arith.constant 0 : i32
    return %c0_i32, %c0_i32_0 : i32, i32
  }
  func.func @transform_3(%arg0: i32, %arg1: i32) -> (i32, i32, i32, i32) {
    %c0_i32 = arith.constant 0 : i32
    %c0_i32_0 = arith.constant 0 : i32
    %c0_i32_1 = arith.constant 0 : i32
    return %arg0, %arg1, %c0_i32, %c0_i32_0 : i32, i32, i32, i32
  }
}

module attributes {stable_mosaic.version = 11 : i64} {
  func.func @_ghost_fused_kernel(%arg0: i32, %arg1: i32, %arg2: memref<1x8x8x32xf32, #tpu.memory_space<vmem>>, %arg3: memref<32x32xf32, #tpu.memory_space<vmem>>, %arg4: memref<1x32xf32, #tpu.memory_space<vmem>>, %arg5: memref<25x32xf32, #tpu.memory_space<vmem>>, %arg6: memref<1x32xf32, #tpu.memory_space<vmem>>, %arg7: memref<1x8x8x64xf32, #tpu.memory_space<vmem>>, %arg8: memref<1x8x8x64xf32, #tpu.memory_space<vmem>>, %arg9: memref<12x12x32xf32, #tpu.memory_space<vmem>>) attributes {dimension_semantics = [#tpu.dimension_semantics<parallel>, #tpu.dimension_semantics<parallel>], iteration_bounds = array<i64: 2, 1>, scalar_prefetch = 0 : i64, scratch_operands = 1 : i64, tpu.core_type = #tpu.core_type<tc>, window_params = [{transform_indices = @transform_0, window_bounds = array<i64: 1, 8, 8, 32>}, {pipeline_mode = #tpu.pipeline_mode<synchronous>, transform_indices = @transform_1, window_bounds = array<i64: 32, 32>}, {pipeline_mode = #tpu.pipeline_mode<synchronous>, transform_indices = @transform_2, window_bounds = array<i64: 1, 32>}, {pipeline_mode = #tpu.pipeline_mode<synchronous>, transform_indices = @transform_3, window_bounds = array<i64: 25, 32>}, {pipeline_mode = #tpu.pipeline_mode<synchronous>, transform_indices = @transform_4, window_bounds = array<i64: 1, 32>}, {transform_indices = @transform_5, window_bounds = array<i64: 1, 8, 8, 64>}, {transform_indices = @transform_6, window_bounds = array<i64: 1, 8, 8, 64>}]} {
    %c0 = arith.constant 0 : index
    %c0_0 = arith.constant 0 : index
    %0 = vector.load %arg3[%c0, %c0_0] : memref<32x32xf32, #tpu.memory_space<vmem>>, vector<32x32xf32>
    %1 = arith.truncf %0 : vector<32x32xf32> to vector<32x32xbf16>
    %c0_1 = arith.constant 0 : index
    %c0_2 = arith.constant 0 : index
    %2 = vector.load %arg4[%c0_1, %c0_2] : memref<1x32xf32, #tpu.memory_space<vmem>>, vector<1x32xf32>
    %cst = arith.constant 0.000000e+00 : f32
    %3 = vector.broadcast %cst : f32 to vector<12x12x32xf32>
    %c0_3 = arith.constant 0 : index
    %c0_4 = arith.constant 0 : index
    %c0_5 = arith.constant 0 : index
    %4 = vector.load %arg9[%c0_3, %c0_4, %c0_5] : memref<12x12x32xf32, #tpu.memory_space<vmem>>, vector<12x12x32xf32>
    tpu.vector_store %arg9[%c0_3, %c0_4, %c0_5], %3 {strides = array<i32>} : memref<12x12x32xf32, #tpu.memory_space<vmem>>, vector<12x12x32xf32>,
    %c8_i32 = arith.constant 8 : i32
    %5 = arith.muli %arg1, %c8_i32 : i32
    %6 = tpu.assume_multiple %5, 8 : i32
    %c0_6 = arith.constant 0 : index
    %7 = arith.index_cast %6 : i32 to index
    %c0_7 = arith.constant 0 : index
    %c0_8 = arith.constant 0 : index
    %8 = vector.load %arg2[%c0_6, %7, %c0_7, %c0_8] : memref<1x8x8x32xf32, #tpu.memory_space<vmem>>, vector<1x8x8x32xf32>
    %9 = vector.shape_cast %8 : vector<1x8x8x32xf32> to vector<8x8x32xf32>
    %10 = vector.shape_cast %9 : vector<8x8x32xf32> to vector<64x32xf32>
    %11 = arith.truncf %10 : vector<64x32xf32> to vector<64x32xbf16>
    %cst_9 = arith.constant dense<0.000000e+00> : vector<64x32xf32>
    %12 = tpu.matmul %11, %1, %cst_9 {dimension_numbers = #tpu.dot_dimension_numbers<[1], [0], [0], [1], [0, 0, 1, 1], [], []>} : vector<64x32xbf16>, vector<32x32xbf16>, vector<64x32xf32> -> vector<64x32xf32>
    %13 = vector.broadcast %2 : vector<1x32xf32> to vector<64x32xf32>
    %14 = arith.addf %12, %13 : vector<64x32xf32>
    %15 = vector.shape_cast %14 : vector<64x32xf32> to vector<8x8x32xf32>
    %c2 = arith.constant 2 : index
    %c2_10 = arith.constant 2 : index
    %c0_11 = arith.constant 0 : index
    %16 = vector.load %arg9[%c2, %c2_10, %c0_11] : memref<12x12x32xf32, #tpu.memory_space<vmem>>, vector<8x8x32xf32>
    tpu.vector_store %arg9[%c2, %c2_10, %c0_11], %15 {strides = array<i32>} : memref<12x12x32xf32, #tpu.memory_space<vmem>>, vector<8x8x32xf32>,
    %c0_i32 = arith.constant 0 : i32
    %17 = arith.cmpi sgt, %arg1, %c0_i32 : i32
    %18 = arith.extui %17 : i1 to i32
    %c0_i32_12 = arith.constant 0 : i32
    %19 = arith.cmpi ne, %18, %c0_i32_12 : i32
    scf.if %19 {
      %c2_i32_135 = arith.constant 2 : i32
      %190 = arith.subi %6, %c2_i32_135 : i32
      %c0_136 = arith.constant 0 : index
      %191 = arith.index_cast %190 : i32 to index
      %c0_137 = arith.constant 0 : index
      %c0_138 = arith.constant 0 : index
      %192 = vector.load %arg2[%c0_136, %191, %c0_137, %c0_138] : memref<1x8x8x32xf32, #tpu.memory_space<vmem>>, vector<1x2x8x32xf32>
      %193 = vector.shape_cast %192 : vector<1x2x8x32xf32> to vector<2x8x32xf32>
      %194 = vector.shape_cast %193 : vector<2x8x32xf32> to vector<16x32xf32>
      %195 = arith.truncf %194 : vector<16x32xf32> to vector<16x32xbf16>
      %cst_139 = arith.constant dense<0.000000e+00> : vector<16x32xf32>
      %196 = tpu.matmul %195, %1, %cst_139 {dimension_numbers = #tpu.dot_dimension_numbers<[1], [0], [0], [1], [0, 0, 1, 1], [], []>} : vector<16x32xbf16>, vector<32x32xbf16>, vector<16x32xf32> -> vector<16x32xf32>
      %197 = vector.broadcast %2 : vector<1x32xf32> to vector<16x32xf32>
      %198 = arith.addf %196, %197 : vector<16x32xf32>
      %199 = vector.shape_cast %198 : vector<16x32xf32> to vector<2x8x32xf32>
      %c0_140 = arith.constant 0 : index
      %c2_141 = arith.constant 2 : index
      %c0_142 = arith.constant 0 : index
      %200 = vector.load %arg9[%c0_140, %c2_141, %c0_142] : memref<12x12x32xf32, #tpu.memory_space<vmem>>, vector<2x8x32xf32>
      tpu.vector_store %arg9[%c0_140, %c2_141, %c0_142], %199 {strides = array<i32>} : memref<12x12x32xf32, #tpu.memory_space<vmem>>, vector<2x8x32xf32>,
    } else {
    }
    %c8_i32_13 = arith.constant 8 : i32
    %20 = arith.addi %6, %c8_i32_13 : i32
    %c2_i32 = arith.constant 2 : i32
    %21 = arith.addi %20, %c2_i32 : i32
    %c8_i32_14 = arith.constant 8 : i32
    %22 = arith.cmpi sle, %21, %c8_i32_14 : i32
    %23 = arith.extui %22 : i1 to i32
    %c0_i32_15 = arith.constant 0 : i32
    %24 = arith.cmpi ne, %23, %c0_i32_15 : i32
    scf.if %24 {
      %c8_i32_135 = arith.constant 8 : i32
      %190 = arith.addi %6, %c8_i32_135 : i32
      %c0_136 = arith.constant 0 : index
      %191 = arith.index_cast %190 : i32 to index
      %c0_137 = arith.constant 0 : index
      %c0_138 = arith.constant 0 : index
      %192 = vector.load %arg2[%c0_136, %191, %c0_137, %c0_138] : memref<1x8x8x32xf32, #tpu.memory_space<vmem>>, vector<1x2x8x32xf32>
      %193 = vector.shape_cast %192 : vector<1x2x8x32xf32> to vector<2x8x32xf32>
      %194 = vector.shape_cast %193 : vector<2x8x32xf32> to vector<16x32xf32>
      %195 = arith.truncf %194 : vector<16x32xf32> to vector<16x32xbf16>
      %cst_139 = arith.constant dense<0.000000e+00> : vector<16x32xf32>
      %196 = tpu.matmul %195, %1, %cst_139 {dimension_numbers = #tpu.dot_dimension_numbers<[1], [0], [0], [1], [0, 0, 1, 1], [], []>} : vector<16x32xbf16>, vector<32x32xbf16>, vector<16x32xf32> -> vector<16x32xf32>
      %197 = vector.broadcast %2 : vector<1x32xf32> to vector<16x32xf32>
      %198 = arith.addf %196, %197 : vector<16x32xf32>
      %199 = vector.shape_cast %198 : vector<16x32xf32> to vector<2x8x32xf32>
      %c10_140 = arith.constant 10 : index
      %c2_141 = arith.constant 2 : index
      %c0_142 = arith.constant 0 : index
      %200 = vector.load %arg9[%c10_140, %c2_141, %c0_142] : memref<12x12x32xf32, #tpu.memory_space<vmem>>, vector<2x8x32xf32>
      tpu.vector_store %arg9[%c10_140, %c2_141, %c0_142], %199 {strides = array<i32>} : memref<12x12x32xf32, #tpu.memory_space<vmem>>, vector<2x8x32xf32>,
    } else {
    }
    %c0_16 = arith.constant 0 : index
    %c0_17 = arith.constant 0 : index
    %c0_18 = arith.constant 0 : index
    %25 = vector.load %arg9[%c0_16, %c0_17, %c0_18] : memref<12x12x32xf32, #tpu.memory_space<vmem>>, vector<8x8x32xf32>
    %c0_19 = arith.constant 0 : index
    %c0_20 = arith.constant 0 : index
    %26 = vector.load %arg5[%c0_19, %c0_20] : memref<25x32xf32, #tpu.memory_space<vmem>>, vector<1x32xf32>
    %27 = vector.shape_cast %26 : vector<1x32xf32> to vector<1x1x32xf32>
    %28 = vector.broadcast %27 : vector<1x1x32xf32> to vector<8x8x32xf32>
    %29 = arith.mulf %25, %28 : vector<8x8x32xf32>
    %c0_21 = arith.constant 0 : index
    %c1 = arith.constant 1 : index
    %c0_22 = arith.constant 0 : index
    %30 = vector.load %arg9[%c0_21, %c1, %c0_22] : memref<12x12x32xf32, #tpu.memory_space<vmem>>, vector<8x8x32xf32>
    %c1_23 = arith.constant 1 : index
    %c0_24 = arith.constant 0 : index
    %31 = vector.load %arg5[%c1_23, %c0_24] : memref<25x32xf32, #tpu.memory_space<vmem>>, vector<1x32xf32>
    %32 = vector.shape_cast %31 : vector<1x32xf32> to vector<1x1x32xf32>
    %33 = vector.broadcast %32 : vector<1x1x32xf32> to vector<8x8x32xf32>
    %34 = arith.mulf %30, %33 : vector<8x8x32xf32>
    %35 = arith.addf %29, %34 : vector<8x8x32xf32>
    %c0_25 = arith.constant 0 : index
    %c2_26 = arith.constant 2 : index
    %c0_27 = arith.constant 0 : index
    %36 = vector.load %arg9[%c0_25, %c2_26, %c0_27] : memref<12x12x32xf32, #tpu.memory_space<vmem>>, vector<8x8x32xf32>
    %c2_28 = arith.constant 2 : index
    %c0_29 = arith.constant 0 : index
    %37 = vector.load %arg5[%c2_28, %c0_29] : memref<25x32xf32, #tpu.memory_space<vmem>>, vector<1x32xf32>
    %38 = vector.shape_cast %37 : vector<1x32xf32> to vector<1x1x32xf32>
    %39 = vector.broadcast %38 : vector<1x1x32xf32> to vector<8x8x32xf32>
    %40 = arith.mulf %36, %39 : vector<8x8x32xf32>
    %41 = arith.addf %35, %40 : vector<8x8x32xf32>
    %c0_30 = arith.constant 0 : index
    %c3 = arith.constant 3 : index
    %c0_31 = arith.constant 0 : index
    %42 = vector.load %arg9[%c0_30, %c3, %c0_31] : memref<12x12x32xf32, #tpu.memory_space<vmem>>, vector<8x8x32xf32>
    %c3_32 = arith.constant 3 : index
    %c0_33 = arith.constant 0 : index
    %43 = vector.load %arg5[%c3_32, %c0_33] : memref<25x32xf32, #tpu.memory_space<vmem>>, vector<1x32xf32>
    %44 = vector.shape_cast %43 : vector<1x32xf32> to vector<1x1x32xf32>
    %45 = vector.broadcast %44 : vector<1x1x32xf32> to vector<8x8x32xf32>
    %46 = arith.mulf %42, %45 : vector<8x8x32xf32>
    %47 = arith.addf %41, %46 : vector<8x8x32xf32>
    %c0_34 = arith.constant 0 : index
    %c4 = arith.constant 4 : index
    %c0_35 = arith.constant 0 : index
    %48 = vector.load %arg9[%c0_34, %c4, %c0_35] : memref<12x12x32xf32, #tpu.memory_space<vmem>>, vector<8x8x32xf32>
    %c4_36 = arith.constant 4 : index
    %c0_37 = arith.constant 0 : index
    %49 = vector.load %arg5[%c4_36, %c0_37] : memref<25x32xf32, #tpu.memory_space<vmem>>, vector<1x32xf32>
    %50 = vector.shape_cast %49 : vector<1x32xf32> to vector<1x1x32xf32>
    %51 = vector.broadcast %50 : vector<1x1x32xf32> to vector<8x8x32xf32>
    %52 = arith.mulf %48, %51 : vector<8x8x32xf32>
    %53 = arith.addf %47, %52 : vector<8x8x32xf32>
    %c1_38 = arith.constant 1 : index
    %c0_39 = arith.constant 0 : index
    %c0_40 = arith.constant 0 : index
    %54 = vector.load %arg9[%c1_38, %c0_39, %c0_40] : memref<12x12x32xf32, #tpu.memory_space<vmem>>, vector<8x8x32xf32>
    %c5 = arith.constant 5 : index
    %c0_41 = arith.constant 0 : index
    %55 = vector.load %arg5[%c5, %c0_41] : memref<25x32xf32, #tpu.memory_space<vmem>>, vector<1x32xf32>
    %56 = vector.shape_cast %55 : vector<1x32xf32> to vector<1x1x32xf32>
    %57 = vector.broadcast %56 : vector<1x1x32xf32> to vector<8x8x32xf32>
    %58 = arith.mulf %54, %57 : vector<8x8x32xf32>
    %c1_42 = arith.constant 1 : index
    %c1_43 = arith.constant 1 : index
    %c0_44 = arith.constant 0 : index
    %59 = vector.load %arg9[%c1_42, %c1_43, %c0_44] : memref<12x12x32xf32, #tpu.memory_space<vmem>>, vector<8x8x32xf32>
    %c6 = arith.constant 6 : index
    %c0_45 = arith.constant 0 : index
    %60 = vector.load %arg5[%c6, %c0_45] : memref<25x32xf32, #tpu.memory_space<vmem>>, vector<1x32xf32>
    %61 = vector.shape_cast %60 : vector<1x32xf32> to vector<1x1x32xf32>
    %62 = vector.broadcast %61 : vector<1x1x32xf32> to vector<8x8x32xf32>
    %63 = arith.mulf %59, %62 : vector<8x8x32xf32>
    %64 = arith.addf %58, %63 : vector<8x8x32xf32>
    %c1_46 = arith.constant 1 : index
    %c2_47 = arith.constant 2 : index
    %c0_48 = arith.constant 0 : index
    %65 = vector.load %arg9[%c1_46, %c2_47, %c0_48] : memref<12x12x32xf32, #tpu.memory_space<vmem>>, vector<8x8x32xf32>
    %c7 = arith.constant 7 : index
    %c0_49 = arith.constant 0 : index
    %66 = vector.load %arg5[%c7, %c0_49] : memref<25x32xf32, #tpu.memory_space<vmem>>, vector<1x32xf32>
    %67 = vector.shape_cast %66 : vector<1x32xf32> to vector<1x1x32xf32>
    %68 = vector.broadcast %67 : vector<1x1x32xf32> to vector<8x8x32xf32>
    %69 = arith.mulf %65, %68 : vector<8x8x32xf32>
    %70 = arith.addf %64, %69 : vector<8x8x32xf32>
    %c1_50 = arith.constant 1 : index
    %c3_51 = arith.constant 3 : index
    %c0_52 = arith.constant 0 : index
    %71 = vector.load %arg9[%c1_50, %c3_51, %c0_52] : memref<12x12x32xf32, #tpu.memory_space<vmem>>, vector<8x8x32xf32>
    %c8 = arith.constant 8 : index
    %c0_53 = arith.constant 0 : index
    %72 = vector.load %arg5[%c8, %c0_53] : memref<25x32xf32, #tpu.memory_space<vmem>>, vector<1x32xf32>
    %73 = vector.shape_cast %72 : vector<1x32xf32> to vector<1x1x32xf32>
    %74 = vector.broadcast %73 : vector<1x1x32xf32> to vector<8x8x32xf32>
    %75 = arith.mulf %71, %74 : vector<8x8x32xf32>
    %76 = arith.addf %70, %75 : vector<8x8x32xf32>
    %c1_54 = arith.constant 1 : index
    %c4_55 = arith.constant 4 : index
    %c0_56 = arith.constant 0 : index
    %77 = vector.load %arg9[%c1_54, %c4_55, %c0_56] : memref<12x12x32xf32, #tpu.memory_space<vmem>>, vector<8x8x32xf32>
    %c9 = arith.constant 9 : index
    %c0_57 = arith.constant 0 : index
    %78 = vector.load %arg5[%c9, %c0_57] : memref<25x32xf32, #tpu.memory_space<vmem>>, vector<1x32xf32>
    %79 = vector.shape_cast %78 : vector<1x32xf32> to vector<1x1x32xf32>
    %80 = vector.broadcast %79 : vector<1x1x32xf32> to vector<8x8x32xf32>
    %81 = arith.mulf %77, %80 : vector<8x8x32xf32>
    %82 = arith.addf %76, %81 : vector<8x8x32xf32>
    %83 = arith.addf %53, %82 : vector<8x8x32xf32>
    %c2_58 = arith.constant 2 : index
    %c0_59 = arith.constant 0 : index
    %c0_60 = arith.constant 0 : index
    %84 = vector.load %arg9[%c2_58, %c0_59, %c0_60] : memref<12x12x32xf32, #tpu.memory_space<vmem>>, vector<8x8x32xf32>
    %c10 = arith.constant 10 : index
    %c0_61 = arith.constant 0 : index
    %85 = vector.load %arg5[%c10, %c0_61] : memref<25x32xf32, #tpu.memory_space<vmem>>, vector<1x32xf32>
    %86 = vector.shape_cast %85 : vector<1x32xf32> to vector<1x1x32xf32>
    %87 = vector.broadcast %86 : vector<1x1x32xf32> to vector<8x8x32xf32>
    %88 = arith.mulf %84, %87 : vector<8x8x32xf32>
    %c2_62 = arith.constant 2 : index
    %c1_63 = arith.constant 1 : index
    %c0_64 = arith.constant 0 : index
    %89 = vector.load %arg9[%c2_62, %c1_63, %c0_64] : memref<12x12x32xf32, #tpu.memory_space<vmem>>, vector<8x8x32xf32>
    %c11 = arith.constant 11 : index
    %c0_65 = arith.constant 0 : index
    %90 = vector.load %arg5[%c11, %c0_65] : memref<25x32xf32, #tpu.memory_space<vmem>>, vector<1x32xf32>
    %91 = vector.shape_cast %90 : vector<1x32xf32> to vector<1x1x32xf32>
    %92 = vector.broadcast %91 : vector<1x1x32xf32> to vector<8x8x32xf32>
    %93 = arith.mulf %89, %92 : vector<8x8x32xf32>
    %94 = arith.addf %88, %93 : vector<8x8x32xf32>
    %c2_66 = arith.constant 2 : index
    %c2_67 = arith.constant 2 : index
    %c0_68 = arith.constant 0 : index
    %95 = vector.load %arg9[%c2_66, %c2_67, %c0_68] : memref<12x12x32xf32, #tpu.memory_space<vmem>>, vector<8x8x32xf32>
    %c12 = arith.constant 12 : index
    %c0_69 = arith.constant 0 : index
    %96 = vector.load %arg5[%c12, %c0_69] : memref<25x32xf32, #tpu.memory_space<vmem>>, vector<1x32xf32>
    %97 = vector.shape_cast %96 : vector<1x32xf32> to vector<1x1x32xf32>
    %98 = vector.broadcast %97 : vector<1x1x32xf32> to vector<8x8x32xf32>
    %99 = arith.mulf %95, %98 : vector<8x8x32xf32>
    %100 = arith.addf %94, %99 : vector<8x8x32xf32>
    %c2_70 = arith.constant 2 : index
    %c3_71 = arith.constant 3 : index
    %c0_72 = arith.constant 0 : index
    %101 = vector.load %arg9[%c2_70, %c3_71, %c0_72] : memref<12x12x32xf32, #tpu.memory_space<vmem>>, vector<8x8x32xf32>
    %c13 = arith.constant 13 : index
    %c0_73 = arith.constant 0 : index
    %102 = vector.load %arg5[%c13, %c0_73] : memref<25x32xf32, #tpu.memory_space<vmem>>, vector<1x32xf32>
    %103 = vector.shape_cast %102 : vector<1x32xf32> to vector<1x1x32xf32>
    %104 = vector.broadcast %103 : vector<1x1x32xf32> to vector<8x8x32xf32>
    %105 = arith.mulf %101, %104 : vector<8x8x32xf32>
    %106 = arith.addf %100, %105 : vector<8x8x32xf32>
    %c2_74 = arith.constant 2 : index
    %c4_75 = arith.constant 4 : index
    %c0_76 = arith.constant 0 : index
    %107 = vector.load %arg9[%c2_74, %c4_75, %c0_76] : memref<12x12x32xf32, #tpu.memory_space<vmem>>, vector<8x8x32xf32>
    %c14 = arith.constant 14 : index
    %c0_77 = arith.constant 0 : index
    %108 = vector.load %arg5[%c14, %c0_77] : memref<25x32xf32, #tpu.memory_space<vmem>>, vector<1x32xf32>
    %109 = vector.shape_cast %108 : vector<1x32xf32> to vector<1x1x32xf32>
    %110 = vector.broadcast %109 : vector<1x1x32xf32> to vector<8x8x32xf32>
    %111 = arith.mulf %107, %110 : vector<8x8x32xf32>
    %112 = arith.addf %106, %111 : vector<8x8x32xf32>
    %113 = arith.addf %83, %112 : vector<8x8x32xf32>
    %c3_78 = arith.constant 3 : index
    %c0_79 = arith.constant 0 : index
    %c0_80 = arith.constant 0 : index
    %114 = vector.load %arg9[%c3_78, %c0_79, %c0_80] : memref<12x12x32xf32, #tpu.memory_space<vmem>>, vector<8x8x32xf32>
    %c15 = arith.constant 15 : index
    %c0_81 = arith.constant 0 : index
    %115 = vector.load %arg5[%c15, %c0_81] : memref<25x32xf32, #tpu.memory_space<vmem>>, vector<1x32xf32>
    %116 = vector.shape_cast %115 : vector<1x32xf32> to vector<1x1x32xf32>
    %117 = vector.broadcast %116 : vector<1x1x32xf32> to vector<8x8x32xf32>
    %118 = arith.mulf %114, %117 : vector<8x8x32xf32>
    %c3_82 = arith.constant 3 : index
    %c1_83 = arith.constant 1 : index
    %c0_84 = arith.constant 0 : index
    %119 = vector.load %arg9[%c3_82, %c1_83, %c0_84] : memref<12x12x32xf32, #tpu.memory_space<vmem>>, vector<8x8x32xf32>
    %c16 = arith.constant 16 : index
    %c0_85 = arith.constant 0 : index
    %120 = vector.load %arg5[%c16, %c0_85] : memref<25x32xf32, #tpu.memory_space<vmem>>, vector<1x32xf32>
    %121 = vector.shape_cast %120 : vector<1x32xf32> to vector<1x1x32xf32>
    %122 = vector.broadcast %121 : vector<1x1x32xf32> to vector<8x8x32xf32>
    %123 = arith.mulf %119, %122 : vector<8x8x32xf32>
    %124 = arith.addf %118, %123 : vector<8x8x32xf32>
    %c3_86 = arith.constant 3 : index
    %c2_87 = arith.constant 2 : index
    %c0_88 = arith.constant 0 : index
    %125 = vector.load %arg9[%c3_86, %c2_87, %c0_88] : memref<12x12x32xf32, #tpu.memory_space<vmem>>, vector<8x8x32xf32>
    %c17 = arith.constant 17 : index
    %c0_89 = arith.constant 0 : index
    %126 = vector.load %arg5[%c17, %c0_89] : memref<25x32xf32, #tpu.memory_space<vmem>>, vector<1x32xf32>
    %127 = vector.shape_cast %126 : vector<1x32xf32> to vector<1x1x32xf32>
    %128 = vector.broadcast %127 : vector<1x1x32xf32> to vector<8x8x32xf32>
    %129 = arith.mulf %125, %128 : vector<8x8x32xf32>
    %130 = arith.addf %124, %129 : vector<8x8x32xf32>
    %c3_90 = arith.constant 3 : index
    %c3_91 = arith.constant 3 : index
    %c0_92 = arith.constant 0 : index
    %131 = vector.load %arg9[%c3_90, %c3_91, %c0_92] : memref<12x12x32xf32, #tpu.memory_space<vmem>>, vector<8x8x32xf32>
    %c18 = arith.constant 18 : index
    %c0_93 = arith.constant 0 : index
    %132 = vector.load %arg5[%c18, %c0_93] : memref<25x32xf32, #tpu.memory_space<vmem>>, vector<1x32xf32>
    %133 = vector.shape_cast %132 : vector<1x32xf32> to vector<1x1x32xf32>
    %134 = vector.broadcast %133 : vector<1x1x32xf32> to vector<8x8x32xf32>
    %135 = arith.mulf %131, %134 : vector<8x8x32xf32>
    %136 = arith.addf %130, %135 : vector<8x8x32xf32>
    %c3_94 = arith.constant 3 : index
    %c4_95 = arith.constant 4 : index
    %c0_96 = arith.constant 0 : index
    %137 = vector.load %arg9[%c3_94, %c4_95, %c0_96] : memref<12x12x32xf32, #tpu.memory_space<vmem>>, vector<8x8x32xf32>
    %c19 = arith.constant 19 : index
    %c0_97 = arith.constant 0 : index
    %138 = vector.load %arg5[%c19, %c0_97] : memref<25x32xf32, #tpu.memory_space<vmem>>, vector<1x32xf32>
    %139 = vector.shape_cast %138 : vector<1x32xf32> to vector<1x1x32xf32>
    %140 = vector.broadcast %139 : vector<1x1x32xf32> to vector<8x8x32xf32>
    %141 = arith.mulf %137, %140 : vector<8x8x32xf32>
    %142 = arith.addf %136, %141 : vector<8x8x32xf32>
    %143 = arith.addf %113, %142 : vector<8x8x32xf32>
    %c4_98 = arith.constant 4 : index
    %c0_99 = arith.constant 0 : index
    %c0_100 = arith.constant 0 : index
    %144 = vector.load %arg9[%c4_98, %c0_99, %c0_100] : memref<12x12x32xf32, #tpu.memory_space<vmem>>, vector<8x8x32xf32>
    %c20 = arith.constant 20 : index
    %c0_101 = arith.constant 0 : index
    %145 = vector.load %arg5[%c20, %c0_101] : memref<25x32xf32, #tpu.memory_space<vmem>>, vector<1x32xf32>
    %146 = vector.shape_cast %145 : vector<1x32xf32> to vector<1x1x32xf32>
    %147 = vector.broadcast %146 : vector<1x1x32xf32> to vector<8x8x32xf32>
    %148 = arith.mulf %144, %147 : vector<8x8x32xf32>
    %c4_102 = arith.constant 4 : index
    %c1_103 = arith.constant 1 : index
    %c0_104 = arith.constant 0 : index
    %149 = vector.load %arg9[%c4_102, %c1_103, %c0_104] : memref<12x12x32xf32, #tpu.memory_space<vmem>>, vector<8x8x32xf32>
    %c21 = arith.constant 21 : index
    %c0_105 = arith.constant 0 : index
    %150 = vector.load %arg5[%c21, %c0_105] : memref<25x32xf32, #tpu.memory_space<vmem>>, vector<1x32xf32>
    %151 = vector.shape_cast %150 : vector<1x32xf32> to vector<1x1x32xf32>
    %152 = vector.broadcast %151 : vector<1x1x32xf32> to vector<8x8x32xf32>
    %153 = arith.mulf %149, %152 : vector<8x8x32xf32>
    %154 = arith.addf %148, %153 : vector<8x8x32xf32>
    %c4_106 = arith.constant 4 : index
    %c2_107 = arith.constant 2 : index
    %c0_108 = arith.constant 0 : index
    %155 = vector.load %arg9[%c4_106, %c2_107, %c0_108] : memref<12x12x32xf32, #tpu.memory_space<vmem>>, vector<8x8x32xf32>
    %c22 = arith.constant 22 : index
    %c0_109 = arith.constant 0 : index
    %156 = vector.load %arg5[%c22, %c0_109] : memref<25x32xf32, #tpu.memory_space<vmem>>, vector<1x32xf32>
    %157 = vector.shape_cast %156 : vector<1x32xf32> to vector<1x1x32xf32>
    %158 = vector.broadcast %157 : vector<1x1x32xf32> to vector<8x8x32xf32>
    %159 = arith.mulf %155, %158 : vector<8x8x32xf32>
    %160 = arith.addf %154, %159 : vector<8x8x32xf32>
    %c4_110 = arith.constant 4 : index
    %c3_111 = arith.constant 3 : index
    %c0_112 = arith.constant 0 : index
    %161 = vector.load %arg9[%c4_110, %c3_111, %c0_112] : memref<12x12x32xf32, #tpu.memory_space<vmem>>, vector<8x8x32xf32>
    %c23 = arith.constant 23 : index
    %c0_113 = arith.constant 0 : index
    %162 = vector.load %arg5[%c23, %c0_113] : memref<25x32xf32, #tpu.memory_space<vmem>>, vector<1x32xf32>
    %163 = vector.shape_cast %162 : vector<1x32xf32> to vector<1x1x32xf32>
    %164 = vector.broadcast %163 : vector<1x1x32xf32> to vector<8x8x32xf32>
    %165 = arith.mulf %161, %164 : vector<8x8x32xf32>
    %166 = arith.addf %160, %165 : vector<8x8x32xf32>
    %c4_114 = arith.constant 4 : index
    %c4_115 = arith.constant 4 : index
    %c0_116 = arith.constant 0 : index
    %167 = vector.load %arg9[%c4_114, %c4_115, %c0_116] : memref<12x12x32xf32, #tpu.memory_space<vmem>>, vector<8x8x32xf32>
    %c24 = arith.constant 24 : index
    %c0_117 = arith.constant 0 : index
    %168 = vector.load %arg5[%c24, %c0_117] : memref<25x32xf32, #tpu.memory_space<vmem>>, vector<1x32xf32>
    %169 = vector.shape_cast %168 : vector<1x32xf32> to vector<1x1x32xf32>
    %170 = vector.broadcast %169 : vector<1x1x32xf32> to vector<8x8x32xf32>
    %171 = arith.mulf %167, %170 : vector<8x8x32xf32>
    %172 = arith.addf %166, %171 : vector<8x8x32xf32>
    %173 = arith.addf %143, %172 : vector<8x8x32xf32>
    %c0_118 = arith.constant 0 : index
    %c0_119 = arith.constant 0 : index
    %174 = vector.load %arg6[%c0_118, %c0_119] : memref<1x32xf32, #tpu.memory_space<vmem>>, vector<1x32xf32>
    %175 = vector.shape_cast %174 : vector<1x32xf32> to vector<1x1x32xf32>
    %176 = vector.broadcast %175 : vector<1x1x32xf32> to vector<8x8x32xf32>
    %177 = arith.addf %173, %176 : vector<8x8x32xf32>
    %c0_120 = arith.constant 0 : index
    %c0_121 = arith.constant 0 : index
    %c0_122 = arith.constant 0 : index
    %c0_123 = arith.constant 0 : index
    %178 = vector.load %arg7[%c0_120, %c0_121, %c0_122, %c0_123] : memref<1x8x8x64xf32, #tpu.memory_space<vmem>>, vector<1x8x8x32xf32>
    %179 = vector.shape_cast %178 : vector<1x8x8x32xf32> to vector<8x8x32xf32>
    %180 = arith.addf %15, %179 : vector<8x8x32xf32>
    %c0_124 = arith.constant 0 : index
    %c0_125 = arith.constant 0 : index
    %c0_126 = arith.constant 0 : index
    %c32 = arith.constant 32 : index
    %181 = vector.load %arg7[%c0_124, %c0_125, %c0_126, %c32] : memref<1x8x8x64xf32, #tpu.memory_space<vmem>>, vector<1x8x8x32xf32>
    %182 = vector.shape_cast %181 : vector<1x8x8x32xf32> to vector<8x8x32xf32>
    %183 = arith.addf %177, %182 : vector<8x8x32xf32>
    %c0_127 = arith.constant 0 : index
    %c0_128 = arith.constant 0 : index
    %c0_129 = arith.constant 0 : index
    %c0_130 = arith.constant 0 : index
    %184 = vector.load %arg8[%c0_127, %c0_128, %c0_129, %c0_130] : memref<1x8x8x64xf32, #tpu.memory_space<vmem>>, vector<1x8x8x32xf32>
    %185 = vector.shape_cast %184 : vector<1x8x8x32xf32> to vector<8x8x32xf32>
    %186 = vector.shape_cast %180 : vector<8x8x32xf32> to vector<1x8x8x32xf32>
    tpu.vector_store %arg8[%c0_127, %c0_128, %c0_129, %c0_130], %186 {strides = array<i32>} : memref<1x8x8x64xf32, #tpu.memory_space<vmem>>, vector<1x8x8x32xf32>,
    %c0_131 = arith.constant 0 : index
    %c0_132 = arith.constant 0 : index
    %c0_133 = arith.constant 0 : index
    %c32_134 = arith.constant 32 : index
    %187 = vector.load %arg8[%c0_131, %c0_132, %c0_133, %c32_134] : memref<1x8x8x64xf32, #tpu.memory_space<vmem>>, vector<1x8x8x32xf32>
    %188 = vector.shape_cast %187 : vector<1x8x8x32xf32> to vector<8x8x32xf32>
    %189 = vector.shape_cast %183 : vector<8x8x32xf32> to vector<1x8x8x32xf32>
    tpu.vector_store %arg8[%c0_131, %c0_132, %c0_133, %c32_134], %189 {strides = array<i32>} : memref<1x8x8x64xf32, #tpu.memory_space<vmem>>, vector<1x8x8x32xf32>,
    return
  }
  func.func @transform_0(%arg0: i32, %arg1: i32) -> (i32, i32, i32, i32) {
    %c0_i32 = arith.constant 0 : i32
    %c0_i32_0 = arith.constant 0 : i32
    %c0_i32_1 = arith.constant 0 : i32
    %c0_i32_2 = arith.constant 0 : i32
    return %arg0, %c0_i32, %c0_i32_0, %c0_i32_1 : i32, i32, i32, i32
  }
  func.func @transform_1(%arg0: i32, %arg1: i32) -> (i32, i32) {
    %c0_i32 = arith.constant 0 : i32
    %c0_i32_0 = arith.constant 0 : i32
    %c0_i32_1 = arith.constant 0 : i32
    return %c0_i32, %c0_i32_0 : i32, i32
  }
  func.func @transform_2(%arg0: i32, %arg1: i32) -> (i32, i32) {
    %c0_i32 = arith.constant 0 : i32
    %c0_i32_0 = arith.constant 0 : i32
    %c0_i32_1 = arith.constant 0 : i32
    return %c0_i32, %c0_i32_0 : i32, i32
  }
  func.func @transform_3(%arg0: i32, %arg1: i32) -> (i32, i32) {
    %c0_i32 = arith.constant 0 : i32
    %c0_i32_0 = arith.constant 0 : i32
    %c0_i32_1 = arith.constant 0 : i32
    return %c0_i32, %c0_i32_0 : i32, i32
  }
  func.func @transform_4(%arg0: i32, %arg1: i32) -> (i32, i32) {
    %c0_i32 = arith.constant 0 : i32
    %c0_i32_0 = arith.constant 0 : i32
    %c0_i32_1 = arith.constant 0 : i32
    return %c0_i32, %c0_i32_0 : i32, i32
  }
  func.func @transform_5(%arg0: i32, %arg1: i32) -> (i32, i32, i32, i32) {
    %c0_i32 = arith.constant 0 : i32
    %c0_i32_0 = arith.constant 0 : i32
    %c0_i32_1 = arith.constant 0 : i32
    return %arg0, %arg1, %c0_i32, %c0_i32_0 : i32, i32, i32, i32
  }
  func.func @transform_6(%arg0: i32, %arg1: i32) -> (i32, i32, i32, i32) {
    %c0_i32 = arith.constant 0 : i32
    %c0_i32_0 = arith.constant 0 : i32
    %c0_i32_1 = arith.constant 0 : i32
    return %arg0, %arg1, %c0_i32, %c0_i32_0 : i32, i32, i32, i32
  }
}

</mosaic_0001>

<bundles_post_ra>
// kernel: ghost_bottleneck_forward.6
= control target key start
LH: loop header
LB: loop body
LE: loop exit
PB: predicated region body
PF: predicated region fallthrough
CT: control target
= control target key end

     0   :  { %s1088_s18 = smov 0   ;;  %s1090_s19 = smov 0   ;;  %s1405_s0 = inlined_call_operand.vmem [shape: f32[2,16,16,32], index: 0, kind: input, shape index: {}]   ;;  %s1406_s1 = inlined_call_operand.vmem [shape: f32[9,32], index: 1, kind: input, shape index: {}]   ;;  %s1407_s2 = inlined_call_operand.vmem [shape: f32[1,32], index: 2, kind: input, shape index: {}]   ;;  %s1408_s3 = inlined_call_operand.vmem [shape: f32[32,64], index: 3, kind: input, shape index: {}]   ;;  %s1409_s4 = inlined_call_operand.vmem [shape: f32[1,64], index: 4, kind: input, shape index: {}]   ;;  %s1410_s5 = inlined_call_operand.vmem [shape: f32[2,8,8,64], index: 5, kind: output, shape index: {}]  }
   0x1   :  { %s1092_s20 = smov 0  }
   0x2 LB: > { %s27_s21 = sadd.s32 1, %s1051_s19  ;;  %p960_p0 = scmp.ge.s32.totalorder %s1055_s20, 1  ;;  %s1055_s20 = sphi %s1092_s20, %s15_s20   ;;  %s1051_s19 = sphi %s1090_s19, %s1412_s19   ;;  %s1047_s18 = sphi %s1088_s18, %s1411_s18  }
   0x3   : > { %p29_p1 = scmp.ge.s32.totalorder %s27_s21, 2  ;;  %p201_p2 = scmp.lt.s32.totalorder %s1055_s20, 3 }
   0x5   : > { %s1414_s21 = smov (%p29_p1, %s27_s21), 0  ;;  %p202_p3 = pnand %p960_p0, %p201_p2 }
   0x6   : > { %v726_v0 = vld [vmem:[%s1408_s3] sm:$0xff] (!%p202_p3)  ;;  %v727_v1 = vld [vmem:[%s1408_s3 + $0x8] sm:$0xff] (!%p202_p3)  ;;  %v728_v2 = vld [vmem:[%s1408_s3 + $0x10] sm:$0xff] (!%p202_p3)  ;;  %p233_p4 = scmp.lt.s32.totalorder (!%p202_p3), %s1047_s18, 1  ;;  %vm249_vm0 = vcmask (!%p202_p3), 261120   ;;  %v1057_v5 = vmov (!%p202_p3), 0.0  }
   0x7   : > { %205 = sbr.rel (%p202_p3) target bundleno = 305 (0x131), region = 40  ;;  %v730_v3 = vpack.c.bf16 (!%p202_p3), %v727_v1, %v726_v0  ;;  %v729_v4 = vld [vmem:[%s1408_s3 + $0x18] sm:$0xff] (!%p202_p3)  ;;  %250 = vst.msk [vmem:[#allocation2] sm:$0xff] (!%p202_p3), %vm249_vm0, %v1057_v5  ;;  %251 = vst.msk [vmem:[#allocation2 + $0x8] sm:$0xff] (!%p202_p3), %vm249_vm0, %v1057_v5  ;;  %vm252_vm1 = vcmask (!%p202_p3), 254976   ;;  %vm816_vm2 = vcmask (!%p202_p3), 523264  }
   0x8   : > { %254 = vst.msk [vmem:[#allocation2 + $0x18] sm:$0xff] (!%p202_p3), %vm249_vm0, %v1057_v5  ;;  %255 = vst.msk [vmem:[#allocation2 + $0x20] sm:$0xff] (!%p202_p3), %vm249_vm0, %v1057_v5  ;;  %v731_v6 = vpack.c.bf16 (!%p202_p3), %v729_v4, %v728_v2  ;;  %v1186_v7 = vld [vmem:[%s1406_s1] ss:$0 sm:$0xff] (!%p202_p3)  ;;  %v1191_v8 = vld [vmem:[%s1406_s1 + $0x1] ss:$0 sm:$0xff] (!%p202_p3) }
   0x9   : > { %257 = vst.msk [vmem:[#allocation2 + $0x30] sm:$0xff] (!%p202_p3), %vm249_vm0, %v1057_v5  ;;  %258 = vst.msk [vmem:[#allocation2 + $0x38] sm:$0xff] (!%p202_p3), %vm249_vm0, %v1057_v5  ;;  %992 = vmatprep.subr.bf16.mxu0 (!%p202_p3), %v730_v3  ;;  %1004 = vmatprep.subr.bf16.mxu1 (!%p202_p3), %v730_v3  ;;  %v1205_v15 = vld [vmem:[%s1406_s1 + $0x2] ss:$0 sm:$0xff] (!%p202_p3)  ;;  %v1220_v24 = vld [vmem:[%s1406_s1 + $0x3] ss:$0 sm:$0xff] (!%p202_p3) }
   0xa   : > { %260 = vst.msk [vmem:[#allocation2 + $0x48] sm:$0xff] (!%p202_p3), %vm249_vm0, %v1057_v5  ;;  %261 = vst.msk [vmem:[#allocation2 + $0x50] sm:$0xff] (!%p202_p3), %vm249_vm0, %v1057_v5  ;;  %993 = vmatpush3.bf16.msra.mxu0 (!%p202_p3), %v730_v3  ;;  %1006 = vmatpush3.bf16.msra.mxu1 (!%p202_p3), %v730_v3  ;;  %v1225_v25 = vld [vmem:[%s1406_s1 + $0x4] ss:$0 sm:$0xff] (!%p202_p3)  ;;  %v1230_v26 = vld [vmem:[%s1406_s1 + $0x5] ss:$0 sm:$0xff] (!%p202_p3) }
   0xb   : > { %263 = vst.msk [vmem:[#allocation2 + $0x60] sm:$0xff] (!%p202_p3), %vm249_vm0, %v1057_v5  ;;  %264 = vst.msk [vmem:[#allocation2 + $0x68] sm:$0xff] (!%p202_p3), %vm249_vm0, %v1057_v5  ;;  %994 = vmatprep.subr.bf16.mxu0 (!%p202_p3), %v731_v6  ;;  %1005 = vmatprep.subr.bf16.mxu1 (!%p202_p3), %v731_v6  ;;  %v1252_v38 = vld [vmem:[%s1406_s1 + $0x6] ss:$0 sm:$0xff] (!%p202_p3)  ;;  %v1257_v39 = vld [vmem:[%s1406_s1 + $0x7] ss:$0 sm:$0xff] (!%p202_p3) }
   0xc   : > { %266 = vst.msk [vmem:[#allocation2 + $0x78] sm:$0xff] (!%p202_p3), %vm249_vm0, %v1057_v5  ;;  %267 = vst.msk [vmem:[#allocation2 + $0x80] sm:$0xff] (!%p202_p3), %vm249_vm0, %v1057_v5  ;;  %v1268_v46 = vld [vmem:[%s1406_s1 + $0x8] ss:$0 sm:$0xff] (!%p202_p3) }
   0xd   : > { %269 = vst.msk [vmem:[#allocation2 + $0x90] sm:$0xff] (!%p202_p3), %vm249_vm0, %v1057_v5  ;;  %270 = vst.msk [vmem:[#allocation2 + $0x98] sm:$0xff] (!%p202_p3), %vm249_vm0, %v1057_v5 }
   0xe   : > { %272 = vst.msk [vmem:[#allocation2 + $0xa8] sm:$0xff] %vm249_vm0, %v1057_v5  ;;  %273 = vst.msk [vmem:[#allocation2 + $0xb0] sm:$0xff] %vm249_vm0, %v1057_v5  ;;  %s1416_s18 = smov (!%p233_p4, %s1047_s18), 1  ;;  %995 = vmatpush3.bf16.msra.mxu0 %v731_v6  ;;  %1007 = vmatpush3.bf16.msra.mxu1 %v731_v6  ;;  %v384_v18 = vld [vmem:[#allocation2] ss:$2 sm:$0xff] }
   0xf   : > { %275 = vst.msk [vmem:[#allocation2 + $0xc0] sm:$0xff] %vm249_vm0, %v1057_v5  ;;  %276 = vst.msk [vmem:[#allocation2 + $0xc8] sm:$0xff] %vm249_vm0, %v1057_v5  ;;  %s984_s30 = sshll.u32 %s1416_s18, 8  ;;  %v404_v19 = vmul.f32 %v1186_v7, %v384_v18  ;;  %v413_v20 = vld [vmem:[#allocation2 + $0x1] ss:$2 sm:$0xff] }
  0x10   : > { %278 = vst.msk [vmem:[#allocation2 + $0xd8] sm:$0xff] %vm249_vm0, %v1057_v5  ;;  %279 = vst.msk [vmem:[#allocation2 + $0xe0] sm:$0xff] %vm249_vm0, %v1057_v5  ;;  %s1181_s8 = scalar_lea.vmem %s1405_s0, %s984_s30  ;;  %v433_v23 = vmul.f32 %v1191_v8, %v413_v20 }
  0x11   : > { %281 = vst.msk [vmem:[#allocation2 + $0xf0] sm:$0xff] %vm249_vm0, %v1057_v5  ;;  %282 = vst.msk [vmem:[#allocation2 + $0xf8] sm:$0xff] %vm249_vm0, %v1057_v5  ;;  %v308_v9 = vld [vmem:[%s1181_s8] sm:$0xff]  ;;  %v309_v10 = vld [vmem:[%s1181_s8 + $0x8] sm:$0xff] }
  0x12   : > { %284 = vst.msk [vmem:[#allocation2 + $0x108] sm:$0xff] %vm249_vm0, %v1057_v5  ;;  %285 = vst.msk [vmem:[#allocation2 + $0x110] sm:$0xff] %vm249_vm0, %v1057_v5  ;;  %v310_v11 = vld [vmem:[%s1181_s8 + $0x10] sm:$0xff]  ;;  %v311_v12 = vld [vmem:[%s1181_s8 + $0x18] sm:$0xff]  ;;  %v441_v33 = vadd.f32 %v433_v23, %v404_v19 }
  0x13   : > { %287 = vst.msk [vmem:[#allocation2 + $0x120] sm:$0xff] %vm249_vm0, %v1057_v5  ;;  %288 = vst.msk [vmem:[#allocation2 + $0x128] sm:$0xff] %vm249_vm0, %v1057_v5  ;;  %v312_v13 = vld [vmem:[%s1181_s8 + $0x20] sm:$0xff]  ;;  %v313_v14 = vld [vmem:[%s1181_s8 + $0x28] sm:$0xff] }
  0x14   : > { %290 = vst.msk [vmem:[#allocation2 + $0x138] sm:$0xff] %vm249_vm0, %v1057_v5  ;;  %291 = vst.msk [vmem:[#allocation2 + $0x140] sm:$0xff] %vm249_vm0, %v1057_v5  ;;  %v314_v16 = vld [vmem:[%s1181_s8 + $0x30] sm:$0xff]  ;;  %v315_v17 = vld [vmem:[%s1181_s8 + $0x38] sm:$0xff] }
  0x15   : > { %293 = vst.msk [vmem:[#allocation2 + $0x150] sm:$0xff] %vm249_vm0, %v1057_v5  ;;  %294 = vst.msk [vmem:[#allocation2 + $0x158] sm:$0xff] %vm249_vm0, %v1057_v5  ;;  %v322_v22 = vld [vmem:[%s1181_s8 + $0x70] sm:$0xff]  ;;  %v323_v27 = vld [vmem:[%s1181_s8 + $0x78] sm:$0xff] }
  0x16   : > { %296 = vst.msk [vmem:[#allocation2 + $0x168] sm:$0xff] %vm249_vm0, %v1057_v5  ;;  %297 = vst.msk [vmem:[#allocation2 + $0x170] sm:$0xff] %vm249_vm0, %v1057_v5  ;;  %v324_v28 = vld [vmem:[%s1181_s8 + $0x80] sm:$0xff]  ;;  %v325_v29 = vld [vmem:[%s1181_s8 + $0x88] sm:$0xff] }
  0x17   : > { %299 = vst.msk [vmem:[#allocation2 + $0x180] sm:$0xff] %vm249_vm0, %v1057_v5  ;;  %300 = vst.msk [vmem:[#allocation2 + $0x188] sm:$0xff] %vm249_vm0, %v1057_v5  ;;  %v326_v30 = vld [vmem:[%s1181_s8 + $0x90] sm:$0xff]  ;;  %v327_v31 = vld [vmem:[%s1181_s8 + $0x98] sm:$0xff] }
  0x18   : > { %253 = vst.msk [vmem:[#allocation2 + $0x10] sm:$0x3] %vm252_vm1, %v1057_v5  ;;  %256 = vst.msk [vmem:[#allocation2 + $0x28] sm:$0x3] %vm252_vm1, %v1057_v5  ;;  %v328_v32 = vld [vmem:[%s1181_s8 + $0xa0] sm:$0xff]  ;;  %v329_v35 = vld [vmem:[%s1181_s8 + $0xa8] sm:$0xff] }
  0x19   : > { %259 = vst.msk [vmem:[#allocation2 + $0x40] sm:$0x3] %vm252_vm1, %v1057_v5  ;;  %262 = vst.msk [vmem:[#allocation2 + $0x58] sm:$0x3] %vm252_vm1, %v1057_v5  ;;  %v330_v36 = vld [vmem:[%s1181_s8 + $0xb0] sm:$0xff]  ;;  %v331_v37 = vld [vmem:[%s1181_s8 + $0xb8] sm:$0xff] }
  0x1a   : > { %265 = vst.msk [vmem:[#allocation2 + $0x70] sm:$0x3] %vm252_vm1, %v1057_v5  ;;  %268 = vst.msk [vmem:[#allocation2 + $0x88] sm:$0x3] %vm252_vm1, %v1057_v5  ;;  %v316_v40 = vld [vmem:[%s1181_s8 + $0x40] sm:$0xff]  ;;  %v317_v41 = vld [vmem:[%s1181_s8 + $0x48] sm:$0xff] }
  0x1b   : > { %271 = vst.msk [vmem:[#allocation2 + $0xa0] sm:$0x3] %vm252_vm1, %v1057_v5  ;;  %274 = vst.msk [vmem:[#allocation2 + $0xb8] sm:$0x3] %vm252_vm1, %v1057_v5  ;;  %v318_v42 = vld [vmem:[%s1181_s8 + $0x50] sm:$0xff] }
  0x1c   : > { %277 = vst.msk [vmem:[#allocation2 + $0xd0] sm:$0x3] %vm252_vm1, %v1057_v5  ;;  %280 = vst.msk [vmem:[#allocation2 + $0xe8] sm:$0x3] %vm252_vm1, %v1057_v5 }
  0x1d   : > { %283 = vst.msk [vmem:[#allocation2 + $0x100] sm:$0x3] %vm252_vm1, %v1057_v5  ;;  %286 = vst.msk [vmem:[#allocation2 + $0x118] sm:$0x3] %vm252_vm1, %v1057_v5 }
  0x1e   : > { %289 = vst.msk [vmem:[#allocation2 + $0x130] sm:$0x3] %vm252_vm1, %v1057_v5  ;;  %292 = vst.msk [vmem:[#allocation2 + $0x148] sm:$0x3] %vm252_vm1, %v1057_v5 }
  0x1f   : > { %295 = vst.msk [vmem:[#allocation2 + $0x160] sm:$0x3] %vm252_vm1, %v1057_v5  ;;  %298 = vst.msk [vmem:[#allocation2 + $0x178] sm:$0x3] %vm252_vm1, %v1057_v5  ;;  %v450_v21 = vld [vmem:[#allocation2 + $0x2] ss:$2 sm:$0xff] }
  0x20   : > { %301 = vst.msk [vmem:[#allocation2 + $0x190] sm:$0x3] %vm252_vm1, %v1057_v5  ;;  %v470_v34 = vmul.f32 %v1205_v15, %v450_v21 }
  0x21   : > { %341 = vst.msk [vmem:[#allocation2 + $0x19] sm:$0xff] %vm249_vm0, %v308_v9  ;;  %342 = vst.msk [vmem:[#allocation2 + $0x21] sm:$0xff] %vm249_vm0, %v309_v10 }
  0x22   : > { %343 = vst.msk [vmem:[#allocation2 + $0x31] sm:$0xff] %vm249_vm0, %v310_v11  ;;  %344 = vst.msk [vmem:[#allocation2 + $0x39] sm:$0xff] %vm249_vm0, %v311_v12  ;;  %v478_v56 = vadd.f32 %v470_v34, %v441_v33  ;;  %v1292_v33 = vld [vmem:[%s1407_s2] ss:$0 sm:$0xff] }
  0x23   : > { %345 = vst.msk [vmem:[#allocation2 + $0x49] sm:$0xff] %vm249_vm0, %v312_v13  ;;  %346 = vst.msk [vmem:[#allocation2 + $0x51] sm:$0xff] %vm249_vm0, %v313_v14 }
  0x24   : > { %347 = vst.msk [vmem:[#allocation2 + $0x61] sm:$0xff] %vm249_vm0, %v314_v16  ;;  %348 = vst.msk [vmem:[#allocation2 + $0x69] sm:$0xff] %vm249_vm0, %v315_v17 }
  0x25   : > { %355 = vst.msk [vmem:[#allocation2 + $0xc1] sm:$0xff] %vm249_vm0, %v322_v22  ;;  %356 = vst.msk [vmem:[#allocation2 + $0xc9] sm:$0xff] %vm249_vm0, %v323_v27 }
  0x26   : > { %357 = vst.msk [vmem:[#allocation2 + $0xd9] sm:$0xff] %vm249_vm0, %v324_v28  ;;  %358 = vst.msk [vmem:[#allocation2 + $0xe1] sm:$0xff] %vm249_vm0, %v325_v29 }
  0x27   : > { %359 = vst.msk [vmem:[#allocation2 + $0xf1] sm:$0xff] %vm249_vm0, %v326_v30  ;;  %360 = vst.msk [vmem:[#allocation2 + $0xf9] sm:$0xff] %vm249_vm0, %v327_v31 }
  0x28   : > { %361 = vst.msk [vmem:[#allocation2 + $0x109] sm:$0xff] %vm249_vm0, %v328_v32  ;;  %362 = vst.msk [vmem:[#allocation2 + $0x111] sm:$0xff] %vm249_vm0, %v329_v35  ;;  %v486_v43 = vld [vmem:[#allocation2 + $0x18] ss:$2 sm:$0xff]  ;;  %v515_v44 = vld [vmem:[#allocation2 + $0x19] ss:$2 sm:$0xff] }
  0x29   : > { %363 = vst.msk [vmem:[#allocation2 + $0x121] sm:$0xff] %vm249_vm0, %v330_v36  ;;  %364 = vst.msk [vmem:[#allocation2 + $0x129] sm:$0xff] %vm249_vm0, %v331_v37  ;;  %v552_v45 = vld [vmem:[#allocation2 + $0x1a] ss:$2 sm:$0xff]  ;;  %v415_v48 = vld [vmem:[#allocation2 + $0x31] ss:$2 sm:$0xff]  ;;  %v506_v50 = vmul.f32 %v1220_v24, %v486_v43  ;;  %v535_v51 = vmul.f32 %v1225_v25, %v515_v44 }
  0x2a   : > { %349 = vst.msk [vmem:[#allocation2 + $0x79] sm:$0xff] %vm249_vm0, %v316_v40  ;;  %350 = vst.msk [vmem:[#allocation2 + $0x81] sm:$0xff] %vm249_vm0, %v317_v41  ;;  %v386_v47 = vld [vmem:[#allocation2 + $0x30] ss:$2 sm:$0xff]  ;;  %v572_v52 = vmul.f32 %v1230_v26, %v552_v45  ;;  %v434_v54 = vmul.f32 %v1191_v8, %v415_v48  ;;  %v517_v58 = vld [vmem:[#allocation2 + $0x49] ss:$2 sm:$0xff] }
  0x2b   : > { %351 = vst.msk [vmem:[#allocation2 + $0x91] sm:$0xff] %vm249_vm0, %v318_v42  ;;  %v452_v49 = vld [vmem:[#allocation2 + $0x32] ss:$2 sm:$0xff]  ;;  %v405_v53 = vmul.f32 %v1186_v7, %v386_v47  ;;  %v536_v61 = vmul.f32 %v1225_v25, %v517_v58  ;;  %v543_v62 = vadd.f32 %v535_v51, %v506_v50  ;;  %v626_v2 = vld [vmem:[#allocation2 + $0x31] ss:$2 sm:$0xff] }
  0x2c   : > { %v471_v55 = vmul.f32 %v1205_v15, %v452_v49  ;;  %v488_v57 = vld [vmem:[#allocation2 + $0x48] ss:$2 sm:$0xff]  ;;  %v628_v6 = vld [vmem:[#allocation2 + $0x61] ss:$2 sm:$0xff]  ;;  %v646_v9 = vmul.f32 %v1257_v39, %v626_v2 }
  0x2d   : > { %v554_v59 = vld [vmem:[#allocation2 + $0x4a] ss:$2 sm:$0xff]  ;;  %v507_v60 = vmul.f32 %v1220_v24, %v488_v57  ;;  %v442_v3 = vadd.f32 %v434_v54, %v405_v53  ;;  %v580_v13 = vadd.f32 %v572_v52, %v543_v62  ;;  %v647_v14 = vmul.f32 %v1257_v39, %v628_v6  ;;  %v421_v19 = vld [vmem:[#allocation2 + $0xc1] ss:$2 sm:$0xff]  ;;  %v560_v45 = vld [vmem:[#allocation2 + $0xda] ss:$2 sm:$0xff] }
  0x2e   : > { %v573_v63 = vmul.f32 %v1230_v26, %v554_v59  ;;  %v597_v0 = vld [vmem:[#allocation2 + $0x30] ss:$2 sm:$0xff]  ;;  %v599_v1 = vld [vmem:[#allocation2 + $0x60] ss:$2 sm:$0xff]  ;;  %v423_v27 = vld [vmem:[#allocation2 + $0xf1] ss:$2 sm:$0xff]  ;;  %v437_v40 = vmul.f32 %v1191_v8, %v421_v19 }
  0x2f   : > { %v617_v4 = vmul.f32 %v1252_v38, %v597_v0  ;;  %v618_v5 = vmul.f32 %v1252_v38, %v599_v1  ;;  %v663_v10 = vld [vmem:[#allocation2 + $0x32] ss:$2 sm:$0xff]  ;;  %v665_v11 = vld [vmem:[#allocation2 + $0x62] ss:$2 sm:$0xff]  ;;  %v544_v12 = vadd.f32 %v536_v61, %v507_v60  ;;  %v479_v20 = vadd.f32 %v471_v55, %v442_v3  ;;  %v523_v43 = vld [vmem:[#allocation2 + $0xd9] ss:$2 sm:$0xff] }
  0x30   : > { %v683_v16 = vmul.f32 %v1268_v46, %v663_v10  ;;  %v392_v17 = vld [vmem:[#allocation2 + $0xc0] ss:$2 sm:$0xff]  ;;  %v394_v18 = vld [vmem:[#allocation2 + $0xf0] ss:$2 sm:$0xff]  ;;  %v684_v22 = vmul.f32 %v1268_v46, %v665_v11  ;;  %v588_v31 = vadd.f32 %v580_v13, %v478_v56  ;;  %v438_v41 = vmul.f32 %v1191_v8, %v423_v27  ;;  %v525_v44 = vld [vmem:[#allocation2 + $0x109] ss:$2 sm:$0xff] }
  0x31   : > { %v654_v21 = vadd.f32 %v646_v9, %v617_v4  ;;  %v408_v23 = vmul.f32 %v1186_v7, %v392_v17  ;;  %v458_v28 = vld [vmem:[#allocation2 + $0xc2] ss:$2 sm:$0xff]  ;;  %v460_v29 = vld [vmem:[#allocation2 + $0xf2] ss:$2 sm:$0xff]  ;;  %v581_v30 = vadd.f32 %v573_v63, %v544_v12  ;;  %v655_v32 = vadd.f32 %v647_v14, %v618_v5  ;;  %v634_v58 = vld [vmem:[#allocation2 + $0xf1] ss:$2 sm:$0xff] }
  0x32   : > { %v409_v34 = vmul.f32 %v1186_v7, %v394_v18  ;;  %v494_v35 = vld [vmem:[#allocation2 + $0xd8] ss:$2 sm:$0xff]  ;;  %v496_v36 = vld [vmem:[#allocation2 + $0x108] ss:$2 sm:$0xff]  ;;  %v474_v42 = vmul.f32 %v1205_v15, %v458_v28  ;;  %v475_v49 = vmul.f32 %v1205_v15, %v460_v29  ;;  %v636_v59 = vld [vmem:[#allocation2 + $0x121] ss:$2 sm:$0xff]  ;;  %v539_v62 = vmul.f32 %v1225_v25, %v523_v43 }
  0x33   : > { %v691_v37 = vadd.f32 %v683_v16, %v654_v21  ;;  %v589_v47 = vadd.f32 %v581_v30, %v479_v20  ;;  %v692_v48 = vadd.f32 %v684_v22, %v655_v32  ;;  %v510_v50 = vmul.f32 %v1220_v24, %v494_v35  ;;  %v562_v51 = vld [vmem:[#allocation2 + $0x10a] ss:$2 sm:$0xff]  ;;  %v320_v2 = vld [vmem:[%s1181_s8 + $0x60] sm:$0xff] }
  0x34   : > { %v605_v52 = vld [vmem:[#allocation2 + $0xf0] ss:$2 sm:$0xff]  ;;  %v607_v53 = vld [vmem:[#allocation2 + $0x120] ss:$2 sm:$0xff]  ;;  %v445_v55 = vadd.f32 %v437_v40, %v408_v23  ;;  %v446_v56 = vadd.f32 %v438_v41, %v409_v34  ;;  %v511_v57 = vmul.f32 %v1220_v24, %v496_v36  ;;  %v540_v63 = vmul.f32 %v1225_v25, %v525_v44  ;;  %353 = vst.msk [vmem:[#allocation2 + $0xa9] sm:$0xff] %vm249_vm0, %v320_v2 }
  0x35   : > { %v699_v54 = vadd.f32 %v691_v37, %v588_v31  ;;  %v671_v60 = vld [vmem:[#allocation2 + $0xf2] ss:$2 sm:$0xff]  ;;  %v700_v61 = vadd.f32 %v692_v48, %v589_v47  ;;  %v576_v0 = vmul.f32 %v1230_v26, %v560_v45  ;;  %v321_v3 = vld [vmem:[%s1181_s8 + $0x68] sm:$0xff]  ;;  %v577_v9 = vmul.f32 %v1230_v26, %v562_v51  ;;  %v519_v20 = vld [vmem:[#allocation2 + $0x79] ss:$2 sm:$0xff] }
  0x36   : > { %v319_v1 = vld [vmem:[%s1181_s8 + $0x58] sm:$0xff]  ;;  %v482_v5 = vadd.f32 %v474_v42, %v445_v55  ;;  %v483_v6 = vadd.f32 %v475_v49, %v446_v56  ;;  %v673_v10 = vld [vmem:[#allocation2 + $0x122] ss:$2 sm:$0xff]  ;;  %354 = vst.msk [vmem:[#allocation2 + $0xb1] sm:$0xff] %vm249_vm0, %v321_v3  ;;  %v417_v12 = vld [vmem:[#allocation2 + $0x61] ss:$2 sm:$0xff]  ;;  %v547_v14 = vadd.f32 %v539_v62, %v510_v50  ;;  %v548_v16 = vadd.f32 %v540_v63, %v511_v57 }
  0x37   : > { %v714_v4 = vadd.f32 %v1292_v33, %v699_v54  ;;  %352 = vst.msk [vmem:[#allocation2 + $0x99] sm:$0xff] %vm249_vm0, %v319_v1  ;;  %v388_v11 = vld [vmem:[#allocation2 + $0x60] ss:$2 sm:$0xff]  ;;  %v715_v13 = vadd.f32 %v1292_v33, %v700_v61  ;;  %v621_v17 = vmul.f32 %v1252_v38, %v605_v52  ;;  %v622_v21 = vmul.f32 %v1252_v38, %v607_v53  ;;  %v632_v30 = vld [vmem:[#allocation2 + $0xc1] ss:$2 sm:$0xff]  ;;  %v334_v41 = vld [vmem:[%s1181_s8 + $0xd0] sm:$0xff] }
  0x38   : > { %v454_v18 = vld [vmem:[#allocation2 + $0x62] ss:$2 sm:$0xff]  ;;  %v650_v22 = vmul.f32 %v1257_v39, %v634_v58  ;;  %v651_v23 = vmul.f32 %v1257_v39, %v636_v59  ;;  %v687_v27 = vmul.f32 %v1268_v46, %v671_v60  ;;  %v584_v34 = vadd.f32 %v576_v0, %v547_v14  ;;  %v335_v47 = vld [vmem:[%s1181_s8 + $0xd8] sm:$0xff]  ;;  %367 = vst.msk [vmem:[#allocation2 + $0x151] sm:$0xff] %vm249_vm0, %v334_v41 }
  0x39   : > { %v490_v19 = vld [vmem:[#allocation2 + $0x78] ss:$2 sm:$0xff]  ;;  %v722_v32 = vpack.c.bf16 %v715_v13, %v714_v4  ;;  %v585_v35 = vadd.f32 %v577_v9, %v548_v16  ;;  %v688_v36 = vmul.f32 %v1268_v46, %v673_v10  ;;  %v333_v40 = vld [vmem:[%s1181_s8 + $0xc8] sm:$0xff]  ;;  %v406_v44 = vmul.f32 %v1186_v7, %v388_v11  ;;  %v338_v54 = vld [vmem:[%s1181_s8 + $0xf0] sm:$0xff]  ;;  %368 = vst.msk [vmem:[#allocation2 + $0x159] sm:$0xff] %vm249_vm0, %v335_v47 }
  0x3a   : > { %v556_v28 = vld [vmem:[#allocation2 + $0x7a] ss:$2 sm:$0xff]  ;;  %v658_v42 = vadd.f32 %v650_v22, %v621_v17  ;;  %v659_v43 = vadd.f32 %v651_v23, %v622_v21  ;;  %v435_v45 = vmul.f32 %v1191_v8, %v417_v12  ;;  %366 = vst.msk [vmem:[#allocation2 + $0x141] sm:$0xff] %vm249_vm0, %v333_v40  ;;  %v592_v50 = vadd.f32 %v584_v34, %v482_v5 }
  0x3b   : > { %v603_v29 = vld [vmem:[#allocation2 + $0xc0] ss:$2 sm:$0xff]  ;;  %996 = vmatprep.mubr.msk.bf16.mxu0 %vm249_vm0, %v722_v32  ;;  %v593_v51 = vadd.f32 %v585_v35, %v483_v6  ;;  %v472_v52 = vmul.f32 %v1205_v15, %v454_v18  ;;  %v508_v53 = vmul.f32 %v1220_v24, %v490_v19  ;;  %v339_v55 = vld [vmem:[%s1181_s8 + $0xf8] sm:$0xff]  ;;  %v537_v59 = vmul.f32 %v1225_v25, %v519_v20  ;;  %v425_v32 = vld [vmem:[#allocation2 + $0x121] ss:$2 sm:$0xff] }
  0x3c   : > { %v669_v31 = vld [vmem:[#allocation2 + $0xc2] ss:$2 sm:$0xff]  ;;  %v695_v56 = vadd.f32 %v687_v27, %v658_v42  ;;  %v696_v57 = vadd.f32 %v688_v36, %v659_v43  ;;  %v443_v58 = vadd.f32 %v435_v45, %v406_v44  ;;  %371 = vst.msk [vmem:[#allocation2 + $0x181] sm:$0xff] %vm249_vm0, %v338_v54  ;;  %372 = vst.msk [vmem:[#allocation2 + $0x189] sm:$0xff] %vm249_vm0, %v339_v55 }
  0x3d   : > { %v332_v37 = vld [vmem:[%s1181_s8 + $0xc0] sm:$0xff]  ;;  %v337_v49 = vld [vmem:[%s1181_s8 + $0xe8] sm:$0xff]  ;;  %v574_v63 = vmul.f32 %v1230_v26, %v556_v28  ;;  %v620_v0 = vmul.f32 %v1252_v38, %v603_v29  ;;  %v649_v1 = vmul.f32 %v1257_v39, %v632_v30  ;;  %v686_v2 = vmul.f32 %v1268_v46, %v669_v31 }
  0x3e   : > { %v336_v48 = vld [vmem:[%s1181_s8 + $0xe0] sm:$0xff]  ;;  %365 = vst.msk [vmem:[#allocation2 + $0x139] sm:$0xff] %vm249_vm0, %v332_v37  ;;  %370 = vst.msk [vmem:[#allocation2 + $0x171] sm:$0xff] %vm249_vm0, %v337_v49  ;;  %v390_v60 = vld [vmem:[#allocation2 + $0x90] ss:$2 sm:$0xff]  ;;  %v703_v3 = vadd.f32 %v695_v56, %v592_v50  ;;  %v704_v4 = vadd.f32 %v696_v57, %v593_v51  ;;  %v480_v13 = vadd.f32 %v472_v52, %v443_v58  ;;  %s985_s8 = sshll.u32 %s1416_s18, 6 }
  0x3f   : > { %369 = vst.msk [vmem:[#allocation2 + $0x169] sm:$0xff] %vm249_vm0, %v336_v48  ;;  %v419_v61 = vld [vmem:[#allocation2 + $0x91] ss:$2 sm:$0xff]  ;;  %v456_v62 = vld [vmem:[#allocation2 + $0x92] ss:$2 sm:$0xff]  ;;  %v407_v5 = vmul.f32 %v1186_v7, %v390_v60  ;;  %v545_v22 = vadd.f32 %v537_v59, %v508_v53  ;;  %v657_v37 = vadd.f32 %v649_v1, %v620_v0  ;;  %v439_v54 = vmul.f32 %v1191_v8, %v425_v32  ;;  %s246_s13 = scalar_lea.vmem %s1410_s5, %s985_s8 }
  0x40   : > { %v436_v6 = vmul.f32 %v1191_v8, %v419_v61  ;;  %v492_v9 = vld [vmem:[#allocation2 + $0xa8] ss:$2 sm:$0xff]  ;;  %v521_v10 = vld [vmem:[#allocation2 + $0xa9] ss:$2 sm:$0xff]  ;;  %v473_v12 = vmul.f32 %v1205_v15, %v456_v62  ;;  %v718_v19 = vadd.f32 %v1292_v33, %v703_v3  ;;  %v719_v20 = vadd.f32 %v1292_v33, %v704_v4 }
  0x41   : > { %v558_v11 = vld [vmem:[#allocation2 + $0xaa] ss:$2 sm:$0xff]  ;;  %v509_v14 = vmul.f32 %v1220_v24, %v492_v9  ;;  %v538_v16 = vmul.f32 %v1225_v25, %v521_v10  ;;  %v630_v18 = vld [vmem:[#allocation2 + $0x91] ss:$2 sm:$0xff]  ;;  %v582_v36 = vadd.f32 %v574_v63, %v545_v22  ;;  %v694_v52 = vadd.f32 %v686_v2, %v657_v37 }
  0x42   : > { %v601_v17 = vld [vmem:[#allocation2 + $0x90] ss:$2 sm:$0xff]  ;;  %v444_v21 = vadd.f32 %v436_v6, %v407_v5  ;;  %v396_v27 = vld [vmem:[#allocation2 + $0x120] ss:$2 sm:$0xff]  ;;  %v575_v29 = vmul.f32 %v1230_v26, %v558_v11  ;;  %v648_v31 = vmul.f32 %v1257_v39, %v630_v18  ;;  %v724_v34 = vpack.c.bf16 %v719_v20, %v718_v19  ;;  %v427_v41 = vld [vmem:[#allocation2 + $0x151] ss:$2 sm:$0xff] }
  0x43   : > { %v667_v23 = vld [vmem:[#allocation2 + $0x92] ss:$2 sm:$0xff]  ;;  %v546_v28 = vadd.f32 %v538_v16, %v509_v14  ;;  %v619_v30 = vmul.f32 %v1252_v38, %v601_v17  ;;  %v462_v42 = vld [vmem:[#allocation2 + $0x122] ss:$2 sm:$0xff]  ;;  %v410_v47 = vmul.f32 %v1186_v7, %v396_v27  ;;  %v590_v51 = vadd.f32 %v582_v36, %v480_v13 }
  0x44   : > { %v481_v35 = vadd.f32 %v473_v12, %v444_v21  ;;  %v398_v40 = vld [vmem:[#allocation2 + $0x150] ss:$2 sm:$0xff]  ;;  %v685_v45 = vmul.f32 %v1268_v46, %v667_v23  ;;  %1000 = vmatprep.mubr.msk.bf16.mxu1 %vm249_vm0, %v724_v34  ;;  %v440_v58 = vmul.f32 %v1191_v8, %v427_v41  ;;  %v476_v59 = vmul.f32 %v1205_v15, %v462_v42  ;;  %v611_v9 = vld [vmem:[#allocation2 + $0x180] ss:$2 sm:$0xff]  ;;  %v638_v8 = vld [vmem:[#allocation2 + $0x151] ss:$2 sm:$0xff] }
  0x45   : > { %v583_v43 = vadd.f32 %v575_v29, %v546_v28  ;;  %v656_v44 = vadd.f32 %v648_v31, %v619_v30  ;;  %v464_v48 = vld [vmem:[#allocation2 + $0x152] ss:$2 sm:$0xff]  ;;  %v411_v53 = vmul.f32 %v1186_v7, %v398_v40  ;;  %v527_v55 = vld [vmem:[#allocation2 + $0x139] ss:$2 sm:$0xff]  ;;  %v447_v63 = vadd.f32 %v439_v54, %v410_v47  ;;  %v677_v19 = vld [vmem:[#allocation2 + $0x182] ss:$2 sm:$0xff] }
  0x46   : > { %v498_v49 = vld [vmem:[#allocation2 + $0x138] ss:$2 sm:$0xff]  ;;  %v500_v50 = vld [vmem:[#allocation2 + $0x168] ss:$2 sm:$0xff]  ;;  %v529_v60 = vld [vmem:[#allocation2 + $0x169] ss:$2 sm:$0xff]  ;;  %v477_v0 = vmul.f32 %v1205_v15, %v464_v48  ;;  %v541_v5 = vmul.f32 %v1225_v25, %v527_v55  ;;  %v624_v22 = vmul.f32 %v1252_v38, %v611_v9  ;;  %v690_v31 = vmul.f32 %v1268_v46, %v677_v19 }
  0x47   : > { %v591_v56 = vadd.f32 %v583_v43, %v481_v35  ;;  %v693_v57 = vadd.f32 %v685_v45, %v656_v44  ;;  %v564_v61 = vld [vmem:[#allocation2 + $0x13a] ss:$2 sm:$0xff]  ;;  %v566_v62 = vld [vmem:[#allocation2 + $0x16a] ss:$2 sm:$0xff]  ;;  %v512_v1 = vmul.f32 %v1220_v24, %v498_v49  ;;  %v513_v2 = vmul.f32 %v1220_v24, %v500_v50  ;;  %v640_v15 = vld [vmem:[#allocation2 + $0x181] ss:$2 sm:$0xff] }
  0x48   : > { %v448_v4 = vadd.f32 %v440_v58, %v411_v53  ;;  %v609_v6 = vld [vmem:[#allocation2 + $0x150] ss:$2 sm:$0xff]  ;;  %v484_v10 = vadd.f32 %v476_v59, %v447_v63  ;;  %v542_v11 = vmul.f32 %v1225_v25, %v529_v60  ;;  %v578_v12 = vmul.f32 %v1230_v26, %v564_v61 }
  0x49   : > { %v701_v7 = vadd.f32 %v693_v57, %v590_v51  ;;  %v702_v3 = vadd.f32 %v694_v52, %v591_v56  ;;  %v579_v13 = vmul.f32 %v1230_v26, %v566_v62  ;;  %v675_v14 = vld [vmem:[#allocation2 + $0x152] ss:$2 sm:$0xff]  ;;  %v549_v18 = vadd.f32 %v541_v5, %v512_v1 }
  0x4a   : > { %v485_v17 = vadd.f32 %v477_v0, %v448_v4  ;;  %v550_v20 = vadd.f32 %v542_v11, %v513_v2  ;;  %v623_v21 = vmul.f32 %v1252_v38, %v609_v6  ;;  %v652_v25 = vmul.f32 %v1257_v39, %v638_v8 }
  0x4b   : > { %v716_v16 = vadd.f32 %v1292_v33, %v701_v7  ;;  %v717_v24 = vadd.f32 %v1292_v33, %v702_v3  ;;  %v586_v27 = vadd.f32 %v578_v12, %v549_v18  ;;  %v653_v26 = vmul.f32 %v1257_v39, %v640_v15 }
  0x4c   : > { %v689_v28 = vmul.f32 %v1268_v46, %v675_v14  ;;  %v587_v29 = vadd.f32 %v579_v13, %v550_v20  ;;  %v660_v30 = vadd.f32 %v652_v25, %v623_v21  ;;  %v977_v46 = vld [vmem:[%s1409_s4] ss:$0 sm:$0xff] }
  0x4d   : > { %v723_v23 = vpack.c.bf16 %v717_v24, %v716_v16  ;;  %v594_v32 = vadd.f32 %v586_v27, %v484_v10  ;;  %v661_v34 = vadd.f32 %v653_v26, %v624_v22 }
  0x4e   : > { %v595_v35 = vadd.f32 %v587_v29, %v485_v17  ;;  %v697_v36 = vadd.f32 %v689_v28, %v660_v30 }
  0x4f   : > { %997 = vmatmul.mubr.msk.bf16.vlgmr.msra.gmra.mrb[0].mxu0 %vm249_vm0, %v723_v23  ;;  %v698_v38 = vadd.f32 %v690_v31, %v661_v34 }
  0x50   : > { %v705_v37 = vadd.f32 %v697_v36, %v594_v32 }
  0x51   : > { %v706_v40 = vadd.f32 %v698_v38, %v595_v35 }
  0x52   : > { %v720_v41 = vadd.f32 %v1292_v33, %v705_v37 }
  0x53   : > { %v721_v39 = vadd.f32 %v1292_v33, %v706_v40 }
  0x55   : > { %v725_v42 = vpack.c.bf16 %v721_v39, %v720_v41 }
  0x57   : > { %1001 = vmatmul.mubr.msk.bf16.vlgmr.msra.gmra.mrb[0].mxu1 %vm249_vm0, %v725_v42 }
 0x122   : > { %v998_v43 = vpop.f32.mrb[0].mxu0 }
 0x123   : > { %v794_v44 = vadd.f32 %v998_v43, %v977_v46  ;;  %v785_v45 = vpop.f32.mrb[1].mxu0 }
 0x124   : > { %v786_v47 = vadd.f32 %v977_v46, %v785_v45  ;;  %v999_v48 = vpop.f32.mrb[2].mxu0 }
 0x125   : > { %819 = vst.msk [vmem:[%s246_s13 + $0x10] sm:$0xff] %vm816_vm2, %v794_v44  ;;  %v797_v33 = vadd.f32 %v999_v48, %v977_v46  ;;  %v788_v49 = vpop.f32.mrb[3].mxu0 }
 0x126   : > { %817 = vst.msk [vmem:[%s246_s13] sm:$0xff] %vm816_vm2, %v786_v47  ;;  %v789_v50 = vadd.f32 %v977_v46, %v788_v49 }
 0x127   : > { %820 = vst.msk [vmem:[%s246_s13 + $0x18] sm:$0xff] %vm816_vm2, %v797_v33 }
 0x128   : > { %818 = vst.msk [vmem:[%s246_s13 + $0x8] sm:$0xff] %vm816_vm2, %v789_v50 }
 0x12a   : > { %v1002_v51 = vpop.f32.mrb[0].mxu1 }
 0x12b   : > { %v810_v52 = vadd.f32 %v1002_v51, %v977_v46  ;;  %v801_v53 = vpop.f32.mrb[1].mxu1 }
 0x12c   : > { %v802_v54 = vadd.f32 %v977_v46, %v801_v53  ;;  %v1003_v55 = vpop.f32.mrb[2].mxu1 }
 0x12d   : > { %823 = vst.msk [vmem:[%s246_s13 + $0x30] sm:$0xff] %vm816_vm2, %v810_v52  ;;  %v813_v56 = vadd.f32 %v1003_v55, %v977_v46  ;;  %v804_v57 = vpop.f32.mrb[3].mxu1 }
 0x12e   : > { %821 = vst.msk [vmem:[%s246_s13 + $0x20] sm:$0xff] %vm816_vm2, %v802_v54  ;;  %v805_v58 = vadd.f32 %v977_v46, %v804_v57 }
 0x12f   : > { %824 = vst.msk [vmem:[%s246_s13 + $0x38] sm:$0xff] %vm816_vm2, %v813_v56 }
 0x130   : > { %822 = vst.msk [vmem:[%s246_s13 + $0x28] sm:$0xff] %vm816_vm2, %v805_v58 }
 0x131 PF: > { %s15_s20 = sadd.s32 1, %s1055_s20   ;;  %s1411_s18 = smov %s1051_s19 }
 0x132   : > { %p12_p5 = scmp.ge.s32.totalorder %s15_s20, 4   ;;  %s1412_s19 = smov %s1414_s21 }
 0x134   :  { %14 = sbr.rel (!%p12_p5) target bundleno = 2 (0x2), region = 147 }

// kernel: ghost_bottleneck_forward.5
= control target key start
LH: loop header
LB: loop body
LE: loop exit
PB: predicated region body
PF: predicated region fallthrough
CT: control target
= control target key end

     0   :  { %s901_s12 = smov 0   ;;  %s903_s13 = smov 0   ;;  %s1209_s0 = inlined_call_operand.vmem [shape: f32[2,16,16,32], index: 0, kind: input, shape index: {}]   ;;  %s1210_s1 = inlined_call_operand.vmem [shape: f32[9,32], index: 1, kind: input, shape index: {}]   ;;  %s1211_s2 = inlined_call_operand.vmem [shape: f32[1,32], index: 2, kind: input, shape index: {}]   ;;  %s1212_s3 = inlined_call_operand.vmem [shape: f32[2,8,8,32], index: 3, kind: output, shape index: {}]  }
   0x1   :  { %s905_s14 = smov 0  }
   0x2 LB: > { %s25_s15 = sadd.s32 1, %s874_s13  ;;  %p810_p0 = scmp.ge.s32.totalorder %s878_s14, 1  ;;  %s878_s14 = sphi %s905_s14, %s13_s14   ;;  %s874_s13 = sphi %s903_s13, %s1214_s13   ;;  %s870_s12 = sphi %s901_s12, %s1213_s12  }
   0x3   : > { %p27_p1 = scmp.ge.s32.totalorder %s25_s15, 2  ;;  %p151_p2 = scmp.lt.s32.totalorder %s878_s14, 3 }
   0x5   : > { %s1216_s15 = smov (%p27_p1, %s25_s15), 0  ;;  %p152_p3 = pnand %p810_p0, %p151_p2 }
   0x6   : > { %vm194_vm0 = vcmask (!%p152_p3), 261120   ;;  %vm197_vm1 = vcmask (!%p152_p3), 254976   ;;  %p179_p4 = scmp.lt.s32.totalorder (!%p152_p3), %s870_s12, 1  ;;  %v880_v0 = vmov (!%p152_p3), 0.0   ;;  %v1026_v22 = vld [vmem:[%s1210_s1] ss:$0 sm:$0xff] (!%p152_p3) }
   0x7   : > { %155 = sbr.rel (%p152_p3) target bundleno = 86 (0x56), region = 32  ;;  %195 = vst.msk [vmem:[#allocation2] sm:$0xff] (!%p152_p3), %vm194_vm0, %v880_v0  ;;  %196 = vst.msk [vmem:[#allocation2 + $0x8] sm:$0xff] (!%p152_p3), %vm194_vm0, %v880_v0  ;;  %v1037_v26 = vld [vmem:[%s1210_s1 + $0x1] ss:$0 sm:$0xff] (!%p152_p3) }
   0x8   : > { %199 = vst.msk [vmem:[#allocation2 + $0x18] sm:$0xff] (!%p152_p3), %vm194_vm0, %v880_v0  ;;  %200 = vst.msk [vmem:[#allocation2 + $0x20] sm:$0xff] (!%p152_p3), %vm194_vm0, %v880_v0  ;;  %v1042_v27 = vld [vmem:[%s1210_s1 + $0x2] ss:$0 sm:$0xff] (!%p152_p3)  ;;  %v1047_v28 = vld [vmem:[%s1210_s1 + $0x3] ss:$0 sm:$0xff] (!%p152_p3) }
   0x9   : > { %202 = vst.msk [vmem:[#allocation2 + $0x30] sm:$0xff] (!%p152_p3), %vm194_vm0, %v880_v0  ;;  %203 = vst.msk [vmem:[#allocation2 + $0x38] sm:$0xff] (!%p152_p3), %vm194_vm0, %v880_v0  ;;  %v1058_v32 = vld [vmem:[%s1210_s1 + $0x4] ss:$0 sm:$0xff] (!%p152_p3)  ;;  %v1063_v33 = vld [vmem:[%s1210_s1 + $0x5] ss:$0 sm:$0xff] (!%p152_p3) }
   0xa   : > { %205 = vst.msk [vmem:[#allocation2 + $0x48] sm:$0xff] (!%p152_p3), %vm194_vm0, %v880_v0  ;;  %206 = vst.msk [vmem:[#allocation2 + $0x50] sm:$0xff] (!%p152_p3), %vm194_vm0, %v880_v0  ;;  %v1068_v34 = vld [vmem:[%s1210_s1 + $0x6] ss:$0 sm:$0xff] (!%p152_p3)  ;;  %v1079_v38 = vld [vmem:[%s1210_s1 + $0x7] ss:$0 sm:$0xff] (!%p152_p3) }
   0xb   : > { %208 = vst.msk [vmem:[#allocation2 + $0x60] sm:$0xff] (!%p152_p3), %vm194_vm0, %v880_v0  ;;  %209 = vst.msk [vmem:[#allocation2 + $0x68] sm:$0xff] (!%p152_p3), %vm194_vm0, %v880_v0  ;;  %v1084_v39 = vld [vmem:[%s1210_s1 + $0x8] ss:$0 sm:$0xff] (!%p152_p3) }
   0xc   : > { %211 = vst.msk [vmem:[#allocation2 + $0x78] sm:$0xff] (!%p152_p3), %vm194_vm0, %v880_v0  ;;  %212 = vst.msk [vmem:[#allocation2 + $0x80] sm:$0xff] (!%p152_p3), %vm194_vm0, %v880_v0 }
   0xd   : > { %214 = vst.msk [vmem:[#allocation2 + $0x90] sm:$0xff] (!%p152_p3), %vm194_vm0, %v880_v0  ;;  %215 = vst.msk [vmem:[#allocation2 + $0x98] sm:$0xff] (!%p152_p3), %vm194_vm0, %v880_v0 }
   0xe   : > { %217 = vst.msk [vmem:[#allocation2 + $0xa8] sm:$0xff] %vm194_vm0, %v880_v0  ;;  %218 = vst.msk [vmem:[#allocation2 + $0xb0] sm:$0xff] %vm194_vm0, %v880_v0  ;;  %s1218_s12 = smov (!%p179_p4, %s870_s12), 1  ;;  %v329_v42 = vld [vmem:[#allocation2] ss:$2 sm:$0xff] }
   0xf   : > { %220 = vst.msk [vmem:[#allocation2 + $0xc0] sm:$0xff] %vm194_vm0, %v880_v0  ;;  %221 = vst.msk [vmem:[#allocation2 + $0xc8] sm:$0xff] %vm194_vm0, %v880_v0  ;;  %s829_s16 = sshll.u32 %s1218_s12, 8  ;;  %v349_v43 = vmul.f32 %v1026_v22, %v329_v42  ;;  %v358_v44 = vld [vmem:[#allocation2 + $0x1] ss:$2 sm:$0xff]  ;;  %s830_s11 = sshll.u32 %s1218_s12, 6 }
  0x10   : > { %223 = vst.msk [vmem:[#allocation2 + $0xd8] sm:$0xff] %vm194_vm0, %v880_v0  ;;  %224 = vst.msk [vmem:[#allocation2 + $0xe0] sm:$0xff] %vm194_vm0, %v880_v0  ;;  %s982_s19 = scalar_lea.vmem %s1209_s0, %s829_s16  ;;  %v378_v47 = vmul.f32 %v1037_v26, %v358_v44  ;;  %v1117_v44 = vld [vmem:[%s1211_s2] ss:$0 sm:$0xff] }
  0x11   : > { %226 = vst.msk [vmem:[#allocation2 + $0xf0] sm:$0xff] %vm194_vm0, %v880_v0  ;;  %227 = vst.msk [vmem:[#allocation2 + $0xf8] sm:$0xff] %vm194_vm0, %v880_v0  ;;  %v253_v1 = vld [vmem:[%s982_s19] sm:$0xff]  ;;  %v254_v2 = vld [vmem:[%s982_s19 + $0x8] sm:$0xff] }
  0x12   : > { %229 = vst.msk [vmem:[#allocation2 + $0x108] sm:$0xff] %vm194_vm0, %v880_v0  ;;  %230 = vst.msk [vmem:[#allocation2 + $0x110] sm:$0xff] %vm194_vm0, %v880_v0  ;;  %v255_v3 = vld [vmem:[%s982_s19 + $0x10] sm:$0xff]  ;;  %v256_v4 = vld [vmem:[%s982_s19 + $0x18] sm:$0xff]  ;;  %v386_v59 = vadd.f32 %v378_v47, %v349_v43 }
  0x13   : > { %232 = vst.msk [vmem:[#allocation2 + $0x120] sm:$0xff] %vm194_vm0, %v880_v0  ;;  %233 = vst.msk [vmem:[#allocation2 + $0x128] sm:$0xff] %vm194_vm0, %v880_v0  ;;  %v257_v5 = vld [vmem:[%s982_s19 + $0x20] sm:$0xff]  ;;  %v258_v6 = vld [vmem:[%s982_s19 + $0x28] sm:$0xff] }
  0x14   : > { %235 = vst.msk [vmem:[#allocation2 + $0x138] sm:$0xff] %vm194_vm0, %v880_v0  ;;  %236 = vst.msk [vmem:[#allocation2 + $0x140] sm:$0xff] %vm194_vm0, %v880_v0  ;;  %v259_v7 = vld [vmem:[%s982_s19 + $0x30] sm:$0xff]  ;;  %v260_v8 = vld [vmem:[%s982_s19 + $0x38] sm:$0xff] }
  0x15   : > { %238 = vst.msk [vmem:[#allocation2 + $0x150] sm:$0xff] %vm194_vm0, %v880_v0  ;;  %239 = vst.msk [vmem:[#allocation2 + $0x158] sm:$0xff] %vm194_vm0, %v880_v0  ;;  %v261_v9 = vld [vmem:[%s982_s19 + $0x40] sm:$0xff]  ;;  %v262_v10 = vld [vmem:[%s982_s19 + $0x48] sm:$0xff] }
  0x16   : > { %241 = vst.msk [vmem:[#allocation2 + $0x168] sm:$0xff] %vm194_vm0, %v880_v0  ;;  %242 = vst.msk [vmem:[#allocation2 + $0x170] sm:$0xff] %vm194_vm0, %v880_v0  ;;  %v263_v11 = vld [vmem:[%s982_s19 + $0x50] sm:$0xff]  ;;  %v264_v12 = vld [vmem:[%s982_s19 + $0x58] sm:$0xff] }
  0x17   : > { %244 = vst.msk [vmem:[#allocation2 + $0x180] sm:$0xff] %vm194_vm0, %v880_v0  ;;  %245 = vst.msk [vmem:[#allocation2 + $0x188] sm:$0xff] %vm194_vm0, %v880_v0  ;;  %v265_v13 = vld [vmem:[%s982_s19 + $0x60] sm:$0xff]  ;;  %v266_v14 = vld [vmem:[%s982_s19 + $0x68] sm:$0xff] }
  0x18   : > { %201 = vst.msk [vmem:[#allocation2 + $0x28] sm:$0x3] %vm197_vm1, %v880_v0  ;;  %198 = vst.msk [vmem:[#allocation2 + $0x10] sm:$0x3] %vm197_vm1, %v880_v0  ;;  %v267_v15 = vld [vmem:[%s982_s19 + $0x70] sm:$0xff]  ;;  %v268_v16 = vld [vmem:[%s982_s19 + $0x78] sm:$0xff] }
  0x19   : > { %204 = vst.msk [vmem:[#allocation2 + $0x40] sm:$0x3] %vm197_vm1, %v880_v0  ;;  %207 = vst.msk [vmem:[#allocation2 + $0x58] sm:$0x3] %vm197_vm1, %v880_v0  ;;  %v269_v17 = vld [vmem:[%s982_s19 + $0x80] sm:$0xff]  ;;  %v270_v18 = vld [vmem:[%s982_s19 + $0x88] sm:$0xff] }
  0x1a   : > { %210 = vst.msk [vmem:[#allocation2 + $0x70] sm:$0x3] %vm197_vm1, %v880_v0  ;;  %213 = vst.msk [vmem:[#allocation2 + $0x88] sm:$0x3] %vm197_vm1, %v880_v0  ;;  %v271_v19 = vld [vmem:[%s982_s19 + $0x90] sm:$0xff]  ;;  %v272_v20 = vld [vmem:[%s982_s19 + $0x98] sm:$0xff] }
  0x1b   : > { %216 = vst.msk [vmem:[#allocation2 + $0xa0] sm:$0x3] %vm197_vm1, %v880_v0  ;;  %219 = vst.msk [vmem:[#allocation2 + $0xb8] sm:$0x3] %vm197_vm1, %v880_v0  ;;  %v273_v21 = vld [vmem:[%s982_s19 + $0xa0] sm:$0xff]  ;;  %v274_v23 = vld [vmem:[%s982_s19 + $0xa8] sm:$0xff] }
  0x1c   : > { %222 = vst.msk [vmem:[#allocation2 + $0xd0] sm:$0x3] %vm197_vm1, %v880_v0  ;;  %225 = vst.msk [vmem:[#allocation2 + $0xe8] sm:$0x3] %vm197_vm1, %v880_v0  ;;  %v275_v24 = vld [vmem:[%s982_s19 + $0xb0] sm:$0xff]  ;;  %v276_v25 = vld [vmem:[%s982_s19 + $0xb8] sm:$0xff] }
  0x1d   : > { %228 = vst.msk [vmem:[#allocation2 + $0x100] sm:$0x3] %vm197_vm1, %v880_v0  ;;  %231 = vst.msk [vmem:[#allocation2 + $0x118] sm:$0x3] %vm197_vm1, %v880_v0  ;;  %v277_v29 = vld [vmem:[%s982_s19 + $0xc0] sm:$0xff]  ;;  %v278_v30 = vld [vmem:[%s982_s19 + $0xc8] sm:$0xff] }
  0x1e   : > { %234 = vst.msk [vmem:[#allocation2 + $0x130] sm:$0x3] %vm197_vm1, %v880_v0  ;;  %237 = vst.msk [vmem:[#allocation2 + $0x148] sm:$0x3] %vm197_vm1, %v880_v0  ;;  %v279_v31 = vld [vmem:[%s982_s19 + $0xd0] sm:$0xff]  ;;  %v280_v35 = vld [vmem:[%s982_s19 + $0xd8] sm:$0xff] }
  0x1f   : > { %240 = vst.msk [vmem:[#allocation2 + $0x160] sm:$0x3] %vm197_vm1, %v880_v0  ;;  %243 = vst.msk [vmem:[#allocation2 + $0x178] sm:$0x3] %vm197_vm1, %v880_v0  ;;  %v281_v36 = vld [vmem:[%s982_s19 + $0xe0] sm:$0xff]  ;;  %v282_v37 = vld [vmem:[%s982_s19 + $0xe8] sm:$0xff] }
  0x20   : > { %246 = vst.msk [vmem:[#allocation2 + $0x190] sm:$0x3] %vm197_vm1, %v880_v0  ;;  %v283_v40 = vld [vmem:[%s982_s19 + $0xf0] sm:$0xff]  ;;  %v284_v41 = vld [vmem:[%s982_s19 + $0xf8] sm:$0xff]  ;;  %s1126_s19 = scalar_lea.vmem %s1212_s3, %s830_s11 }
  0x21   : > { %286 = vst.msk [vmem:[#allocation2 + $0x19] sm:$0xff] %vm194_vm0, %v253_v1  ;;  %287 = vst.msk [vmem:[#allocation2 + $0x21] sm:$0xff] %vm194_vm0, %v254_v2  ;;  %v395_v45 = vld [vmem:[#allocation2 + $0x2] ss:$2 sm:$0xff] }
  0x22   : > { %288 = vst.msk [vmem:[#allocation2 + $0x31] sm:$0xff] %vm194_vm0, %v255_v3  ;;  %289 = vst.msk [vmem:[#allocation2 + $0x39] sm:$0xff] %vm194_vm0, %v256_v4  ;;  %v415_v48 = vmul.f32 %v1042_v27, %v395_v45 }
  0x23   : > { %290 = vst.msk [vmem:[#allocation2 + $0x49] sm:$0xff] %vm194_vm0, %v257_v5  ;;  %291 = vst.msk [vmem:[#allocation2 + $0x51] sm:$0xff] %vm194_vm0, %v258_v6 }
  0x24   : > { %292 = vst.msk [vmem:[#allocation2 + $0x61] sm:$0xff] %vm194_vm0, %v259_v7  ;;  %293 = vst.msk [vmem:[#allocation2 + $0x69] sm:$0xff] %vm194_vm0, %v260_v8 }
  0x25   : > { %294 = vst.msk [vmem:[#allocation2 + $0x79] sm:$0xff] %vm194_vm0, %v261_v9  ;;  %295 = vst.msk [vmem:[#allocation2 + $0x81] sm:$0xff] %vm194_vm0, %v262_v10  ;;  %v423_v9 = vadd.f32 %v415_v48, %v386_v59 }
  0x26   : > { %296 = vst.msk [vmem:[#allocation2 + $0x91] sm:$0xff] %vm194_vm0, %v263_v11  ;;  %297 = vst.msk [vmem:[#allocation2 + $0x99] sm:$0xff] %vm194_vm0, %v264_v12 }
  0x27   : > { %298 = vst.msk [vmem:[#allocation2 + $0xa9] sm:$0xff] %vm194_vm0, %v265_v13  ;;  %299 = vst.msk [vmem:[#allocation2 + $0xb1] sm:$0xff] %vm194_vm0, %v266_v14 }
  0x28   : > { %300 = vst.msk [vmem:[#allocation2 + $0xc1] sm:$0xff] %vm194_vm0, %v267_v15  ;;  %301 = vst.msk [vmem:[#allocation2 + $0xc9] sm:$0xff] %vm194_vm0, %v268_v16  ;;  %v431_v46 = vld [vmem:[#allocation2 + $0x18] ss:$2 sm:$0xff]  ;;  %v460_v50 = vld [vmem:[#allocation2 + $0x19] ss:$2 sm:$0xff] }
  0x29   : > { %302 = vst.msk [vmem:[#allocation2 + $0xd9] sm:$0xff] %vm194_vm0, %v269_v17  ;;  %303 = vst.msk [vmem:[#allocation2 + $0xe1] sm:$0xff] %vm194_vm0, %v270_v18  ;;  %v451_v49 = vmul.f32 %v1047_v28, %v431_v46  ;;  %v497_v51 = vld [vmem:[#allocation2 + $0x1a] ss:$2 sm:$0xff]  ;;  %v480_v53 = vmul.f32 %v1058_v32, %v460_v50  ;;  %v571_v56 = vld [vmem:[#allocation2 + $0x31] ss:$2 sm:$0xff] }
  0x2a   : > { %304 = vst.msk [vmem:[#allocation2 + $0xf1] sm:$0xff] %vm194_vm0, %v271_v19  ;;  %305 = vst.msk [vmem:[#allocation2 + $0xf9] sm:$0xff] %vm194_vm0, %v272_v20  ;;  %v542_v52 = vld [vmem:[#allocation2 + $0x30] ss:$2 sm:$0xff]  ;;  %v517_v54 = vmul.f32 %v1063_v33, %v497_v51  ;;  %v591_v60 = vmul.f32 %v1079_v38, %v571_v56  ;;  %v360_v63 = vld [vmem:[#allocation2 + $0x31] ss:$2 sm:$0xff] }
  0x2b   : > { %306 = vst.msk [vmem:[#allocation2 + $0x109] sm:$0xff] %vm194_vm0, %v273_v21  ;;  %307 = vst.msk [vmem:[#allocation2 + $0x111] sm:$0xff] %vm194_vm0, %v274_v23  ;;  %v562_v55 = vmul.f32 %v1068_v34, %v542_v52  ;;  %v608_v57 = vld [vmem:[#allocation2 + $0x32] ss:$2 sm:$0xff]  ;;  %v488_v2 = vadd.f32 %v480_v53, %v451_v49  ;;  %v379_v3 = vmul.f32 %v1037_v26, %v360_v63  ;;  %v462_v6 = vld [vmem:[#allocation2 + $0x49] ss:$2 sm:$0xff] }
  0x2c   : > { %308 = vst.msk [vmem:[#allocation2 + $0x121] sm:$0xff] %vm194_vm0, %v275_v24  ;;  %309 = vst.msk [vmem:[#allocation2 + $0x129] sm:$0xff] %vm194_vm0, %v276_v25  ;;  %v331_v58 = vld [vmem:[#allocation2 + $0x30] ss:$2 sm:$0xff]  ;;  %v628_v61 = vmul.f32 %v1084_v39, %v608_v57  ;;  %v544_v8 = vld [vmem:[#allocation2 + $0x60] ss:$2 sm:$0xff]  ;;  %v481_v11 = vmul.f32 %v1058_v32, %v462_v6 }
  0x2d   : > { %310 = vst.msk [vmem:[#allocation2 + $0x139] sm:$0xff] %vm194_vm0, %v277_v29  ;;  %311 = vst.msk [vmem:[#allocation2 + $0x141] sm:$0xff] %vm194_vm0, %v278_v30  ;;  %v350_v62 = vmul.f32 %v1026_v22, %v331_v58  ;;  %v397_v0 = vld [vmem:[#allocation2 + $0x32] ss:$2 sm:$0xff]  ;;  %v599_v10 = vadd.f32 %v591_v60, %v562_v55  ;;  %v573_v13 = vld [vmem:[#allocation2 + $0x61] ss:$2 sm:$0xff]  ;;  %v525_v16 = vadd.f32 %v517_v54, %v488_v2 }
  0x2e   : > { %312 = vst.msk [vmem:[#allocation2 + $0x151] sm:$0xff] %vm194_vm0, %v279_v31  ;;  %313 = vst.msk [vmem:[#allocation2 + $0x159] sm:$0xff] %vm194_vm0, %v280_v35  ;;  %v433_v1 = vld [vmem:[#allocation2 + $0x48] ss:$2 sm:$0xff]  ;;  %v416_v4 = vmul.f32 %v1042_v27, %v397_v0  ;;  %v563_v18 = vmul.f32 %v1068_v34, %v544_v8  ;;  %v592_v19 = vmul.f32 %v1079_v38, %v573_v13  ;;  %v362_v20 = vld [vmem:[#allocation2 + $0x61] ss:$2 sm:$0xff] }
  0x2f   : > { %314 = vst.msk [vmem:[#allocation2 + $0x169] sm:$0xff] %vm194_vm0, %v281_v36  ;;  %315 = vst.msk [vmem:[#allocation2 + $0x171] sm:$0xff] %vm194_vm0, %v282_v37  ;;  %v452_v5 = vmul.f32 %v1047_v28, %v433_v1  ;;  %v499_v7 = vld [vmem:[#allocation2 + $0x4a] ss:$2 sm:$0xff]  ;;  %v387_v17 = vadd.f32 %v379_v3, %v350_v62  ;;  %v636_v24 = vadd.f32 %v628_v61, %v599_v10  ;;  %v464_v31 = vld [vmem:[#allocation2 + $0x79] ss:$2 sm:$0xff] }
  0x30   : > { %316 = vst.msk [vmem:[#allocation2 + $0x181] sm:$0xff] %vm194_vm0, %v283_v40  ;;  %317 = vst.msk [vmem:[#allocation2 + $0x189] sm:$0xff] %vm194_vm0, %v284_v41  ;;  %v518_v12 = vmul.f32 %v1063_v33, %v499_v7  ;;  %v610_v14 = vld [vmem:[#allocation2 + $0x62] ss:$2 sm:$0xff]  ;;  %v533_v36 = vadd.f32 %v525_v16, %v423_v9  ;;  %v600_v40 = vadd.f32 %v592_v19, %v563_v18  ;;  %v575_v43 = vld [vmem:[#allocation2 + $0x91] ss:$2 sm:$0xff] }
  0x31   : > { %v333_v15 = vld [vmem:[#allocation2 + $0x60] ss:$2 sm:$0xff]  ;;  %v489_v25 = vadd.f32 %v481_v11, %v452_v5  ;;  %v629_v29 = vmul.f32 %v1084_v39, %v610_v14  ;;  %v424_v37 = vadd.f32 %v416_v4, %v387_v17  ;;  %v380_v41 = vmul.f32 %v1037_v26, %v362_v20  ;;  %v546_v42 = vld [vmem:[#allocation2 + $0x90] ss:$2 sm:$0xff]  ;;  %v364_v55 = vld [vmem:[#allocation2 + $0x91] ss:$2 sm:$0xff] }
  0x32   : > { %v399_v21 = vld [vmem:[#allocation2 + $0x62] ss:$2 sm:$0xff]  ;;  %v351_v30 = vmul.f32 %v1026_v22, %v333_v15  ;;  %v482_v48 = vmul.f32 %v1058_v32, %v464_v31  ;;  %v612_v49 = vld [vmem:[#allocation2 + $0x92] ss:$2 sm:$0xff]  ;;  %v644_v51 = vadd.f32 %v636_v24, %v533_v36  ;;  %v564_v59 = vmul.f32 %v1068_v34, %v546_v42  ;;  %v466_v62 = vld [vmem:[#allocation2 + $0xa9] ss:$2 sm:$0xff] }
  0x33   : > { %v435_v23 = vld [vmem:[#allocation2 + $0x78] ss:$2 sm:$0xff]  ;;  %v526_v45 = vadd.f32 %v518_v12, %v489_v25  ;;  %v417_v46 = vmul.f32 %v1042_v27, %v399_v21  ;;  %v637_v52 = vadd.f32 %v629_v29, %v600_v40  ;;  %v593_v60 = vmul.f32 %v1079_v38, %v575_v43  ;;  %v437_v61 = vld [vmem:[#allocation2 + $0xa8] ss:$2 sm:$0xff]  ;;  %v577_v9 = vld [vmem:[#allocation2 + $0xc1] ss:$2 sm:$0xff] }
  0x34   : > { %v501_v35 = vld [vmem:[#allocation2 + $0x7a] ss:$2 sm:$0xff]  ;;  %v453_v47 = vmul.f32 %v1047_v28, %v435_v23  ;;  %v388_v53 = vadd.f32 %v380_v41, %v351_v30  ;;  %v503_v63 = vld [vmem:[#allocation2 + $0xaa] ss:$2 sm:$0xff]  ;;  %v659_v0 = vadd.f32 %v1117_v44, %v644_v51  ;;  %v630_v2 = vmul.f32 %v1084_v39, %v612_v49  ;;  %v366_v16 = vld [vmem:[#allocation2 + $0xc1] ss:$2 sm:$0xff] }
  0x35   : > { %v335_v50 = vld [vmem:[#allocation2 + $0x90] ss:$2 sm:$0xff]  ;;  %v519_v54 = vmul.f32 %v1063_v33, %v501_v35  ;;  %v534_v57 = vadd.f32 %v526_v45, %v424_v37  ;;  %v601_v6 = vadd.f32 %v593_v60, %v564_v59  ;;  %v381_v7 = vmul.f32 %v1037_v26, %v364_v55  ;;  %v548_v8 = vld [vmem:[#allocation2 + $0xc0] ss:$2 sm:$0xff]  ;;  %v468_v31 = vld [vmem:[#allocation2 + $0xd9] ss:$2 sm:$0xff] }
  0x36   : > { %v401_v56 = vld [vmem:[#allocation2 + $0x92] ss:$2 sm:$0xff]  ;;  %v490_v58 = vadd.f32 %v482_v48, %v453_v47  ;;  %v425_v1 = vadd.f32 %v417_v46, %v388_v53  ;;  %v352_v3 = vmul.f32 %v1026_v22, %v335_v50  ;;  %v614_v10 = vld [vmem:[#allocation2 + $0xc2] ss:$2 sm:$0xff]  ;;  %667 = vst.msk [vmem:[%s1126_s19] sm:$0xff] %vm194_vm0, %v659_v0  ;;  %v454_v12 = vmul.f32 %v1047_v28, %v437_v61 }
  0x37   : > { %v645_v4 = vadd.f32 %v637_v52, %v534_v57  ;;  %v418_v11 = vmul.f32 %v1042_v27, %v401_v56  ;;  %v483_v13 = vmul.f32 %v1058_v32, %v466_v62  ;;  %v520_v14 = vmul.f32 %v1063_v33, %v503_v63  ;;  %v337_v15 = vld [vmem:[#allocation2 + $0xc0] ss:$2 sm:$0xff]  ;;  %v550_v42 = vld [vmem:[#allocation2 + $0xf0] ss:$2 sm:$0xff]  ;;  %v579_v43 = vld [vmem:[#allocation2 + $0xf1] ss:$2 sm:$0xff] }
  0x38   : > { %v527_v5 = vadd.f32 %v519_v54, %v490_v58  ;;  %v638_v19 = vadd.f32 %v630_v2, %v601_v6  ;;  %v389_v20 = vadd.f32 %v381_v7, %v352_v3  ;;  %v403_v21 = vld [vmem:[#allocation2 + $0xc2] ss:$2 sm:$0xff]  ;;  %v565_v25 = vmul.f32 %v1068_v34, %v548_v8  ;;  %v616_v49 = vld [vmem:[#allocation2 + $0xf2] ss:$2 sm:$0xff]  ;;  %v368_v55 = vld [vmem:[#allocation2 + $0xf1] ss:$2 sm:$0xff] }
  0x39   : > { %v660_v17 = vadd.f32 %v1117_v44, %v645_v4  ;;  %v439_v23 = vld [vmem:[#allocation2 + $0xd8] ss:$2 sm:$0xff]  ;;  %v491_v24 = vadd.f32 %v483_v13, %v454_v12  ;;  %v594_v29 = vmul.f32 %v1079_v38, %v577_v9  ;;  %v631_v30 = vmul.f32 %v1084_v39, %v614_v10  ;;  %v441_v61 = vld [vmem:[#allocation2 + $0x108] ss:$2 sm:$0xff]  ;;  %v470_v62 = vld [vmem:[#allocation2 + $0x109] ss:$2 sm:$0xff] }
  0x3a   : > { %v535_v18 = vadd.f32 %v527_v5, %v425_v1  ;;  %v505_v35 = vld [vmem:[#allocation2 + $0xda] ss:$2 sm:$0xff]  ;;  %v426_v37 = vadd.f32 %v418_v11, %v389_v20  ;;  %v353_v40 = vmul.f32 %v1026_v22, %v337_v15  ;;  %v382_v41 = vmul.f32 %v1037_v26, %v366_v16  ;;  %v507_v63 = vld [vmem:[#allocation2 + $0x10a] ss:$2 sm:$0xff]  ;;  %v581_v9 = vld [vmem:[#allocation2 + $0x121] ss:$2 sm:$0xff] }
  0x3b   : > { %668 = vst.msk [vmem:[%s1126_s19 + $0x8] sm:$0xff] %vm194_vm0, %v660_v17  ;;  %v528_v45 = vadd.f32 %v520_v14, %v491_v24  ;;  %v602_v46 = vadd.f32 %v594_v29, %v565_v25  ;;  %v419_v47 = vmul.f32 %v1042_v27, %v403_v21  ;;  %v455_v48 = vmul.f32 %v1047_v28, %v439_v23  ;;  %v339_v50 = vld [vmem:[#allocation2 + $0xf0] ss:$2 sm:$0xff]  ;;  %v552_v4 = vld [vmem:[#allocation2 + $0x120] ss:$2 sm:$0xff] }
  0x3c   : > { %v646_v36 = vadd.f32 %v638_v19, %v535_v18  ;;  %v390_v52 = vadd.f32 %v382_v41, %v353_v40  ;;  %v484_v53 = vmul.f32 %v1058_v32, %v468_v31  ;;  %v521_v54 = vmul.f32 %v1063_v33, %v505_v35  ;;  %v405_v56 = vld [vmem:[#allocation2 + $0xf2] ss:$2 sm:$0xff]  ;;  %v618_v10 = vld [vmem:[#allocation2 + $0x122] ss:$2 sm:$0xff]  ;;  %v370_v16 = vld [vmem:[#allocation2 + $0x121] ss:$2 sm:$0xff] }
  0x3d   : > { %v536_v57 = vadd.f32 %v528_v45, %v426_v37  ;;  %v639_v58 = vadd.f32 %v631_v30, %v602_v46  ;;  %v566_v59 = vmul.f32 %v1068_v34, %v550_v42  ;;  %v595_v60 = vmul.f32 %v1079_v38, %v579_v43  ;;  %v341_v15 = vld [vmem:[#allocation2 + $0x120] ss:$2 sm:$0xff]  ;;  %v472_v31 = vld [vmem:[#allocation2 + $0x139] ss:$2 sm:$0xff] }
  0x3e   : > { %v661_v51 = vadd.f32 %v1117_v44, %v646_v36  ;;  %v427_v0 = vadd.f32 %v419_v47, %v390_v52  ;;  %v492_v1 = vadd.f32 %v484_v53, %v455_v48  ;;  %v632_v2 = vmul.f32 %v1084_v39, %v616_v49  ;;  %v407_v17 = vld [vmem:[#allocation2 + $0x122] ss:$2 sm:$0xff]  ;;  %v583_v43 = vld [vmem:[#allocation2 + $0x151] ss:$2 sm:$0xff]  ;;  %v620_v49 = vld [vmem:[#allocation2 + $0x152] ss:$2 sm:$0xff] }
  0x3f   : > { %v354_v3 = vmul.f32 %v1026_v22, %v339_v50  ;;  %v647_v5 = vadd.f32 %v639_v58, %v536_v57  ;;  %v603_v6 = vadd.f32 %v595_v60, %v566_v59  ;;  %v383_v7 = vmul.f32 %v1037_v26, %v368_v55  ;;  %v443_v23 = vld [vmem:[#allocation2 + $0x138] ss:$2 sm:$0xff]  ;;  %v372_v55 = vld [vmem:[#allocation2 + $0x151] ss:$2 sm:$0xff] }
  0x40   : > { %669 = vst.msk [vmem:[%s1126_s19 + $0x10] sm:$0xff] %vm194_vm0, %v661_v51  ;;  %v420_v8 = vmul.f32 %v1042_v27, %v405_v56  ;;  %v529_v11 = vadd.f32 %v521_v54, %v492_v1  ;;  %v456_v12 = vmul.f32 %v1047_v28, %v441_v61  ;;  %v485_v13 = vmul.f32 %v1058_v32, %v470_v62  ;;  %v509_v35 = vld [vmem:[#allocation2 + $0x13a] ss:$2 sm:$0xff]  ;;  %v474_v62 = vld [vmem:[#allocation2 + $0x169] ss:$2 sm:$0xff] }
  0x41   : > { %v522_v14 = vmul.f32 %v1063_v33, %v507_v63  ;;  %v662_v18 = vadd.f32 %v1117_v44, %v647_v5  ;;  %v640_v19 = vadd.f32 %v632_v2, %v603_v6  ;;  %v391_v20 = vadd.f32 %v383_v7, %v354_v3  ;;  %v554_v36 = vld [vmem:[#allocation2 + $0x150] ss:$2 sm:$0xff] }
  0x42   : > { %v567_v21 = vmul.f32 %v1068_v34, %v552_v4  ;;  %v537_v24 = vadd.f32 %v529_v11, %v427_v0  ;;  %v493_v25 = vadd.f32 %v485_v13, %v456_v12  ;;  %v596_v29 = vmul.f32 %v1079_v38, %v581_v9  ;;  %v343_v50 = vld [vmem:[#allocation2 + $0x150] ss:$2 sm:$0xff]  ;;  %v556_v4 = vld [vmem:[#allocation2 + $0x180] ss:$2 sm:$0xff]  ;;  %v585_v9 = vld [vmem:[#allocation2 + $0x181] ss:$2 sm:$0xff] }
  0x43   : > { %v633_v30 = vmul.f32 %v1084_v39, %v618_v10  ;;  %670 = vst.msk [vmem:[%s1126_s19 + $0x18] sm:$0xff] %vm194_vm0, %v662_v18  ;;  %v428_v37 = vadd.f32 %v420_v8, %v391_v20  ;;  %v355_v40 = vmul.f32 %v1026_v22, %v341_v15  ;;  %v384_v41 = vmul.f32 %v1037_v26, %v370_v16  ;;  %v409_v56 = vld [vmem:[#allocation2 + $0x152] ss:$2 sm:$0xff]  ;;  %v622_v10 = vld [vmem:[#allocation2 + $0x182] ss:$2 sm:$0xff] }
  0x44   : > { %v421_v42 = vmul.f32 %v1042_v27, %v407_v17  ;;  %v648_v45 = vadd.f32 %v640_v19, %v537_v24  ;;  %v530_v46 = vadd.f32 %v522_v14, %v493_v25  ;;  %v604_v47 = vadd.f32 %v596_v29, %v567_v21  ;;  %v445_v61 = vld [vmem:[#allocation2 + $0x168] ss:$2 sm:$0xff] }
  0x45   : > { %v457_v48 = vmul.f32 %v1047_v28, %v443_v23  ;;  %v392_v51 = vadd.f32 %v384_v41, %v355_v40  ;;  %v486_v52 = vmul.f32 %v1058_v32, %v472_v31  ;;  %v523_v53 = vmul.f32 %v1063_v33, %v509_v35  ;;  %v511_v63 = vld [vmem:[#allocation2 + $0x16a] ss:$2 sm:$0xff] }
  0x46   : > { %v568_v54 = vmul.f32 %v1068_v34, %v554_v36  ;;  %v663_v57 = vadd.f32 %v1117_v44, %v648_v45  ;;  %v538_v58 = vadd.f32 %v530_v46, %v428_v37  ;;  %v641_v59 = vadd.f32 %v633_v30, %v604_v47 }
  0x47   : > { %v597_v60 = vmul.f32 %v1079_v38, %v583_v43  ;;  %v429_v0 = vadd.f32 %v421_v42, %v392_v51  ;;  %v494_v1 = vadd.f32 %v486_v52, %v457_v48  ;;  %v634_v2 = vmul.f32 %v1084_v39, %v620_v49 }
  0x48   : > { %v356_v3 = vmul.f32 %v1026_v22, %v343_v50  ;;  %671 = vst.msk [vmem:[%s1126_s19 + $0x20] sm:$0xff] %vm194_vm0, %v663_v57  ;;  %v649_v5 = vadd.f32 %v641_v59, %v538_v58  ;;  %v385_v7 = vmul.f32 %v1037_v26, %v372_v55  ;;  %v422_v8 = vmul.f32 %v1042_v27, %v409_v56 }
  0x49   : > { %v605_v6 = vadd.f32 %v597_v60, %v568_v54  ;;  %v531_v11 = vadd.f32 %v523_v53, %v494_v1  ;;  %v458_v12 = vmul.f32 %v1047_v28, %v445_v61  ;;  %v487_v13 = vmul.f32 %v1058_v32, %v474_v62 }
  0x4a   : > { %v524_v14 = vmul.f32 %v1063_v33, %v511_v63  ;;  %v664_v22 = vadd.f32 %v1117_v44, %v649_v5  ;;  %v393_v16 = vadd.f32 %v385_v7, %v356_v3  ;;  %v569_v17 = vmul.f32 %v1068_v34, %v556_v4 }
  0x4b   : > { %v642_v15 = vadd.f32 %v634_v2, %v605_v6  ;;  %v539_v26 = vadd.f32 %v531_v11, %v429_v0  ;;  %v495_v18 = vadd.f32 %v487_v13, %v458_v12  ;;  %v598_v27 = vmul.f32 %v1079_v38, %v585_v9 }
  0x4c   : > { %v635_v19 = vmul.f32 %v1084_v39, %v622_v10  ;;  %672 = vst.msk [vmem:[%s1126_s19 + $0x28] sm:$0xff] %vm194_vm0, %v664_v22  ;;  %v430_v28 = vadd.f32 %v422_v8, %v393_v16 }
  0x4d   : > { %v650_v32 = vadd.f32 %v642_v15, %v539_v26  ;;  %v532_v20 = vadd.f32 %v524_v14, %v495_v18  ;;  %v606_v33 = vadd.f32 %v598_v27, %v569_v17 }
  0x4f   : > { %v665_v21 = vadd.f32 %v1117_v44, %v650_v32  ;;  %v540_v23 = vadd.f32 %v532_v20, %v430_v28  ;;  %v643_v24 = vadd.f32 %v635_v19, %v606_v33 }
  0x51   : > { %673 = vst.msk [vmem:[%s1126_s19 + $0x30] sm:$0xff] %vm194_vm0, %v665_v21  ;;  %v651_v34 = vadd.f32 %v643_v24, %v540_v23 }
  0x53   : > { %v666_v25 = vadd.f32 %v1117_v44, %v651_v34 }
  0x55   : > { %674 = vst.msk [vmem:[%s1126_s19 + $0x38] sm:$0xff] %vm194_vm0, %v666_v25 }
  0x56 PF: > { %s13_s14 = sadd.s32 1, %s878_s14   ;;  %s1213_s12 = smov %s874_s13 }
  0x57   : > { %p10_p5 = scmp.ge.s32.totalorder %s13_s14, 4   ;;  %s1214_s13 = smov %s1216_s15 }
  0x59   :  { %12 = sbr.rel (!%p10_p5) target bundleno = 2 (0x2), region = 139 }

// kernel: ghost_bottleneck_forward.7
= control target key start
LH: loop header
LB: loop body
LE: loop exit
PB: predicated region body
PF: predicated region fallthrough
CT: control target
= control target key end

     0   :  { %11 = vsyncpa [#allocation4], 0  ;;  %s2689_s0 = inlined_call_operand.vmem [shape: f32[2,8,8,32], index: 0, kind: input, shape index: {}]   ;;  %s2690_s1 = inlined_call_operand.vmem [shape: f32[32,32], index: 1, kind: input, shape index: {}]   ;;  %s2691_s2 = inlined_call_operand.vmem [shape: f32[1,32], index: 2, kind: input, shape index: {}]   ;;  %s2692_s3 = inlined_call_operand.vmem [shape: f32[25,32], index: 3, kind: input, shape index: {}]   ;;  %s2693_s4 = inlined_call_operand.vmem [shape: f32[1,32], index: 4, kind: input, shape index: {}]   ;;  %s2694_s5 = inlined_call_operand.vmem [shape: f32[2,8,8,64], index: 5, kind: input, shape index: {}]   ;;  %s2695_s6 = inlined_call_operand.hbm [shape: f32[2,8,8,64], index: 6, kind: output, shape index: {}]  }
   0x1   :  { %13 = vsyncpa [#allocation4 + $0x1], 0  ;;  %s1769_s21 = smov 0   ;;  %s1771_s22 = smov 0  }
   0x2   :  { %s1773_s23 = smov 0   ;;  %s1775_s24 = smov 0  }
   0x3   :  { %s1777_s25 = smov 0   ;;  %s1779_s26 = smov 0  }
   0x4 LB: > { %s1511_s27 = sadd.s32 4294967295, %s1726_s26   ;;  %s1512_s28 = sadd.s32 4294967294, %s1726_s26   ;;  %s1726_s26 = sphi %s1779_s26, %s19_s26   ;;  %s1722_s25 = sphi %s1777_s25, %s2876_s25   ;;  %s1718_s24 = sphi %s1775_s24, %s2875_s24   ;;  %s1714_s23 = sphi %s1773_s23, %s2874_s23   ;;  %s1710_s22 = sphi %s1771_s22, %s2873_s22   ;;  %s1706_s21 = sphi %s1769_s21, %s2872_s21  }
   0x5   : > { %s31_s29 = sadd.s32 1, %s1722_s25  ;;  %s178_s30 = sadd.s32 1, %s1714_s23 }
   0x6   : > { %p33_p0 = scmp.ge.s32.totalorder %s31_s29, 2  ;;  %p188_p1 = scmp.ne.s32.totalorder %s1714_s23, %s1710_s22 }
   0x7   : > { %p189_p2 = scmp.eq.s32.totalorder %s1511_s27, 1  ;;  %p194_p3 = scmp.ne.s32.totalorder %s1710_s22, %s1706_s21 }
   0x8   : > { %s2878_s29 = smov (%p33_p0, %s31_s29), 0  ;;  %p195_p5 = scmp.eq.s32.totalorder %s1512_s28, 1 }
   0x9   : > { %p1809_p4 = por %p189_p2, %p188_p1  ;;  %s173_s8 = ssub.s32 %s1722_s25, %s2878_s29 }
   0xa   : > { %p1515_p6 = scmp.ge.s32.totalorder %s1726_s26, 1  ;;  %p176_p7 = scmp.eq.s32.totalorder %s173_s8, 0 }
   0xb   : > { %p1816_p8 = por %p195_p5, %p194_p3  ;;  %p246_p9 = scmp.lt.s32.totalorder %s1726_s26, 3 }
   0xc   : > { %s1822_s10 = scalar_select %p176_p7, %s1714_s23, %s178_s30  }
   0xd   : > { %p247_p10 = pnand %p1515_p6, %p246_p9 }
   0xf   : > { %250 = sbr.rel (%p247_p10) target bundleno = 491 (0x1eb), region = 44 }
  0x16   : > { %v302_v0 = vld [vmem:[%s2690_s1] sm:$0xff]  ;;  %v303_v1 = vld [vmem:[%s2690_s1 + $0x8] sm:$0xff]  ;;  %v304_v2 = vld [vmem:[%s2690_s1 + $0x10] sm:$0xff]  ;;  %p285_p11 = scmp.lt.s32.totalorder %s1718_s24, 1  ;;  %vm309_vm0 = vcmask 261120   ;;  %vm311_vm1 = vcmask 257024  }
  0x17   : > { %v306_v3 = vpack.c.bf16 %v303_v1, %v302_v0  ;;  %v305_v4 = vld [vmem:[%s2690_s1 + $0x18] sm:$0xff]  ;;  %v1728_v6 = vmov 0.0   ;;  %s1729_s13 = smov 96   ;;  %v1912_v27 = vld [vmem:[%s2692_s3] ss:$0 sm:$0xff]  ;;  %s282_s14 = sand.u32 1, %s1710_s22  }
  0x18   : > { %v307_v5 = vpack.c.bf16 %v305_v4, %v304_v2  ;;  %s1838_s19 = scalar_select %p285_p11, %s1718_s24, 1  ;;  %319 = vst.msk [vmem:[#allocation2 + $0x40] sm:$0xff] %vm309_vm0, %v1728_v6  ;;  %310 = vst.msk [vmem:[#allocation2] sm:$0xff] %vm309_vm0, %v1728_v6  ;;  %v1917_v28 = vld [vmem:[%s2692_s3 + $0x1] ss:$0 sm:$0xff]  ;;  %vm1387_vm2 = vcmask 523520  }
  0x19   : > { %320 = vst.msk [vmem:[#allocation2 + $0x48] sm:$0xf] %vm311_vm1, %v1728_v6  ;;  %312 = vst.msk [vmem:[#allocation2 + $0x8] sm:$0xf] %vm311_vm1, %v1728_v6  ;;  %1572 = vmatprep.subr.bf16.mxu0 %v306_v3  ;;  %1584 = vmatprep.subr.bf16.mxu1 %v306_v3  ;;  %v1922_v29 = vld [vmem:[%s2692_s3 + $0x5] ss:$0 sm:$0xff] }
  0x1a   : > { %313 = vst.msk [vmem:[#allocation2 + $0x10] sm:$0xff] %vm309_vm0, %v1728_v6  ;;  %315 = vst.msk [vmem:[#allocation2 + $0x20] sm:$0xff] %vm309_vm0, %v1728_v6  ;;  %1573 = vmatpush3.bf16.msra.mxu0 %v306_v3  ;;  %1586 = vmatpush3.bf16.msra.mxu1 %v306_v3  ;;  %s1563_s20 = sshll.u32 %s1838_s19, 6  ;;  %v1927_v30 = vld [vmem:[%s2692_s3 + $0x6] ss:$0 sm:$0xff]  ;;  %s2026_s27 = sshll.u32 %s282_s14, 6 }
  0x1b   : > { %314 = vst.msk [vmem:[#allocation2 + $0x18] sm:$0xf] %vm311_vm1, %v1728_v6  ;;  %316 = vst.msk [vmem:[#allocation2 + $0x28] sm:$0xf] %vm311_vm1, %v1728_v6  ;;  %1574 = vmatprep.subr.bf16.mxu0 %v307_v5  ;;  %1585 = vmatprep.subr.bf16.mxu1 %v307_v5  ;;  %s289_s30 = scalar_lea.vmem %s2689_s0, %s1563_s20  ;;  %s1871_s12 = scalar_lea.vmem %s2694_s5, %s1563_s20  ;;  %v1932_v35 = vld [vmem:[%s2692_s3 + $0x2] ss:$0 sm:$0xff] }
  0x1c   : > { %317 = vst.msk [vmem:[#allocation2 + $0x30] sm:$0xff] %vm309_vm0, %v1728_v6  ;;  %321 = vst.msk [vmem:[#allocation2 + $0x50] sm:$0xff] %vm309_vm0, %v1728_v6  ;;  %v338_v7 = vld [vmem:[%s289_s30] sm:$0xff]  ;;  %v339_v8 = vld [vmem:[%s289_s30 + $0x8] sm:$0xff]  ;;  %s2066_s15 = scalar_lea.vmem [#allocation3], %s2026_s27  ;;  %s1730_s18 = smov 32  }
  0x1d   : > { %318 = vst.msk [vmem:[#allocation2 + $0x38] sm:$0xf] %vm311_vm1, %v1728_v6  ;;  %322 = vst.msk [vmem:[#allocation2 + $0x58] sm:$0xf] %vm311_vm1, %v1728_v6  ;;  %v342_v9 = vld [vmem:[%s289_s30 + $0x20] sm:$0xff]  ;;  %v346_v10 = vpack.c.bf16 %v339_v8, %v338_v7  ;;  %v343_v11 = vld [vmem:[%s289_s30 + $0x28] sm:$0xff] }
  0x1e   : > { %323 = vst.msk [vmem:[#allocation2 + $0x60] sm:$0xff] %vm309_vm0, %v1728_v6  ;;  %325 = vst.msk [vmem:[#allocation2 + $0x70] sm:$0xff] %vm309_vm0, %v1728_v6  ;;  %v340_v12 = vld [vmem:[%s289_s30 + $0x10] sm:$0xff]  ;;  %v341_v13 = vld [vmem:[%s289_s30 + $0x18] sm:$0xff]  ;;  %1575 = vmatpush3.bf16.msra.mxu0 %v307_v5  ;;  %1587 = vmatpush3.bf16.msra.mxu1 %v307_v5  ;;  %v348_v14 = vpack.c.bf16 %v343_v11, %v342_v9  ;;  %s1565_s19 = sshll.u32 %s1718_s24, 10  ;;  %s1412_s20 = sshll.u32 %s2066_s15, 4  ;;  %s2637_s20 = int_to_ptr.vmem [resolvable:$true] %s1412_s20 }
  0x1f   : > { %324 = vst.msk [vmem:[#allocation2 + $0x68] sm:$0xf] %vm311_vm1, %v1728_v6  ;;  %326 = vst.msk [vmem:[#allocation2 + $0x78] sm:$0xf] %vm311_vm1, %v1728_v6  ;;  %v347_v15 = vpack.c.bf16 %v341_v13, %v340_v12  ;;  %v344_v16 = vld [vmem:[%s289_s30 + $0x30] sm:$0xff]  ;;  %v345_v17 = vld [vmem:[%s289_s30 + $0x38] sm:$0xff]  ;;  %1576 = vmatprep.mubr.msk.bf16.mxu0 %vm309_vm0, %v346_v10  ;;  %s2635_s30 = scalar_lea.hbm %s2695_s6, %s1565_s19 }
  0x20   : > { %327 = vst.msk [vmem:[#allocation2 + $0x80] sm:$0xff] %vm309_vm0, %v1728_v6  ;;  %329 = vst.msk [vmem:[#allocation2 + $0x90] sm:$0xff] %vm309_vm0, %v1728_v6  ;;  %v1874_v18 = vld [vmem:[%s1871_s12 + $0x10] sm:$0xff]  ;;  %v349_v19 = vpack.c.bf16 %v345_v17, %v344_v16  ;;  %v1879_v20 = vld [vmem:[%s1871_s12] sm:$0xff]  ;;  %1580 = vmatprep.mubr.msk.bf16.mxu1 %vm309_vm0, %v348_v14  ;;  %s2643_s8 = scalar_lea.sflag [#allocation4], %s282_s14  ;;  %s1648_s11 = scalar_lea.vmem %s2637_s20, 1024 }
  0x21   : > { %328 = vst.msk [vmem:[#allocation2 + $0x88] sm:$0xf] %vm311_vm1, %v1728_v6  ;;  %330 = vst.msk [vmem:[#allocation2 + $0x98] sm:$0xf] %vm311_vm1, %v1728_v6  ;;  %1319 = vrot.lane.b32.xlu1 %v1874_v18, %s1729_s13  ;;  %1315 = vrot.lane.b32.xlu0 %v1879_v20, %s1729_s13  ;;  %v1884_v21 = vld [vmem:[%s1871_s12 + $0x18] sm:$0xff]  ;;  %v1889_v22 = vld [vmem:[%s1871_s12 + $0x8] sm:$0xff]  ;;  %p1649_p12 = scmp.ne.s32.totalorder %s2637_s20, %s1648_s11 }
  0x22   : > { %331 = vst.msk [vmem:[#allocation2 + $0xa0] sm:$0xff] %vm309_vm0, %v1728_v6  ;;  %333 = vst.msk [vmem:[#allocation2 + $0xb0] sm:$0xff] %vm309_vm0, %v1728_v6  ;;  %1577 = vmatmul.mubr.msk.bf16.vlgmr.msra.gmra.mrb[0].mxu0 %vm309_vm0, %v347_v15  ;;  %1581 = vmatmul.mubr.msk.bf16.vlgmr.msra.gmra.mrb[0].mxu1 %vm309_vm0, %v349_v19  ;;  %v1894_v23 = vld [vmem:[%s1871_s12 + $0x28] sm:$0xff]  ;;  %v1897_v24 = vld [vmem:[%s1871_s12 + $0x20] sm:$0xff]  ;;  %s1731_s24 = smov [#allocation3]  }
  0x23   : > { %332 = vst.msk [vmem:[#allocation2 + $0xa8] sm:$0xf] %vm311_vm1, %v1728_v6  ;;  %334 = vst.msk [vmem:[#allocation2 + $0xb8] sm:$0xf] %vm311_vm1, %v1728_v6  ;;  %v1902_v25 = vld [vmem:[%s1871_s12 + $0x38] sm:$0xff]  ;;  %v1905_v26 = vld [vmem:[%s1871_s12 + $0x30] sm:$0xff]  ;;  %p1650_p13 = pnand %p1649_p12, %p1809_p4 }
  0x24   : > { %2769 = vst [vmem:[#allocation6_spill] sm:$0xff] %v1912_v27  ;;  %2770 = vst [vmem:[#allocation7_spill] sm:$0xff] %v1917_v28  ;;  %v556_v31 = vld [vmem:[#allocation2] sm:$0xff]  ;;  %v694_v33 = vld [vmem:[#allocation2 + $0x10] sm:$0xff]  ;;  %s1652_s12 = sshll.u32 %s1731_s24, 4  ;;  %s1653_s12 = int_to_ptr.vmem [resolvable:$false] %s1652_s12 }
  0x25   : > { %1321 = vrot.lane.b32.xlu1 %v1884_v21, %s1729_s13  ;;  %1317 = vrot.lane.b32.xlu0 %v1889_v22, %s1729_s13  ;;  %v577_v32 = vld [vmem:[#allocation2 + $0x1] sm:$0xff]  ;;  %v715_v34 = vld [vmem:[#allocation2 + $0x11] sm:$0xff]  ;;  %2771 = vst [vmem:[#allocation8_spill] sm:$0xff] %v1932_v35  ;;  %v569_v37 = vmul.f32 %v1912_v27, %v556_v31  ;;  %v707_v40 = vmul.f32 %v1922_v29, %v694_v33  ;;  %v1964_v55 = vld [vmem:[%s2692_s3 + $0xf] ss:$0 sm:$0xff]  ;;  %p1651_p0 = pneg %p1650_p13  ;;  %p1655_p1 = scmp.lt.s32.totalorder %s2637_s20, %s1653_s12 }
  0x26   : > { %v1937_v36 = vld [vmem:[%s2692_s3 + $0x7] ss:$0 sm:$0xff]  ;;  %v590_v38 = vmul.f32 %v1917_v28, %v577_v32  ;;  %v728_v41 = vmul.f32 %v1927_v30, %v715_v34  ;;  %v744_v42 = vld [vmem:[#allocation2 + $0x12] sm:$0xff]  ;;  %v570_v49 = vmul.f32 %v1912_v27, %v694_v33  ;;  %v591_v50 = vmul.f32 %v1917_v28, %v715_v34  ;;  %v1950_v51 = vld [vmem:[%s2692_s3 + $0x3] ss:$0 sm:$0xff] }
  0x27   : > { %2772 = vst [vmem:[#allocation9_spill] sm:$0xff] %v1937_v36  ;;  %v606_v39 = vld [vmem:[#allocation2 + $0x2] sm:$0xff]  ;;  %v757_v44 = vmul.f32 %v1937_v36, %v744_v42  ;;  %v773_v48 = vld [vmem:[#allocation2 + $0x13] sm:$0xff]  ;;  %2773 = vst [vmem:[#allocation10_spill] sm:$0xff] %v1950_v51  ;;  %v620_v2 = vmul.f32 %v1932_v35, %v744_v42 }
  0x28   : > { %v619_v43 = vmul.f32 %v1932_v35, %v606_v39  ;;  %v598_v45 = vadd.f32 %v590_v38, %v569_v37  ;;  %v635_v46 = vld [vmem:[#allocation2 + $0x3] sm:$0xff]  ;;  %v736_v47 = vadd.f32 %v728_v41, %v707_v40  ;;  %v1971_v60 = vld [vmem:[%s2692_s3 + $0x10] ss:$0 sm:$0xff]  ;;  %v802_v0 = vld [vmem:[#allocation2 + $0x14] sm:$0xff]  ;;  %v599_v1 = vadd.f32 %v591_v50, %v570_v49 }
  0x29   : > { %1325 = vrot.lane.b32.xlu1 %v1894_v23, %s1729_s13  ;;  %1323 = vrot.lane.b32.xlu0 %v1897_v24, %s1729_s13  ;;  %v1955_v52 = vld [vmem:[%s2692_s3 + $0x8] ss:$0 sm:$0xff]  ;;  %v1957_v53 = vld [vmem:[#allocation2 + $0xa0] sm:$0xff]  ;;  %v648_v56 = vmul.f32 %v1950_v51, %v635_v46  ;;  %v1138_v58 = vld [vmem:[#allocation2 + $0xb0] sm:$0xff]  ;;  %v649_v31 = vmul.f32 %v1950_v51, %v773_v48 }
  0x2a   : > { %2774 = vst [vmem:[#allocation11_spill] sm:$0xff] %v1955_v52  ;;  %v1959_v54 = vld [vmem:[#allocation2 + $0xa1] sm:$0xff]  ;;  %v786_v57 = vmul.f32 %v1955_v52, %v773_v48  ;;  %v1159_v59 = vld [vmem:[#allocation2 + $0xb1] sm:$0xff]  ;;  %v627_v61 = vadd.f32 %v619_v43, %v598_v45  ;;  %v765_v63 = vadd.f32 %v757_v44, %v736_v47  ;;  %v1005_v5 = vmul.f32 %v1964_v55, %v1957_v53  ;;  %v1996_v8 = vld [vmem:[%s2692_s3 + $0x9] ss:$0 sm:$0xff] }
  0x2b   : > { %v664_v62 = vld [vmem:[#allocation2 + $0x4] sm:$0xff]  ;;  %v1977_v3 = vld [vmem:[%s2692_s3 + $0x14] ss:$0 sm:$0xff]  ;;  %v1982_v4 = vld [vmem:[%s2692_s3 + $0x15] ss:$0 sm:$0xff]  ;;  %v1026_v6 = vmul.f32 %v1971_v60, %v1959_v54  ;;  %2777 = vst [vmem:[#allocation14_spill] sm:$0xff] %v1996_v8  ;;  %v815_v13 = vmul.f32 %v1996_v8, %v802_v0  ;;  %v628_v19 = vadd.f32 %v620_v2, %v599_v1 }
  0x2c   : > { %2775 = vst [vmem:[#allocation12_spill] sm:$0xff] %v1977_v3  ;;  %v1991_v7 = vld [vmem:[%s2692_s3 + $0x4] ss:$0 sm:$0xff]  ;;  %v1151_v10 = vmul.f32 %v1977_v3, %v1138_v58  ;;  %v1172_v11 = vmul.f32 %v1982_v4, %v1159_v59  ;;  %v1188_v14 = vld [vmem:[#allocation2 + $0xb2] sm:$0xff]  ;;  %v2008_v15 = vld [vmem:[%s2692_s3 + $0x11] ss:$0 sm:$0xff]  ;;  %v656_v16 = vadd.f32 %v648_v56, %v627_v61  ;;  %v794_v17 = vadd.f32 %v786_v57, %v765_v63 }
  0x2d   : > { %1329 = vrot.lane.b32.xlu1 %v1902_v25, %s1729_s13  ;;  %1327 = vrot.lane.b32.xlu0 %v1905_v26, %s1729_s13  ;;  %2776 = vst [vmem:[#allocation13_spill] sm:$0xff] %v1991_v7  ;;  %v1998_v9 = vld [vmem:[#allocation2 + $0xa2] sm:$0xff]  ;;  %v677_v12 = vmul.f32 %v1991_v7, %v664_v62  ;;  %2778 = vst [vmem:[#allocation15_spill] sm:$0xff] %v2008_v15  ;;  %v2014_v32 = vld [vmem:[%s2692_s3 + $0x16] ss:$0 sm:$0xff]  ;;  %v1034_v33 = vadd.f32 %v1026_v6, %v1005_v5  ;;  %s1654_s13 = scalar_lea.vmem %s1653_s12, 2048 }
  0x2e   : > { %2779 = vst [vmem:[#allocation16_spill] sm:$0xff] %v2014_v32  ;;  %v1055_v34 = vmul.f32 %v2008_v15, %v1998_v9  ;;  %v1521_v37 = vld [vmem:[%s2691_s2] ss:$0 sm:$0xff]  ;;  %v2021_v38 = vld [vmem:[#allocation2 + $0xa3] sm:$0xff]  ;;  %v1180_v39 = vadd.f32 %v1172_v11, %v1151_v10  ;;  %v1201_v40 = vmul.f32 %v2014_v32, %v1188_v14  ;;  %v1217_v41 = vld [vmem:[#allocation2 + $0xb3] sm:$0xff]  ;;  %v2035_v46 = vadd.f32 %v815_v13, %v794_v17  ;;  %p1656_p2 = scmp.lt.s32.totalorder %s1654_s13, %s1648_s11 }
  0x2f   : > { %v2031_v44 = vld [vmem:[%s2692_s3 + $0x12] ss:$0 sm:$0xff]  ;;  %v2033_v45 = vadd.f32 %v677_v12, %v656_v16  ;;  %v2037_v47 = vadd.f32 %v649_v31, %v628_v19  ;;  %v2040_v48 = vmul.f32 %v1991_v7, %v802_v0  ;;  %v2045_v58 = vld [vmem:[%s2692_s3 + $0x17] ss:$0 sm:$0xff]  ;;  %v2049_v5 = vld [vmem:[#allocation2 + $0xa4] sm:$0xff] }
  0x30   : > { %2780 = vst [vmem:[#allocation17_spill] sm:$0xff] %v2031_v44  ;;  %v1063_v59 = vadd.f32 %v1055_v34, %v1034_v33  ;;  %v1084_v61 = vmul.f32 %v2031_v44, %v2021_v38  ;;  %2781 = vst [vmem:[#allocation18_spill] sm:$0xff] %v2049_v5  ;;  %v1209_v0 = vadd.f32 %v1201_v40, %v1180_v39  ;;  %v1246_v17 = vld [vmem:[#allocation2 + $0xb4] sm:$0xff]  ;;  %p1657_p3 = por %p1656_p2, %p1655_p1 }
  0x31   : > { %v1230_v6 = vmul.f32 %v2045_v58, %v1217_v41 }
  0x32   : > { %p1658_p5 = pnand %p1657_p3, %p1651_p0 }
  0x33   : > { %v1238_v40 = vadd.f32 %v1230_v6, %v1209_v0 }
  0xf5   : > { %v1578_v42 = vpop.f32.mrb[0].mxu0  ;;  %v1582_v43 = vpop.f32.mrb[0].mxu1 }
  0xf6   : > { %v411_v49 = vadd.f32 %v1578_v42, %v1521_v37  ;;  %v427_v50 = vadd.f32 %v1582_v43, %v1521_v37  ;;  %v402_v56 = vpop.f32.mrb[1].mxu0  ;;  %v418_v57 = vpop.f32.mrb[1].mxu1  ;;  %v1150_v42 = vmul.f32 %v1977_v3, %v1957_v53  ;;  %v1171_v43 = vmul.f32 %v1982_v4, %v1959_v54  ;;  %v2117_v53 = vld [vmem:[%s2692_s3 + $0xc] ss:$0 sm:$0xff]  ;;  %v2122_v54 = vld [vmem:[%s2692_s3 + $0xd] ss:$0 sm:$0xff] }
  0xf7   : > { %v403_v62 = vadd.f32 %v1521_v37, %v402_v56  ;;  %v419_v63 = vadd.f32 %v1521_v37, %v418_v57  ;;  %v1579_v1 = vpop.f32.mrb[2].mxu0  ;;  %v1583_v2 = vpop.f32.mrb[2].mxu1  ;;  %v2132_v57 = vadd.f32 %v2035_v46, %v2033_v45 }
  0xf8   : > { %436 = vst.msk [vmem:[#allocation2 + $0x42] sm:$0xff] %vm309_vm0, %v411_v49  ;;  %v1301_v10 = vadd.f32 %v1874_v18, %v411_v49  ;;  %440 = vst.msk [vmem:[#allocation2 + $0x82] sm:$0xff] %vm309_vm0, %v427_v50  ;;  %v1305_v11 = vadd.f32 %v1905_v26, %v427_v50  ;;  %v414_v12 = vadd.f32 %v1579_v1, %v1521_v37  ;;  %v405_v14 = vpop.f32.mrb[3].mxu0  ;;  %v421_v16 = vpop.f32.mrb[3].mxu1  ;;  %v2063_v18 = vld [vmem:[%s2692_s3 + $0x13] ss:$0 sm:$0xff] }
  0xf9   : > { %v430_v13 = vadd.f32 %v1583_v2, %v1521_v37  ;;  %434 = vst.msk [vmem:[#allocation2 + $0x22] sm:$0xff] %vm309_vm0, %v403_v62  ;;  %v1299_v19 = vadd.f32 %v1879_v20, %v403_v62  ;;  %438 = vst.msk [vmem:[#allocation2 + $0x62] sm:$0xff] %vm309_vm0, %v419_v63  ;;  %v1303_v31 = vadd.f32 %v1897_v24, %v419_v63  ;;  %v2079_v26 = vld [vmem:[%s2692_s3 + $0x18] ss:$0 sm:$0xff] }
  0xfa   : > { %v406_v33 = vadd.f32 %v1521_v37, %v405_v14  ;;  %v422_v34 = vadd.f32 %v1521_v37, %v421_v16  ;;  %1349 = vst.msk [vmem:[%s2066_s15 + $0x10] sm:$0xff] %vm309_vm0, %v1301_v10  ;;  %1353 = vst.msk [vmem:[%s2066_s15 + $0x30] sm:$0xff] %vm309_vm0, %v1305_v11  ;;  %v1302_v20 = vadd.f32 %v1884_v21, %v414_v12 }
  0xfb   : > { %437 = vst.msk [vmem:[#allocation2 + $0x52] sm:$0xff] %vm309_vm0, %v414_v12  ;;  %441 = vst.msk [vmem:[#allocation2 + $0x92] sm:$0xff] %vm309_vm0, %v430_v13  ;;  %v1306_v24 = vadd.f32 %v1902_v25, %v430_v13  ;;  %v1092_v37 = vadd.f32 %v1084_v61, %v1063_v59  ;;  %v1113_v39 = vmul.f32 %v2063_v18, %v2049_v5 }
  0xfc   : > { %1347 = vst.msk [vmem:[%s2066_s15] sm:$0xff] %vm309_vm0, %v1299_v19  ;;  %1351 = vst.msk [vmem:[%s2066_s15 + $0x20] sm:$0xff] %vm309_vm0, %v1303_v31  ;;  %v1300_v21 = vadd.f32 %v1889_v22, %v406_v33  ;;  %v1304_v25 = vadd.f32 %v1894_v23, %v422_v34  ;;  %v1259_v41 = vmul.f32 %v2079_v26, %v1246_v17  ;;  %v2107_v22 = vld [vmem:[%s2692_s3 + $0xa] ss:$0 sm:$0xff]  ;;  %v2112_v23 = vld [vmem:[%s2692_s3 + $0xb] ss:$0 sm:$0xff] }
  0xfd   : > { %435 = vst.msk [vmem:[#allocation2 + $0x32] sm:$0xff] %vm309_vm0, %v406_v33  ;;  %439 = vst.msk [vmem:[#allocation2 + $0x72] sm:$0xff] %vm309_vm0, %v422_v34  ;;  %v2136_v59 = vadd.f32 %v2040_v48, %v2037_v47  ;;  %v2138_v61 = vadd.f32 %v1113_v39, %v1092_v37  ;;  %v2152_v46 = vadd.f32 %v1171_v43, %v1150_v42 }
  0xfe   : > { %1350 = vst.msk [vmem:[%s2066_s15 + $0x18] sm:$0xff] %vm309_vm0, %v1302_v20  ;;  %1354 = vst.msk [vmem:[%s2066_s15 + $0x38] sm:$0xff] %vm309_vm0, %v1306_v24  ;;  %v2140_v62 = vadd.f32 %v1259_v41, %v1238_v40  ;;  %v2156_v47 = vmul.f32 %v2014_v32, %v1998_v9  ;;  %v2172_v14 = vmul.f32 %v2045_v58, %v2021_v38  ;;  %v2191_v38 = vld [vmem:[%s2692_s3 + $0xe] ss:$0 sm:$0xff] }
  0xff   : > { %1348 = vst.msk [vmem:[%s2066_s15 + $0x8] sm:$0xff] %vm309_vm0, %v1300_v21  ;;  %1352 = vst.msk [vmem:[%s2066_s15 + $0x28] sm:$0xff] %vm309_vm0, %v1304_v25  ;;  %v2124_v49 = vld [vmem:[#allocation2 + $0x40] sm:$0xff] }
 0x100   : > { %2782 = vst [vmem:[#allocation19_spill] sm:$0xff] %v2107_v22  ;;  %v2126_v50 = vld [vmem:[#allocation2 + $0x41] sm:$0xff]  ;;  %2783 = vst [vmem:[#allocation20_spill] sm:$0xff] %v2136_v59  ;;  %v854_v0 = vmul.f32 %v2107_v22, %v2124_v49  ;;  %v2186_v34 = vmul.f32 %v1977_v3, %v2124_v49 }
 0x101   : > { %v2128_v56 = vld [vmem:[#allocation2 + $0x42] sm:$0xff]  ;;  %2784 = vst [vmem:[#allocation21_spill] sm:$0xff] %v2138_v61  ;;  %2785 = vst [vmem:[#allocation22_spill] sm:$0xff] %v2140_v62  ;;  %v875_v45 = vmul.f32 %v2112_v23, %v2126_v50 }
 0x102   : > { %v2142_v63 = vld [vmem:[#allocation2 + $0x20] sm:$0xff]  ;;  %2787 = vst [vmem:[#allocation24_spill] sm:$0xff] %v2156_v47  ;;  %v904_v12 = vmul.f32 %v2117_v53, %v2128_v56  ;;  %2788 = vst [vmem:[#allocation25_spill] sm:$0xff] %v2172_v14 }
 0x103   : > { %2786 = vst [vmem:[#allocation23_spill] sm:$0xff] %v2142_v63  ;;  %v2144_v1 = vld [vmem:[#allocation2 + $0x21] sm:$0xff]  ;;  %v571_v48 = vmul.f32 %v1912_v27, %v2142_v63  ;;  %v883_v31 = vadd.f32 %v875_v45, %v854_v0  ;;  %v852_v33 = vmul.f32 %v2107_v22, %v2142_v63  ;;  %v2209_v0 = vld [vmem:[#allocation2 + $0x50] sm:$0xff] }
 0x104   : > { %v2146_v2 = vld [vmem:[#allocation2 + $0x22] sm:$0xff]  ;;  %v592_v6 = vmul.f32 %v1917_v28, %v2144_v1  ;;  %v2176_v16 = vld [vmem:[#allocation2 + $0x30] sm:$0xff]  ;;  %2789 = vst [vmem:[#allocation26_spill] sm:$0xff] %v2209_v0  ;;  %v1000_v5 = vmul.f32 %v1964_v55, %v2209_v0 }
 0x105   : > { %v2162_v10 = vld [vmem:[#allocation2 + $0x23] sm:$0xff]  ;;  %v621_v9 = vmul.f32 %v1932_v35, %v2146_v2  ;;  %v2178_v17 = vld [vmem:[#allocation2 + $0x31] sm:$0xff]  ;;  %v709_v37 = vmul.f32 %v1922_v29, %v2176_v16  ;;  %v912_v42 = vadd.f32 %v904_v12, %v883_v31 }
 0x106   : > { %v2164_v11 = vld [vmem:[#allocation2 + $0x24] sm:$0xff]  ;;  %v2180_v19 = vld [vmem:[#allocation2 + $0x32] sm:$0xff]  ;;  %v600_v20 = vadd.f32 %v592_v6, %v571_v48  ;;  %v650_v24 = vmul.f32 %v1950_v51, %v2162_v10  ;;  %v730_v39 = vmul.f32 %v1927_v30, %v2178_v17 }
 0x107   : > { %v2168_v13 = vld [vmem:[#allocation2 + $0x43] sm:$0xff]  ;;  %v2199_v21 = vld [vmem:[#allocation2 + $0x33] sm:$0xff]  ;;  %v679_v40 = vmul.f32 %v1991_v7, %v2164_v11  ;;  %v759_v41 = vmul.f32 %v1937_v36, %v2180_v19 }
 0x108   : > { %v2201_v25 = vld [vmem:[#allocation2 + $0x44] sm:$0xff]  ;;  %v933_v43 = vmul.f32 %v2122_v54, %v2168_v13  ;;  %v2211_v45 = vld [vmem:[#allocation2 + $0x51] sm:$0xff]  ;;  %v629_v6 = vadd.f32 %v621_v9, %v600_v20  ;;  %v738_v14 = vadd.f32 %v730_v39, %v709_v37  ;;  %v788_v59 = vmul.f32 %v1955_v52, %v2199_v21 }
 0x109   : > { %2790 = vst [vmem:[#allocation27_spill] sm:$0xff] %v2211_v45  ;;  %v2213_v48 = vld [vmem:[#allocation2 + $0x52] sm:$0xff]  ;;  %v1021_v61 = vmul.f32 %v1971_v60, %v2211_v45  ;;  %v2223_v31 = vld [vmem:[#allocation2 + $0x60] sm:$0xff]  ;;  %v962_v9 = vmul.f32 %v2191_v38, %v2201_v25 }
 0x10a   : > { %2791 = vst [vmem:[#allocation28_spill] sm:$0xff] %v2213_v48  ;;  %v2215_v62 = vld [vmem:[#allocation2 + $0x34] sm:$0xff]  ;;  %2793 = vst [vmem:[#allocation30_spill] sm:$0xff] %v2223_v31  ;;  %v941_v63 = vadd.f32 %v933_v43, %v912_v42  ;;  %v1050_v20 = vmul.f32 %v2008_v15, %v2213_v48  ;;  %v2233_v39 = vld [vmem:[#allocation2 + $0x61] sm:$0xff]  ;;  %v658_v45 = vadd.f32 %v650_v24, %v629_v6 }
 0x10b   : > { %v2221_v12 = vld [vmem:[#allocation2 + $0x53] sm:$0xff]  ;;  %2795 = vst [vmem:[#allocation32_spill] sm:$0xff] %v2233_v39  ;;  %v2235_v22 = vld [vmem:[#allocation2 + $0x62] sm:$0xff]  ;;  %v767_v0 = vadd.f32 %v759_v41, %v738_v14  ;;  %v1029_v7 = vadd.f32 %v1021_v61, %v1000_v5  ;;  %v1146_v36 = vmul.f32 %v1977_v3, %v2223_v31  ;;  %v817_v42 = vmul.f32 %v1996_v8, %v2215_v62 }
 0x10c   : > { %2792 = vst [vmem:[#allocation29_spill] sm:$0xff] %v2221_v12  ;;  %v2231_v37 = vld [vmem:[#allocation2 + $0x54] sm:$0xff]  ;;  %2796 = vst [vmem:[#allocation33_spill] sm:$0xff] %v2235_v22  ;;  %v2239_v52 = vld [vmem:[#allocation2 + $0x63] sm:$0xff]  ;;  %v1079_v43 = vmul.f32 %v2031_v44, %v2221_v12  ;;  %v1167_v48 = vmul.f32 %v1982_v4, %v2233_v39  ;;  %v1196_v47 = vmul.f32 %v2014_v32, %v2235_v22 }
 0x10d   : > { %2794 = vst [vmem:[#allocation31_spill] sm:$0xff] %v2231_v37  ;;  %2797 = vst [vmem:[#allocation34_spill] sm:$0xff] %v2239_v52  ;;  %v2249_v24 = vld [vmem:[#allocation2 + $0x64] sm:$0xff]  ;;  %v796_v5 = vadd.f32 %v788_v59, %v767_v0  ;;  %v970_v61 = vadd.f32 %v962_v9, %v941_v63  ;;  %v1058_v14 = vadd.f32 %v1050_v20, %v1029_v7 }
 0x10e   : > { %2798 = vst [vmem:[#allocation35_spill] sm:$0xff] %v2249_v24  ;;  %v1108_v41 = vmul.f32 %v2063_v18, %v2231_v37  ;;  %v687_v6 = vadd.f32 %v679_v40, %v658_v45  ;;  %v1175_v3 = vadd.f32 %v1167_v48, %v1146_v36  ;;  %v1225_v31 = vmul.f32 %v2045_v58, %v2239_v52 }
 0x10f   : > { %v873_v12 = vmul.f32 %v2112_v23, %v2144_v1  ;;  %v825_v39 = vadd.f32 %v817_v42, %v796_v5  ;;  %v1087_v8 = vadd.f32 %v1079_v43, %v1058_v14  ;;  %v1254_v22 = vmul.f32 %v2079_v26, %v2249_v24 }
 0x110   : > { %v998_v59 = vmul.f32 %v1964_v55, %v2176_v16  ;;  %v1204_v7 = vadd.f32 %v1196_v47, %v1175_v3  ;;  %v902_v40 = vmul.f32 %v2117_v53, %v2146_v2  ;;  %v1019_v36 = vmul.f32 %v1971_v60, %v2178_v17 }
 0x111   : > { %v881_v63 = vadd.f32 %v873_v12, %v852_v33  ;;  %v833_v0 = vadd.f32 %v825_v39, %v687_v6  ;;  %v931_v45 = vmul.f32 %v2122_v54, %v2162_v10  ;;  %v960_v48 = vmul.f32 %v2191_v38, %v2164_v11 }
 0x112   : > { %v1048_v9 = vmul.f32 %v2008_v15, %v2180_v19  ;;  %v1116_v20 = vadd.f32 %v1108_v41, %v1087_v8  ;;  %v1027_v3 = vadd.f32 %v1019_v36, %v998_v59  ;;  %v1165_v47 = vmul.f32 %v1982_v4, %v2126_v50 }
 0x113   : > { %v910_v42 = vadd.f32 %v902_v40, %v881_v63  ;;  %v978_v33 = vadd.f32 %v970_v61, %v833_v0  ;;  %v1233_v12 = vadd.f32 %v1225_v31, %v1204_v7  ;;  %v1077_v39 = vmul.f32 %v2031_v44, %v2199_v21 }
 0x114   : > { %v1106_v43 = vmul.f32 %v2063_v18, %v2215_v62  ;;  %v1056_v14 = vadd.f32 %v1048_v9, %v1027_v3  ;;  %v1173_v6 = vadd.f32 %v1165_v47, %v2186_v34  ;;  %v1194_v8 = vmul.f32 %v2014_v32, %v2128_v56 }
 0x115   : > { %v939_v5 = vadd.f32 %v931_v45, %v910_v42  ;;  %v1124_v41 = vadd.f32 %v1116_v20, %v978_v33  ;;  %v1223_v59 = vmul.f32 %v2045_v58, %v2168_v13  ;;  %v572_v31 = vmul.f32 %v1912_v27, %v2176_v16  ;;  %v2345_v27 = vld [vmem:[#allocation2 + $0x74] sm:$0xff] }
 0x116   : > { %v593_v61 = vmul.f32 %v1917_v28, %v2178_v17  ;;  %v1085_v63 = vadd.f32 %v1077_v39, %v1056_v14  ;;  %v1202_v40 = vadd.f32 %v1194_v8, %v1173_v6  ;;  %v1252_v36 = vmul.f32 %v2079_v26, %v2201_v25  ;;  %v2308_v8 = vld [vmem:[%s2693_s4] ss:$0 sm:$0xff]  ;;  %v2818_v28 = vld [vmem:[#allocation12_spill] sm:$0xff] }
 0x117   : > { %v968_v7 = vadd.f32 %v960_v48, %v939_v5  ;;  %v1262_v34 = vadd.f32 %v1254_v22, %v1233_v12  ;;  %v622_v45 = vmul.f32 %v1932_v35, %v2180_v19  ;;  %v710_v9 = vmul.f32 %v1922_v29, %v2124_v49  ;;  %v2800_v12 = vld [vmem:[#allocation24_spill] sm:$0xff] }
 0x118   : > { %v601_v0 = vadd.f32 %v593_v61, %v572_v31  ;;  %v1114_v42 = vadd.f32 %v1106_v43, %v1085_v63  ;;  %v1231_v3 = vadd.f32 %v1223_v59, %v1202_v40  ;;  %v731_v48 = vmul.f32 %v1927_v30, %v2126_v50  ;;  %v2804_v59 = vld [vmem:[#allocation13_spill] sm:$0xff]  ;;  %v2805_v61 = vld [vmem:[#allocation26_spill] sm:$0xff] }
 0x119   : > { %v976_v20 = vadd.f32 %v968_v7, %v2132_v57  ;;  %v2295_v47 = vadd.f32 %v1262_v34, %v1124_v41  ;;  %v651_v22 = vmul.f32 %v1950_v51, %v2199_v21  ;;  %v2301_v39 = vadd.f32 %v2800_v12, %v2152_v46  ;;  %v2802_v57 = vld [vmem:[#allocation9_spill] sm:$0xff]  ;;  %v2806_v7 = vld [vmem:[#allocation19_spill] sm:$0xff]  ;;  %v2812_v12 = vld [vmem:[#allocation30_spill] sm:$0xff] }
 0x11a   : > { %v630_v33 = vadd.f32 %v622_v45, %v601_v0  ;;  %v1260_v14 = vadd.f32 %v1252_v36, %v1231_v3  ;;  %v739_v6 = vadd.f32 %v731_v48, %v710_v9  ;;  %v760_v43 = vmul.f32 %v2802_v57, %v2128_v56  ;;  %2803 = vst [vmem:[#allocation9_spill] sm:$0xff] %v2308_v8  ;;  %v2807_v46 = vld [vmem:[#allocation27_spill] sm:$0xff]  ;;  %v2809_v9 = vld [vmem:[#allocation14_spill] sm:$0xff]  ;;  %v2333_v35 = vld [vmem:[#allocation2 + $0x72] sm:$0xff] }
 0x11b   : > { %2799 = vst [vmem:[#allocation36_spill] sm:$0xff] %v2295_v47  ;;  %2801 = vst [vmem:[#allocation24_spill] sm:$0xff] %v2301_v39  ;;  %v1122_v5 = vadd.f32 %v1114_v42, %v976_v20  ;;  %v680_v31 = vmul.f32 %v2804_v59, %v2215_v62  ;;  %v855_v63 = vmul.f32 %v2806_v7, %v2805_v61  ;;  %v2808_v0 = vld [vmem:[#allocation11_spill] sm:$0xff]  ;;  %v2320_v42 = vld [vmem:[#allocation2 + $0x70] sm:$0xff] }
 0x11c   : > { %v659_v41 = vadd.f32 %v651_v22, %v630_v33  ;;  %v876_v40 = vmul.f32 %v2112_v23, %v2807_v46  ;;  %v768_v34 = vadd.f32 %v760_v43, %v739_v6  ;;  %v789_v45 = vmul.f32 %v2808_v0, %v2168_v13  ;;  %2810 = vst [vmem:[#allocation26_spill] sm:$0xff] %v2320_v42  ;;  %v2811_v33 = vld [vmem:[#allocation28_spill] sm:$0xff]  ;;  %v2815_v59 = vld [vmem:[#allocation33_spill] sm:$0xff] }
 0x11d   : > { %v1268_v36 = vadd.f32 %v1260_v14, %v1122_v5  ;;  %v818_v20 = vmul.f32 %v2809_v9, %v2201_v25  ;;  %v905_v22 = vmul.f32 %v2117_v53, %v2811_v33  ;;  %v1001_v39 = vmul.f32 %v1964_v55, %v2812_v12  ;;  %v2326_v47 = vld [vmem:[#allocation2 + $0x71] sm:$0xff]  ;;  %2816 = vst [vmem:[#allocation27_spill] sm:$0xff] %v2333_v35 }
 0x11e   : > { %v688_v3 = vadd.f32 %v680_v31, %v659_v41  ;;  %v884_v48 = vadd.f32 %v876_v40, %v855_v63  ;;  %2813 = vst [vmem:[#allocation19_spill] sm:$0xff] %v2326_v47  ;;  %v797_v14 = vadd.f32 %v789_v45, %v768_v34  ;;  %v2814_v6 = vld [vmem:[#allocation32_spill] sm:$0xff]  ;;  %v1051_v51 = vmul.f32 %v2008_v15, %v2815_v59  ;;  %v1316_v41 = vpop.permute.xlu0 %1315  ;;  %v2817_v63 = vld [vmem:[#allocation29_spill] sm:$0xff] }
 0x11f   : > { %v1283_v5 = vadd.f32 %v2308_v8, %v1268_v36  ;;  %v1022_v43 = vmul.f32 %v1971_v60, %v2814_v6  ;;  %v934_v40 = vmul.f32 %v2122_v54, %v2817_v63  ;;  %v1080_v12 = vmul.f32 %v2031_v44, %v2239_v52  ;;  %v2343_v59 = vld [vmem:[#allocation2 + $0x73] sm:$0xff]  ;;  %2820 = vst [vmem:[#allocation14_spill] sm:$0xff] %v2345_v27 }
 0x120   : > { %v913_v31 = vadd.f32 %v905_v22, %v884_v48  ;;  %v1147_v36 = vmul.f32 %v2818_v28, %v2320_v42  ;;  %v826_v45 = vadd.f32 %v818_v20, %v797_v14  ;;  %v1168_v6 = vmul.f32 %v1982_v4, %v2326_v47  ;;  %2819 = vst [vmem:[#allocation11_spill] sm:$0xff] %v2343_v59  ;;  %v2821_v14 = vld [vmem:[#allocation23_spill] sm:$0xff] }
 0x121   : > { %v1339_v34 = vadd.f32 %v1316_v41, %v1283_v5  ;;  %v1030_v8 = vadd.f32 %v1022_v43, %v1001_v39  ;;  %v963_v22 = vmul.f32 %v2191_v38, %v2231_v37  ;;  %v1109_v52 = vmul.f32 %v2063_v18, %v2249_v24 }
 0x122   : > { %v942_v48 = vadd.f32 %v934_v40, %v913_v31  ;;  %v1197_v42 = vmul.f32 %v2014_v32, %v2333_v35  ;;  %v834_v5 = vadd.f32 %v826_v45, %v688_v3  ;;  %v1176_v39 = vadd.f32 %v1168_v6, %v1147_v36 }
 0x123   : > { %v1059_v20 = vadd.f32 %v1051_v51, %v1030_v8  ;;  %v708_v43 = vmul.f32 %v1922_v29, %v2821_v14  ;;  %1363 = vrot.lane.b32.xlu0 %v1339_v34, %s1730_s18  ;;  %v1226_v31 = vmul.f32 %v2045_v58, %v2343_v59  ;;  %v1255_v40 = vmul.f32 %v2079_v26, %v2345_v27 }
 0x124   : > { %v971_v41 = vadd.f32 %v963_v22, %v942_v48  ;;  %v729_v24 = vmul.f32 %v1927_v30, %v2144_v1  ;;  %v1205_v3 = vadd.f32 %v1197_v42, %v1176_v39  ;;  %v758_v51 = vmul.f32 %v2802_v57, %v2146_v2 }
 0x125   : > { %v1088_v35 = vadd.f32 %v1080_v12, %v1059_v20  ;;  %v853_v8 = vmul.f32 %v2806_v7, %v2176_v16  ;;  %v787_v34 = vmul.f32 %v2808_v0, %v2162_v10  ;;  %v874_v45 = vmul.f32 %v2112_v23, %v2178_v17 }
 0x126   : > { %v979_v6 = vadd.f32 %v971_v41, %v834_v5  ;;  %v737_v36 = vadd.f32 %v729_v24, %v708_v43  ;;  %v1234_v22 = vadd.f32 %v1226_v31, %v1205_v3  ;;  %v816_v1 = vmul.f32 %v2809_v9, %v2164_v11 }
 0x127   : > { %v1117_v48 = vadd.f32 %v1109_v52, %v1088_v35  ;;  %v903_v42 = vmul.f32 %v2117_v53, %v2180_v19  ;;  %v882_v12 = vadd.f32 %v874_v45, %v853_v8  ;;  %v999_v16 = vmul.f32 %v1964_v55, %v2124_v49 }
 0x128   : > { %v766_v2 = vadd.f32 %v758_v51, %v737_v36  ;;  %v1020_v24 = vmul.f32 %v1971_v60, %v2126_v50  ;;  %v1263_v5 = vadd.f32 %v1255_v40, %v1234_v22  ;;  %v932_v35 = vmul.f32 %v2122_v54, %v2199_v21 }
 0x129   : > { %v1125_v10 = vadd.f32 %v1117_v48, %v979_v6  ;;  %v961_v52 = vmul.f32 %v2191_v38, %v2215_v62  ;;  %v911_v17 = vadd.f32 %v903_v42, %v882_v12  ;;  %v1049_v19 = vmul.f32 %v2008_v15, %v2128_v56  ;;  %v2822_v6 = vld [vmem:[#allocation6_spill] sm:$0xff] }
 0x12a   : > { %v795_v11 = vadd.f32 %v787_v34, %v766_v2  ;;  %v1028_v20 = vadd.f32 %v1020_v24, %v999_v16  ;;  %v1078_v14 = vmul.f32 %v2031_v44, %v2168_v13  ;;  %v1145_v43 = vmul.f32 %v2818_v28, %v2805_v61  ;;  %v2823_v34 = vld [vmem:[#allocation20_spill] sm:$0xff]  ;;  %v2825_v2 = vld [vmem:[#allocation9_spill] sm:$0xff] }
 0x12b   : > { %v1271_v39 = vadd.f32 %v1263_v5, %v1125_v10  ;;  %v1166_v41 = vmul.f32 %v1982_v4, %v2807_v46  ;;  %v940_v31 = vadd.f32 %v932_v35, %v911_v17  ;;  %v1107_v62 = vmul.f32 %v2063_v18, %v2201_v25  ;;  %v2827_v10 = vld [vmem:[#allocation8_spill] sm:$0xff] }
 0x12c   : > { %v824_v21 = vadd.f32 %v816_v1, %v795_v11  ;;  %v1057_v40 = vadd.f32 %v1049_v19, %v1028_v20  ;;  %v1195_v51 = vmul.f32 %v2014_v32, %v2811_v33  ;;  %v1224_v8 = vmul.f32 %v2045_v58, %v2817_v63  ;;  %v2824_v1 = vld [vmem:[#allocation7_spill] sm:$0xff]  ;;  %v2828_v20 = vld [vmem:[#allocation10_spill] sm:$0xff] }
 0x12d   : > { %v1174_v3 = vadd.f32 %v1166_v41, %v1145_v43  ;;  %v574_v36 = vmul.f32 %v2822_v6, %v2805_v61  ;;  %v969_v48 = vadd.f32 %v961_v52, %v940_v31  ;;  %v595_v42 = vmul.f32 %v2824_v1, %v2807_v46  ;;  %v2830_v41 = vld [vmem:[#allocation32_spill] sm:$0xff] }
 0x12e   : > { %v832_v45 = vadd.f32 %v824_v21, %v2823_v34  ;;  %v1086_v22 = vadd.f32 %v1078_v14, %v1057_v40  ;;  %v2402_v12 = vadd.f32 %v2825_v2, %v1271_v39  ;;  %v1253_v24 = vmul.f32 %v2079_v26, %v2231_v37  ;;  %v2829_v14 = vld [vmem:[#allocation30_spill] sm:$0xff]  ;;  %v2831_v21 = vld [vmem:[#allocation33_spill] sm:$0xff] }
 0x12f   : > { %v1203_v16 = vadd.f32 %v1195_v51, %v1174_v3  ;;  %v624_v5 = vmul.f32 %v2827_v10, %v2811_v33  ;;  %v603_v17 = vadd.f32 %v595_v42, %v574_v36  ;;  %v653_v52 = vmul.f32 %v2828_v20, %v2817_v63  ;;  %v2832_v51 = vld [vmem:[#allocation13_spill] sm:$0xff] }
 0x130   : > { %2826 = vst [vmem:[#allocation28_spill] sm:$0xff] %v2402_v12  ;;  %v977_v35 = vadd.f32 %v969_v48, %v832_v45  ;;  %v1115_v11 = vadd.f32 %v1107_v62, %v1086_v22  ;;  %v712_v43 = vmul.f32 %v1922_v29, %v2829_v14  ;;  %v733_v39 = vmul.f32 %v1927_v30, %v2830_v41  ;;  %v2833_v62 = vld [vmem:[#allocation34_spill] sm:$0xff] }
 0x131   : > { %v1232_v19 = vadd.f32 %v1224_v8, %v1203_v16  ;;  %v762_v31 = vmul.f32 %v2802_v57, %v2831_v21  ;;  %v632_v3 = vadd.f32 %v624_v5, %v603_v17  ;;  %v682_v34 = vmul.f32 %v2832_v51, %v2231_v37  ;;  %v2420_v45 = vld [vmem:[#allocation2 + $0x80] sm:$0xff]  ;;  %v2839_v37 = vld [vmem:[#allocation27_spill] sm:$0xff]  ;;  %v2440_v21 = vld [vmem:[#allocation2 + $0x90] sm:$0xff] }
 0x132   : > { %v1123_v40 = vadd.f32 %v1115_v11, %v977_v35  ;;  %v791_v36 = vmul.f32 %v2808_v0, %v2833_v62  ;;  %2834 = vst [vmem:[#allocation29_spill] sm:$0xff] %v2420_v45  ;;  %v741_v48 = vadd.f32 %v733_v39, %v712_v43  ;;  %v2835_v22 = vld [vmem:[#allocation26_spill] sm:$0xff]  ;;  %v878_v16 = vmul.f32 %v2112_v23, %v2326_v47  ;;  %v2838_v11 = vld [vmem:[#allocation35_spill] sm:$0xff] }
 0x133   : > { %v1261_v8 = vadd.f32 %v1253_v24, %v1232_v19  ;;  %v857_v42 = vmul.f32 %v2806_v7, %v2835_v22  ;;  %v2426_v12 = vld [vmem:[#allocation2 + $0x81] sm:$0xff]  ;;  %v661_v5 = vadd.f32 %v653_v52, %v632_v3  ;;  %v820_v17 = vmul.f32 %v2809_v9, %v2838_v11  ;;  %2841 = vst [vmem:[#allocation20_spill] sm:$0xff] %v2440_v21  ;;  %v2442_v52 = vld [vmem:[#allocation2 + $0x91] sm:$0xff] }
 0x134   : > { %2836 = vst [vmem:[#allocation12_spill] sm:$0xff] %v2426_v12  ;;  %v2428_v35 = vld [vmem:[#allocation2 + $0x82] sm:$0xff]  ;;  %v907_v62 = vmul.f32 %v2117_v53, %v2839_v37  ;;  %v936_v24 = vmul.f32 %v2122_v54, %v2343_v59  ;;  %v770_v39 = vadd.f32 %v762_v31, %v741_v48  ;;  %v1003_v47 = vmul.f32 %v1964_v55, %v2420_v45  ;;  %v2444_v3 = vld [vmem:[#allocation2 + $0x92] sm:$0xff] }
 0x135   : > { %2837 = vst [vmem:[#allocation23_spill] sm:$0xff] %v2428_v35  ;;  %v2436_v19 = vld [vmem:[#allocation2 + $0x83] sm:$0xff]  ;;  %v1269_v43 = vadd.f32 %v1261_v8, %v1123_v40  ;;  %v886_v22 = vadd.f32 %v878_v16, %v857_v42  ;;  %2842 = vst [vmem:[#allocation7_spill] sm:$0xff] %v2442_v52  ;;  %v690_v11 = vadd.f32 %v682_v34, %v661_v5  ;;  %v2457_v45 = vld [vmem:[#allocation2 + $0x93] sm:$0xff]  ;;  %v1318_v34 = vpop.permute.xlu0 %1317 }
 0x136   : > { %2840 = vst [vmem:[#allocation6_spill] sm:$0xff] %v2436_v19  ;;  %2843 = vst [vmem:[#allocation9_spill] sm:$0xff] %v2444_v3  ;;  %v965_v37 = vmul.f32 %v2191_v38, %v2345_v27  ;;  %v1024_v59 = vmul.f32 %v1971_v60, %v2426_v12  ;;  %v1053_v31 = vmul.f32 %v2008_v15, %v2428_v35  ;;  %v2452_v40 = vld [vmem:[#allocation2 + $0x84] sm:$0xff]  ;;  %v2465_v15 = vld [vmem:[#allocation2 + $0x94] sm:$0xff] }
 0x137   : > { %v1284_v8 = vadd.f32 %v2825_v2, %v1269_v43  ;;  %v799_v48 = vadd.f32 %v791_v36, %v770_v39  ;;  %v915_v42 = vadd.f32 %v907_v62, %v886_v22  ;;  %v1082_v16 = vmul.f32 %v2031_v44, %v2436_v19  ;;  %v2467_v36 = vpop.permute.xlu1 %1319 }
 0x138   : > { %v1032_v5 = vadd.f32 %v1024_v59, %v1003_v47  ;;  %v1149_v27 = vmul.f32 %v2818_v28, %v2440_v21  ;;  %v1170_v12 = vmul.f32 %v1982_v4, %v2442_v52  ;;  %v1199_v35 = vmul.f32 %v2014_v32, %v2444_v3 }
 0x139   : > { %v1340_v62 = vadd.f32 %v1318_v34, %v1284_v8  ;;  %v828_v22 = vadd.f32 %v820_v17, %v799_v48  ;;  %v944_v43 = vadd.f32 %v936_v24, %v915_v42  ;;  %v1111_v39 = vmul.f32 %v2063_v18, %v2452_v40 }
 0x13a   : > { %v1061_v47 = vadd.f32 %v1053_v31, %v1032_v5  ;;  %v1178_v59 = vadd.f32 %v1170_v12, %v1149_v27  ;;  %v1228_v21 = vmul.f32 %v2045_v58, %v2457_v45  ;;  %v573_v52 = vmul.f32 %v2822_v6, %v2124_v49 }
 0x13b   : > { %v836_v19 = vadd.f32 %v828_v22, %v690_v11  ;;  %v973_v3 = vadd.f32 %v965_v37, %v944_v43  ;;  %v1257_v32 = vmul.f32 %v2079_v26, %v2465_v15  ;;  %v594_v17 = vmul.f32 %v2824_v1, %v2126_v50  ;;  %1365 = vrot.lane.b32.xlu1 %v1340_v62, %s1730_s18  ;;  %v2846_v22 = vld [vmem:[#allocation34_spill] sm:$0xff] }
 0x13c   : > { %v1090_v24 = vadd.f32 %v1082_v16, %v1061_v47  ;;  %v1207_v8 = vadd.f32 %v1199_v35, %v1178_v59  ;;  %v623_v27 = vmul.f32 %v2827_v10, %v2128_v56  ;;  %v652_v12 = vmul.f32 %v2828_v20, %v2168_v13  ;;  %v1322_v56 = vpop.permute.xlu1 %1321  ;;  %v2847_v47 = vld [vmem:[#allocation26_spill] sm:$0xff] }
 0x13d   : > { %v981_v31 = vadd.f32 %v973_v3, %v836_v19  ;;  %v602_v49 = vadd.f32 %v594_v17, %v573_v52  ;;  %v711_v37 = vmul.f32 %v1922_v29, %v2805_v61  ;;  %v732_v11 = vmul.f32 %v1927_v30, %v2807_v46 }
 0x13e   : > { %v1119_v48 = vadd.f32 %v1111_v39, %v1090_v24  ;;  %v1236_v50 = vadd.f32 %v1228_v21, %v1207_v8  ;;  %v681_v42 = vmul.f32 %v2832_v51, %v2201_v25  ;;  %v761_v35 = vmul.f32 %v2802_v57, %v2811_v33  ;;  %v2844_v21 = vld [vmem:[#allocation33_spill] sm:$0xff]  ;;  %v2845_v33 = vld [vmem:[#allocation31_spill] sm:$0xff] }
 0x13f   : > { %v631_v16 = vadd.f32 %v623_v27, %v602_v49  ;;  %v740_v34 = vadd.f32 %v732_v11, %v711_v37  ;;  %v790_v13 = vmul.f32 %v2808_v0, %v2817_v63  ;;  %v856_v61 = vmul.f32 %v2806_v7, %v2829_v14  ;;  %v2849_v27 = vld [vmem:[#allocation35_spill] sm:$0xff] }
 0x140   : > { %v1127_v19 = vadd.f32 %v1119_v48, %v981_v31  ;;  %v1265_v52 = vadd.f32 %v1257_v32, %v1236_v50  ;;  %v877_v46 = vmul.f32 %v2112_v23, %v2830_v41  ;;  %v906_v25 = vmul.f32 %v2117_v53, %v2844_v21  ;;  %v2848_v32 = vld [vmem:[#allocation19_spill] sm:$0xff] }
 0x141   : > { %v660_v3 = vadd.f32 %v652_v12, %v631_v16  ;;  %v769_v5 = vadd.f32 %v761_v35, %v740_v34  ;;  %v819_v62 = vmul.f32 %v2809_v9, %v2845_v33  ;;  %v935_v43 = vmul.f32 %v2122_v54, %v2846_v22  ;;  %v2850_v31 = vld [vmem:[#allocation27_spill] sm:$0xff]  ;;  %v1326_v34 = vpop.permute.xlu1 %1325 }
 0x142   : > { %v1273_v63 = vadd.f32 %v1265_v52, %v1127_v19  ;;  %v885_v39 = vadd.f32 %v877_v46, %v856_v61  ;;  %v1002_v59 = vmul.f32 %v1964_v55, %v2847_v47  ;;  %v1023_v17 = vmul.f32 %v1971_v60, %v2848_v32  ;;  %v2851_v49 = vld [vmem:[#allocation15_spill] sm:$0xff]  ;;  %v2853_v19 = vld [vmem:[#allocation29_spill] sm:$0xff] }
 0x143   : > { %v689_v24 = vadd.f32 %v681_v42, %v660_v3  ;;  %v798_v8 = vadd.f32 %v790_v13, %v769_v5  ;;  %v964_v12 = vmul.f32 %v2191_v38, %v2849_v27  ;;  %v1052_v37 = vmul.f32 %v2851_v49, %v2850_v31  ;;  %v2852_v35 = vld [vmem:[#allocation11_spill] sm:$0xff]  ;;  %v2854_v42 = vld [vmem:[#allocation12_spill] sm:$0xff] }
 0x144   : > { %v1288_v11 = vadd.f32 %v2825_v2, %v1273_v63  ;;  %v914_v48 = vadd.f32 %v906_v25, %v885_v39  ;;  %v1031_v50 = vadd.f32 %v1023_v17, %v1002_v59  ;;  %v1081_v16 = vmul.f32 %v2031_v44, %v2852_v35  ;;  %v2855_v46 = vld [vmem:[#allocation23_spill] sm:$0xff]  ;;  %v2856_v3 = vld [vmem:[#allocation16_spill] sm:$0xff]  ;;  %v2857_v63 = vld [vmem:[#allocation14_spill] sm:$0xff] }
 0x145   : > { %v827_v61 = vadd.f32 %v819_v62, %v798_v8  ;;  %v1148_v52 = vmul.f32 %v2818_v28, %v2853_v19  ;;  %v1169_v13 = vmul.f32 %v1982_v4, %v2854_v42  ;;  %v1198_v5 = vmul.f32 %v2856_v3, %v2855_v46  ;;  %v2858_v17 = vld [vmem:[#allocation6_spill] sm:$0xff] }
 0x146   : > { %v1344_v33 = vadd.f32 %v1326_v34, %v1288_v11  ;;  %v943_v27 = vadd.f32 %v935_v43, %v914_v48  ;;  %v1060_v49 = vadd.f32 %v1052_v37, %v1031_v50  ;;  %v1110_v25 = vmul.f32 %v2063_v18, %v2857_v63  ;;  %v2859_v37 = vld [vmem:[#allocation28_spill] sm:$0xff] }
 0x147   : > { %v835_v39 = vadd.f32 %v827_v61, %v689_v24  ;;  %v1177_v59 = vadd.f32 %v1169_v13, %v1148_v52  ;;  %v1227_v62 = vmul.f32 %v2045_v58, %v2858_v17  ;;  %v576_v28 = vmul.f32 %v2822_v6, %v2847_v47 }
 0x148   : > { %v972_v8 = vadd.f32 %v964_v12, %v943_v27  ;;  %v1089_v44 = vadd.f32 %v1081_v16, %v1060_v49  ;;  %v597_v4 = vmul.f32 %v2824_v1, %v2848_v32  ;;  %v626_v43 = vmul.f32 %v2827_v10, %v2850_v31  ;;  %1373 = vrot.lane.b32.xlu1 %v1344_v33, %s1730_s18 }
 0x149   : > { %v1342_v11 = vadd.f32 %v1322_v56, %v2859_v37  ;;  %v1206_v24 = vadd.f32 %v1198_v5, %v1177_v59  ;;  %v1256_v48 = vmul.f32 %v2079_v26, %v2452_v40  ;;  %v714_v58 = vmul.f32 %v1922_v29, %v2853_v19  ;;  %v2860_v5 = vld [vmem:[#allocation20_spill] sm:$0xff] }
 0x14a   : > { %v980_v50 = vadd.f32 %v972_v8, %v835_v39  ;;  %v1118_v27 = vadd.f32 %v1110_v25, %v1089_v44  ;;  %v605_v12 = vadd.f32 %v597_v4, %v576_v28  ;;  %v735_v49 = vmul.f32 %v1927_v30, %v2854_v42  ;;  %v2861_v39 = vld [vmem:[#allocation7_spill] sm:$0xff] }
 0x14b   : > { %v1235_v16 = vadd.f32 %v1227_v62, %v1206_v24  ;;  %v655_v34 = vmul.f32 %v2828_v20, %v2852_v35  ;;  %v764_v56 = vmul.f32 %v2802_v57, %v2855_v46  ;;  %v793_v61 = vmul.f32 %v2808_v0, %v2858_v17  ;;  %v2862_v62 = vld [vmem:[#allocation9_spill] sm:$0xff] }
 0x14c   : > { %v1126_v52 = vadd.f32 %v1118_v27, %v980_v50  ;;  %v634_v13 = vadd.f32 %v626_v43, %v605_v12  ;;  %v743_v3 = vadd.f32 %v735_v49, %v714_v58  ;;  %v859_v44 = vmul.f32 %v2806_v7, %v2860_v5  ;;  %1369 = vrot.lane.b32.xlu1 %v1342_v11, %s1730_s18 }
 0x14d   : > { %v1264_v33 = vadd.f32 %v1256_v48, %v1235_v16  ;;  %v684_v25 = vmul.f32 %v2832_v51, %v2857_v63  ;;  %v880_v59 = vmul.f32 %v2112_v23, %v2861_v39  ;;  %v909_v28 = vmul.f32 %v2117_v53, %v2862_v62 }
 0x14e   : > { %v663_v8 = vadd.f32 %v655_v34, %v634_v13  ;;  %v772_v4 = vadd.f32 %v764_v56, %v743_v3  ;;  %v822_v43 = vmul.f32 %v2809_v9, %v2452_v40  ;;  %v575_v37 = vmul.f32 %v2822_v6, %v2829_v14  ;;  %v2863_v56 = vld [vmem:[#allocation36_spill] sm:$0xff] }
 0x14f   : > { %v1272_v24 = vadd.f32 %v1264_v33, %v1126_v52  ;;  %v888_v11 = vadd.f32 %v880_v59, %v859_v44  ;;  %v596_v48 = vmul.f32 %v2824_v1, %v2830_v41  ;;  %v625_v58 = vmul.f32 %v2827_v10, %v2844_v21  ;;  %v1324_v41 = vpop.permute.xlu0 %1323 }
 0x150   : > { %v692_v50 = vadd.f32 %v684_v25, %v663_v8  ;;  %v801_v27 = vadd.f32 %v793_v61, %v772_v4  ;;  %v938_v12 = vmul.f32 %v2122_v54, %v2457_v45  ;;  %v654_v49 = vmul.f32 %v2828_v20, %v2846_v22 }
 0x151   : > { %v1287_v16 = vadd.f32 %v2825_v2, %v1272_v24  ;;  %v917_v34 = vadd.f32 %v909_v28, %v888_v11  ;;  %v604_v6 = vadd.f32 %v596_v48, %v575_v37  ;;  %v713_v14 = vmul.f32 %v1922_v29, %v2847_v47  ;;  %v2869_v24 = vld [vmem:[#allocation24_spill] sm:$0xff]  ;;  %v2870_v11 = vld [vmem:[#allocation25_spill] sm:$0xff] }
 0x152   : > { %v1285_v1 = vadd.f32 %v2825_v2, %v2863_v56  ;;  %v830_v10 = vadd.f32 %v822_v43, %v801_v27  ;;  %v734_v21 = vmul.f32 %v1927_v30, %v2848_v32  ;;  %v763_v61 = vmul.f32 %v2802_v57, %v2850_v31  ;;  %v2871_v48 = vld [vmem:[#allocation17_spill] sm:$0xff] }
 0x153   : > { %v1343_v52 = vadd.f32 %v1324_v41, %v1287_v16  ;;  %v946_v20 = vadd.f32 %v938_v12, %v917_v34  ;;  %v967_v22 = vmul.f32 %v2191_v38, %v2465_v15  ;;  %v633_v13 = vadd.f32 %v625_v58, %v604_v6  ;;  %v1328_v56 = vpop.permute.xlu0 %1327 }
 0x154   : > { %v838_v3 = vadd.f32 %v830_v10, %v692_v50  ;;  %v742_v44 = vadd.f32 %v734_v21, %v713_v14  ;;  %v858_v29 = vmul.f32 %v2806_v7, %v2853_v19  ;;  %v879_v47 = vmul.f32 %v2112_v23, %v2854_v42  ;;  %v1330_v50 = vpop.permute.xlu1 %1329 }
 0x155   : > { %v975_v33 = vadd.f32 %v967_v22, %v946_v20  ;;  %v662_v25 = vadd.f32 %v654_v49, %v633_v13  ;;  %v792_v30 = vmul.f32 %v2808_v0, %v2852_v35  ;;  %v908_v57 = vmul.f32 %v2117_v53, %v2855_v46  ;;  %1371 = vrot.lane.b32.xlu0 %v1343_v52, %s1730_s18  ;;  %v2864_v0 = vld [vmem:[#allocation15_spill] sm:$0xff] }
 0x156   : > { %v771_v32 = vadd.f32 %v763_v61, %v742_v44  ;;  %v887_v31 = vadd.f32 %v879_v47, %v858_v29  ;;  %v937_v59 = vmul.f32 %v2122_v54, %v2858_v17  ;;  %v1004_v7 = vmul.f32 %v1964_v55, %v2860_v5  ;;  %v2865_v53 = vld [vmem:[#allocation35_spill] sm:$0xff]  ;;  %v2866_v17 = vld [vmem:[#allocation21_spill] sm:$0xff]  ;;  %v2867_v55 = vld [vmem:[#allocation18_spill] sm:$0xff] }
 0x157   : > { %v1341_v23 = vadd.f32 %v2467_v36, %v1285_v1  ;;  %v983_v19 = vadd.f32 %v975_v33, %v838_v3  ;;  %v1025_v42 = vmul.f32 %v1971_v60, %v2861_v39  ;;  %v1054_v35 = vmul.f32 %v2864_v0, %v2862_v62 }
 0x158   : > { %v683_v46 = vmul.f32 %v2832_v51, %v2865_v53  ;;  %v800_v28 = vadd.f32 %v792_v30, %v771_v32  ;;  %v821_v8 = vmul.f32 %v2809_v9, %v2857_v63  ;;  %v916_v54 = vadd.f32 %v908_v57, %v887_v31  ;;  %v2868_v51 = vld [vmem:[#allocation22_spill] sm:$0xff] }
 0x159   : > { %v1129_v4 = vadd.f32 %v2866_v17, %v983_v19  ;;  %v1258_v36 = vmul.f32 %v2079_v26, %v2867_v55  ;;  %v1033_v5 = vadd.f32 %v1025_v42, %v1004_v7  ;;  %1367 = vrot.lane.b32.xlu0 %v1341_v23, %s1730_s18  ;;  %v966_v62 = vmul.f32 %v2191_v38, %v2452_v40 }
 0x15a   : > { %v691_v60 = vadd.f32 %v683_v46, %v662_v25  ;;  %v829_v39 = vadd.f32 %v821_v8, %v800_v28  ;;  %v945_v43 = vadd.f32 %v937_v59, %v916_v54  ;;  %v1237_v9 = vadd.f32 %v2870_v11, %v2869_v24 }
 0x15b   : > { %v1275_v37 = vadd.f32 %v2868_v51, %v1129_v4  ;;  %v1062_v63 = vadd.f32 %v1054_v35, %v1033_v5  ;;  %v1083_v58 = vmul.f32 %v2871_v48, %v2457_v45  ;;  %v1112_v16 = vmul.f32 %v2063_v18, %v2465_v15 }
 0x15c   : > { %v837_v26 = vadd.f32 %v829_v39, %v691_v60  ;;  %v974_v27 = vadd.f32 %v966_v62, %v945_v43  ;;  %v1266_v34 = vadd.f32 %v1258_v36, %v1237_v9 }
 0x15d   : > { %v1290_v12 = vadd.f32 %v2825_v2, %v1275_v37  ;;  %v1091_v49 = vadd.f32 %v1083_v58, %v1062_v63 }
 0x15e   : > { %v982_v38 = vadd.f32 %v974_v27, %v837_v26 }
 0x15f   : > { %v1346_v40 = vadd.f32 %v1330_v50, %v1290_v12  ;;  %v1120_v6 = vadd.f32 %v1112_v16, %v1091_v49 }
 0x161   : > { %v1128_v14 = vadd.f32 %v1120_v6, %v982_v38  ;;  %1377 = vrot.lane.b32.xlu1 %v1346_v40, %s1730_s18 }
 0x163   : > { %v1274_v45 = vadd.f32 %v1266_v34, %v1128_v14 }
 0x165   : > { %v1289_v1 = vadd.f32 %v2825_v2, %v1274_v45 }
 0x167   : > { %v1345_v41 = vadd.f32 %v1328_v56, %v1289_v1 }
 0x169   : > { %1375 = vrot.lane.b32.xlu0 %v1345_v41, %s1730_s18 }
 0x195   : > { %v1364_v15 = vpop.permute.xlu0 %1363 }
 0x196   : > { %1388 = vst.msk [vmem:[%s2066_s15] sm:$0xff] %vm1387_vm2, %v1364_v15 }
 0x1ad   : > { %v1366_v18 = vpop.permute.xlu1 %1365 }
 0x1ae   : > { %1389 = vst.msk [vmem:[%s2066_s15 + $0x8] sm:$0xff] %vm1387_vm2, %v1366_v18 }
 0x1ba   : > { %v1374_v10 = vpop.permute.xlu1 %1373 }
 0x1bb   : > { %1393 = vst.msk [vmem:[%s2066_s15 + $0x28] sm:$0xff] %vm1387_vm2, %v1374_v10 }
 0x1be   : > { %v1370_v21 = vpop.permute.xlu1 %1369 }
 0x1bf   : > { %1391 = vst.msk [vmem:[%s2066_s15 + $0x18] sm:$0xff] %vm1387_vm2, %v1370_v21 }
 0x1c7   : > { %v1372_v2 = vpop.permute.xlu0 %1371 }
 0x1c8   : > { %1392 = vst.msk [vmem:[%s2066_s15 + $0x20] sm:$0xff] %vm1387_vm2, %v1372_v2 }
 0x1cb   : > { %v1368_v61 = vpop.permute.xlu0 %1367 }
 0x1cc   : > { %1390 = vst.msk [vmem:[%s2066_s15 + $0x10] sm:$0xff] %vm1387_vm2, %v1368_v61 }
 0x1d3   : > { %v1378_v52 = vpop.permute.xlu1 %1377 }
 0x1d4   : > { %1395 = vst.msk [vmem:[%s2066_s15 + $0x38] sm:$0xff] %vm1387_vm2, %v1378_v52 }
 0x1db   : > { %v1376_v20 = vpop.permute.xlu0 %1375 }
 0x1dc   : > { %1394 = vst.msk [vmem:[%s2066_s15 + $0x30] sm:$0xff] %vm1387_vm2, %v1376_v20 }
 0x1dd   : > { %1661 = shalt.err (!%p1658_p5)
}
 0x1de   : > { %s1662_s14 = scalar_lea.hbm %s2635_s30, 1024  ;;  %s1666_s17 = scalar_lea.hbm %s2695_s6, 2048 }
 0x1df   : > { %p1663_p6 = scmp.ne.s32.totalorder %s2635_s30, %s1662_s14  ;;  %p1667_p10 = scmp.lt.u32.totalorder %s2635_s30, %s2695_s6 }
 0x1e0   : > { %p1668_p11 = scmp.lt.u32.totalorder %s1666_s17, %s1662_s14  ;;  %p1670_p13 = scmp.lt.u32.totalorder %s1662_s14, %s2635_s30 }
 0x1e1   : > { %p1664_p7 = pnand %p1663_p6, %p1809_p4 }
 0x1e2   : > { %p1669_p12 = por %p1668_p11, %p1667_p10 }
 0x1e3   : > { %p1665_p9 = pneg %p1664_p7 }
 0x1e4   : > { %p1671_p0 = por %p1670_p13, %p1669_p12 }
 0x1e6   : > { %p1672_p1 = pnand %p1671_p0, %p1665_p9 }
 0x1e8   : > { %1675 = shalt.err (!%p1672_p1)
}
 0x1e9   : > { %s1732_s27 = smov 128   ;;  %s1733_s28 = smov 8  }
 0x1ea   : > { %1588 = dma.vmem_to_hbm [thread:$0]  (%p1809_p4), %s2637_s20, 1024, %s2635_s30, %s2643_s8, %s1732_s27, %s1732_s27, %s1733_s28  }
 0x1eb PF: > { %p1594_p2 = scmp.ge.s32.totalorder %s1726_s26, 2  ;;  %s1427_s11 = sand.u32 1, %s1706_s21  }
 0x1ec   : > { %s1428_s24 = scalar_lea.sflag [#allocation4], %s1427_s11 }
 0x1ed   : > { %p1591_p3 = pnand %p1594_p2, %p1816_p8 }
 0x1ef   : > { %1701 = dma.done.wait (!%p1591_p3), %s1428_s24, 1024  }
 0x1f0   : > { %1703 = vsyncadd (!%p1591_p3), %s1428_s24, 4294966272  ;;  %s19_s26 = sadd.s32 1, %s1726_s26   ;;  %s2872_s21 = smov %s1710_s22 }
 0x1f1   : > { %p16_p5 = scmp.ge.s32.totalorder %s19_s26, 4   ;;  %s2873_s22 = smov %s1714_s23 }
 0x1f2   : > { %s2874_s23 = smov %s1822_s10  ;;  %s2875_s24 = smov %s1722_s25 }
 0x1f3   : > { %s2876_s25 = smov %s2878_s29  ;;  %18 = sbr.rel (!%p16_p5) target bundleno = 4 (0x4), region = 98 }
 0x1fa   :  { %1433 = vsyncpa [#allocation4], 1 }
 0x1fb   :  { %1435 = vsyncpa [#allocation4 + $0x1], 1 }

// kernel: ghost_bottleneck_forward.4
= control target key start
LH: loop header
LB: loop body
LE: loop exit
PB: predicated region body
PF: predicated region fallthrough
CT: control target
= control target key end

     0   :  { %10 = vsyncpa [#allocation4], 0  ;;  %s4848_s0 = inlined_call_operand.hbm [shape: f32[2,16,16,32], index: 0, kind: input, shape index: {}]   ;;  %s4849_s1 = inlined_call_operand.vmem [shape: f32[32,16], index: 1, kind: input, shape index: {}]   ;;  %s4850_s2 = inlined_call_operand.vmem [shape: f32[1,16], index: 2, kind: input, shape index: {}]   ;;  %s4851_s3 = inlined_call_operand.vmem [shape: f32[25,16], index: 3, kind: input, shape index: {}]   ;;  %s4852_s4 = inlined_call_operand.vmem [shape: f32[1,16], index: 4, kind: input, shape index: {}]   ;;  %s4853_s5 = inlined_call_operand.vmem [shape: f32[2,16,16,32], index: 5, kind: output, shape index: {}]  }
   0x1   :  { %12 = vsyncpa [#allocation4 + $0x1], 0  ;;  %s3016_s18 = smov 0   ;;  %s3018_s19 = smov 0  }
   0x2   :  { %s3020_s20 = smov 0   ;;  %s3022_s21 = smov 0  }
   0x3   :  { %s3024_s22 = smov 0   ;;  %s3026_s23 = smov 0  }
   0x4   :  { %s3028_s24 = smov 0   ;;  %s3030_s25 = smov 0  }
   0x5 LB: > { %s2455_s26 = sadd.s32 4294967295, %s2979_s25   ;;  %s27_s27 = sadd.s32 1, %s2971_s23  ;;  %s2979_s25 = sphi %s3030_s25, %s18_s25   ;;  %s2975_s24 = sphi %s3028_s24, %s5292_s24   ;;  %s2971_s23 = sphi %s3026_s23, %s5291_s23   ;;  %s2967_s22 = sphi %s3024_s22, %s5290_s22   ;;  %s2963_s21 = sphi %s3022_s21, %s5289_s21   ;;  %s2959_s20 = sphi %s3020_s20, %s5288_s20   ;;  %s2955_s19 = sphi %s3018_s19, %s5287_s19   ;;  %s2951_s18 = sphi %s3016_s18, %s5286_s18  }
   0x6   : > { %p28_p0 = scmp.ge.s32.totalorder %s27_s27, 2  ;;  %s30_s28 = sadd.s32 1, %s2975_s24 }
   0x7   : > { %s37_s29 = sadd.s32 1, %s2959_s20  ;;  %p44_p1 = scmp.ne.s32.totalorder %s2959_s20, %s2955_s19 }
   0x8   : > { %s5294_s27 = smov (%p28_p0, %s27_s27), 0  ;;  %s5296_s28 = smov (!%p28_p0, %s30_s28), %s2975_s24 }
   0x9   : > { %p45_p2 = scmp.eq.s32.totalorder %s2979_s25, 0  ;;  %p50_p3 = scmp.ne.s32.totalorder %s2955_s19, %s2951_s18 }
   0xa   : > { %p32_p4 = scmp.ge.s32.totalorder %s5296_s28, 2  ;;  %p51_p5 = scmp.eq.s32.totalorder %s2455_s26, 0 }
   0xb   : > { %p3065_p6 = por %p45_p2, %p44_p1  ;;  %p2628_p8 = scmp.lt.s32.totalorder %s2979_s25, 4 }
   0xc   : > { %s5298_s28 = smov (%p32_p4, %s5296_s28), 0  ;;  %p3071_p7 = por %p51_p5, %p50_p3 }
   0xd   : > { %s34_s7 = ssub.s32 %s2975_s24, %s5298_s28  ;;  %s198_s8 = sand.u32 1, %s2959_s20  }
   0xe   : > { %p35_p9 = scmp.eq.s32.totalorder %s34_s7, 0  ;;  %s2459_s9 = sshll.u32 %s198_s8, 8 }
   0xf   : > { %s2561_s10 = sshll.u32 %s2975_s24, 12  ;;  %s202_s15 = scalar_lea.vmem [#allocation3], %s2459_s9 }
  0x10   : > { %s3081_s11 = scalar_select %p35_p9, %s2959_s20, %s37_s29  }
  0x11   : > { %s3086_s14 = scalar_lea.hbm %s4848_s0, %s2561_s10  ;;  %s209_s16 = sshll.u32 %s202_s15, 4  ;;  %s3094_s16 = int_to_ptr.vmem [resolvable:$true] %s209_s16 }
  0x12   : > { %p3090_p10 = pnand %p2628_p8, %p3065_p6  ;;  %s3096_s18 = scalar_lea.sflag [#allocation4], %s198_s8 }
  0x13   : > { %s2883_s26 = scalar_lea.hbm %s3086_s14, 4096  ;;  %s2888_s7 = scalar_lea.hbm %s4848_s0, 8192 }
  0x14   : > { %p2884_p11 = scmp.ne.s32.totalorder %s3086_s14, %s2883_s26  ;;  %p2885_p12 = pneg %p3090_p10 }
  0x15   : > { %p2889_p1 = scmp.lt.u32.totalorder %s3086_s14, %s4848_s0  ;;  %p2890_p2 = scmp.lt.u32.totalorder %s2888_s7, %s2883_s26 }
  0x16   : > { %p2886_p13 = pnand %p2885_p12, %p2884_p11  ;;  %p2892_p4 = scmp.lt.u32.totalorder %s2883_s26, %s3086_s14 }
  0x17   : > { %p2891_p3 = por %p2890_p2, %p2889_p1 }
  0x18   : > { %p2887_p0 = pneg %p2886_p13 }
  0x19   : > { %p2893_p5 = por %p2892_p4, %p2891_p3 }
  0x1b   : > { %p2894_p6 = pnand %p2893_p5, %p2887_p0 }
  0x1d   : > { %2897 = shalt.err (!%p2894_p6)
}
  0x1e   : > { %s2898_s8 = scalar_lea.vmem %s3094_s16, 4096  ;;  %s2981_s12 = smov [#allocation3]  }
  0x1f   : > { %p2899_p8 = scmp.ne.s32.totalorder %s3094_s16, %s2898_s8  ;;  %s2903_s13 = sshll.u32 %s2981_s12, 4  ;;  %s2904_s13 = int_to_ptr.vmem [resolvable:$false] %s2903_s13 }
  0x20   : > { %s2905_s15 = scalar_lea.vmem %s2904_s13, 8192  ;;  %p2906_p13 = scmp.lt.s32.totalorder %s3094_s16, %s2904_s13 }
  0x21   : > { %p2901_p9 = pnand %p2899_p8, %p2885_p12  ;;  %p2907_p1 = scmp.lt.s32.totalorder %s2905_s15, %s2898_s8 }
  0x23   : > { %p2902_p11 = pneg %p2901_p9  ;;  %p2908_p2 = por %p2907_p1, %p2906_p13 }
  0x25   : > { %p2909_p3 = pnand %p2908_p2, %p2902_p11 }
  0x27   : > { %2912 = shalt.err (!%p2909_p3)
}
  0x28   : > { %s2982_s26 = smov 128   ;;  %s2983_s29 = smov 8  }
  0x29   : > { %2627 = dma.hbm_to_vmem [thread:$0]  (!%p3090_p10), %s3086_s14, 4096, %s3094_s16, %s3096_s18, %s2982_s26, %s2982_s26, %s2983_s29  }
  0x2a   : > { %p2462_p12 = scmp.ge.s32.totalorder %s2979_s25, 1  ;;  %p217_p0 = scmp.lt.s32.totalorder %s2979_s25, 5 }
  0x2c   : > { %p218_p4 = pnand %p2462_p12, %p217_p0 }
  0x2e   : > { %221 = sbr.rel (%p218_p4) target bundleno = 1190 (0x4a6), region = 40 }
  0x35   : > { %s223_s30 = sand.u32 1, %s2955_s19  }
  0x36   : > { %s3127_s7 = sshll.u32 %s223_s30, 8  ;;  %s224_s9 = scalar_lea.sflag [#allocation4], %s223_s30 }
  0x37   : > { %s4854_s10 = scalar_lea.vmem [#allocation3], %s3127_s7 }
  0x38   : > { %2946 = dma.done.wait (%p3071_p7), %s224_s9, 4096  }
  0x39   : > { %2948 = vsyncadd (%p3071_p7), %s224_s9, 4294963200  ;;  %vm278_vm0 = vcmask 130048   ;;  %s3135_s14 = sshll.u32 %s2963_s21, 3  ;;  %p260_p10 = scmp.lt.s32.totalorder %s2967_s22, 1  ;;  %v2984_v0 = vmov 0.0   ;;  %v271_v1 = vld [vmem:[%s4849_s1] sm:$0xff] }
  0x3a   : > { %279 = vst.msk [vmem:[#allocation2] sm:$0xff] %vm278_vm0, %v2984_v0  ;;  %280 = vst.msk [vmem:[#allocation2 + $0x8] sm:$0xff] %vm278_vm0, %v2984_v0  ;;  %p262_p7 = scmp.lt.s32.totalorder %s3135_s14, 15  ;;  %s2562_s6 = sshll.u32 %s2963_s21, 7  ;;  %v272_v2 = vld [vmem:[%s4849_s1 + $0x8] sm:$0xff]  ;;  %v273_v3 = vld [vmem:[%s4849_s1 + $0x10] sm:$0xff] }
  0x3b   : > { %283 = vst.msk [vmem:[#allocation2 + $0x18] sm:$0xff] %vm278_vm0, %v2984_v0  ;;  %284 = vst.msk [vmem:[#allocation2 + $0x20] sm:$0xff] %vm278_vm0, %v2984_v0  ;;  %s5300_s22 = smov (!%p260_p10, %s2967_s22), 1  ;;  %s3194_s8 = scalar_lea.vmem %s4854_s10, %s2562_s6 [#allocation3]  ;;  %v3210_v4 = vpack.c.bf16 %v272_v2, %v271_v1  ;;  %v274_v5 = vld [vmem:[%s4849_s1 + $0x18] sm:$0xff]  ;;  %vm349_vm1 = vcmask 261120   ;;  %vm281_vm2 = vcmask 125952  }
  0x3c   : > { %310 = vst.msk [vmem:[#allocation2 + $0xf0] sm:$0xff] %vm278_vm0, %v2984_v0  ;;  %311 = vst.msk [vmem:[#allocation2 + $0xf8] sm:$0xff] %vm278_vm0, %v2984_v0  ;;  %s263_s16 = scalar_select %p262_p7, %s3135_s14, 15  ;;  %v319_v6 = vld [vmem:[%s3194_s8] sm:$0xff]  ;;  %v320_v7 = vld [vmem:[%s3194_s8 + $0x8] sm:$0xff]  ;;  %v3217_v8 = vpack.c.bf16 %v274_v5, %v273_v3 }
  0x3d   : > { %313 = vst.msk [vmem:[#allocation2 + $0x108] sm:$0xff] %vm278_vm0, %v2984_v0  ;;  %314 = vst.msk [vmem:[#allocation2 + $0x110] sm:$0xff] %vm278_vm0, %v2984_v0  ;;  %s2466_s17 = sshll.u32 %s5300_s22, 5  ;;  %v335_v9 = vpack.c.bf16 %v320_v7, %v319_v6  ;;  %v327_v10 = vld [vmem:[%s3194_s8 + $0x40] sm:$0xff]  ;;  %v328_v11 = vld [vmem:[%s3194_s8 + $0x48] sm:$0xff]  ;;  %2582 = vmatprep.subr.bf16.mxu0 %v3210_v4  ;;  %2618 = vmatprep.subr.bf16.mxu1 %v3210_v4  ;;  %p2495_p5 = scmp.le.s32.totalorder %s2963_s21, 0 }
  0x3e   : > { %286 = vst.msk [vmem:[#allocation2 + $0x30] sm:$0xff] %vm278_vm0, %v2984_v0  ;;  %287 = vst.msk [vmem:[#allocation2 + $0x38] sm:$0xff] %vm278_vm0, %v2984_v0  ;;  %s2465_s18 = sshll.u32 %s263_s16, 1  ;;  %v339_v12 = vpack.c.bf16 %v328_v11, %v327_v10  ;;  %v321_v13 = vld [vmem:[%s3194_s8 + $0x10] sm:$0xff]  ;;  %v322_v14 = vld [vmem:[%s3194_s8 + $0x18] sm:$0xff]  ;;  %2583 = vmatpush3.bf16.msra.mxu0 %v3210_v4  ;;  %2620 = vmatpush3.bf16.msra.mxu1 %v3210_v4  ;;  %s2496_s15 = sadd.s32 (!%p2495_p5), 4294967294, %s3135_s14 }
  0x3f   : > { %289 = vst.msk [vmem:[#allocation2 + $0x48] sm:$0xff] %vm278_vm0, %v2984_v0  ;;  %290 = vst.msk [vmem:[#allocation2 + $0x50] sm:$0xff] %vm278_vm0, %v2984_v0  ;;  %s266_s12 = sadd.s32 %s2466_s17, %s2465_s18  ;;  %v329_v15 = vld [vmem:[%s3194_s8 + $0x50] sm:$0xff]  ;;  %v330_v16 = vld [vmem:[%s3194_s8 + $0x58] sm:$0xff]  ;;  %2584 = vmatprep.subr.bf16.mxu0 %v3217_v8  ;;  %2619 = vmatprep.subr.bf16.mxu1 %v3217_v8  ;;  %v336_v21 = vpack.c.bf16 %v322_v14, %v321_v13  ;;  %s2497_s26 = sshll.u32 (!%p2495_p5), %s2496_s15, 4 }
  0x40   : > { %292 = vst.msk [vmem:[#allocation2 + $0x60] sm:$0xff] %vm278_vm0, %v2984_v0  ;;  %293 = vst.msk [vmem:[#allocation2 + $0x68] sm:$0xff] %vm278_vm0, %v2984_v0  ;;  %s2467_s13 = sshll.u32 %s266_s12, 3  ;;  %v323_v17 = vld [vmem:[%s3194_s8 + $0x20] sm:$0xff]  ;;  %v324_v18 = vld [vmem:[%s3194_s8 + $0x28] sm:$0xff]  ;;  %2586 = vmatprep.mubr.msk.bf16.mxu0 %vm349_vm1, %v335_v9  ;;  %2594 = vmatprep.mubr.msk.bf16.mxu1 %vm349_vm1, %v339_v12  ;;  %v340_v22 = vpack.c.bf16 %v330_v16, %v329_v15  ;;  %s5024_s29 = scalar_lea.vmem (!%p2495_p5), [#allocation3], %s3127_s7 }
  0x41   : > { %295 = vst.msk [vmem:[#allocation2 + $0x78] sm:$0xff] %vm278_vm0, %v2984_v0  ;;  %296 = vst.msk [vmem:[#allocation2 + $0x80] sm:$0xff] %vm278_vm0, %v2984_v0  ;;  %s3208_s10 = scalar_lea.vmem %s4853_s5, %s2467_s13  ;;  %v331_v19 = vld [vmem:[%s3194_s8 + $0x60] sm:$0xff]  ;;  %v332_v20 = vld [vmem:[%s3194_s8 + $0x68] sm:$0xff]  ;;  %v337_v23 = vpack.c.bf16 %v324_v18, %v323_v17  ;;  %s606_s30 = scalar_lea.vmem (!%p2495_p5), %s5024_s29, %s2497_s26 [#allocation3] }
  0x42   : > { %298 = vst.msk [vmem:[#allocation2 + $0x90] sm:$0xff] %vm278_vm0, %v2984_v0  ;;  %299 = vst.msk [vmem:[#allocation2 + $0x98] sm:$0xff] %vm278_vm0, %v2984_v0  ;;  %2585 = vmatpush3.bf16.msra.mxu0 %v3217_v8  ;;  %2621 = vmatpush3.bf16.msra.mxu1 %v3217_v8  ;;  %v341_v24 = vpack.c.bf16 %v332_v20, %v331_v19  ;;  %v325_v25 = vld [vmem:[%s3194_s8 + $0x30] sm:$0xff]  ;;  %v326_v26 = vld [vmem:[%s3194_s8 + $0x38] sm:$0xff] }
  0x43   : > { %301 = vst.msk [vmem:[#allocation2 + $0xa8] sm:$0xff] %vm278_vm0, %v2984_v0  ;;  %302 = vst.msk [vmem:[#allocation2 + $0xb0] sm:$0xff] %vm278_vm0, %v2984_v0  ;;  %v333_v27 = vld [vmem:[%s3194_s8 + $0x70] sm:$0xff]  ;;  %v334_v28 = vld [vmem:[%s3194_s8 + $0x78] sm:$0xff]  ;;  %v338_v29 = vpack.c.bf16 %v326_v26, %v325_v25  ;;  %2602 = vmatprep.subr.bf16.mxu0 (!%p2495_p5), %v3210_v4 }
  0x44   : > { %304 = vst.msk [vmem:[#allocation2 + $0xc0] sm:$0xff] %vm278_vm0, %v2984_v0  ;;  %305 = vst.msk [vmem:[#allocation2 + $0xc8] sm:$0xff] %vm278_vm0, %v2984_v0  ;;  %v342_v30 = vpack.c.bf16 %v334_v28, %v333_v27  ;;  %v3264_v31 = vld [vmem:[%s4850_s2] ss:$0 sm:$0xff] }
  0x45   : > { %307 = vst.msk [vmem:[#allocation2 + $0xd8] sm:$0xff] %vm278_vm0, %v2984_v0  ;;  %308 = vst.msk [vmem:[#allocation2 + $0xe0] sm:$0xff] %vm278_vm0, %v2984_v0  ;;  %2587 = vmatmul.mubr.msk.bf16.vlgmr.msra.gmra.mrb[0].mxu0 %vm349_vm1, %v336_v21  ;;  %2595 = vmatmul.mubr.msk.bf16.vlgmr.msra.gmra.mrb[0].mxu1 %vm349_vm1, %v340_v22 }
  0x46   : > { %2590 = vmatprep.mubr.msk.bf16.mxu0 %vm349_vm1, %v337_v23  ;;  %2598 = vmatprep.mubr.msk.bf16.mxu1 %vm349_vm1, %v341_v24  ;;  %282 = vst.msk [vmem:[#allocation2 + $0x10] sm:$0xf] %vm281_vm2, %v2984_v0  ;;  %285 = vst.msk [vmem:[#allocation2 + $0x28] sm:$0xf] %vm281_vm2, %v2984_v0 }
  0x47   : > { %291 = vst.msk [vmem:[#allocation2 + $0x58] sm:$0xf] %vm281_vm2, %v2984_v0  ;;  %312 = vst.msk [vmem:[#allocation2 + $0x100] sm:$0xf] %vm281_vm2, %v2984_v0  ;;  %2603 = vmatpush3.bf16.msra.mxu0 (!%p2495_p5), %v3210_v4 }
  0x48   : > { %315 = vst.msk [vmem:[#allocation2 + $0x118] sm:$0xf] %vm281_vm2, %v2984_v0  ;;  %288 = vst.msk [vmem:[#allocation2 + $0x40] sm:$0xf] %vm281_vm2, %v2984_v0  ;;  %2604 = vmatprep.subr.bf16.mxu0 (!%p2495_p5), %v3217_v8 }
  0x49   : > { %294 = vst.msk [vmem:[#allocation2 + $0x70] sm:$0xf] %vm281_vm2, %v2984_v0  ;;  %297 = vst.msk [vmem:[#allocation2 + $0x88] sm:$0xf] %vm281_vm2, %v2984_v0 }
  0x4a   : > { %300 = vst.msk [vmem:[#allocation2 + $0xa0] sm:$0xf] %vm281_vm2, %v2984_v0  ;;  %303 = vst.msk [vmem:[#allocation2 + $0xb8] sm:$0xf] %vm281_vm2, %v2984_v0 }
  0x4b   : > { %306 = vst.msk [vmem:[#allocation2 + $0xd0] sm:$0xf] %vm281_vm2, %v2984_v0  ;;  %309 = vst.msk [vmem:[#allocation2 + $0xe8] sm:$0xf] %vm281_vm2, %v2984_v0  ;;  %2605 = vmatpush3.bf16.msra.mxu0 (!%p2495_p5), %v3217_v8 }
  0x4d   : > { %2591 = vmatmul.mubr.msk.bf16.gmra.mrb[4].mxu0 %vm349_vm1, %v338_v29  ;;  %2599 = vmatmul.mubr.msk.bf16.gmra.mrb[4].mxu1 %vm349_vm1, %v342_v30 }
 0x118   : > { %v2588_v32 = vpop.f32.mrb[0].mxu0  ;;  %v2596_v33 = vpop.f32.mrb[0].mxu1 }
 0x119   : > { %v3267_v34 = vadd.f32 %v2588_v32, %v3264_v31  ;;  %v3270_v35 = vadd.f32 %v2596_v33, %v3264_v31  ;;  %v408_v36 = vpop.f32.mrb[1].mxu0  ;;  %v440_v37 = vpop.f32.mrb[1].mxu1 }
 0x11a   : > { %v3273_v38 = vadd.f32 %v3264_v31, %v408_v36  ;;  %v3276_v39 = vadd.f32 %v3264_v31, %v440_v37  ;;  %v2589_v40 = vpop.f32.mrb[2].mxu0  ;;  %v2597_v41 = vpop.f32.mrb[2].mxu1 }
 0x11b   : > { %v2481_v42 = vmul.f32 -1.442695, %v3267_v34  ;;  %v2489_v43 = vmul.f32 -1.442695, %v3270_v35  ;;  %v3281_v44 = vadd.f32 %v2589_v40, %v3264_v31  ;;  %v3284_v45 = vadd.f32 %v2597_v41, %v3264_v31  ;;  %v411_v46 = vpop.f32.mrb[3].mxu0  ;;  %v443_v47 = vpop.f32.mrb[3].mxu1 }
 0x11c   : > { %v2479_v48 = vmul.f32 -1.442695, %v3273_v38  ;;  %v2487_v49 = vmul.f32 -1.442695, %v3276_v39  ;;  %v3289_v50 = vadd.f32 %v3264_v31, %v411_v46  ;;  %v3292_v51 = vadd.f32 %v3264_v31, %v443_v47 }
 0x11d   : > { %2697 = vpow2.f32 %v2481_v42  ;;  %v2482_v52 = vmul.f32 -1.442695, %v3281_v44  ;;  %v2490_v53 = vmul.f32 -1.442695, %v3284_v45 }
 0x11e   : > { %2699 = vpow2.f32 %v2489_v43  ;;  %v2480_v54 = vmul.f32 -1.442695, %v3289_v50  ;;  %v2488_v55 = vmul.f32 -1.442695, %v3292_v51 }
 0x11f   : > { %2701 = vpow2.f32 %v2479_v48 }
 0x120   : > { %2703 = vpow2.f32 %v2487_v49  ;;  %v2592_v56 = vpop.f32.mrb[4].mxu0  ;;  %v2600_v57 = vpop.f32.mrb[4].mxu1 }
 0x121   : > { %2705 = vpow2.f32 %v2482_v52  ;;  %v3299_v58 = vadd.f32 %v2592_v56, %v3264_v31  ;;  %v3302_v59 = vadd.f32 %v2600_v57, %v3264_v31  ;;  %v424_v60 = vpop.f32.mrb[5].mxu0  ;;  %v456_v61 = vpop.f32.mrb[5].mxu1 }
 0x122   : > { %2707 = vpow2.f32 %v2490_v53  ;;  %v3305_v62 = vadd.f32 %v3264_v31, %v424_v60  ;;  %v3308_v63 = vadd.f32 %v3264_v31, %v456_v61  ;;  %v2593_v0 = vpop.f32.mrb[6].mxu0  ;;  %v2601_v1 = vpop.f32.mrb[6].mxu1 }
 0x123   : > { %2709 = vpow2.f32 %v2480_v54  ;;  %v2485_v2 = vmul.f32 -1.442695, %v3299_v58  ;;  %v2493_v3 = vmul.f32 -1.442695, %v3302_v59  ;;  %v3313_v5 = vadd.f32 %v2593_v0, %v3264_v31  ;;  %v427_v6 = vpop.f32.mrb[7].mxu0  ;;  %v459_v7 = vpop.f32.mrb[7].mxu1 }
 0x124   : > { %2711 = vpow2.f32 %v2488_v55  ;;  %v2483_v9 = vmul.f32 -1.442695, %v3305_v62  ;;  %v2491_v10 = vmul.f32 -1.442695, %v3308_v63  ;;  %v3319_v29 = vadd.f32 %v2601_v1, %v3264_v31 }
 0x125   : > { %2713 = vpow2.f32 %v2485_v2  ;;  %v2486_v11 = vmul.f32 -1.442695, %v3313_v5  ;;  %v3322_v33 = vadd.f32 %v3264_v31, %v427_v6  ;;  %v3325_v40 = vadd.f32 %v3264_v31, %v459_v7 }
 0x126   : > { %2715 = vpow2.f32 %v2493_v3  ;;  %v2494_v47 = vmul.f32 -1.442695, %v3319_v29 }
 0x127   : > { %v2698_v12 = vpop.eup %2697  ;;  %2717 = vpow2.f32 %v2483_v9  ;;  %v2484_v52 = vmul.f32 -1.442695, %v3322_v33  ;;  %v2492_v55 = vmul.f32 -1.442695, %v3325_v40 }
 0x128   : > { %v2700_v13 = vpop.eup %2699  ;;  %v521_v14 = vadd.f32 1.0, %v2698_v12  ;;  %2719 = vpow2.f32 %v2491_v10 }
 0x129   : > { %v2702_v15 = vpop.eup %2701  ;;  %v529_v16 = vadd.f32 1.0, %v2700_v13  ;;  %2721 = vpow2.f32 %v2486_v11 }
 0x12a   : > { %v2704_v17 = vpop.eup %2703  ;;  %2723 = vrcp.f32 %v521_v14  ;;  %v519_v18 = vadd.f32 1.0, %v2702_v15 }
 0x12b   : > { %v2706_v19 = vpop.eup %2705  ;;  %2725 = vrcp.f32 %v529_v16  ;;  %v527_v20 = vadd.f32 1.0, %v2704_v17 }
 0x12c   : > { %v2708_v21 = vpop.eup %2707  ;;  %2727 = vrcp.f32 %v519_v18  ;;  %v522_v22 = vadd.f32 1.0, %v2706_v19 }
 0x12d   : > { %v2710_v23 = vpop.eup %2709  ;;  %2729 = vrcp.f32 %v527_v20  ;;  %v530_v24 = vadd.f32 1.0, %v2708_v21  ;;  %v607_v21 = vld [vmem:[%s606_s30] sm:$0xff] (!%p2495_p5) }
 0x12e   : > { %v2712_v25 = vpop.eup %2711  ;;  %2731 = vrcp.f32 %v522_v22  ;;  %v520_v26 = vadd.f32 1.0, %v2710_v23  ;;  %v608_v22 = vld [vmem:[%s606_s30 + $0x8] sm:$0xff] (!%p2495_p5)  ;;  %v609_v23 = vld [vmem:[%s606_s30 + $0x10] sm:$0xff] (!%p2495_p5) }
 0x12f   : > { %v2714_v27 = vpop.eup %2713  ;;  %2733 = vrcp.f32 %v530_v24  ;;  %v528_v28 = vadd.f32 1.0, %v2712_v25  ;;  %v611_v24 = vpack.c.bf16 (!%p2495_p5), %v608_v22, %v607_v21  ;;  %v610_v25 = vld [vmem:[%s606_s30 + $0x18] sm:$0xff] (!%p2495_p5) }
 0x130   : > { %v2716_v30 = vpop.eup %2715  ;;  %2735 = vrcp.f32 %v520_v26  ;;  %v525_v32 = vadd.f32 1.0, %v2714_v27  ;;  %v612_v26 = vpack.c.bf16 (!%p2495_p5), %v610_v25, %v609_v23 }
 0x131   : > { %v2718_v36 = vpop.eup %2717  ;;  %2737 = vrcp.f32 %v528_v28  ;;  %v533_v37 = vadd.f32 1.0, %v2716_v30  ;;  %2606 = vmatprep.mubr.msk.bf16.mxu0 (!%p2495_p5), %vm349_vm1, %v611_v24 }
 0x132   : > { %v2720_v41 = vpop.eup %2719  ;;  %2739 = vrcp.f32 %v525_v32  ;;  %v523_v42 = vadd.f32 1.0, %v2718_v36  ;;  %2607 = vmatmul.mubr.msk.bf16.vlgmr.msra.gmra.mrb[0].mxu0 (!%p2495_p5), %vm349_vm1, %v612_v26 }
 0x133   : > { %v2722_v43 = vpop.eup %2721  ;;  %2741 = vrcp.f32 %v533_v37  ;;  %v531_v46 = vadd.f32 1.0, %v2720_v41 }
 0x134   : > { %v2724_v48 = vpop.eup %2723  ;;  %2743 = vrcp.f32 %v523_v42  ;;  %v526_v49 = vadd.f32 1.0, %v2722_v43 }
 0x135   : > { %v2726_v53 = vpop.eup %2725  ;;  %v3330_v54 = vmul.f32 %v2724_v48, %v3267_v34  ;;  %2745 = vrcp.f32 %v531_v46 }
 0x136   : > { %v2728_v56 = vpop.eup %2727  ;;  %v3334_v57 = vmul.f32 %v2726_v53, %v3270_v35  ;;  %2747 = vrcp.f32 %v526_v49 }
 0x137   : > { %v2730_v60 = vpop.eup %2729  ;;  %586 = vst.msk [vmem:[#allocation2 + $0x4a] sm:$0xff] %vm278_vm0, %v3330_v54  ;;  %v3339_v61 = vmul.f32 %v2728_v56, %v3273_v38  ;;  %2749 = vpow2.f32 %v2494_v47 }
 0x138   : > { %v2732_v0 = vpop.eup %2731  ;;  %594 = vst.msk [vmem:[#allocation2 + $0xaa] sm:$0xff] %vm278_vm0, %v3334_v57  ;;  %v3344_v34 = vmul.f32 %v2730_v60, %v3276_v39  ;;  %2751 = vpow2.f32 %v2484_v52 }
 0x139   : > { %v2734_v1 = vpop.eup %2733  ;;  %584 = vst.msk [vmem:[#allocation2 + $0x32] sm:$0xff] %vm278_vm0, %v3339_v61  ;;  %v3349_v35 = vmul.f32 %v2732_v0, %v3281_v44  ;;  %2753 = vpow2.f32 %v2492_v55 }
 0x13a   : > { %v2736_v2 = vpop.eup %2735  ;;  %592 = vst.msk [vmem:[#allocation2 + $0x92] sm:$0xff] %vm278_vm0, %v3344_v34  ;;  %v3354_v38 = vmul.f32 %v2734_v1, %v3284_v45 }
 0x13b   : > { %v2738_v3 = vpop.eup %2737  ;;  %587 = vst.msk [vmem:[#allocation2 + $0x52] sm:$0xff] %vm278_vm0, %v3349_v35  ;;  %v3359_v39 = vmul.f32 %v2736_v2, %v3289_v50 }
 0x13c   : > { %v2740_v6 = vpop.eup %2739  ;;  %595 = vst.msk [vmem:[#allocation2 + $0xb2] sm:$0xff] %vm278_vm0, %v3354_v38  ;;  %v3364_v44 = vmul.f32 %v2738_v3, %v3292_v51 }
 0x13d   : > { %v2742_v7 = vpop.eup %2741  ;;  %585 = vst.msk [vmem:[#allocation2 + $0x3a] sm:$0xff] %vm278_vm0, %v3359_v39  ;;  %v3369_v45 = vmul.f32 %v2740_v6, %v3299_v58 }
 0x13e   : > { %v2744_v9 = vpop.eup %2743  ;;  %593 = vst.msk [vmem:[#allocation2 + $0x9a] sm:$0xff] %vm278_vm0, %v3364_v44  ;;  %v3374_v50 = vmul.f32 %v2742_v7, %v3302_v59 }
 0x13f   : > { %v2746_v10 = vpop.eup %2745  ;;  %590 = vst.msk [vmem:[#allocation2 + $0x7a] sm:$0xff] %vm278_vm0, %v3369_v45  ;;  %v3379_v51 = vmul.f32 %v2744_v9, %v3305_v62 }
 0x140   : > { %v2748_v11 = vpop.eup %2747  ;;  %598 = vst.msk [vmem:[#allocation2 + $0xda] sm:$0xff] %vm278_vm0, %v3374_v50  ;;  %v3384_v58 = vmul.f32 %v2746_v10, %v3308_v63 }
 0x141   : > { %v2750_v12 = vpop.eup %2749  ;;  %588 = vst.msk [vmem:[#allocation2 + $0x62] sm:$0xff] %vm278_vm0, %v3379_v51  ;;  %v3389_v59 = vmul.f32 %v2748_v11, %v3313_v5 }
 0x142   : > { %v2752_v13 = vpop.eup %2751  ;;  %596 = vst.msk [vmem:[#allocation2 + $0xc2] sm:$0xff] %vm278_vm0, %v3384_v58  ;;  %v534_v62 = vadd.f32 1.0, %v2750_v12 }
 0x143   : > { %v2754_v14 = vpop.eup %2753  ;;  %591 = vst.msk [vmem:[#allocation2 + $0x82] sm:$0xff] %vm278_vm0, %v3389_v59  ;;  %v524_v15 = vadd.f32 1.0, %v2752_v13 }
 0x144   : > { %2755 = vrcp.f32 %v534_v62  ;;  %v532_v63 = vadd.f32 1.0, %v2754_v14 }
 0x145   : > { %2757 = vrcp.f32 %v524_v15 }
 0x146   : > { %2759 = vrcp.f32 %v532_v63 }
 0x14d   : > { %603 = sbr.rel (%p2495_p5) target bundleno = 552 (0x228), region = 48 }
 0x14e   : > { %v2756_v16 = vpop.eup %2755 }
 0x14f   : > { %v2758_v17 = vpop.eup %2757  ;;  %v3396_v18 = vmul.f32 %v2756_v16, %v3319_v29 }
 0x150   : > { %v2760_v5 = vpop.eup %2759  ;;  %v3399_v19 = vmul.f32 %v2758_v17, %v3322_v33 }
 0x151   : > { %599 = vst.msk [vmem:[#allocation2 + $0xe2] sm:$0xff] %vm278_vm0, %v3396_v18  ;;  %v3404_v20 = vmul.f32 %v2760_v5, %v3325_v40 }
 0x152   : > { %589 = vst.msk [vmem:[#allocation2 + $0x6a] sm:$0xff] %vm278_vm0, %v3399_v19 }
 0x153   : > { %597 = vst.msk [vmem:[#allocation2 + $0xca] sm:$0xff] %vm278_vm0, %v3404_v20 }
 0x205   : > { %v2608_v27 = vpop.f32.mrb[0].mxu0 }
 0x206   : > { %v662_v28 = vadd.f32 %v2608_v27, %v3264_v31  ;;  %v653_v29 = vpop.f32.mrb[1].mxu0 }
 0x207   : > { %v654_v30 = vadd.f32 %v3264_v31, %v653_v29  ;;  %v2609_v32 = vpop.f32.mrb[2].mxu0 }
 0x208   : > { %v2502_v33 = vmul.f32 -1.442695, %v662_v28  ;;  %v665_v36 = vadd.f32 %v2609_v32, %v3264_v31  ;;  %v656_v37 = vpop.f32.mrb[3].mxu0 }
 0x209   : > { %v2500_v40 = vmul.f32 -1.442695, %v654_v30  ;;  %v657_v41 = vadd.f32 %v3264_v31, %v656_v37 }
 0x20a   : > { %2761 = vpow2.f32 %v2502_v33  ;;  %v2503_v42 = vmul.f32 -1.442695, %v665_v36 }
 0x20b   : > { %2763 = vpow2.f32 %v2500_v40  ;;  %v2501_v43 = vmul.f32 -1.442695, %v657_v41 }
 0x20c   : > { %2765 = vpow2.f32 %v2503_v42 }
 0x20d   : > { %2767 = vpow2.f32 %v2501_v43 }
 0x214   : > { %v2762_v46 = vpop.eup %2761 }
 0x215   : > { %v2764_v47 = vpop.eup %2763  ;;  %v682_v48 = vadd.f32 1.0, %v2762_v46 }
 0x216   : > { %v2766_v49 = vpop.eup %2765  ;;  %v680_v52 = vadd.f32 1.0, %v2764_v47 }
 0x217   : > { %v2768_v53 = vpop.eup %2767  ;;  %2769 = vrcp.f32 %v682_v48  ;;  %v683_v55 = vadd.f32 1.0, %v2766_v49 }
 0x218   : > { %2771 = vrcp.f32 %v680_v52  ;;  %v681_v56 = vadd.f32 1.0, %v2768_v53 }
 0x219   : > { %2773 = vrcp.f32 %v683_v55 }
 0x21a   : > { %2775 = vrcp.f32 %v681_v56 }
 0x221   : > { %v2770_v60 = vpop.eup %2769 }
 0x222   : > { %v2772_v0 = vpop.eup %2771  ;;  %v694_v1 = vmul.f32 %v2770_v60, %v662_v28 }
 0x223   : > { %v2774_v2 = vpop.eup %2773  ;;  %v692_v3 = vmul.f32 %v2772_v0, %v654_v30 }
 0x224   : > { %v2776_v6 = vpop.eup %2775  ;;  %698 = vst.msk [vmem:[#allocation2 + $0x1a] sm:$0xff] %vm278_vm0, %v694_v1  ;;  %v695_v7 = vmul.f32 %v2774_v2, %v665_v36 }
 0x225   : > { %696 = vst.msk [vmem:[#allocation2 + $0x2] sm:$0xff] %vm278_vm0, %v692_v3  ;;  %v693_v9 = vmul.f32 %v2776_v6, %v657_v41 }
 0x226   : > { %699 = vst.msk [vmem:[#allocation2 + $0x22] sm:$0xff] %vm278_vm0, %v695_v7 }
 0x227   : > { %697 = vst.msk [vmem:[#allocation2 + $0xa] sm:$0xff] %vm278_vm0, %v693_v9 }
 0x228 PF: > { %s700_s21 = sadd.s32 10, %s3135_s14 }
 0x229   : > { %p2504_p6 = scmp.gt.s32.totalorder %s700_s21, 16 }
 0x22a   : > { %2610 = vmatprep.subr.bf16.mxu0 (!%p2504_p6), %v3210_v4  ;;  %v2507_v10 = vld [vmem:[%s3194_s8 + $0x80] sm:$0xff] (!%p2504_p6)  ;;  %v2508_v11 = vld [vmem:[%s3194_s8 + $0x88] sm:$0xff] (!%p2504_p6)  ;;  %v2509_v13 = vld [vmem:[%s3194_s8 + $0x90] sm:$0xff] (!%p2504_p6) }
 0x22b   : > { %704 = sbr.rel (%p2504_p6) target bundleno = 808 (0x328), region = 52  ;;  %2611 = vmatpush3.bf16.msra.mxu0 (!%p2504_p6), %v3210_v4  ;;  %v712_v12 = vpack.c.bf16 (!%p2504_p6), %v2508_v11, %v2507_v10  ;;  %v2510_v62 = vld [vmem:[%s3194_s8 + $0x98] sm:$0xff] (!%p2504_p6) }
 0x22c   : > { %2612 = vmatprep.subr.bf16.mxu0 (!%p2504_p6), %v3217_v8  ;;  %v713_v14 = vpack.c.bf16 (!%p2504_p6), %v2510_v62, %v2509_v13 }
 0x22d   : > { %2614 = vmatprep.mubr.msk.bf16.mxu0 (!%p2504_p6), %vm349_vm1, %v712_v12 }
 0x22f   : > { %2613 = vmatpush3.bf16.msra.mxu0 (!%p2504_p6), %v3217_v8 }
 0x232   : > { %2615 = vmatmul.mubr.msk.bf16.vlgmr.msra.gmra.mrb[0].mxu0 %vm349_vm1, %v713_v14 }
 0x305   : > { %v2616_v15 = vpop.f32.mrb[0].mxu0 }
 0x306   : > { %v763_v63 = vadd.f32 %v2616_v15, %v3264_v31  ;;  %v754_v16 = vpop.f32.mrb[1].mxu0 }
 0x307   : > { %v755_v17 = vadd.f32 %v3264_v31, %v754_v16  ;;  %v2617_v5 = vpop.f32.mrb[2].mxu0 }
 0x308   : > { %v2515_v4 = vmul.f32 -1.442695, %v763_v63  ;;  %v766_v21 = vadd.f32 %v2617_v5, %v3264_v31  ;;  %v757_v22 = vpop.f32.mrb[3].mxu0 }
 0x309   : > { %v2513_v23 = vmul.f32 -1.442695, %v755_v17  ;;  %v758_v24 = vadd.f32 %v3264_v31, %v757_v22 }
 0x30a   : > { %2777 = vpow2.f32 %v2515_v4  ;;  %v2516_v25 = vmul.f32 -1.442695, %v766_v21 }
 0x30b   : > { %2779 = vpow2.f32 %v2513_v23  ;;  %v2514_v8 = vmul.f32 -1.442695, %v758_v24 }
 0x30c   : > { %2781 = vpow2.f32 %v2516_v25 }
 0x30d   : > { %2783 = vpow2.f32 %v2514_v8 }
 0x314   : > { %v2778_v26 = vpop.eup %2777 }
 0x315   : > { %v2780_v27 = vpop.eup %2779  ;;  %v783_v28 = vadd.f32 1.0, %v2778_v26 }
 0x316   : > { %v2782_v29 = vpop.eup %2781  ;;  %v781_v30 = vadd.f32 1.0, %v2780_v27 }
 0x317   : > { %v2784_v32 = vpop.eup %2783  ;;  %2785 = vrcp.f32 %v783_v28  ;;  %v784_v33 = vadd.f32 1.0, %v2782_v29 }
 0x318   : > { %2787 = vrcp.f32 %v781_v30  ;;  %v782_v36 = vadd.f32 1.0, %v2784_v32 }
 0x319   : > { %2789 = vrcp.f32 %v784_v33 }
 0x31a   : > { %2791 = vrcp.f32 %v782_v36 }
 0x321   : > { %v2786_v37 = vpop.eup %2785 }
 0x322   : > { %v2788_v31 = vpop.eup %2787  ;;  %v795_v40 = vmul.f32 %v2786_v37, %v763_v63 }
 0x323   : > { %v2790_v41 = vpop.eup %2789  ;;  %v793_v42 = vmul.f32 %v2788_v31, %v755_v17 }
 0x324   : > { %v2792_v43 = vpop.eup %2791  ;;  %800 = vst.msk [vmem:[#allocation2 + $0x10a] sm:$0xff] %vm278_vm0, %v795_v40  ;;  %v796_v46 = vmul.f32 %v2790_v41, %v766_v21 }
 0x325   : > { %798 = vst.msk [vmem:[#allocation2 + $0xf2] sm:$0xff] %vm278_vm0, %v793_v42  ;;  %v794_v47 = vmul.f32 %v2792_v43, %v758_v24 }
 0x326   : > { %801 = vst.msk [vmem:[#allocation2 + $0x112] sm:$0xff] %vm278_vm0, %v796_v46 }
 0x327   : > { %799 = vst.msk [vmem:[#allocation2 + $0xfa] sm:$0xff] %vm278_vm0, %v794_v47 }
 0x328 PF: > { %v804_v48 = vld [vmem:[#allocation2 + $0x18] sm:$0xff]  ;;  %v3450_v49 = vld [vmem:[%s4851_s3] ss:$0 sm:$0xff]  ;;  %2251 = vst.msk [vmem:[%s3208_s10 + $0x10] sm:$0xff] %vm278_vm0, %v3330_v54  ;;  %2249 = vst.msk [vmem:[%s3208_s10] sm:$0xff] %vm278_vm0, %v3339_v61  ;;  %s2985_s9 = smov 16  }
 0x329   : > { %v841_v52 = vld [vmem:[#allocation2 + $0x19] sm:$0xff]  ;;  %2252 = vst.msk [vmem:[%s3208_s10 + $0x18] sm:$0xff] %vm278_vm0, %v3349_v35  ;;  %2250 = vst.msk [vmem:[%s3208_s10 + $0x8] sm:$0xff] %vm278_vm0, %v3359_v39  ;;  %v825_v54 = vmul.f32 %v3450_v49, %v804_v48  ;;  %v3504_v61 = vld [vmem:[%s4851_s3 + $0x1] ss:$0 sm:$0xff]  ;;  %vm2329_vm3 = vcmask 261248  }
 0x32a   : > { %2254 = vst.msk [vmem:[%s3208_s10 + $0x28] sm:$0xff] %vm278_vm0, %v3399_v19  ;;  %2253 = vst.msk [vmem:[%s3208_s10 + $0x20] sm:$0xff] %vm278_vm0, %v3379_v51  ;;  %v862_v35 = vmul.f32 %v3504_v61, %v841_v52  ;;  %v947_v39 = vld [vmem:[#allocation2 + $0x1b] sm:$0xff]  ;;  %v3522_v51 = vld [vmem:[%s4851_s3 + $0x4] ss:$0 sm:$0xff] }
 0x32b   : > { %2256 = vst.msk [vmem:[%s3208_s10 + $0x38] sm:$0xff] %vm278_vm0, %v3389_v59  ;;  %2255 = vst.msk [vmem:[%s3208_s10 + $0x30] sm:$0xff] %vm278_vm0, %v3369_v45  ;;  %v1000_v45 = vld [vmem:[#allocation2 + $0x1c] sm:$0xff]  ;;  %v3527_v59 = vld [vmem:[%s4851_s3 + $0x5] ss:$0 sm:$0xff] }
 0x32c   : > { %2258 = vst.msk [vmem:[%s3208_s10 + $0x48] sm:$0xff] %vm278_vm0, %v3364_v44  ;;  %2257 = vst.msk [vmem:[%s3208_s10 + $0x40] sm:$0xff] %vm278_vm0, %v3344_v34  ;;  %v3509_v34 = vld [vmem:[%s4851_s3 + $0x2] ss:$0 sm:$0xff]  ;;  %v3516_v44 = vld [vmem:[%s4851_s3 + $0x3] ss:$0 sm:$0xff]  ;;  %v1021_v19 = vmul.f32 %v3522_v51, %v1000_v45  ;;  %v1073_v60 = vmul.f32 %v3527_v59, %v804_v48 }
 0x32d   : > { %2260 = vst.msk [vmem:[%s3208_s10 + $0x58] sm:$0xff] %vm278_vm0, %v3354_v38  ;;  %2259 = vst.msk [vmem:[%s3208_s10 + $0x50] sm:$0xff] %vm278_vm0, %v3334_v57  ;;  %v894_v57 = vld [vmem:[#allocation2 + $0x1a] sm:$0xff]  ;;  %v1091_v53 = vld [vmem:[#allocation2 + $0x31] sm:$0xff] }
 0x32e   : > { %2262 = vst.msk [vmem:[%s3208_s10 + $0x68] sm:$0xff] %vm278_vm0, %v3404_v20  ;;  %2261 = vst.msk [vmem:[%s3208_s10 + $0x60] sm:$0xff] %vm278_vm0, %v3384_v58  ;;  %v915_v38 = vmul.f32 %v3509_v34, %v894_v57  ;;  %v1054_v58 = vld [vmem:[#allocation2 + $0x30] sm:$0xff]  ;;  %v3534_v55 = vld [vmem:[%s4851_s3 + $0x6] ss:$0 sm:$0xff]  ;;  %v3557_v9 = vmul.f32 %v3504_v61, %v1091_v53 }
 0x32f   : > { %2264 = vst.msk [vmem:[%s3208_s10 + $0x78] sm:$0xff] %vm278_vm0, %v3396_v18  ;;  %2263 = vst.msk [vmem:[%s3208_s10 + $0x70] sm:$0xff] %vm278_vm0, %v3374_v50  ;;  %v968_v50 = vmul.f32 %v3516_v44, %v947_v39  ;;  %v878_v18 = vadd.f32 %v862_v35, %v825_v54  ;;  %v1075_v20 = vmul.f32 %v3527_v59, %v1054_v58  ;;  %v3536_v56 = vld [vmem:[#allocation2 + $0x32] sm:$0xff]  ;;  %v3543_v1 = vld [vmem:[%s4851_s3 + $0x7] ss:$0 sm:$0xff] }
 0x330   : > { %5025 = vst [vmem:[#allocation6_spill] sm:$0xff] %v3536_v56  ;;  %v1112_v0 = vmul.f32 %v3534_v55, %v1091_v53  ;;  %v3545_v2 = vld [vmem:[#allocation2 + $0x33] sm:$0xff]  ;;  %v3550_v3 = vld [vmem:[%s4851_s3 + $0x8] ss:$0 sm:$0xff]  ;;  %v1110_v6 = vmul.f32 %v3534_v55, %v841_v52  ;;  %v3554_v7 = vmul.f32 %v3450_v49, %v1054_v58  ;;  %5028 = vst [vmem:[#allocation9_spill] sm:$0xff] %v3557_v9 }
 0x331   : > { %5026 = vst [vmem:[#allocation7_spill] sm:$0xff] %v3545_v2  ;;  %v931_v10 = vadd.f32 %v915_v38, %v878_v18  ;;  %v1165_v11 = vmul.f32 %v3543_v1, %v3536_v56  ;;  %v1218_v12 = vmul.f32 %v3550_v3, %v3545_v2  ;;  %v3563_v13 = vld [vmem:[#allocation2 + $0x34] sm:$0xff]  ;;  %v3568_v62 = vld [vmem:[%s4851_s3 + $0x9] ss:$0 sm:$0xff]  ;;  %v1163_v15 = vmul.f32 %v3543_v1, %v894_v57  ;;  %v3578_v17 = vld [vmem:[%s4851_s3 + $0xa] ss:$0 sm:$0xff] }
 0x332   : > { %5027 = vst [vmem:[#allocation8_spill] sm:$0xff] %v3554_v7  ;;  %5029 = vst [vmem:[#allocation10_spill] sm:$0xff] %v3563_v13  ;;  %v3570_v14 = vld [vmem:[#allocation2 + $0x48] sm:$0xff]  ;;  %v1128_v63 = vadd.f32 %v1112_v0, %v1075_v20  ;;  %v1271_v16 = vmul.f32 %v3568_v62, %v3563_v13  ;;  %v1126_v21 = vadd.f32 %v1110_v6, %v1073_v60  ;;  %v3621_v46 = vld [vmem:[#allocation2 + $0x60] sm:$0xff] }
 0x333   : > { %5030 = vst [vmem:[#allocation11_spill] sm:$0xff] %v3570_v14  ;;  %v3580_v5 = vld [vmem:[#allocation2 + $0x49] sm:$0xff]  ;;  %v1216_v22 = vmul.f32 %v3550_v3, %v947_v39  ;;  %v984_v23 = vadd.f32 %v968_v50, %v931_v10  ;;  %v1340_v24 = vmul.f32 %v3578_v17, %v3570_v14  ;;  %v1269_v28 = vmul.f32 %v3568_v62, %v1000_v45  ;;  %v3628_v48 = vld [vmem:[#allocation2 + $0x61] sm:$0xff]  ;;  %v3642_v38 = vld [vmem:[%s4851_s3 + $0x11] ss:$0 sm:$0xff] }
 0x334   : > { %5031 = vst [vmem:[#allocation12_spill] sm:$0xff] %v3580_v5  ;;  %v3585_v4 = vld [vmem:[%s4851_s3 + $0xb] ss:$0 sm:$0xff]  ;;  %v3597_v26 = vld [vmem:[%s4851_s3 + $0xc] ss:$0 sm:$0xff]  ;;  %v1181_v29 = vadd.f32 %v1165_v11, %v1128_v63  ;;  %v1179_v37 = vadd.f32 %v1163_v15, %v1126_v21  ;;  %v1338_v31 = vmul.f32 %v3578_v17, %v1054_v58  ;;  %5035 = vst [vmem:[#allocation16_spill] sm:$0xff] %v3621_v46 }
 0x335   : > { %v1377_v25 = vmul.f32 %v3585_v4, %v3580_v5  ;;  %v3592_v8 = vld [vmem:[#allocation2 + $0x4a] sm:$0xff]  ;;  %v1037_v40 = vadd.f32 %v1021_v19, %v984_v23  ;;  %5036 = vst [vmem:[#allocation17_spill] sm:$0xff] %v3628_v48  ;;  %v3637_v35 = vld [vmem:[#allocation2 + $0x62] sm:$0xff]  ;;  %v1375_v45 = vmul.f32 %v3585_v4, %v1091_v53  ;;  %v3654_v20 = vld [vmem:[%s4851_s3 + $0x12] ss:$0 sm:$0xff]  ;;  %v1428_v0 = vmul.f32 %v3597_v26, %v3536_v56 }
 0x336   : > { %5032 = vst [vmem:[#allocation13_spill] sm:$0xff] %v3592_v8  ;;  %v3599_v27 = vld [vmem:[#allocation2 + $0x4b] sm:$0xff]  ;;  %v1430_v30 = vmul.f32 %v3597_v26, %v3592_v8  ;;  %v1234_v52 = vadd.f32 %v1218_v12, %v1181_v29  ;;  %5038 = vst [vmem:[#allocation19_spill] sm:$0xff] %v3637_v35  ;;  %v1232_v39 = vadd.f32 %v1216_v22, %v1179_v37  ;;  %v3649_v19 = vld [vmem:[#allocation2 + $0x63] sm:$0xff] }
 0x337   : > { %5033 = vst [vmem:[#allocation14_spill] sm:$0xff] %v3599_v27  ;;  %v3607_v32 = vld [vmem:[%s4851_s3 + $0xd] ss:$0 sm:$0xff]  ;;  %v3614_v36 = vld [vmem:[%s4851_s3 + $0xe] ss:$0 sm:$0xff]  ;;  %v1393_v41 = vadd.f32 %v1377_v25, %v1340_v24  ;;  %v1696_v18 = vmul.f32 %v3642_v38, %v3637_v35  ;;  %5039 = vst [vmem:[#allocation20_spill] sm:$0xff] %v3649_v19  ;;  %v1749_v6 = vmul.f32 %v3654_v20, %v3649_v19 }
 0x338   : > { %v3609_v33 = vld [vmem:[#allocation2 + $0x4c] sm:$0xff]  ;;  %v1483_v42 = vmul.f32 %v3607_v32, %v3599_v27  ;;  %v3656_v60 = vld [vmem:[#allocation2 + $0x64] sm:$0xff]  ;;  %v1287_v53 = vadd.f32 %v1271_v16, %v1234_v52  ;;  %v3667_v11 = vld [vmem:[#allocation2 + $0x78] sm:$0xff]  ;;  %v3674_v15 = vadd.f32 %v1269_v28, %v1232_v39  ;;  %v1391_v63 = vadd.f32 %v1375_v45, %v1338_v31 }
 0x339   : > { %5034 = vst [vmem:[#allocation15_spill] sm:$0xff] %v3609_v33  ;;  %v1536_v43 = vmul.f32 %v3614_v36, %v3609_v33  ;;  %v3626_v47 = vld [vmem:[%s4851_s3 + $0xf] ss:$0 sm:$0xff]  ;;  %v3635_v57 = vld [vmem:[%s4851_s3 + $0x10] ss:$0 sm:$0xff]  ;;  %v1446_v50 = vadd.f32 %v1430_v30, %v1393_v41  ;;  %5040 = vst [vmem:[#allocation21_spill] sm:$0xff] %v3656_v60  ;;  %v1481_v52 = vmul.f32 %v3607_v32, %v3545_v2 }
 0x33a   : > { %v1606_v54 = vmul.f32 %v3626_v47, %v3621_v46  ;;  %5037 = vst [vmem:[#allocation18_spill] sm:$0xff] %v3635_v57  ;;  %v1643_v58 = vmul.f32 %v3635_v57, %v3628_v48  ;;  %v3665_v10 = vld [vmem:[%s4851_s3 + $0x13] ss:$0 sm:$0xff]  ;;  %5042 = vst [vmem:[#allocation23_spill] sm:$0xff] %v3667_v11  ;;  %v3672_v12 = vld [vmem:[%s4851_s3 + $0x14] ss:$0 sm:$0xff]  ;;  %v1303_v28 = vadd.f32 %v1287_v53, %v1037_v40 }
 0x33b   : > { %5041 = vst [vmem:[#allocation22_spill] sm:$0xff] %v3665_v10  ;;  %5043 = vst [vmem:[#allocation24_spill] sm:$0xff] %v3672_v12  ;;  %v1499_v21 = vadd.f32 %v1483_v42, %v1446_v50  ;;  %v1802_v22 = vmul.f32 %v3665_v10, %v3656_v60  ;;  %v1872_v23 = vmul.f32 %v3672_v12, %v3667_v11  ;;  %v3680_v24 = vld [vmem:[#allocation2 + $0x79] sm:$0xff]  ;;  %v3685_v25 = vld [vmem:[%s4851_s3 + $0x15] ss:$0 sm:$0xff] }
 0x33c   : > { %v1659_v16 = vadd.f32 %v1643_v58, %v1606_v54  ;;  %5044 = vst [vmem:[#allocation25_spill] sm:$0xff] %v3680_v24  ;;  %5045 = vst [vmem:[#allocation26_spill] sm:$0xff] %v3685_v25  ;;  %v3687_v29 = vld [vmem:[#allocation2 + $0x7a] sm:$0xff]  ;;  %v1909_v30 = vmul.f32 %v3685_v25, %v3680_v24  ;;  %v3694_v37 = vld [vmem:[%s4851_s3 + $0x16] ss:$0 sm:$0xff]  ;;  %v1444_v42 = vadd.f32 %v1428_v0, %v1391_v63 }
 0x33d   : > { %5046 = vst [vmem:[#allocation27_spill] sm:$0xff] %v3687_v29  ;;  %5047 = vst [vmem:[#allocation28_spill] sm:$0xff] %v3694_v37  ;;  %v3696_v31 = vld [vmem:[#allocation2 + $0x7b] sm:$0xff]  ;;  %v3701_v41 = vld [vmem:[%s4851_s3 + $0x17] ss:$0 sm:$0xff]  ;;  %v1552_v40 = vadd.f32 %v1536_v43, %v1499_v21  ;;  %v1962_v39 = vmul.f32 %v3694_v37, %v3687_v29 }
 0x33e   : > { %5048 = vst [vmem:[#allocation29_spill] sm:$0xff] %v3696_v31  ;;  %5049 = vst [vmem:[#allocation30_spill] sm:$0xff] %v3701_v41  ;;  %v1712_v54 = vadd.f32 %v1696_v18, %v1659_v16  ;;  %v2015_v45 = vmul.f32 %v3701_v41, %v3696_v31  ;;  %v3709_v50 = vld [vmem:[#allocation2 + $0x7c] sm:$0xff]  ;;  %v3714_v58 = vld [vmem:[%s4851_s3 + $0x18] ss:$0 sm:$0xff]  ;;  %v1925_v53 = vadd.f32 %v1909_v30, %v1872_v23 }
 0x33f   : > { %5050 = vst [vmem:[#allocation31_spill] sm:$0xff] %v3709_v50  ;;  %5051 = vst [vmem:[#allocation32_spill] sm:$0xff] %v3714_v58  ;;  %v2068_v0 = vmul.f32 %v3714_v58, %v3709_v50  ;;  %v802_v63 = vld [vmem:[#allocation2] sm:$0xff]  ;;  %v1497_v21 = vadd.f32 %v1481_v52, %v1444_v42  ;;  %v1534_v16 = vmul.f32 %v3614_v36, %v3563_v13  ;;  %v3803_v13 = vld [vmem:[#allocation2 + $0x54] sm:$0xff] }
 0x340   : > { %v839_v43 = vld [vmem:[#allocation2 + $0x1] sm:$0xff]  ;;  %v1568_v29 = vadd.f32 %v1552_v40, %v1303_v28  ;;  %v1765_v31 = vadd.f32 %v1749_v6, %v1712_v54  ;;  %v823_v24 = vmul.f32 %v3450_v49, %v802_v63  ;;  %v1978_v9 = vadd.f32 %v1962_v39, %v1925_v53  ;;  %5057 = vst [vmem:[#allocation38_spill] sm:$0xff] %v3803_v13 }
 0x341   : > { %v892_v18 = vld [vmem:[#allocation2 + $0x2] sm:$0xff]  ;;  %v860_v11 = vmul.f32 %v3504_v61, %v839_v43  ;;  %v1550_v52 = vadd.f32 %v1534_v16, %v1497_v21  ;;  %v1604_v28 = vmul.f32 %v3626_v47, %v3570_v14  ;;  %v1641_v40 = vmul.f32 %v3635_v57, %v3580_v5  ;;  %v3801_v14 = vld [vmem:[#allocation2 + $0x53] sm:$0xff] }
 0x342   : > { %v945_v2 = vld [vmem:[#allocation2 + $0x3] sm:$0xff]  ;;  %v913_v23 = vmul.f32 %v3509_v34, %v892_v18  ;;  %v1818_v7 = vadd.f32 %v1802_v22, %v1765_v31  ;;  %v2031_v6 = vadd.f32 %v2015_v45, %v1978_v9  ;;  %v1694_v54 = vmul.f32 %v3642_v38, %v3592_v8  ;;  %v3754_v18 = vld [vmem:[%s4852_s4] ss:$0 sm:$0xff]  ;;  %5056 = vst [vmem:[#allocation37_spill] sm:$0xff] %v3801_v14 }
 0x343   : > { %v998_v56 = vld [vmem:[#allocation2 + $0x4] sm:$0xff]  ;;  %v966_v30 = vmul.f32 %v3516_v44, %v945_v2  ;;  %v876_v42 = vadd.f32 %v860_v11, %v823_v24  ;;  %v1747_v39 = vmul.f32 %v3654_v20, %v3599_v27  ;;  %v1800_v11 = vmul.f32 %v3665_v10, %v3609_v33 }
 0x344   : > { %v1019_v50 = vmul.f32 %v3522_v51, %v998_v56  ;;  %v3733_v53 = vld [vmem:[#allocation2 + $0x20] sm:$0xff]  ;;  %v1834_v2 = vadd.f32 %v1818_v7, %v1568_v29  ;;  %v1870_v22 = vmul.f32 %v3672_v12, %v3621_v46  ;;  %v2084_v24 = vadd.f32 %v2068_v0, %v2031_v6 }
 0x345   : > { %v929_v56 = vadd.f32 %v913_v23, %v876_v42  ;;  %v3739_v9 = vld [vmem:[#allocation2 + $0x21] sm:$0xff]  ;;  %v1657_v31 = vadd.f32 %v1641_v40, %v1604_v28  ;;  %v1907_v45 = vmul.f32 %v3685_v25, %v3628_v48  ;;  %v1960_v63 = vmul.f32 %v3694_v37, %v3637_v35  ;;  %v3764_v35 = vld [vmem:[#allocation2 + $0x38] sm:$0xff] }
 0x346   : > { %v3745_v43 = vld [vmem:[#allocation2 + $0x22] sm:$0xff]  ;;  %v2013_v0 = vmul.f32 %v3701_v41, %v3649_v19  ;;  %v2066_v16 = vmul.f32 %v3714_v58, %v3656_v60  ;;  %v826_v23 = vmul.f32 %v3450_v49, %v3733_v53  ;;  %v2100_v42 = vadd.f32 %v2084_v24, %v1834_v2  ;;  %v3766_v48 = vld [vmem:[#allocation2 + $0x39] sm:$0xff] }
 0x347   : > { %v3747_v7 = vld [vmem:[#allocation2 + $0x23] sm:$0xff]  ;;  %v982_v21 = vadd.f32 %v966_v30, %v929_v56  ;;  %v1710_v28 = vadd.f32 %v1694_v54, %v1657_v31  ;;  %v1923_v6 = vadd.f32 %v1907_v45, %v1870_v22  ;;  %v863_v40 = vmul.f32 %v3504_v61, %v3739_v9  ;;  %v3768_v30 = vld [vmem:[#allocation2 + $0x3a] sm:$0xff] }
 0x348   : > { %v3749_v29 = vld [vmem:[#allocation2 + $0x24] sm:$0xff]  ;;  %v916_v19 = vmul.f32 %v3509_v34, %v3745_v43  ;;  %v969_v60 = vmul.f32 %v3516_v44, %v3747_v7  ;;  %v3777_v2 = vadd.f32 %v3754_v18, %v2100_v42  ;;  %v3779_v45 = vld [vmem:[#allocation2 + $0x3b] sm:$0xff]  ;;  %v1113_v33 = vmul.f32 %v3534_v55, %v3766_v48  ;;  %v3790_v42 = vld [vmem:[#allocation2 + $0x50] sm:$0xff] }
 0x349   : > { %v1035_v56 = vadd.f32 %v1019_v50, %v982_v21  ;;  %v1022_v54 = vmul.f32 %v3522_v51, %v3749_v29  ;;  %v1763_v22 = vadd.f32 %v1747_v39, %v1710_v28  ;;  %v1976_v24 = vadd.f32 %v1960_v63, %v1923_v6  ;;  %v3781_v46 = vld [vmem:[#allocation2 + $0x3c] sm:$0xff]  ;;  %5053 = vst [vmem:[#allocation34_spill] sm:$0xff] %v3790_v42  ;;  %v3793_v6 = vld [vmem:[#allocation2 + $0x51] sm:$0xff] }
 0x34a   : > { %5052 = vst [vmem:[#allocation33_spill] sm:$0xff] %v3777_v2  ;;  %v879_v31 = vadd.f32 %v863_v40, %v826_v23  ;;  %v1076_v21 = vmul.f32 %v3527_v59, %v3764_v35  ;;  %v1166_v27 = vmul.f32 %v3543_v1, %v3768_v30  ;;  %v2545_v39 = vmul.f32 -1.442695, %v3777_v2  ;;  %5054 = vst [vmem:[#allocation35_spill] sm:$0xff] %v3793_v6  ;;  %v3795_v40 = vld [vmem:[#allocation2 + $0x52] sm:$0xff]  ;;  %v3805_v2 = vld [vmem:[#allocation2 + $0x68] sm:$0xff] }
 0x34b   : > { %v1301_v50 = vadd.f32 %v3674_v15, %v1035_v56  ;;  %v1816_v63 = vadd.f32 %v1800_v11, %v1763_v22  ;;  %v2029_v23 = vadd.f32 %v2013_v0, %v1976_v24  ;;  %5055 = vst [vmem:[#allocation36_spill] sm:$0xff] %v3795_v40  ;;  %v1219_v8 = vmul.f32 %v3550_v3, %v3779_v45 }
 0x34c   : > { %v932_v28 = vadd.f32 %v916_v19, %v879_v31  ;;  %v1129_v56 = vadd.f32 %v1113_v33, %v1076_v21  ;;  %v1272_v5 = vmul.f32 %v3568_v62, %v3781_v46  ;;  %5058 = vst [vmem:[#allocation39_spill] sm:$0xff] %v3805_v2  ;;  %2793 = vpow2.f32 %v2545_v39  ;;  %v3811_v33 = vld [vmem:[#allocation2 + $0x6a] sm:$0xff] }
 0x34d   : > { %v1566_v15 = vadd.f32 %v1550_v52, %v1301_v50  ;;  %v2082_v19 = vadd.f32 %v2066_v16, %v2029_v23  ;;  %v1341_v0 = vmul.f32 %v3578_v17, %v3790_v42  ;;  %v3809_v52 = vld [vmem:[#allocation2 + $0x69] sm:$0xff]  ;;  %5060 = vst [vmem:[#allocation41_spill] sm:$0xff] %v3811_v33  ;;  %v1378_v31 = vmul.f32 %v3585_v4, %v3793_v6 }
 0x34e   : > { %v985_v11 = vadd.f32 %v969_v60, %v932_v28  ;;  %5059 = vst [vmem:[#allocation40_spill] sm:$0xff] %v3809_v52  ;;  %v1182_v24 = vadd.f32 %v1166_v27, %v1129_v56  ;;  %v1431_v50 = vmul.f32 %v3597_v26, %v3795_v40  ;;  %v3817_v21 = vld [vmem:[#allocation2 + $0x6b] sm:$0xff]  ;;  %v3821_v60 = vld [vmem:[#allocation2 + $0x80] sm:$0xff]  ;;  %v1484_v23 = vmul.f32 %v3607_v32, %v3801_v14 }
 0x34f   : > { %v1832_v22 = vadd.f32 %v1816_v63, %v1566_v15  ;;  %5061 = vst [vmem:[#allocation42_spill] sm:$0xff] %v3817_v21  ;;  %v3819_v39 = vld [vmem:[#allocation2 + $0x6c] sm:$0xff]  ;;  %5063 = vst [vmem:[#allocation44_spill] sm:$0xff] %v3821_v60  ;;  %v1537_v63 = vmul.f32 %v3614_v36, %v3803_v13  ;;  %v1607_v27 = vmul.f32 %v3626_v47, %v3805_v2  ;;  %v3829_v28 = vld [vmem:[#allocation2 + $0x81] sm:$0xff] }
 0x350   : > { %5062 = vst [vmem:[#allocation43_spill] sm:$0xff] %v3819_v39  ;;  %v1038_v16 = vadd.f32 %v1022_v54, %v985_v11  ;;  %5064 = vst [vmem:[#allocation45_spill] sm:$0xff] %v3829_v28  ;;  %v1235_v56 = vadd.f32 %v1219_v8, %v1182_v24  ;;  %v1394_v40 = vadd.f32 %v1378_v31, %v1341_v0  ;;  %v3833_v42 = vld [vmem:[#allocation2 + $0x82] sm:$0xff] }
 0x351   : > { %v2098_v15 = vadd.f32 %v2082_v19, %v1832_v22  ;;  %v1644_v6 = vmul.f32 %v3635_v57, %v3809_v52  ;;  %5065 = vst [vmem:[#allocation46_spill] sm:$0xff] %v3833_v42  ;;  %v3835_v54 = vld [vmem:[#allocation2 + $0x83] sm:$0xff]  ;;  %v1697_v13 = vmul.f32 %v3642_v38, %v3811_v33  ;;  %v1750_v2 = vmul.f32 %v3654_v20, %v3817_v21 }
 0x352   : > { %5066 = vst [vmem:[#allocation47_spill] sm:$0xff] %v3835_v54  ;;  %v3837_v11 = vld [vmem:[#allocation2 + $0x84] sm:$0xff]  ;;  %v1803_v19 = vmul.f32 %v3665_v10, %v3819_v39  ;;  %v1873_v8 = vmul.f32 %v3672_v12, %v3821_v60  ;;  %v1288_v22 = vadd.f32 %v1272_v5, %v1235_v56  ;;  %v1447_v24 = vadd.f32 %v1431_v50, %v1394_v40 }
 0x353   : > { %5067 = vst [vmem:[#allocation48_spill] sm:$0xff] %v3837_v11  ;;  %v3848_v0 = vadd.f32 %v3754_v18, %v2098_v15  ;;  %v1660_v31 = vadd.f32 %v1644_v6, %v1607_v27  ;;  %v803_v52 = vld [vmem:[#allocation2 + $0x8] sm:$0xff]  ;;  %v1910_v33 = vmul.f32 %v3685_v25, %v3829_v28  ;;  %v1963_v21 = vmul.f32 %v3694_v37, %v3833_v42 }
 0x354   : > { %v840_v14 = vld [vmem:[#allocation2 + $0x9] sm:$0xff]  ;;  %v2016_v39 = vmul.f32 %v3701_v41, %v3835_v54  ;;  %v2069_v60 = vmul.f32 %v3714_v58, %v3837_v11  ;;  %v1304_v40 = vadd.f32 %v1288_v22, %v1038_v16  ;;  %v1500_v6 = vadd.f32 %v1484_v23, %v1447_v24  ;;  %v5071_v22 = vld [vmem:[#allocation18_spill] sm:$0xff] }
 0x355   : > { %5068 = vst [vmem:[#allocation49_spill] sm:$0xff] %v3848_v0  ;;  %v893_v57 = vld [vmem:[#allocation2 + $0xa] sm:$0xff]  ;;  %v2543_v5 = vmul.f32 -1.442695, %v3848_v0  ;;  %v1713_v50 = vadd.f32 %v1697_v13, %v1660_v31  ;;  %v1926_v56 = vadd.f32 %v1910_v33, %v1873_v8  ;;  %v824_v12 = vmul.f32 %v3450_v49, %v803_v52 }
 0x356   : > { %v946_v15 = vld [vmem:[#allocation2 + $0xb] sm:$0xff]  ;;  %v861_v28 = vmul.f32 %v3504_v61, %v840_v14  ;;  %v914_v42 = vmul.f32 %v3509_v34, %v893_v57  ;;  %v1553_v37 = vadd.f32 %v1537_v63, %v1500_v6  ;;  %v2794_v11 = vpop.eup %2793  ;;  %v1074_v13 = vmul.f32 %v3527_v59, %v3733_v53 }
 0x357   : > { %v999_v27 = vld [vmem:[#allocation2 + $0xc] sm:$0xff]  ;;  %2795 = vpow2.f32 %v2543_v5  ;;  %v1766_v54 = vadd.f32 %v1750_v2, %v1713_v50  ;;  %v967_v41 = vmul.f32 %v3516_v44, %v946_v15  ;;  %v1979_v58 = vadd.f32 %v1963_v21, %v1926_v56  ;;  %v5073_v5 = vld [vmem:[#allocation37_spill] sm:$0xff] }
 0x358   : > { %v877_v25 = vadd.f32 %v861_v28, %v824_v12  ;;  %v1020_v16 = vmul.f32 %v3522_v51, %v999_v27  ;;  %v2187_v33 = vadd.f32 1.0, %v2794_v11  ;;  %v1569_v23 = vadd.f32 %v1553_v37, %v1304_v40  ;;  %v5072_v31 = vld [vmem:[#allocation36_spill] sm:$0xff]  ;;  %v5074_v27 = vld [vmem:[#allocation38_spill] sm:$0xff] }
 0x359   : > { %v1819_v52 = vadd.f32 %v1803_v19, %v1766_v54  ;;  %v1111_v14 = vmul.f32 %v3534_v55, %v3739_v9  ;;  %v2032_v57 = vadd.f32 %v2016_v39, %v1979_v58  ;;  %v1164_v2 = vmul.f32 %v3543_v1, %v3745_v43  ;;  %v5070_v19 = vld [vmem:[#allocation35_spill] sm:$0xff] }
 0x35a   : > { %v930_v8 = vadd.f32 %v914_v42, %v877_v25  ;;  %v1217_v21 = vmul.f32 %v3550_v3, %v3747_v7  ;;  %2797 = vrcp.f32 %v2187_v33  ;;  %v1270_v53 = vmul.f32 %v3568_v62, %v3749_v29 }
 0x35b   : > { %v1835_v12 = vadd.f32 %v1819_v52, %v1569_v23  ;;  %v1127_v63 = vadd.f32 %v1111_v14, %v1074_v13  ;;  %v2085_v28 = vadd.f32 %v2069_v60, %v2032_v57  ;;  %v1339_v54 = vmul.f32 %v3578_v17, %v3764_v35  ;;  %v5076_v13 = vld [vmem:[#allocation24_spill] sm:$0xff] }
 0x35c   : > { %v983_v37 = vadd.f32 %v967_v41, %v930_v8  ;;  %v1376_v25 = vmul.f32 %v3585_v4, %v3766_v48  ;;  %v1429_v9 = vmul.f32 %v3597_v26, %v3768_v30  ;;  %v1482_v43 = vmul.f32 %v3607_v32, %v3779_v45  ;;  %v5069_v41 = vld [vmem:[#allocation34_spill] sm:$0xff]  ;;  %v5077_v57 = vld [vmem:[#allocation40_spill] sm:$0xff] }
 0x35d   : > { %v1180_v58 = vadd.f32 %v1164_v2, %v1127_v63  ;;  %v1535_v7 = vmul.f32 %v3614_v36, %v3781_v46  ;;  %v2101_v42 = vadd.f32 %v2085_v28, %v1835_v12  ;;  %v1605_v60 = vmul.f32 %v3626_v47, %v5069_v41  ;;  %v5078_v8 = vld [vmem:[#allocation26_spill] sm:$0xff]  ;;  %v5080_v12 = vld [vmem:[#allocation28_spill] sm:$0xff] }
 0x35e   : > { %v1036_v29 = vadd.f32 %v1020_v16, %v983_v37  ;;  %v1392_v39 = vadd.f32 %v1376_v25, %v1339_v54  ;;  %v1642_v24 = vmul.f32 %v5071_v22, %v5070_v19  ;;  %v1695_v15 = vmul.f32 %v3642_v38, %v5072_v31  ;;  %v5075_v16 = vld [vmem:[#allocation39_spill] sm:$0xff]  ;;  %v5081_v25 = vld [vmem:[#allocation42_spill] sm:$0xff] }
 0x35f   : > { %v1233_v11 = vadd.f32 %v1217_v21, %v1180_v58  ;;  %v1748_v40 = vmul.f32 %v3654_v20, %v5073_v5  ;;  %v3893_v6 = vadd.f32 %v3754_v18, %v2101_v42  ;;  %v1801_v56 = vmul.f32 %v3665_v10, %v5074_v27  ;;  %v5079_v21 = vld [vmem:[#allocation41_spill] sm:$0xff]  ;;  %v5082_v58 = vld [vmem:[#allocation30_spill] sm:$0xff]  ;;  %v5084_v10 = vld [vmem:[#allocation32_spill] sm:$0xff] }
 0x360   : > { %v1445_v50 = vadd.f32 %v1429_v9, %v1392_v39  ;;  %v1871_v33 = vmul.f32 %v5076_v13, %v5075_v16  ;;  %v1658_v14 = vadd.f32 %v1642_v24, %v1605_v60  ;;  %v1908_v2 = vmul.f32 %v5078_v8, %v5077_v57  ;;  %v5083_v13 = vld [vmem:[#allocation43_spill] sm:$0xff] }
 0x361   : > { %v2796_v23 = vpop.eup %2795  ;;  %v1286_v52 = vadd.f32 %v1270_v53, %v1233_v11  ;;  %v1961_v63 = vmul.f32 %v5080_v12, %v5079_v21  ;;  %v2546_v37 = vmul.f32 -1.442695, %v3893_v6  ;;  %v2014_v9 = vmul.f32 %v5082_v58, %v5081_v25 }
 0x362   : > { %v2185_v28 = vadd.f32 1.0, %v2796_v23  ;;  %v1498_v54 = vadd.f32 %v1482_v43, %v1445_v50  ;;  %v1711_v39 = vadd.f32 %v1695_v15, %v1658_v14  ;;  %v1924_v0 = vadd.f32 %v1908_v2, %v1871_v33  ;;  %v5085_v15 = vld [vmem:[#allocation33_spill] sm:$0xff] }
 0x363   : > { %v1302_v42 = vadd.f32 %v1286_v52, %v1036_v29  ;;  %v2067_v53 = vmul.f32 %v5084_v10, %v5083_v13  ;;  %v828_v11 = vmul.f32 %v3450_v49, %v3764_v35  ;;  %v865_v24 = vmul.f32 %v3504_v61, %v3766_v48 }
 0x364   : > { %2799 = vrcp.f32 %v2185_v28  ;;  %v1551_v60 = vadd.f32 %v1535_v7, %v1498_v54  ;;  %v2798_v23 = vpop.eup %2797  ;;  %v1764_v43 = vadd.f32 %v1748_v40, %v1711_v39  ;;  %v1977_v50 = vadd.f32 %v1961_v63, %v1924_v0 }
 0x365   : > { %2801 = vpow2.f32 %v2546_v37  ;;  %v918_v29 = vmul.f32 %v3509_v34, %v3768_v30  ;;  %v2235_v33 = vmul.f32 %v2798_v23, %v5085_v15  ;;  %v881_v14 = vadd.f32 %v865_v24, %v828_v11  ;;  %v5086_v24 = vld [vmem:[#allocation44_spill] sm:$0xff] }
 0x366   : > { %v1567_v52 = vadd.f32 %v1551_v60, %v1302_v42  ;;  %v971_v7 = vmul.f32 %v3516_v44, %v3779_v45  ;;  %v1817_v2 = vadd.f32 %v1801_v56, %v1764_v43  ;;  %v2030_v28 = vadd.f32 %v2014_v9, %v1977_v50  ;;  %v3942_v43 = vld [vmem:[#allocation2 + $0x98] sm:$0xff] }
 0x367   : > { %v1024_v35 = vmul.f32 %v3522_v51, %v3781_v46  ;;  %v1078_v48 = vmul.f32 %v3527_v59, %v5069_v41  ;;  %2285 = vrot.lane.b32.xlu1 %v2235_v33, %s2985_s9  ;;  %v934_v0 = vadd.f32 %v918_v29, %v881_v14  ;;  %v1115_v30 = vmul.f32 %v3534_v55, %v5070_v19  ;;  %v5088_v33 = vld [vmem:[#allocation45_spill] sm:$0xff] }
 0x368   : > { %v1168_v40 = vmul.f32 %v3543_v1, %v5072_v31  ;;  %v1221_v45 = vmul.f32 %v3550_v3, %v5073_v5  ;;  %v1833_v56 = vadd.f32 %v1817_v2, %v1567_v52  ;;  %v2083_v63 = vadd.f32 %v2067_v53, %v2030_v28  ;;  %5087 = vst [vmem:[#allocation34_spill] sm:$0xff] %v3942_v43  ;;  %v3946_v14 = vld [vmem:[#allocation2 + $0x99] sm:$0xff] }
 0x369   : > { %v1274_v46 = vmul.f32 %v3568_v62, %v5074_v27  ;;  %v1343_v37 = vmul.f32 %v3578_v17, %v5075_v16  ;;  %v987_v54 = vadd.f32 %v971_v7, %v934_v0  ;;  %v1131_v9 = vadd.f32 %v1115_v30, %v1078_v48  ;;  %5089 = vst [vmem:[#allocation35_spill] sm:$0xff] %v3946_v14  ;;  %v3948_v7 = vld [vmem:[#allocation2 + $0x9a] sm:$0xff]  ;;  %v5093_v0 = vld [vmem:[#allocation47_spill] sm:$0xff] }
 0x36a   : > { %v1380_v42 = vmul.f32 %v3585_v4, %v5077_v57  ;;  %v1433_v39 = vmul.f32 %v3597_v26, %v5079_v21  ;;  %v2099_v60 = vadd.f32 %v2083_v63, %v1833_v56  ;;  %v1486_v11 = vmul.f32 %v3607_v32, %v5081_v25  ;;  %5090 = vst [vmem:[#allocation18_spill] sm:$0xff] %v3948_v7  ;;  %v5092_v28 = vld [vmem:[#allocation46_spill] sm:$0xff]  ;;  %v5094_v56 = vld [vmem:[#allocation48_spill] sm:$0xff]  ;;  %v5099_v25 = vld [vmem:[#allocation49_spill] sm:$0xff] }
 0x36b   : > { %v1539_v53 = vmul.f32 %v3614_v36, %v5083_v13  ;;  %v1609_v23 = vmul.f32 %v3626_v47, %v5086_v24  ;;  %v1040_v50 = vadd.f32 %v1024_v35, %v987_v54  ;;  %v1184_v29 = vadd.f32 %v1168_v40, %v1131_v9  ;;  %v5095_v35 = vld [vmem:[#allocation22_spill] sm:$0xff] }
 0x36c   : > { %v1396_v15 = vadd.f32 %v1380_v42, %v1343_v37  ;;  %v1646_v52 = vmul.f32 %v5071_v22, %v5088_v33  ;;  %v3951_v2 = vadd.f32 %v3754_v18, %v2099_v60  ;;  %v1699_v48 = vmul.f32 %v3642_v38, %v5092_v28  ;;  %v5096_v42 = vld [vmem:[#allocation24_spill] sm:$0xff]  ;;  %v3961_v24 = vld [vmem:[#allocation2 + $0x9b] sm:$0xff] }
 0x36d   : > { %v1752_v30 = vmul.f32 %v3654_v20, %v5093_v0  ;;  %v1805_v40 = vmul.f32 %v5095_v35, %v5094_v56  ;;  %v1237_v37 = vadd.f32 %v1221_v45, %v1184_v29  ;;  %v1875_v33 = vmul.f32 %v5096_v42, %v3942_v43  ;;  %5097 = vst [vmem:[#allocation37_spill] sm:$0xff] %v3961_v24  ;;  %v3963_v60 = vld [vmem:[#allocation2 + $0x9c] sm:$0xff] }
 0x36e   : > { %5091 = vst [vmem:[#allocation36_spill] sm:$0xff] %v3951_v2  ;;  %v2800_v63 = vpop.eup %2799  ;;  %v1449_v54 = vadd.f32 %v1433_v39, %v1396_v15  ;;  %v1662_v9 = vadd.f32 %v1646_v52, %v1609_v23  ;;  %5098 = vst [vmem:[#allocation38_spill] sm:$0xff] %v3963_v60  ;;  %v2544_v21 = vmul.f32 -1.442695, %v3951_v2  ;;  %v1912_v0 = vmul.f32 %v5078_v8, %v3946_v14 }
 0x36f   : > { %v2802_v13 = vpop.eup %2801  ;;  %v2233_v28 = vmul.f32 %v2800_v63, %v5099_v25  ;;  %v1965_v45 = vmul.f32 %v5080_v12, %v3948_v7  ;;  %v1290_v23 = vadd.f32 %v1274_v46, %v1237_v37  ;;  %v2018_v43 = vmul.f32 %v5082_v58, %v3961_v24  ;;  %v5100_v7 = vld [vmem:[#allocation8_spill] sm:$0xff]  ;;  %v5104_v37 = vld [vmem:[#allocation10_spill] sm:$0xff] }
 0x370   : > { %v2188_v39 = vadd.f32 1.0, %v2802_v13  ;;  %v1502_v29 = vadd.f32 %v1486_v11, %v1449_v54  ;;  %v1715_v15 = vadd.f32 %v1699_v48, %v1662_v9  ;;  %2803 = vpow2.f32 %v2544_v21  ;;  %v5101_v13 = vld [vmem:[#allocation9_spill] sm:$0xff]  ;;  %v5102_v11 = vld [vmem:[#allocation6_spill] sm:$0xff]  ;;  %v5105_v9 = vld [vmem:[#allocation11_spill] sm:$0xff] }
 0x371   : > { %2281 = vrot.lane.b32.xlu0 %v2233_v28, %s2985_s9  ;;  %v1928_v52 = vadd.f32 %v1912_v0, %v1875_v33  ;;  %v2071_v25 = vmul.f32 %v5084_v10, %v3963_v60  ;;  %v1306_v63 = vadd.f32 %v1290_v23, %v1040_v50  ;;  %v880_v46 = vadd.f32 %v5101_v13, %v5100_v7  ;;  %v5103_v28 = vld [vmem:[#allocation7_spill] sm:$0xff]  ;;  %v5107_v7 = vld [vmem:[#allocation13_spill] sm:$0xff] }
 0x372   : > { %2805 = vrcp.f32 %v2188_v39  ;;  %v1555_v2 = vadd.f32 %v1539_v53, %v1502_v29  ;;  %v1768_v14 = vadd.f32 %v1752_v30, %v1715_v15  ;;  %v917_v48 = vmul.f32 %v3509_v34, %v5102_v11  ;;  %v5108_v15 = vld [vmem:[#allocation14_spill] sm:$0xff] }
 0x373   : > { %v1981_v56 = vadd.f32 %v1965_v45, %v1928_v52  ;;  %v970_v21 = vmul.f32 %v3516_v44, %v5103_v28  ;;  %v1023_v54 = vmul.f32 %v3522_v51, %v5104_v37  ;;  %v1077_v50 = vmul.f32 %v3527_v59, %v5105_v9  ;;  %v5106_v45 = vld [vmem:[#allocation12_spill] sm:$0xff] }
 0x374   : > { %v1571_v33 = vadd.f32 %v1555_v2, %v1306_v63  ;;  %v1821_v0 = vadd.f32 %v1805_v40, %v1768_v14  ;;  %v933_v30 = vadd.f32 %v917_v48, %v880_v46  ;;  %v1114_v39 = vmul.f32 %v3534_v55, %v5106_v45  ;;  %v5109_v2 = vld [vmem:[#allocation15_spill] sm:$0xff]  ;;  %v5110_v40 = vld [vmem:[#allocation16_spill] sm:$0xff] }
 0x375   : > { %v2034_v53 = vadd.f32 %v2018_v43, %v1981_v56  ;;  %v1167_v23 = vmul.f32 %v3543_v1, %v5107_v7  ;;  %v1220_v52 = vmul.f32 %v3550_v3, %v5108_v15  ;;  %v1273_v14 = vmul.f32 %v3568_v62, %v5109_v2  ;;  %v5111_v56 = vld [vmem:[#allocation17_spill] sm:$0xff]  ;;  %v5112_v48 = vld [vmem:[#allocation19_spill] sm:$0xff]  ;;  %v5113_v37 = vld [vmem:[#allocation20_spill] sm:$0xff] }
 0x376   : > { %v1837_v29 = vadd.f32 %v1821_v0, %v1571_v33  ;;  %v1342_v63 = vmul.f32 %v3578_v17, %v5110_v40  ;;  %v986_v11 = vadd.f32 %v970_v21, %v933_v30  ;;  %v1130_v43 = vadd.f32 %v1114_v39, %v1077_v50  ;;  %v5114_v0 = vld [vmem:[#allocation21_spill] sm:$0xff]  ;;  %v5115_v45 = vld [vmem:[#allocation23_spill] sm:$0xff]  ;;  %v4006_v15 = vld [vmem:[#allocation2 + $0x90] sm:$0xff] }
 0x377   : > { %v2087_v13 = vadd.f32 %v2071_v25, %v2034_v53  ;;  %v1379_v46 = vmul.f32 %v3585_v4, %v5111_v56  ;;  %v1432_v28 = vmul.f32 %v3597_v26, %v5112_v48  ;;  %v1485_v33 = vmul.f32 %v3607_v32, %v5113_v37  ;;  %5116 = vst [vmem:[#allocation39_spill] sm:$0xff] %v4006_v15  ;;  %v4008_v30 = vld [vmem:[#allocation2 + $0x91] sm:$0xff]  ;;  %v5120_v56 = vld [vmem:[#allocation27_spill] sm:$0xff] }
 0x378   : > { %v1538_v9 = vmul.f32 %v3614_v36, %v5114_v0  ;;  %v1608_v7 = vmul.f32 %v3626_v47, %v5115_v45  ;;  %v1039_v21 = vadd.f32 %v1023_v54, %v986_v11  ;;  %v1183_v50 = vadd.f32 %v1167_v23, %v1130_v43  ;;  %5117 = vst [vmem:[#allocation40_spill] sm:$0xff] %v4008_v30  ;;  %v4010_v39 = vld [vmem:[#allocation2 + $0x92] sm:$0xff]  ;;  %v5122_v45 = vld [vmem:[#allocation31_spill] sm:$0xff] }
 0x379   : > { %v2103_v25 = vadd.f32 %v2087_v13, %v1837_v29  ;;  %v1395_v53 = vadd.f32 %v1379_v46, %v1342_v63  ;;  %5118 = vst [vmem:[#allocation26_spill] sm:$0xff] %v4010_v39  ;;  %v5119_v2 = vld [vmem:[#allocation25_spill] sm:$0xff]  ;;  %v1698_v48 = vmul.f32 %v3642_v38, %v5120_v56  ;;  %v1804_v60 = vmul.f32 %v5095_v35, %v5122_v45 }
 0x37a   : > { %v1645_v40 = vmul.f32 %v5071_v22, %v5119_v2  ;;  %v5121_v37 = vld [vmem:[#allocation29_spill] sm:$0xff]  ;;  %v2804_v29 = vpop.eup %2803  ;;  %v1236_v23 = vadd.f32 %v1220_v52, %v1183_v50  ;;  %v1874_v13 = vmul.f32 %v5096_v42, %v4006_v15  ;;  %v1911_v56 = vmul.f32 %v5078_v8, %v4008_v30 }
 0x37b   : > { %v1751_v0 = vmul.f32 %v3654_v20, %v5121_v37  ;;  %v4021_v54 = vadd.f32 %v3754_v18, %v2103_v25  ;;  %v1448_v63 = vadd.f32 %v1432_v28, %v1395_v53  ;;  %v4025_v11 = vld [vmem:[#allocation2 + $0x93] sm:$0xff]  ;;  %v2186_v46 = vadd.f32 1.0, %v2804_v29 }
 0x37c   : > { %5123 = vst [vmem:[#allocation28_spill] sm:$0xff] %v4025_v11  ;;  %v2806_v43 = vpop.eup %2805  ;;  %v1661_v2 = vadd.f32 %v1645_v40, %v1608_v7  ;;  %v1964_v37 = vmul.f32 %v5080_v12, %v4010_v39  ;;  %v4031_v45 = vld [vmem:[#allocation2 + $0x94] sm:$0xff]  ;;  %v1289_v28 = vadd.f32 %v1273_v14, %v1236_v23  ;;  %v1927_v15 = vadd.f32 %v1911_v56, %v1874_v13 }
 0x37d   : > { %5124 = vst [vmem:[#allocation30_spill] sm:$0xff] %v4031_v45  ;;  %v2236_v25 = vmul.f32 %v2806_v43, %v3893_v6  ;;  %v2548_v52 = vmul.f32 -1.442695, %v4021_v54  ;;  %v1501_v50 = vadd.f32 %v1485_v33, %v1448_v63  ;;  %2807 = vrcp.f32 %v2186_v46  ;;  %v5126_v46 = vld [vmem:[#allocation42_spill] sm:$0xff] }
 0x37e   : > { %v1714_v53 = vadd.f32 %v1698_v48, %v1661_v2  ;;  %v2017_v7 = vmul.f32 %v5082_v58, %v4025_v11  ;;  %v1305_v40 = vadd.f32 %v1289_v28, %v1039_v21  ;;  %v2070_v39 = vmul.f32 %v5084_v10, %v4031_v45  ;;  %v5127_v2 = vld [vmem:[#allocation43_spill] sm:$0xff] }
 0x37f   : > { %2287 = vrot.lane.b32.xlu1 %v2236_v25, %s2985_s9  ;;  %2809 = vpow2.f32 %v2548_v52  ;;  %v1554_v29 = vadd.f32 %v1538_v9, %v1501_v50  ;;  %v1980_v6 = vadd.f32 %v1964_v37, %v1927_v15  ;;  %v830_v14 = vmul.f32 %v3450_v49, %v5069_v41  ;;  %v5129_v52 = vld [vmem:[#allocation45_spill] sm:$0xff]  ;;  %v5130_v50 = vld [vmem:[#allocation46_spill] sm:$0xff] }
 0x380   : > { %v1767_v30 = vadd.f32 %v1751_v0, %v1714_v53  ;;  %v867_v33 = vmul.f32 %v3504_v61, %v5070_v19  ;;  %v920_v23 = vmul.f32 %v3509_v34, %v5072_v31  ;;  %v973_v63 = vmul.f32 %v3516_v44, %v5073_v5  ;;  %v5125_v19 = vld [vmem:[#allocation41_spill] sm:$0xff] }
 0x381   : > { %v1570_v48 = vadd.f32 %v1554_v29, %v1305_v40  ;;  %v1026_v9 = vmul.f32 %v3522_v51, %v5074_v27  ;;  %v2033_v13 = vadd.f32 %v2017_v7, %v1980_v6  ;;  %v1080_v15 = vmul.f32 %v3527_v59, %v5075_v16  ;;  %v5131_v7 = vld [vmem:[#allocation47_spill] sm:$0xff] }
 0x382   : > { %v1820_v21 = vadd.f32 %v1804_v60, %v1767_v30  ;;  %v883_v0 = vadd.f32 %v867_v33, %v830_v14  ;;  %v1117_v41 = vmul.f32 %v3534_v55, %v5077_v57  ;;  %v1170_v43 = vmul.f32 %v3543_v1, %v5125_v19  ;;  %v5128_v30 = vld [vmem:[#allocation44_spill] sm:$0xff] }
 0x383   : > { %v1223_v31 = vmul.f32 %v3550_v3, %v5126_v46  ;;  %v1276_v5 = vmul.f32 %v3568_v62, %v5127_v2  ;;  %v2086_v27 = vadd.f32 %v2070_v39, %v2033_v13  ;;  %v1345_v37 = vmul.f32 %v3578_v17, %v5128_v30  ;;  %v5132_v14 = vld [vmem:[#allocation48_spill] sm:$0xff]  ;;  %v5133_v39 = vld [vmem:[#allocation34_spill] sm:$0xff]  ;;  %v5134_v13 = vld [vmem:[#allocation35_spill] sm:$0xff] }
 0x384   : > { %v1836_v56 = vadd.f32 %v1820_v21, %v1570_v48  ;;  %v936_v60 = vadd.f32 %v920_v23, %v883_v0  ;;  %v1133_v25 = vadd.f32 %v1117_v41, %v1080_v15  ;;  %v1382_v28 = vmul.f32 %v3585_v4, %v5129_v52  ;;  %v5135_v15 = vld [vmem:[#allocation18_spill] sm:$0xff]  ;;  %v4078_v52 = vld [vmem:[#allocation2 + $0xb1] sm:$0xff] }
 0x385   : > { %v1435_v53 = vmul.f32 %v3597_v26, %v5130_v50  ;;  %v1488_v40 = vmul.f32 %v3607_v32, %v5131_v7  ;;  %v1541_v33 = vmul.f32 %v3614_v36, %v5132_v14  ;;  %v1611_v48 = vmul.f32 %v3626_v47, %v5133_v39  ;;  %v4076_v50 = vld [vmem:[#allocation2 + $0xb0] sm:$0xff]  ;;  %5137 = vst [vmem:[#allocation33_spill] sm:$0xff] %v4078_v52 }
 0x386   : > { %v2102_v29 = vadd.f32 %v2086_v27, %v1836_v56  ;;  %v989_v6 = vadd.f32 %v973_v63, %v936_v60  ;;  %v1186_v23 = vadd.f32 %v1170_v43, %v1133_v25  ;;  %v1398_v21 = vadd.f32 %v1382_v28, %v1345_v37  ;;  %5136 = vst [vmem:[#allocation32_spill] sm:$0xff] %v4076_v50  ;;  %v5139_v43 = vld [vmem:[#allocation38_spill] sm:$0xff]  ;;  %v4087_v25 = vld [vmem:[#allocation2 + $0xb2] sm:$0xff] }
 0x387   : > { %v1648_v0 = vmul.f32 %v5071_v22, %v5134_v13  ;;  %v1701_v41 = vmul.f32 %v3642_v38, %v5135_v15  ;;  %v2808_v56 = vpop.eup %2807  ;;  %v1754_v60 = vmul.f32 %v3654_v20, %v3961_v24  ;;  %v1807_v37 = vmul.f32 %v5095_v35, %v5139_v43  ;;  %5140 = vst [vmem:[#allocation24_spill] sm:$0xff] %v4087_v25  ;;  %v5141_v13 = vld [vmem:[#allocation36_spill] sm:$0xff] }
 0x388   : > { %v4081_v63 = vadd.f32 %v3754_v18, %v2102_v29  ;;  %v1042_v27 = vadd.f32 %v1026_v9, %v989_v6  ;;  %v2234_v15 = vmul.f32 %v2808_v56, %v5141_v13  ;;  %v1239_v39 = vadd.f32 %v1223_v31, %v1186_v23  ;;  %v4090_v30 = vld [vmem:[#allocation2 + $0xb3] sm:$0xff]  ;;  %v845_v23 = vld [vmem:[#allocation2 + $0x49] sm:$0xff] }
 0x389   : > { %v2810_v28 = vpop.eup %2809  ;;  %v1451_v14 = vadd.f32 %v1435_v53, %v1398_v21  ;;  %v1664_v7 = vadd.f32 %v1648_v0, %v1611_v48  ;;  %5142 = vst [vmem:[#allocation49_spill] sm:$0xff] %v4090_v30  ;;  %v4092_v2 = vld [vmem:[#allocation2 + $0xb4] sm:$0xff]  ;;  %v1877_v6 = vmul.f32 %v5096_v42, %v4076_v50  ;;  %v1914_v43 = vmul.f32 %v5078_v8, %v4078_v52  ;;  %v808_v48 = vld [vmem:[#allocation2 + $0x48] sm:$0xff] }
 0x38a   : > { %5138 = vst [vmem:[#allocation22_spill] sm:$0xff] %v4081_v63  ;;  %5143 = vst [vmem:[#allocation8_spill] sm:$0xff] %v4092_v2  ;;  %v2190_v29 = vadd.f32 1.0, %v2810_v28  ;;  %v2547_v9 = vmul.f32 -1.442695, %v4081_v63  ;;  %2283 = vrot.lane.b32.xlu0 %v2234_v15, %s2985_s9  ;;  %v1292_v24 = vadd.f32 %v1276_v5, %v1239_v39  ;;  %v1967_v53 = vmul.f32 %v5080_v12, %v4087_v25  ;;  %v898_v21 = vld [vmem:[#allocation2 + $0x4a] sm:$0xff] }
 0x38b   : > { %v1504_v13 = vadd.f32 %v1488_v40, %v1451_v14  ;;  %v1717_v31 = vadd.f32 %v1701_v41, %v1664_v7  ;;  %v1930_v0 = vadd.f32 %v1914_v43, %v1877_v6  ;;  %v2020_v56 = vmul.f32 %v5082_v58, %v4090_v30  ;;  %v951_v63 = vld [vmem:[#allocation2 + $0x4b] sm:$0xff]  ;;  %v4106_v14 = vld [vmem:[#allocation2 + $0x60] sm:$0xff] }
 0x38c   : > { %2811 = vrcp.f32 %v2190_v29  ;;  %v2073_v28 = vmul.f32 %v5084_v10, %v4092_v2  ;;  %v1004_v52 = vld [vmem:[#allocation2 + $0x4c] sm:$0xff]  ;;  %v1308_v5 = vadd.f32 %v1292_v24, %v1042_v27  ;;  %v4108_v39 = vld [vmem:[#allocation2 + $0x61] sm:$0xff]  ;;  %v829_v41 = vmul.f32 %v3450_v49, %v808_v48 }
 0x38d   : > { %2813 = vpow2.f32 %v2547_v9  ;;  %v1557_v40 = vadd.f32 %v1541_v33, %v1504_v13  ;;  %v1770_v7 = vadd.f32 %v1754_v60, %v1717_v31  ;;  %v1983_v15 = vadd.f32 %v1967_v53, %v1930_v0  ;;  %v4113_v6 = vld [vmem:[#allocation2 + $0x62] sm:$0xff]  ;;  %v4121_v9 = vld [vmem:[#allocation2 + $0x78] sm:$0xff] }
 0x38e   : > { %v866_v43 = vmul.f32 %v3504_v61, %v845_v23  ;;  %v919_v29 = vmul.f32 %v3509_v34, %v898_v21  ;;  %v4115_v2 = vld [vmem:[#allocation2 + $0x63] sm:$0xff]  ;;  %v972_v27 = vmul.f32 %v3516_v44, %v951_v63  ;;  %v1025_v60 = vmul.f32 %v3522_v51, %v1004_v52  ;;  %5144 = vst [vmem:[#allocation9_spill] sm:$0xff] %v4121_v9  ;;  %v4123_v13 = vld [vmem:[#allocation2 + $0x79] sm:$0xff] }
 0x38f   : > { %v4117_v30 = vld [vmem:[#allocation2 + $0x64] sm:$0xff]  ;;  %v1573_v24 = vadd.f32 %v1557_v40, %v1308_v5  ;;  %v1823_v33 = vadd.f32 %v1807_v37, %v1770_v7  ;;  %5145 = vst [vmem:[#allocation6_spill] sm:$0xff] %v4123_v13  ;;  %v2036_v49 = vadd.f32 %v2020_v56, %v1983_v15  ;;  %v1079_v34 = vmul.f32 %v3527_v59, %v4106_v14  ;;  %v4129_v53 = vld [vmem:[#allocation2 + $0x7a] sm:$0xff] }
 0x390   : > { %v882_v61 = vadd.f32 %v866_v43, %v829_v41  ;;  %v1116_v31 = vmul.f32 %v3534_v55, %v4108_v39  ;;  %5146 = vst [vmem:[#allocation7_spill] sm:$0xff] %v4129_v53  ;;  %v4131_v48 = vld [vmem:[#allocation2 + $0x7b] sm:$0xff]  ;;  %v1169_v51 = vmul.f32 %v3543_v1, %v4113_v6  ;;  %v1222_v52 = vmul.f32 %v3550_v3, %v4115_v2  ;;  %v5149_v40 = vld [vmem:[#allocation39_spill] sm:$0xff]  ;;  %v5151_v41 = vld [vmem:[#allocation40_spill] sm:$0xff] }
 0x391   : > { %5147 = vst [vmem:[#allocation10_spill] sm:$0xff] %v4131_v48  ;;  %v4133_v37 = vld [vmem:[#allocation2 + $0x7c] sm:$0xff]  ;;  %v1839_v44 = vadd.f32 %v1823_v33, %v1573_v24  ;;  %v1275_v63 = vmul.f32 %v3568_v62, %v4117_v30  ;;  %v2089_v59 = vadd.f32 %v2073_v28, %v2036_v49  ;;  %v1344_v55 = vmul.f32 %v3578_v17, %v4121_v9  ;;  %v4153_v15 = vld [vmem:[#allocation2 + $0xa8] sm:$0xff] }
 0x392   : > { %5148 = vst [vmem:[#allocation11_spill] sm:$0xff] %v4133_v37  ;;  %v935_v23 = vadd.f32 %v919_v29, %v882_v61  ;;  %v1132_v21 = vadd.f32 %v1116_v31, %v1079_v34  ;;  %v1381_v0 = vmul.f32 %v3585_v4, %v4123_v13  ;;  %v1434_v56 = vmul.f32 %v3597_v26, %v4129_v53  ;;  %v5152_v43 = vld [vmem:[#allocation26_spill] sm:$0xff]  ;;  %v4161_v29 = vld [vmem:[#allocation2 + $0xa9] sm:$0xff] }
 0x393   : > { %v1487_v1 = vmul.f32 %v3607_v32, %v4131_v48  ;;  %v1540_v3 = vmul.f32 %v3614_v36, %v4133_v37  ;;  %v2105_v5 = vadd.f32 %v2089_v59, %v1839_v44  ;;  %v1610_v7 = vmul.f32 %v3626_v47, %v5149_v40  ;;  %5150 = vst [vmem:[#allocation12_spill] sm:$0xff] %v4153_v15  ;;  %v4168_v49 = vld [vmem:[#allocation2 + $0xaa] sm:$0xff] }
 0x394   : > { %v988_v62 = vadd.f32 %v972_v27, %v935_v23  ;;  %v1185_v28 = vadd.f32 %v1169_v51, %v1132_v21  ;;  %v1397_v17 = vadd.f32 %v1381_v0, %v1344_v55  ;;  %v1647_v4 = vmul.f32 %v5071_v22, %v5151_v41  ;;  %5153 = vst [vmem:[#allocation13_spill] sm:$0xff] %v4161_v29  ;;  %v4170_v22 = vld [vmem:[#allocation2 + $0xab] sm:$0xff] }
 0x395   : > { %v1700_v26 = vmul.f32 %v3642_v38, %v5152_v43  ;;  %v1753_v32 = vmul.f32 %v3654_v20, %v4025_v11  ;;  %v4164_v24 = vadd.f32 %v3754_v18, %v2105_v5  ;;  %v1806_v27 = vmul.f32 %v5095_v35, %v4031_v45  ;;  %5155 = vst [vmem:[#allocation15_spill] sm:$0xff] %v4168_v49  ;;  %v4175_v44 = vld [vmem:[#allocation2 + $0xac] sm:$0xff] }
 0x396   : > { %v2812_v36 = vpop.eup %2811  ;;  %v1041_v33 = vadd.f32 %v1025_v60, %v988_v62  ;;  %v1238_v47 = vadd.f32 %v1222_v52, %v1185_v28  ;;  %5156 = vst [vmem:[#allocation16_spill] sm:$0xff] %v4170_v22  ;;  %v1450_v34 = vadd.f32 %v1434_v56, %v1397_v17  ;;  %v1663_v20 = vadd.f32 %v1647_v4, %v1610_v7  ;;  %v5158_v17 = vld [vmem:[#allocation43_spill] sm:$0xff] }
 0x397   : > { %5154 = vst [vmem:[#allocation14_spill] sm:$0xff] %v4164_v24  ;;  %v2814_v61 = vpop.eup %2813  ;;  %v2238_v38 = vmul.f32 %v2812_v36, %v4021_v54  ;;  %v1876_v31 = vmul.f32 %v5096_v42, %v4153_v15  ;;  %5157 = vst [vmem:[#allocation17_spill] sm:$0xff] %v4175_v44  ;;  %v2550_v60 = vmul.f32 -1.442695, %v4164_v24  ;;  %v1913_v35 = vmul.f32 %v5078_v8, %v4161_v29  ;;  %v4190_v8 = vld [vmem:[%s4851_s3] ss:$0 sm:$0xff] }
 0x398   : > { %v2189_v51 = vadd.f32 1.0, %v2814_v61  ;;  %v1291_v52 = vadd.f32 %v1275_v63, %v1238_v47  ;;  %v1503_v59 = vadd.f32 %v1487_v1, %v1450_v34  ;;  %v1716_v23 = vadd.f32 %v1700_v26, %v1663_v20  ;;  %v5159_v26 = vld [vmem:[#allocation44_spill] sm:$0xff]  ;;  %v5160_v47 = vld [vmem:[#allocation45_spill] sm:$0xff]  ;;  %v4239_v61 = vld [vmem:[%s4851_s3 + $0x7] ss:$0 sm:$0xff] }
 0x399   : > { %2291 = vrot.lane.b32.xlu1 %v2238_v38, %s2985_s9  ;;  %v1966_v54 = vmul.f32 %v5080_v12, %v4168_v49  ;;  %v2019_v21 = vmul.f32 %v5082_v58, %v4170_v22  ;;  %v1929_v55 = vadd.f32 %v1913_v35, %v1876_v31  ;;  %v2072_v0 = vmul.f32 %v5084_v10, %v4175_v44  ;;  %v4197_v58 = vld [vmem:[%s4851_s3 + $0x1] ss:$0 sm:$0xff]  ;;  %v4246_v31 = vld [vmem:[%s4851_s3 + $0x8] ss:$0 sm:$0xff]  ;;  %v5163_v35 = vld [vmem:[#allocation48_spill] sm:$0xff] }
 0x39a   : > { %2815 = vrcp.f32 %v2189_v51  ;;  %v1307_v42 = vadd.f32 %v1291_v52, %v1041_v33  ;;  %v1556_v63 = vadd.f32 %v1540_v3, %v1503_v59  ;;  %v1769_v56 = vadd.f32 %v1753_v32, %v1716_v23  ;;  %v4204_v3 = vld [vmem:[%s4851_s3 + $0x2] ss:$0 sm:$0xff]  ;;  %v4232_v33 = vld [vmem:[%s4851_s3 + $0x6] ss:$0 sm:$0xff]  ;;  %v5162_v51 = vld [vmem:[#allocation47_spill] sm:$0xff] }
 0x39b   : > { %2817 = vpow2.f32 %v2550_v60  ;;  %v832_v12 = vmul.f32 %v4190_v8, %v5075_v16  ;;  %v1982_v1 = vadd.f32 %v1966_v54, %v1929_v55  ;;  %v869_v10 = vmul.f32 %v4197_v58, %v5077_v57  ;;  %v4211_v16 = vld [vmem:[%s4851_s3 + $0x3] ss:$0 sm:$0xff]  ;;  %v4218_v57 = vld [vmem:[%s4851_s3 + $0x4] ss:$0 sm:$0xff]  ;;  %v4253_v52 = vld [vmem:[%s4851_s3 + $0x9] ss:$0 sm:$0xff] }
 0x39c   : > { %v922_v5 = vmul.f32 %v4204_v3, %v5125_v19  ;;  %v975_v62 = vmul.f32 %v4211_v16, %v5126_v46  ;;  %v1572_v28 = vadd.f32 %v1556_v63, %v1307_v42  ;;  %v1822_v7 = vadd.f32 %v1806_v27, %v1769_v56  ;;  %v4225_v19 = vld [vmem:[%s4851_s3 + $0x5] ss:$0 sm:$0xff]  ;;  %v4260_v23 = vld [vmem:[%s4851_s3 + $0xa] ss:$0 sm:$0xff]  ;;  %v4267_v56 = vld [vmem:[%s4851_s3 + $0xb] ss:$0 sm:$0xff] }
 0x39d   : > { %v1028_v4 = vmul.f32 %v4218_v57, %v5158_v17  ;;  %v1082_v32 = vmul.f32 %v4225_v19, %v5159_v26  ;;  %v2035_v36 = vadd.f32 %v2019_v21, %v1982_v1  ;;  %v885_v46 = vadd.f32 %v869_v10, %v832_v12  ;;  %v5161_v38 = vld [vmem:[#allocation46_spill] sm:$0xff]  ;;  %v5165_v12 = vld [vmem:[#allocation35_spill] sm:$0xff]  ;;  %v4342_v29 = vld [vmem:[%s4851_s3 + $0x14] ss:$0 sm:$0xff] }
 0x39e   : > { %v1119_v27 = vmul.f32 %v4232_v33, %v5160_v47  ;;  %v1172_v34 = vmul.f32 %v4239_v61, %v5161_v38  ;;  %v1838_v20 = vadd.f32 %v1822_v7, %v1572_v28  ;;  %v1225_v60 = vmul.f32 %v4246_v31, %v5162_v51  ;;  %v5164_v54 = vld [vmem:[#allocation34_spill] sm:$0xff]  ;;  %v4274_v10 = vld [vmem:[%s4851_s3 + $0xc] ss:$0 sm:$0xff]  ;;  %v4288_v26 = vld [vmem:[%s4851_s3 + $0xe] ss:$0 sm:$0xff] }
 0x39f   : > { %v1278_v59 = vmul.f32 %v4253_v52, %v5163_v35  ;;  %v1347_v21 = vmul.f32 %v4260_v23, %v5164_v54  ;;  %v2088_v42 = vadd.f32 %v2072_v0, %v2035_v36  ;;  %v938_v55 = vadd.f32 %v922_v5, %v885_v46  ;;  %v5166_v28 = vld [vmem:[#allocation18_spill] sm:$0xff]  ;;  %v4281_v0 = vld [vmem:[%s4851_s3 + $0xd] ss:$0 sm:$0xff]  ;;  %v5167_v5 = vld [vmem:[#allocation37_spill] sm:$0xff] }
 0x3a0   : > { %v1135_v63 = vadd.f32 %v1119_v27, %v1082_v32  ;;  %v1384_v1 = vmul.f32 %v4267_v56, %v5165_v12  ;;  %v1437_v7 = vmul.f32 %v4274_v10, %v5166_v28  ;;  %v1490_v17 = vmul.f32 %v4281_v0, %v5167_v5  ;;  %v5168_v32 = vld [vmem:[#allocation38_spill] sm:$0xff]  ;;  %v4295_v46 = vld [vmem:[%s4851_s3 + $0xf] ss:$0 sm:$0xff]  ;;  %v5172_v12 = vld [vmem:[#allocation33_spill] sm:$0xff] }
 0x3a1   : > { %v1543_v36 = vmul.f32 %v4288_v26, %v5168_v32  ;;  %v1613_v47 = vmul.f32 %v4295_v46, %v4076_v50  ;;  %v2104_v27 = vadd.f32 %v2088_v42, %v1838_v20  ;;  %v991_v38 = vadd.f32 %v975_v62, %v938_v55  ;;  %v4299_v5 = vld [vmem:[#allocation2 + $0xc8] sm:$0xff]  ;;  %v4306_v32 = vld [vmem:[%s4851_s3 + $0x10] ss:$0 sm:$0xff]  ;;  %v4313_v50 = vld [vmem:[%s4851_s3 + $0x11] ss:$0 sm:$0xff] }
 0x3a2   : > { %v1188_v51 = vadd.f32 %v1172_v34, %v1135_v63  ;;  %v1400_v35 = vadd.f32 %v1384_v1, %v1347_v21  ;;  %5169 = vst [vmem:[#allocation19_spill] sm:$0xff] %v4299_v5  ;;  %v4301_v28 = vld [vmem:[#allocation2 + $0xc9] sm:$0xff]  ;;  %5171 = vst [vmem:[#allocation21_spill] sm:$0xff] %v4306_v32  ;;  %v1650_v54 = vmul.f32 %v4306_v32, %v5172_v12  ;;  %v4320_v34 = vld [vmem:[%s4851_s3 + $0x12] ss:$0 sm:$0xff] }
 0x3a3   : > { %5170 = vst [vmem:[#allocation20_spill] sm:$0xff] %v4301_v28  ;;  %5173 = vst [vmem:[#allocation23_spill] sm:$0xff] %v4313_v50  ;;  %v1703_v62 = vmul.f32 %v4313_v50, %v4087_v25  ;;  %v5175_v20 = vld [vmem:[#allocation49_spill] sm:$0xff]  ;;  %v4327_v42 = vld [vmem:[%s4851_s3 + $0x13] ss:$0 sm:$0xff]  ;;  %v4332_v12 = vadd.f32 %v3754_v18, %v2104_v27  ;;  %v1044_v25 = vadd.f32 %v1028_v4, %v991_v38 }
 0x3a4   : > { %5174 = vst [vmem:[#allocation25_spill] sm:$0xff] %v4320_v34  ;;  %v1756_v21 = vmul.f32 %v4320_v34, %v5175_v20  ;;  %5176 = vst [vmem:[#allocation27_spill] sm:$0xff] %v4327_v42  ;;  %v5177_v55 = vld [vmem:[#allocation8_spill] sm:$0xff]  ;;  %v2816_v1 = vpop.eup %2815  ;;  %v1241_v24 = vadd.f32 %v1225_v60, %v1188_v51  ;;  %v1453_v44 = vadd.f32 %v1437_v7, %v1400_v35  ;;  %v5180_v34 = vld [vmem:[#allocation22_spill] sm:$0xff] }
 0x3a5   : > { %v1809_v63 = vmul.f32 %v4327_v42, %v5177_v55  ;;  %v4334_v22 = vld [vmem:[#allocation2 + $0xca] sm:$0xff]  ;;  %v2818_v20 = vpop.eup %2817  ;;  %v2237_v49 = vmul.f32 %v2816_v1, %v5180_v34  ;;  %v1666_v32 = vadd.f32 %v1650_v54, %v1613_v47  ;;  %v1879_v18 = vmul.f32 %v4342_v29, %v4299_v5  ;;  %v4349_v4 = vld [vmem:[%s4851_s3 + $0x15] ss:$0 sm:$0xff]  ;;  %v4360_v34 = vld [vmem:[%s4851_s3 + $0x16] ss:$0 sm:$0xff] }
 0x3a6   : > { %5178 = vst [vmem:[#allocation29_spill] sm:$0xff] %v4334_v22  ;;  %v4336_v50 = vld [vmem:[#allocation2 + $0xcb] sm:$0xff]  ;;  %v1916_v60 = vmul.f32 %v4349_v4, %v4301_v28  ;;  %v2192_v27 = vadd.f32 1.0, %v2818_v20  ;;  %v2549_v54 = vmul.f32 -1.442695, %v4332_v12  ;;  %v1294_v47 = vadd.f32 %v1278_v59, %v1241_v24 }
 0x3a7   : > { %5179 = vst [vmem:[#allocation31_spill] sm:$0xff] %v4336_v50  ;;  %v4353_v7 = vld [vmem:[#allocation2 + $0xcc] sm:$0xff]  ;;  %v1506_v38 = vadd.f32 %v1490_v17, %v1453_v44  ;;  %2289 = vrot.lane.b32.xlu0 %v2237_v49, %s2985_s9  ;;  %v1719_v51 = vadd.f32 %v1703_v62, %v1666_v32  ;;  %v1969_v1 = vmul.f32 %v4360_v34, %v4334_v22  ;;  %v4367_v20 = vld [vmem:[%s4851_s3 + $0x17] ss:$0 sm:$0xff]  ;;  %v4374_v59 = vld [vmem:[%s4851_s3 + $0x18] ss:$0 sm:$0xff] }
 0x3a8   : > { %5181 = vst [vmem:[#allocation41_spill] sm:$0xff] %v4353_v7  ;;  %v1932_v35 = vadd.f32 %v1916_v60, %v1879_v18  ;;  %v2022_v24 = vmul.f32 %v4367_v20, %v4336_v50  ;;  %2819 = vrcp.f32 %v2192_v27  ;;  %v1310_v49 = vadd.f32 %v1294_v47, %v1044_v25 }
 0x3a9   : > { %v1559_v44 = vadd.f32 %v1543_v36, %v1506_v38  ;;  %v2075_v17 = vmul.f32 %v4374_v59, %v4353_v7  ;;  %2821 = vpow2.f32 %v2549_v54  ;;  %v1772_v32 = vadd.f32 %v1756_v21, %v1719_v51 }
 0x3aa   : > { %v1985_v62 = vadd.f32 %v1969_v1, %v1932_v35  ;;  %v831_v18 = vmul.f32 %v4190_v8, %v4106_v14  ;;  %v868_v27 = vmul.f32 %v4197_v58, %v4108_v39  ;;  %v921_v25 = vmul.f32 %v4204_v3, %v4113_v6 }
 0x3ab   : > { %v1575_v60 = vadd.f32 %v1559_v44, %v1310_v49  ;;  %v974_v36 = vmul.f32 %v4211_v16, %v4115_v2  ;;  %v1825_v47 = vadd.f32 %v1809_v63, %v1772_v32  ;;  %v1027_v54 = vmul.f32 %v4218_v57, %v4117_v30 }
 0x3ac   : > { %v2038_v38 = vadd.f32 %v2022_v24, %v1985_v62  ;;  %v1081_v21 = vmul.f32 %v4225_v19, %v4121_v9  ;;  %v884_v51 = vadd.f32 %v868_v27, %v831_v18  ;;  %v1118_v14 = vmul.f32 %v4232_v33, %v4123_v13 }
 0x3ad   : > { %v1171_v39 = vmul.f32 %v4239_v61, %v4129_v53  ;;  %v1224_v6 = vmul.f32 %v4246_v31, %v4131_v48  ;;  %v1841_v35 = vadd.f32 %v1825_v47, %v1575_v60  ;;  %v1277_v63 = vmul.f32 %v4253_v52, %v4133_v37  ;;  %v5182_v47 = vld [vmem:[#allocation13_spill] sm:$0xff]  ;;  %v4430_v37 = vld [vmem:[#allocation2 + $0xc2] sm:$0xff] }
 0x3ae   : > { %v2091_v2 = vadd.f32 %v2075_v17, %v2038_v38  ;;  %v1346_v30 = vmul.f32 %v4260_v23, %v5149_v40  ;;  %v937_v1 = vadd.f32 %v921_v25, %v884_v51  ;;  %v1134_v24 = vadd.f32 %v1118_v14, %v1081_v21  ;;  %v5183_v38 = vld [vmem:[#allocation21_spill] sm:$0xff]  ;;  %v4412_v51 = vld [vmem:[#allocation2 + $0xc0] sm:$0xff]  ;;  %5192 = vst [vmem:[#allocation44_spill] sm:$0xff] %v4430_v37 }
 0x3af   : > { %v1383_v49 = vmul.f32 %v4267_v56, %v5151_v41  ;;  %v1436_v44 = vmul.f32 %v4274_v10, %v5152_v43  ;;  %v1489_v62 = vmul.f32 %v4281_v0, %v4025_v11  ;;  %v1542_v17 = vmul.f32 %v4288_v26, %v4031_v45  ;;  %5184 = vst [vmem:[#allocation42_spill] sm:$0xff] %v4412_v51  ;;  %v4414_v14 = vld [vmem:[#allocation2 + $0xc1] sm:$0xff] }
 0x3b0   : > { %v2107_v32 = vadd.f32 %v2091_v2, %v1841_v35  ;;  %v1612_v18 = vmul.f32 %v4295_v46, %v4153_v15  ;;  %v990_v60 = vadd.f32 %v974_v36, %v937_v1  ;;  %v1187_v27 = vadd.f32 %v1171_v39, %v1134_v24  ;;  %5185 = vst [vmem:[#allocation36_spill] sm:$0xff] %v4414_v14  ;;  %v4419_v35 = vld [vmem:[%s4852_s4] ss:$0 sm:$0xff]  ;;  %v5187_v45 = vld [vmem:[#allocation15_spill] sm:$0xff]  ;;  %v5189_v39 = vld [vmem:[#allocation16_spill] sm:$0xff] }
 0x3b1   : > { %v1399_v25 = vadd.f32 %v1383_v49, %v1346_v30  ;;  %v1649_v21 = vmul.f32 %v5183_v38, %v5182_v47  ;;  %v5188_v15 = vld [vmem:[#allocation23_spill] sm:$0xff]  ;;  %v5190_v30 = vld [vmem:[#allocation25_spill] sm:$0xff]  ;;  %v5194_v53 = vld [vmem:[#allocation14_spill] sm:$0xff] }
 0x3b2   : > { %v4422_v2 = vadd.f32 %v4419_v35, %v2107_v32  ;;  %v1702_v36 = vmul.f32 %v5188_v15, %v5187_v45  ;;  %v1755_v1 = vmul.f32 %v5190_v30, %v5189_v39  ;;  %v5191_v24 = vld [vmem:[#allocation17_spill] sm:$0xff]  ;;  %v2820_v47 = vpop.eup %2819  ;;  %v1043_v11 = vadd.f32 %v1027_v54, %v990_v60  ;;  %v4432_v48 = vld [vmem:[#allocation2 + $0xc3] sm:$0xff] }
 0x3b3   : > { %v1808_v49 = vmul.f32 %v4327_v42, %v5191_v24  ;;  %v1240_v43 = vadd.f32 %v1224_v6, %v1187_v27  ;;  %v1452_v41 = vadd.f32 %v1436_v44, %v1399_v25  ;;  %v1665_v40 = vadd.f32 %v1649_v21, %v1612_v18  ;;  %5193 = vst [vmem:[#allocation45_spill] sm:$0xff] %v4432_v48  ;;  %v2822_v32 = vpop.eup %2821  ;;  %v4440_v18 = vld [vmem:[#allocation2 + $0xc4] sm:$0xff] }
 0x3b4   : > { %5186 = vst [vmem:[#allocation43_spill] sm:$0xff] %v4422_v2  ;;  %v2240_v13 = vmul.f32 %v2820_v47, %v5194_v53  ;;  %v2552_v45 = vmul.f32 -1.442695, %v4422_v2  ;;  %v1878_v39 = vmul.f32 %v4342_v29, %v4412_v51  ;;  %v1915_v24 = vmul.f32 %v4349_v4, %v4414_v14  ;;  %5195 = vst [vmem:[#allocation46_spill] sm:$0xff] %v4440_v18  ;;  %v813_v60 = vld [vmem:[#allocation2 + $0x80] sm:$0xff] }
 0x3b5   : > { %v2191_v9 = vadd.f32 1.0, %v2822_v32  ;;  %v1293_v54 = vadd.f32 %v1277_v63, %v1240_v43  ;;  %v1505_v6 = vadd.f32 %v1489_v62, %v1452_v41  ;;  %v1718_v44 = vadd.f32 %v1702_v36, %v1665_v40  ;;  %v850_v27 = vld [vmem:[#allocation2 + $0x81] sm:$0xff] }
 0x3b6   : > { %2295 = vrot.lane.b32.xlu1 %v2240_v13, %s2985_s9  ;;  %2823 = vpow2.f32 %v2552_v45  ;;  %v1931_v53 = vadd.f32 %v1915_v24, %v1878_v39  ;;  %v1968_v25 = vmul.f32 %v4360_v34, %v4430_v37  ;;  %v2021_v47 = vmul.f32 %v4367_v20, %v4432_v48  ;;  %v903_v21 = vld [vmem:[#allocation2 + $0x82] sm:$0xff] }
 0x3b7   : > { %v956_v2 = vld [vmem:[#allocation2 + $0x83] sm:$0xff]  ;;  %2825 = vrcp.f32 %v2191_v9  ;;  %v1309_v43 = vadd.f32 %v1293_v54, %v1043_v11  ;;  %v1558_v41 = vadd.f32 %v1542_v17, %v1505_v6  ;;  %v1771_v40 = vadd.f32 %v1755_v1, %v1718_v44 }
 0x3b8   : > { %v1009_v63 = vld [vmem:[#allocation2 + $0x84] sm:$0xff]  ;;  %v1984_v62 = vadd.f32 %v1968_v25, %v1931_v53  ;;  %v2074_v36 = vmul.f32 %v4374_v59, %v4440_v18  ;;  %v834_v45 = vmul.f32 %v4190_v8, %v813_v60  ;;  %v871_v13 = vmul.f32 %v4197_v58, %v850_v27  ;;  %v5199_v53 = vld [vmem:[#allocation37_spill] sm:$0xff] }
 0x3b9   : > { %v1574_v39 = vadd.f32 %v1558_v41, %v1309_v43  ;;  %v1824_v24 = vadd.f32 %v1808_v49, %v1771_v40  ;;  %v924_v32 = vmul.f32 %v4204_v3, %v903_v21  ;;  %v977_v48 = vmul.f32 %v4211_v16, %v956_v2  ;;  %v5196_v17 = vld [vmem:[#allocation34_spill] sm:$0xff]  ;;  %v5197_v6 = vld [vmem:[#allocation35_spill] sm:$0xff]  ;;  %v5201_v43 = vld [vmem:[#allocation32_spill] sm:$0xff] }
 0x3ba   : > { %v2037_v37 = vadd.f32 %v2021_v47, %v1984_v62  ;;  %v887_v9 = vadd.f32 %v871_v13, %v834_v45  ;;  %v1030_v11 = vmul.f32 %v4218_v57, %v1009_v63  ;;  %v1084_v1 = vmul.f32 %v4225_v19, %v5196_v17  ;;  %v5198_v60 = vld [vmem:[#allocation18_spill] sm:$0xff]  ;;  %v5202_v63 = vld [vmem:[#allocation33_spill] sm:$0xff]  ;;  %v5203_v45 = vld [vmem:[#allocation24_spill] sm:$0xff] }
 0x3bb   : > { %v1840_v54 = vadd.f32 %v1824_v24, %v1574_v39  ;;  %v1121_v44 = vmul.f32 %v4232_v33, %v5197_v6  ;;  %v1174_v27 = vmul.f32 %v4239_v61, %v5198_v60  ;;  %v1227_v49 = vmul.f32 %v4246_v31, %v5199_v53  ;;  %v5200_v2 = vld [vmem:[#allocation38_spill] sm:$0xff]  ;;  %v5204_v39 = vld [vmem:[#allocation49_spill] sm:$0xff] }
 0x3bc   : > { %v2090_v25 = vadd.f32 %v2074_v36, %v2037_v37  ;;  %v940_v21 = vadd.f32 %v924_v32, %v887_v9  ;;  %v1280_v47 = vmul.f32 %v4253_v52, %v5200_v2  ;;  %v1349_v41 = vmul.f32 %v4260_v23, %v5201_v43  ;;  %v4480_v60 = vld [vmem:[#allocation2 + $0xe0] sm:$0xff] }
 0x3bd   : > { %v1137_v40 = vadd.f32 %v1121_v44, %v1084_v1  ;;  %v1386_v62 = vmul.f32 %v4267_v56, %v5202_v63  ;;  %v1439_v13 = vmul.f32 %v4274_v10, %v5203_v45  ;;  %v1492_v24 = vmul.f32 %v4281_v0, %v5204_v39  ;;  %5205 = vst [vmem:[#allocation47_spill] sm:$0xff] %v4480_v60  ;;  %v4482_v53 = vld [vmem:[#allocation2 + $0xe1] sm:$0xff] }
 0x3be   : > { %v2106_v17 = vadd.f32 %v2090_v25, %v1840_v54  ;;  %v993_v6 = vadd.f32 %v977_v48, %v940_v21  ;;  %v1545_v37 = vmul.f32 %v4288_v26, %v5177_v55  ;;  %v1615_v36 = vmul.f32 %v4295_v46, %v4299_v5  ;;  %5206 = vst [vmem:[#allocation48_spill] sm:$0xff] %v4482_v53  ;;  %v4493_v5 = vld [vmem:[#allocation2 + $0xe3] sm:$0xff] }
 0x3bf   : > { %v1190_v32 = vadd.f32 %v1174_v27, %v1137_v40  ;;  %v1402_v9 = vadd.f32 %v1386_v62, %v1349_v41  ;;  %v1652_v1 = vmul.f32 %v5183_v38, %v4301_v28  ;;  %v1705_v44 = vmul.f32 %v5188_v15, %v4334_v22  ;;  %v4491_v28 = vld [vmem:[#allocation2 + $0xe2] sm:$0xff]  ;;  %5209 = vst [vmem:[#allocation23_spill] sm:$0xff] %v4493_v5 }
 0x3c0   : > { %v2824_v54 = vpop.eup %2823  ;;  %v4485_v48 = vadd.f32 %v4419_v35, %v2106_v17  ;;  %v1046_v25 = vadd.f32 %v1030_v11, %v993_v6  ;;  %v1758_v21 = vmul.f32 %v5190_v30, %v4336_v50  ;;  %v1811_v27 = vmul.f32 %v4327_v42, %v4353_v7  ;;  %5208 = vst [vmem:[#allocation21_spill] sm:$0xff] %v4491_v28  ;;  %v4501_v7 = vld [vmem:[#allocation2 + $0xe4] sm:$0xff] }
 0x3c1   : > { %v2826_v2 = vpop.eup %2825  ;;  %v2194_v41 = vadd.f32 1.0, %v2824_v54  ;;  %v1243_v40 = vadd.f32 %v1227_v49, %v1190_v32  ;;  %v1455_v62 = vadd.f32 %v1439_v13, %v1402_v9  ;;  %v1668_v22 = vadd.f32 %v1652_v1, %v1615_v36  ;;  %5210 = vst [vmem:[#allocation14_spill] sm:$0xff] %v4501_v7 }
 0x3c2   : > { %5207 = vst [vmem:[#allocation22_spill] sm:$0xff] %v4485_v48  ;;  %v2239_v55 = vmul.f32 %v2826_v2, %v4332_v12  ;;  %v2551_v17 = vmul.f32 -1.442695, %v4485_v48  ;;  %v1881_v11 = vmul.f32 %v4342_v29, %v4480_v60  ;;  %v1918_v6 = vmul.f32 %v4349_v4, %v4482_v53 }
 0x3c3   : > { %2827 = vrcp.f32 %v2194_v41  ;;  %v1296_v49 = vadd.f32 %v1280_v47, %v1243_v40  ;;  %v1508_v13 = vadd.f32 %v1492_v24, %v1455_v62  ;;  %v1721_v36 = vadd.f32 %v1705_v44, %v1668_v22  ;;  %v5211_v47 = vld [vmem:[#allocation9_spill] sm:$0xff]  ;;  %v5212_v24 = vld [vmem:[#allocation6_spill] sm:$0xff]  ;;  %v5213_v44 = vld [vmem:[#allocation7_spill] sm:$0xff] }
 0x3c4   : > { %2293 = vrot.lane.b32.xlu0 %v2239_v55, %s2985_s9  ;;  %2829 = vpow2.f32 %v2551_v17  ;;  %v1934_v32 = vadd.f32 %v1918_v6, %v1881_v11  ;;  %v1971_v12 = vmul.f32 %v4360_v34, %v4491_v28  ;;  %v2024_v9 = vmul.f32 %v4367_v20, %v4493_v5  ;;  %v5214_v11 = vld [vmem:[#allocation10_spill] sm:$0xff] }
 0x3c5   : > { %v1312_v1 = vadd.f32 %v1296_v49, %v1046_v25  ;;  %v1561_v54 = vadd.f32 %v1545_v37, %v1508_v13  ;;  %v1774_v2 = vadd.f32 %v1758_v21, %v1721_v36  ;;  %v2077_v48 = vmul.f32 %v4374_v59, %v4501_v7  ;;  %v5215_v37 = vld [vmem:[#allocation11_spill] sm:$0xff]  ;;  %v5225_v7 = vld [vmem:[#allocation17_spill] sm:$0xff] }
 0x3c6   : > { %v1987_v41 = vadd.f32 %v1971_v12, %v1934_v32  ;;  %v833_v22 = vmul.f32 %v4190_v8, %v5211_v47  ;;  %v870_v55 = vmul.f32 %v4197_v58, %v5212_v24  ;;  %v923_v40 = vmul.f32 %v4204_v3, %v5213_v44  ;;  %v5216_v13 = vld [vmem:[#allocation39_spill] sm:$0xff]  ;;  %v5217_v32 = vld [vmem:[#allocation40_spill] sm:$0xff]  ;;  %v5218_v24 = vld [vmem:[#allocation26_spill] sm:$0xff] }
 0x3c7   : > { %v1577_v62 = vadd.f32 %v1561_v54, %v1312_v1  ;;  %v1827_v17 = vadd.f32 %v1811_v27, %v1774_v2  ;;  %v976_v25 = vmul.f32 %v4211_v16, %v5214_v11  ;;  %v1029_v21 = vmul.f32 %v4218_v57, %v5215_v37  ;;  %v5219_v1 = vld [vmem:[#allocation28_spill] sm:$0xff]  ;;  %v5220_v54 = vld [vmem:[#allocation30_spill] sm:$0xff] }
 0x3c8   : > { %v2040_v6 = vadd.f32 %v2024_v9, %v1987_v41  ;;  %v886_v49 = vadd.f32 %v870_v55, %v833_v22  ;;  %v1083_v36 = vmul.f32 %v4225_v19, %v5216_v13  ;;  %v1120_v12 = vmul.f32 %v4232_v33, %v5217_v32  ;;  %v5221_v41 = vld [vmem:[#allocation12_spill] sm:$0xff]  ;;  %v5222_v55 = vld [vmem:[#allocation13_spill] sm:$0xff]  ;;  %v5223_v32 = vld [vmem:[#allocation15_spill] sm:$0xff] }
 0x3c9   : > { %v1843_v47 = vadd.f32 %v1827_v17, %v1577_v62  ;;  %v1173_v44 = vmul.f32 %v4239_v61, %v5218_v24  ;;  %v1226_v27 = vmul.f32 %v4246_v31, %v5219_v1  ;;  %v1279_v2 = vmul.f32 %v4253_v52, %v5220_v54  ;;  %v5224_v17 = vld [vmem:[#allocation16_spill] sm:$0xff] }
 0x3ca   : > { %v2093_v11 = vadd.f32 %v2077_v48, %v2040_v6  ;;  %v939_v37 = vadd.f32 %v923_v40, %v886_v49  ;;  %v1136_v9 = vadd.f32 %v1120_v12, %v1083_v36  ;;  %v1348_v22 = vmul.f32 %v4260_v23, %v5221_v41  ;;  %v5226_v12 = vld [vmem:[#allocation44_spill] sm:$0xff]  ;;  %v4548_v41 = vld [vmem:[#allocation2 + $0xd8] sm:$0xff] }
 0x3cb   : > { %v1385_v13 = vmul.f32 %v4267_v56, %v5222_v55  ;;  %v1438_v62 = vmul.f32 %v4274_v10, %v5223_v32  ;;  %v1491_v24 = vmul.f32 %v4281_v0, %v5224_v17  ;;  %v1544_v1 = vmul.f32 %v4288_v26, %v5225_v7  ;;  %v5227_v55 = vld [vmem:[#allocation45_spill] sm:$0xff]  ;;  %5228 = vst [vmem:[#allocation34_spill] sm:$0xff] %v4548_v41 }
 0x3cc   : > { %v2109_v5 = vadd.f32 %v2093_v11, %v1843_v47  ;;  %v992_v54 = vadd.f32 %v976_v25, %v939_v37  ;;  %v1189_v48 = vadd.f32 %v1173_v44, %v1136_v9  ;;  %v1614_v40 = vmul.f32 %v4295_v46, %v4412_v51  ;;  %v4550_v7 = vld [vmem:[#allocation2 + $0xd9] sm:$0xff]  ;;  %v5230_v47 = vld [vmem:[#allocation43_spill] sm:$0xff] }
 0x3cd   : > { %v2828_v6 = vpop.eup %2827  ;;  %v1401_v49 = vadd.f32 %v1385_v13, %v1348_v22  ;;  %v1651_v36 = vmul.f32 %v5183_v38, %v4414_v14  ;;  %v1704_v32 = vmul.f32 %v5188_v15, %v5226_v12  ;;  %v1757_v17 = vmul.f32 %v5190_v30, %v5227_v55  ;;  %5229 = vst [vmem:[#allocation35_spill] sm:$0xff] %v4550_v7  ;;  %v4556_v22 = vld [vmem:[#allocation2 + $0xda] sm:$0xff] }
 0x3ce   : > { %v2830_v25 = vpop.eup %2829  ;;  %v2242_v44 = vmul.f32 %v2828_v6, %v5230_v47  ;;  %v4554_v11 = vadd.f32 %v4419_v35, %v2109_v5  ;;  %v1045_v37 = vadd.f32 %v1029_v21, %v992_v54  ;;  %v1242_v9 = vadd.f32 %v1226_v27, %v1189_v48  ;;  %5232 = vst [vmem:[#allocation37_spill] sm:$0xff] %v4556_v22  ;;  %v4560_v51 = vld [vmem:[#allocation2 + $0xdb] sm:$0xff] }
 0x3cf   : > { %v2193_v13 = vadd.f32 1.0, %v2830_v25  ;;  %v1454_v14 = vadd.f32 %v1438_v62, %v1401_v49  ;;  %v1667_v12 = vadd.f32 %v1651_v36, %v1614_v40  ;;  %v1810_v55 = vmul.f32 %v4327_v42, %v4440_v18  ;;  %5233 = vst [vmem:[#allocation38_spill] sm:$0xff] %v4560_v51  ;;  %v4568_v27 = vld [vmem:[#allocation2 + $0xdc] sm:$0xff] }
 0x3d0   : > { %5231 = vst [vmem:[#allocation18_spill] sm:$0xff] %v4554_v11  ;;  %2299 = vrot.lane.b32.xlu1 %v2242_v44, %s2985_s9  ;;  %v2554_v30 = vmul.f32 -1.442695, %v4554_v11  ;;  %v1295_v6 = vadd.f32 %v1279_v2, %v1242_v9  ;;  %v1880_v5 = vmul.f32 %v4342_v29, %v4548_v41  ;;  %v1917_v21 = vmul.f32 %v4349_v4, %v4550_v7  ;;  %v815_v62 = vld [vmem:[#allocation2 + $0x98] sm:$0xff] }
 0x3d1   : > { %5234 = vst [vmem:[#allocation32_spill] sm:$0xff] %v4568_v27  ;;  %2831 = vrcp.f32 %v2193_v13  ;;  %v1507_v54 = vadd.f32 %v1491_v24, %v1454_v14  ;;  %v1720_v48 = vadd.f32 %v1704_v32, %v1667_v12  ;;  %v1970_v40 = vmul.f32 %v4360_v34, %v4556_v22  ;;  %v852_v49 = vld [vmem:[#allocation2 + $0x99] sm:$0xff] }
 0x3d2   : > { %v905_v36 = vld [vmem:[#allocation2 + $0x9a] sm:$0xff]  ;;  %2833 = vpow2.f32 %v2554_v30  ;;  %v1311_v2 = vadd.f32 %v1295_v6, %v1045_v37  ;;  %v1933_v47 = vadd.f32 %v1917_v21, %v1880_v5  ;;  %v2023_v44 = vmul.f32 %v4367_v20, %v4560_v51 }
 0x3d3   : > { %v958_v25 = vld [vmem:[#allocation2 + $0x9b] sm:$0xff]  ;;  %v1560_v11 = vadd.f32 %v1544_v1, %v1507_v54  ;;  %v1773_v7 = vadd.f32 %v1757_v17, %v1720_v48  ;;  %v2076_v13 = vmul.f32 %v4374_v59, %v4568_v27  ;;  %v836_v14 = vmul.f32 %v4190_v8, %v815_v62 }
 0x3d4   : > { %v1011_v9 = vld [vmem:[#allocation2 + $0x9c] sm:$0xff]  ;;  %v1986_v32 = vadd.f32 %v1970_v40, %v1933_v47  ;;  %v873_v24 = vmul.f32 %v4197_v58, %v852_v49  ;;  %v926_v12 = vmul.f32 %v4204_v3, %v905_v36  ;;  %v979_v30 = vmul.f32 %v4211_v16, %v958_v25  ;;  %v5235_v49 = vld [vmem:[#allocation8_spill] sm:$0xff] }
 0x3d5   : > { %v1576_v37 = vadd.f32 %v1560_v11, %v1311_v2  ;;  %v1826_v6 = vadd.f32 %v1810_v55, %v1773_v7  ;;  %v1032_v5 = vmul.f32 %v4218_v57, %v1011_v9  ;;  %v1086_v1 = vmul.f32 %v4225_v19, %v5201_v43  ;;  %v5236_v55 = vld [vmem:[#allocation19_spill] sm:$0xff]  ;;  %v5237_v2 = vld [vmem:[#allocation20_spill] sm:$0xff]  ;;  %v5239_v9 = vld [vmem:[#allocation41_spill] sm:$0xff] }
 0x3d6   : > { %v2039_v17 = vadd.f32 %v2023_v44, %v1986_v32  ;;  %v889_v21 = vadd.f32 %v873_v24, %v836_v14  ;;  %v1123_v54 = vmul.f32 %v4232_v33, %v5202_v63  ;;  %v1176_v62 = vmul.f32 %v4239_v61, %v5203_v45  ;;  %v5238_v63 = vld [vmem:[#allocation29_spill] sm:$0xff] }
 0x3d7   : > { %v1842_v48 = vadd.f32 %v1826_v6, %v1576_v37  ;;  %v1229_v40 = vmul.f32 %v4246_v31, %v5204_v39  ;;  %v1282_v7 = vmul.f32 %v4253_v52, %v5235_v49  ;;  %v1351_v11 = vmul.f32 %v4260_v23, %v5236_v55  ;;  %v4603_v37 = vld [vmem:[#allocation2 + $0xf8] sm:$0xff] }
 0x3d8   : > { %v2092_v36 = vadd.f32 %v2076_v13, %v2039_v17  ;;  %v942_v43 = vadd.f32 %v926_v12, %v889_v21  ;;  %v1139_v25 = vadd.f32 %v1123_v54, %v1086_v1  ;;  %v1388_v47 = vmul.f32 %v4267_v56, %v5237_v2  ;;  %v5240_v21 = vld [vmem:[#allocation23_spill] sm:$0xff]  ;;  %v5241_v54 = vld [vmem:[#allocation25_spill] sm:$0xff] }
 0x3d9   : > { %v1441_v44 = vmul.f32 %v4274_v10, %v5238_v63  ;;  %v1494_v45 = vmul.f32 %v4281_v0, %v4336_v50  ;;  %v1547_v39 = vmul.f32 %v4288_v26, %v5239_v9  ;;  %v1617_v14 = vmul.f32 %v4295_v46, %v4480_v60  ;;  %v5242_v9 = vld [vmem:[#allocation14_spill] sm:$0xff] }
 0x3da   : > { %v2108_v32 = vadd.f32 %v2092_v36, %v1842_v48  ;;  %v995_v24 = vadd.f32 %v979_v30, %v942_v43  ;;  %v1192_v13 = vadd.f32 %v1176_v62, %v1139_v25  ;;  %v1404_v12 = vadd.f32 %v1388_v47, %v1351_v11  ;;  %v4613_v60 = vld [vmem:[#allocation2 + $0xf9] sm:$0xff] }
 0x3db   : > { %v2832_v6 = vpop.eup %2831  ;;  %v1654_v1 = vmul.f32 %v5183_v38, %v4482_v53  ;;  %v1707_v17 = vmul.f32 %v5188_v15, %v4491_v28  ;;  %v1760_v49 = vmul.f32 %v5241_v54, %v5240_v21  ;;  %v1813_v50 = vmul.f32 %v4327_v42, %v5242_v9  ;;  %v4615_v30 = vld [vmem:[#allocation2 + $0xfa] sm:$0xff] }
 0x3dc   : > { %5243 = vst [vmem:[#allocation33_spill] sm:$0xff] %v4615_v30  ;;  %v2834_v62 = vpop.eup %2833  ;;  %v5244_v48 = vld [vmem:[#allocation22_spill] sm:$0xff]  ;;  %v4619_v36 = vadd.f32 %v4419_v35, %v2108_v32  ;;  %v1048_v43 = vadd.f32 %v1032_v5, %v995_v24  ;;  %v1245_v25 = vadd.f32 %v1229_v40, %v1192_v13  ;;  %v1457_v53 = vadd.f32 %v1441_v44, %v1404_v12  ;;  %v814_v40 = vld [vmem:[#allocation2 + $0x90] sm:$0xff] }
 0x3dd   : > { %v2241_v11 = vmul.f32 %v2832_v6, %v5244_v48  ;;  %v4621_v47 = vld [vmem:[#allocation2 + $0xfb] sm:$0xff]  ;;  %v2196_v28 = vadd.f32 1.0, %v2834_v62  ;;  %v1670_v21 = vadd.f32 %v1654_v1, %v1617_v14  ;;  %v1883_v9 = vmul.f32 %v4342_v29, %v4603_v37  ;;  %v851_v24 = vld [vmem:[#allocation2 + $0x91] sm:$0xff] }
 0x3de   : > { %5245 = vst [vmem:[#allocation24_spill] sm:$0xff] %v4619_v36  ;;  %5246 = vst [vmem:[#allocation49_spill] sm:$0xff] %v4621_v47  ;;  %v4625_v63 = vld [vmem:[#allocation2 + $0xfc] sm:$0xff]  ;;  %v2553_v2 = vmul.f32 -1.442695, %v4619_v36  ;;  %v1298_v6 = vadd.f32 %v1282_v7, %v1245_v25  ;;  %v1920_v32 = vmul.f32 %v4349_v4, %v4613_v60  ;;  %v1973_v5 = vmul.f32 %v4360_v34, %v4615_v30  ;;  %v904_v12 = vld [vmem:[#allocation2 + $0x92] sm:$0xff] }
 0x3df   : > { %2297 = vrot.lane.b32.xlu0 %v2241_v11, %s2985_s9  ;;  %2835 = vrcp.f32 %v2196_v28  ;;  %v1510_v44 = vadd.f32 %v1494_v45, %v1457_v53  ;;  %v1723_v14 = vadd.f32 %v1707_v17, %v1670_v21  ;;  %v2026_v13 = vmul.f32 %v4367_v20, %v4621_v47  ;;  %v957_v1 = vld [vmem:[#allocation2 + $0x93] sm:$0xff] }
 0x3e0   : > { %v1010_v62 = vld [vmem:[#allocation2 + $0x94] sm:$0xff]  ;;  %2837 = vpow2.f32 %v2553_v2  ;;  %v1314_v48 = vadd.f32 %v1298_v6, %v1048_v43  ;;  %v1936_v7 = vadd.f32 %v1920_v32, %v1883_v9  ;;  %v2079_v11 = vmul.f32 %v4374_v59, %v4625_v63 }
 0x3e1   : > { %v1563_v25 = vadd.f32 %v1547_v39, %v1510_v44  ;;  %v1776_v36 = vadd.f32 %v1760_v49, %v1723_v14  ;;  %v835_v30 = vmul.f32 %v4190_v8, %v814_v40  ;;  %v872_v28 = vmul.f32 %v4197_v58, %v851_v24  ;;  %v5247_v9 = vld [vmem:[#allocation12_spill] sm:$0xff]  ;;  %v5248_v39 = vld [vmem:[#allocation13_spill] sm:$0xff]  ;;  %v5249_v40 = vld [vmem:[#allocation15_spill] sm:$0xff] }
 0x3e2   : > { %v1989_v53 = vadd.f32 %v1973_v5, %v1936_v7  ;;  %v925_v45 = vmul.f32 %v4204_v3, %v904_v12  ;;  %v978_v17 = vmul.f32 %v4211_v16, %v957_v1  ;;  %v1031_v21 = vmul.f32 %v4218_v57, %v1010_v62  ;;  %v5250_v5 = vld [vmem:[#allocation16_spill] sm:$0xff]  ;;  %v5251_v1 = vld [vmem:[#allocation17_spill] sm:$0xff] }
 0x3e3   : > { %v1579_v47 = vadd.f32 %v1563_v25, %v1314_v48  ;;  %v1829_v2 = vadd.f32 %v1813_v50, %v1776_v36  ;;  %v888_v43 = vadd.f32 %v872_v28, %v835_v30  ;;  %v1085_v6 = vmul.f32 %v4225_v19, %v5247_v9  ;;  %v5252_v50 = vld [vmem:[#allocation42_spill] sm:$0xff]  ;;  %v5254_v25 = vld [vmem:[#allocation44_spill] sm:$0xff]  ;;  %v5255_v9 = vld [vmem:[#allocation45_spill] sm:$0xff] }
 0x3e4   : > { %v2042_v32 = vadd.f32 %v2026_v13, %v1989_v53  ;;  %v1122_v49 = vmul.f32 %v4232_v33, %v5248_v39  ;;  %v1175_v24 = vmul.f32 %v4239_v61, %v5249_v40  ;;  %v1228_v44 = vmul.f32 %v4246_v31, %v5250_v5  ;;  %v5253_v13 = vld [vmem:[#allocation36_spill] sm:$0xff] }
 0x3e5   : > { %v1845_v14 = vadd.f32 %v1829_v2, %v1579_v47  ;;  %v941_v12 = vadd.f32 %v925_v45, %v888_v43  ;;  %v1281_v62 = vmul.f32 %v4253_v52, %v5251_v1  ;;  %v1350_v30 = vmul.f32 %v4260_v23, %v5252_v50  ;;  %v4668_v40 = vld [vmem:[#allocation2 + $0xf1] sm:$0xff] }
 0x3e6   : > { %v2095_v36 = vadd.f32 %v2079_v11, %v2042_v32  ;;  %v1138_v48 = vadd.f32 %v1122_v49, %v1085_v6  ;;  %v1387_v7 = vmul.f32 %v4267_v56, %v5253_v13  ;;  %v1440_v28 = vmul.f32 %v4274_v10, %v5254_v25  ;;  %v5256_v6 = vld [vmem:[#allocation35_spill] sm:$0xff]  ;;  %v4666_v49 = vld [vmem:[#allocation2 + $0xf0] sm:$0xff]  ;;  %5258 = vst [vmem:[#allocation6_spill] sm:$0xff] %v4668_v40 }
 0x3e7   : > { %v994_v53 = vadd.f32 %v978_v17, %v941_v12  ;;  %v1493_v39 = vmul.f32 %v4281_v0, %v5255_v9  ;;  %v1546_v47 = vmul.f32 %v4288_v26, %v4440_v18  ;;  %v1616_v45 = vmul.f32 %v4295_v46, %v4548_v41  ;;  %5257 = vst [vmem:[#allocation9_spill] sm:$0xff] %v4666_v49  ;;  %v4688_v41 = vld [vmem:[#allocation2 + $0xf4] sm:$0xff] }
 0x3e8   : > { %v2111_v2 = vadd.f32 %v2095_v36, %v1845_v14  ;;  %v1191_v43 = vadd.f32 %v1175_v24, %v1138_v48  ;;  %v1403_v11 = vadd.f32 %v1387_v7, %v1350_v30  ;;  %v1653_v32 = vmul.f32 %v5183_v38, %v5256_v6  ;;  %v4676_v24 = vld [vmem:[#allocation2 + $0xf2] sm:$0xff]  ;;  %v5259_v36 = vld [vmem:[#allocation18_spill] sm:$0xff]  ;;  %5261 = vst [vmem:[#allocation10_spill] sm:$0xff] %v4688_v41 }
 0x3e9   : > { %v2836_v17 = vpop.eup %2835  ;;  %v1047_v5 = vadd.f32 %v1031_v21, %v994_v53  ;;  %v1706_v12 = vmul.f32 %v5188_v15, %v4556_v22  ;;  %v1759_v1 = vmul.f32 %v5241_v54, %v4560_v51  ;;  %v1812_v14 = vmul.f32 %v4327_v42, %v4568_v27  ;;  %v4682_v21 = vld [vmem:[#allocation2 + $0xf3] sm:$0xff] }
 0x3ea   : > { %v2838_v30 = vpop.eup %2837  ;;  %v2244_v48 = vmul.f32 %v2836_v17, %v5259_v36  ;;  %v4680_v7 = vadd.f32 %v4419_v35, %v2111_v2  ;;  %v1244_v6 = vadd.f32 %v1228_v44, %v1191_v43  ;;  %v1456_v18 = vadd.f32 %v1440_v28, %v1403_v11  ;;  %v817_v28 = vld [vmem:[#allocation2 + $0xb0] sm:$0xff] }
 0x3eb   : > { %v2195_v53 = vadd.f32 1.0, %v2838_v30  ;;  %v1669_v22 = vadd.f32 %v1653_v32, %v1616_v45  ;;  %v1882_v51 = vmul.f32 %v4342_v29, %v4666_v49  ;;  %v1919_v27 = vmul.f32 %v4349_v4, %v4668_v40  ;;  %v854_v43 = vld [vmem:[#allocation2 + $0xb1] sm:$0xff] }
 0x3ec   : > { %5260 = vst [vmem:[#allocation7_spill] sm:$0xff] %v4680_v7  ;;  %2303 = vrot.lane.b32.xlu1 %v2244_v48, %s2985_s9  ;;  %v2556_v17 = vmul.f32 -1.442695, %v4680_v7  ;;  %v1297_v2 = vadd.f32 %v1281_v62, %v1244_v6  ;;  %v1509_v36 = vadd.f32 %v1493_v39, %v1456_v18  ;;  %v1972_v44 = vmul.f32 %v4360_v34, %v4676_v24  ;;  %v907_v30 = vld [vmem:[#allocation2 + $0xb2] sm:$0xff] }
 0x3ed   : > { %2839 = vrcp.f32 %v2195_v53  ;;  %v1722_v45 = vadd.f32 %v1706_v12, %v1669_v22  ;;  %v1935_v11 = vadd.f32 %v1919_v27, %v1882_v51  ;;  %v2025_v32 = vmul.f32 %v4367_v20, %v4682_v21  ;;  %v960_v40 = vld [vmem:[#allocation2 + $0xb3] sm:$0xff] }
 0x3ee   : > { %v1013_v49 = vld [vmem:[#allocation2 + $0xb4] sm:$0xff]  ;;  %2841 = vpow2.f32 %v2556_v17  ;;  %v1313_v48 = vadd.f32 %v1297_v2, %v1047_v5  ;;  %v1562_v9 = vadd.f32 %v1546_v47, %v1509_v36  ;;  %v2078_v18 = vmul.f32 %v4374_v59, %v4688_v41 }
 0x3ef   : > { %v1775_v62 = vadd.f32 %v1759_v1, %v1722_v45  ;;  %v1988_v39 = vadd.f32 %v1972_v44, %v1935_v11  ;;  %v838_v6 = vmul.f32 %v4190_v8, %v817_v28  ;;  %v875_v53 = vmul.f32 %v4197_v58, %v854_v43  ;;  %v5262_v2 = vld [vmem:[#allocation20_spill] sm:$0xff]  ;;  %v5263_v36 = vld [vmem:[#allocation29_spill] sm:$0xff]  ;;  %v5264_v28 = vld [vmem:[#allocation31_spill] sm:$0xff] }
 0x3f0   : > { %v1578_v22 = vadd.f32 %v1562_v9, %v1313_v48  ;;  %v928_v51 = vmul.f32 %v4204_v3, %v907_v30  ;;  %v981_v27 = vmul.f32 %v4211_v16, %v960_v40  ;;  %v1034_v12 = vmul.f32 %v4218_v57, %v1013_v49  ;;  %v5265_v43 = vld [vmem:[#allocation41_spill] sm:$0xff]  ;;  %v5266_v11 = vld [vmem:[#allocation47_spill] sm:$0xff] }
 0x3f1   : > { %v1828_v7 = vadd.f32 %v1812_v14, %v1775_v62  ;;  %v2041_v17 = vadd.f32 %v2025_v32, %v1988_v39  ;;  %v891_v5 = vadd.f32 %v875_v53, %v838_v6  ;;  %v1088_v47 = vmul.f32 %v4225_v19, %v5236_v55  ;;  %v5267_v55 = vld [vmem:[#allocation48_spill] sm:$0xff]  ;;  %v5268_v62 = vld [vmem:[#allocation21_spill] sm:$0xff]  ;;  %v5269_v6 = vld [vmem:[#allocation23_spill] sm:$0xff] }
 0x3f2   : > { %v1125_v1 = vmul.f32 %v4232_v33, %v5262_v2  ;;  %v1178_v44 = vmul.f32 %v4239_v61, %v5263_v36  ;;  %v1231_v9 = vmul.f32 %v4246_v31, %v5264_v28  ;;  %v1284_v40 = vmul.f32 %v4253_v52, %v5265_v43  ;;  %v5270_v28 = vld [vmem:[#allocation14_spill] sm:$0xff]  ;;  %v1901_v43 = vld [vmem:[#allocation2 + $0x111] sm:$0xff] }
 0x3f3   : > { %v1844_v45 = vadd.f32 %v1828_v7, %v1578_v22  ;;  %v2094_v49 = vadd.f32 %v2078_v18, %v2041_v17  ;;  %v944_v14 = vadd.f32 %v928_v51, %v891_v5  ;;  %v1353_v32 = vmul.f32 %v4260_v23, %v5266_v11  ;;  %v5271_v5 = vld [vmem:[#allocation33_spill] sm:$0xff] }
 0x3f4   : > { %v1141_v30 = vadd.f32 %v1125_v1, %v1088_v47  ;;  %v1390_v48 = vmul.f32 %v4267_v56, %v5267_v55  ;;  %v1443_v39 = vmul.f32 %v4274_v10, %v5268_v62  ;;  %v1496_v53 = vmul.f32 %v4281_v0, %v5269_v6  ;;  %v1864_v1 = vld [vmem:[#allocation2 + $0x110] sm:$0xff] }
 0x3f5   : > { %v2110_v2 = vadd.f32 %v2094_v49, %v1844_v45  ;;  %v997_v36 = vadd.f32 %v981_v27, %v944_v14  ;;  %v1549_v7 = vmul.f32 %v4288_v26, %v5270_v28  ;;  %v1619_v18 = vmul.f32 %v4295_v46, %v4603_v37  ;;  %v5272_v49 = vld [vmem:[#allocation49_spill] sm:$0xff] }
 0x3f6   : > { %v1194_v22 = vadd.f32 %v1178_v44, %v1141_v30  ;;  %v1406_v51 = vadd.f32 %v1390_v48, %v1353_v32  ;;  %v1656_v17 = vmul.f32 %v5183_v38, %v4613_v60  ;;  %v1709_v47 = vmul.f32 %v5188_v15, %v5271_v5  ;;  %v1954_v44 = vld [vmem:[#allocation2 + $0x112] sm:$0xff] }
 0x3f7   : > { %v2840_v11 = vpop.eup %2839  ;;  %v4730_v45 = vadd.f32 %v4419_v35, %v2110_v2  ;;  %v1050_v27 = vadd.f32 %v1034_v12, %v997_v36  ;;  %v1762_v14 = vmul.f32 %v5241_v54, %v5272_v49  ;;  %v1815_v37 = vmul.f32 %v4327_v42, %v4625_v63  ;;  %v5273_v30 = vld [vmem:[#allocation24_spill] sm:$0xff] }
 0x3f8   : > { %v2842_v32 = vpop.eup %2841  ;;  %v2243_v60 = vmul.f32 %v2840_v11, %v5273_v30  ;;  %v1247_v55 = vadd.f32 %v1231_v9, %v1194_v22  ;;  %v1459_v48 = vadd.f32 %v1443_v39, %v1406_v51  ;;  %v1672_v62 = vadd.f32 %v1656_v17, %v1619_v18  ;;  %v2007_v6 = vld [vmem:[#allocation2 + $0x113] sm:$0xff]  ;;  %v816_v11 = vld [vmem:[#allocation2 + $0xa8] sm:$0xff] }
 0x3f9   : > { %v2060_v28 = vld [vmem:[#allocation2 + $0x114] sm:$0xff]  ;;  %v2198_v5 = vadd.f32 1.0, %v2842_v32  ;;  %v2555_v2 = vmul.f32 -1.442695, %v4730_v45  ;;  %v1885_v12 = vmul.f32 %v4342_v29, %v1864_v1  ;;  %v1922_v36 = vmul.f32 %v4349_v4, %v1901_v43  ;;  %v853_v9 = vld [vmem:[#allocation2 + $0xa9] sm:$0xff] }
 0x3fa   : > { %2301 = vrot.lane.b32.xlu0 %v2243_v60, %s2985_s9  ;;  %v1300_v49 = vadd.f32 %v1284_v40, %v1247_v55  ;;  %v1512_v63 = vadd.f32 %v1496_v53, %v1459_v48  ;;  %v1725_v42 = vadd.f32 %v1709_v47, %v1672_v62  ;;  %v1975_v41 = vmul.f32 %v4360_v34, %v1954_v44  ;;  %v906_v39 = vld [vmem:[#allocation2 + $0xaa] sm:$0xff] }
 0x3fb   : > { %2843 = vrcp.f32 %v2198_v5  ;;  %v1938_v18 = vadd.f32 %v1922_v36, %v1885_v12  ;;  %v2028_v22 = vmul.f32 %v4367_v20, %v2007_v6  ;;  %v2081_v51 = vmul.f32 %v4374_v59, %v2060_v28  ;;  %v959_v17 = vld [vmem:[#allocation2 + $0xab] sm:$0xff]  ;;  %v5275_v5 = vld [vmem:[#allocation34_spill] sm:$0xff] }
 0x3fc   : > { %2845 = vpow2.f32 %v2555_v2  ;;  %v1316_v1 = vadd.f32 %v1300_v49, %v1050_v27  ;;  %v1565_v43 = vadd.f32 %v1549_v7, %v1512_v63  ;;  %v1778_v32 = vadd.f32 %v1762_v14, %v1725_v42  ;;  %v1012_v44 = vld [vmem:[#allocation2 + $0xac] sm:$0xff]  ;;  %v2286_v27 = vpop.permute.xlu1 %2285 }
 0x3fd   : > { %v1991_v30 = vadd.f32 %v1975_v41, %v1938_v18  ;;  %v837_v40 = vmul.f32 %v4190_v8, %v816_v11  ;;  %v874_v53 = vmul.f32 %v4197_v58, %v853_v9  ;;  %v927_v47 = vmul.f32 %v4204_v3, %v906_v39  ;;  %v5274_v3 = vld [vmem:[#allocation45_spill] sm:$0xff]  ;;  %v5281_v18 = vld [vmem:[#allocation32_spill] sm:$0xff]  ;;  %2332 = vst.msk [vmem:[%s3208_s10 + $0x10] sm:$0xff] %vm2329_vm3, %v2286_v27 }
 0x3fe   : > { %v1581_v60 = vadd.f32 %v1565_v43, %v1316_v1  ;;  %v1831_v55 = vadd.f32 %v1815_v37, %v1778_v32  ;;  %v980_v48 = vmul.f32 %v4211_v16, %v959_v17  ;;  %v1087_v28 = vmul.f32 %v4225_v19, %v5252_v50  ;;  %v5276_v19 = vld [vmem:[#allocation46_spill] sm:$0xff]  ;;  %v5280_v11 = vld [vmem:[#allocation9_spill] sm:$0xff]  ;;  %v1953_v32 = vld [vmem:[#allocation2 + $0x10a] sm:$0xff] }
 0x3ff   : > { %v2044_v62 = vadd.f32 %v2028_v22, %v1991_v30  ;;  %v890_v6 = vadd.f32 %v874_v53, %v837_v40  ;;  %v1124_v42 = vmul.f32 %v4232_v33, %v5253_v13  ;;  %v1033_v8 = vmul.f32 %v4218_v57, %v1012_v44  ;;  %v5277_v33 = vld [vmem:[#allocation35_spill] sm:$0xff]  ;;  %v5278_v57 = vld [vmem:[#allocation37_spill] sm:$0xff]  ;;  %v5282_v22 = vld [vmem:[#allocation6_spill] sm:$0xff] }
 0x400   : > { %v1847_v41 = vadd.f32 %v1831_v55, %v1581_v60  ;;  %v1177_v58 = vmul.f32 %v4239_v61, %v5254_v25  ;;  %v1230_v7 = vmul.f32 %v4246_v31, %v5274_v3  ;;  %v1352_v2 = vmul.f32 %v4260_v23, %v5275_v5  ;;  %v5279_v61 = vld [vmem:[#allocation38_spill] sm:$0xff]  ;;  %v2282_v31 = vpop.permute.xlu0 %2281  ;;  %v1863_v23 = vld [vmem:[#allocation2 + $0x108] sm:$0xff]  ;;  %v2288_v60 = vpop.permute.xlu1 %2287 }
 0x401   : > { %v2097_v14 = vadd.f32 %v2081_v51, %v2044_v62  ;;  %v943_v16 = vadd.f32 %v927_v47, %v890_v6  ;;  %v1140_v37 = vadd.f32 %v1124_v42, %v1087_v28  ;;  %v1283_v50 = vmul.f32 %v4253_v52, %v5276_v19  ;;  %v1900_v51 = vld [vmem:[#allocation2 + $0x109] sm:$0xff]  ;;  %2330 = vst.msk [vmem:[%s3208_s10] sm:$0xff] %vm2329_vm3, %v2282_v31 }
 0x402   : > { %v1389_v13 = vmul.f32 %v4267_v56, %v5277_v33  ;;  %v1442_v12 = vmul.f32 %v4274_v10, %v5278_v57  ;;  %v1495_v25 = vmul.f32 %v4281_v0, %v5279_v61  ;;  %v1618_v9 = vmul.f32 %v4295_v46, %v5280_v11  ;;  %v5283_v40 = vld [vmem:[#allocation7_spill] sm:$0xff]  ;;  %2333 = vst.msk [vmem:[%s3208_s10 + $0x18] sm:$0xff] %vm2329_vm3, %v2288_v60 }
 0x403   : > { %v2113_v36 = vadd.f32 %v2097_v14, %v1847_v41  ;;  %v996_v49 = vadd.f32 %v980_v48, %v943_v16  ;;  %v1193_v63 = vadd.f32 %v1177_v58, %v1140_v37  ;;  %v1548_v52 = vmul.f32 %v4288_v26, %v5281_v18  ;;  %v2006_v44 = vld [vmem:[#allocation2 + $0x10b] sm:$0xff] }
 0x404   : > { %v1405_v39 = vadd.f32 %v1389_v13, %v1352_v2  ;;  %v1655_v56 = vmul.f32 %v5183_v38, %v5282_v22  ;;  %v1708_v10 = vmul.f32 %v5188_v15, %v4676_v24  ;;  %v1761_v46 = vmul.f32 %v5241_v54, %v4682_v21  ;;  %v5284_v21 = vld [vmem:[#allocation10_spill] sm:$0xff]  ;;  %v5285_v6 = vld [vmem:[#allocation27_spill] sm:$0xff]  ;;  %v2284_v41 = vpop.permute.xlu0 %2283 }
 0x405   : > { %v2844_v0 = vpop.eup %2843  ;;  %v2136_v17 = vadd.f32 %v4419_v35, %v2113_v36  ;;  %v1049_v1 = vadd.f32 %v1033_v8, %v996_v49  ;;  %v1246_v43 = vadd.f32 %v1230_v7, %v1193_v63  ;;  %v1884_v38 = vmul.f32 %v4342_v29, %v1863_v23  ;;  %v2059_v29 = vld [vmem:[#allocation2 + $0x10c] sm:$0xff]  ;;  %2331 = vst.msk [vmem:[%s3208_s10 + $0x8] sm:$0xff] %vm2329_vm3, %v2284_v41 }
 0x406   : > { %v2846_v30 = vpop.eup %2845  ;;  %v2246_v53 = vmul.f32 %v2844_v0, %v5283_v40  ;;  %v1458_v26 = vadd.f32 %v1442_v12, %v1405_v39  ;;  %v1671_v47 = vadd.f32 %v1655_v56, %v1618_v9  ;;  %v1921_v48 = vmul.f32 %v4349_v4, %v1900_v51 }
 0x407   : > { %v2197_v15 = vadd.f32 1.0, %v2846_v30  ;;  %v2558_v24 = vmul.f32 -1.442695, %v2136_v17  ;;  %v1299_v55 = vadd.f32 %v1283_v50, %v1246_v43  ;;  %v1814_v28 = vmul.f32 %v5285_v6, %v5284_v21 }
 0x408   : > { %2307 = vrot.lane.b32.xlu1 %v2246_v53, %s2985_s9  ;;  %v1511_v62 = vadd.f32 %v1495_v25, %v1458_v26  ;;  %v1724_v54 = vadd.f32 %v1708_v10, %v1671_v47  ;;  %v1974_v42 = vmul.f32 %v4360_v34, %v1953_v32  ;;  %v1937_v58 = vadd.f32 %v1921_v48, %v1884_v38 }
 0x409   : > { %2847 = vrcp.f32 %v2197_v15  ;;  %v1315_v8 = vadd.f32 %v1299_v55, %v1049_v1  ;;  %v2027_v4 = vmul.f32 %v4367_v20, %v2006_v44  ;;  %v2080_v16 = vmul.f32 %v4374_v59, %v2059_v29 }
 0x40a   : > { %2849 = vpow2.f32 %v2558_v24  ;;  %v1564_v3 = vadd.f32 %v1548_v52, %v1511_v62  ;;  %v1777_v7 = vadd.f32 %v1761_v46, %v1724_v54  ;;  %v1990_v14 = vadd.f32 %v1974_v42, %v1937_v58 }
 0x40b   : > { %v2292_v5 = vpop.permute.xlu1 %2291 }
 0x40c   : > { %v1580_v34 = vadd.f32 %v1564_v3, %v1315_v8  ;;  %v1830_v37 = vadd.f32 %v1814_v28, %v1777_v7  ;;  %v2043_v20 = vadd.f32 %v2027_v4, %v1990_v14  ;;  %2335 = vst.msk [vmem:[%s3208_s10 + $0x28] sm:$0xff] %vm2329_vm3, %v2292_v5 }
 0x40e   : > { %v1846_v2 = vadd.f32 %v1830_v37, %v1580_v34  ;;  %v2096_v19 = vadd.f32 %v2080_v16, %v2043_v20 }
 0x410   : > { %v2112_v50 = vadd.f32 %v2096_v19, %v1846_v2 }
 0x412   : > { %v2135_v59 = vadd.f32 %v4419_v35, %v2112_v50 }
 0x413   : > { %v2848_v33 = vpop.eup %2847 }
 0x414   : > { %v2850_v27 = vpop.eup %2849  ;;  %v2245_v13 = vmul.f32 %v2848_v33, %v4730_v45  ;;  %v2557_v12 = vmul.f32 -1.442695, %v2135_v59 }
 0x415   : > { %v2200_v57 = vadd.f32 1.0, %v2850_v27 }
 0x416   : > { %2305 = vrot.lane.b32.xlu0 %v2245_v13, %s2985_s9 }
 0x417   : > { %2851 = vrcp.f32 %v2200_v57 }
 0x418   : > { %2853 = vpow2.f32 %v2557_v12 }
 0x419   : > { %v2290_v61 = vpop.permute.xlu0 %2289 }
 0x41a   : > { %2334 = vst.msk [vmem:[%s3208_s10 + $0x20] sm:$0xff] %vm2329_vm3, %v2290_v61 }
 0x421   : > { %v2852_v25 = vpop.eup %2851 }
 0x422   : > { %v2854_v31 = vpop.eup %2853  ;;  %v2248_v36 = vmul.f32 %v2852_v25, %v2136_v17 }
 0x423   : > { %v2199_v35 = vadd.f32 1.0, %v2854_v31 }
 0x424   : > { %2311 = vrot.lane.b32.xlu1 %v2248_v36, %s2985_s9 }
 0x425   : > { %2855 = vrcp.f32 %v2199_v35 }
 0x428   : > { %v2296_v45 = vpop.permute.xlu1 %2295 }
 0x429   : > { %2337 = vst.msk [vmem:[%s3208_s10 + $0x38] sm:$0xff] %vm2329_vm3, %v2296_v45 }
 0x42f   : > { %v2856_v49 = vpop.eup %2855 }
 0x430   : > { %v2247_v63 = vmul.f32 %v2856_v49, %v2135_v59 }
 0x432   : > { %2309 = vrot.lane.b32.xlu0 %v2247_v63, %s2985_s9 }
 0x436   : > { %v2294_v11 = vpop.permute.xlu0 %2293 }
 0x437   : > { %2336 = vst.msk [vmem:[%s3208_s10 + $0x30] sm:$0xff] %vm2329_vm3, %v2294_v11 }
 0x442   : > { %v2300_v9 = vpop.permute.xlu1 %2299 }
 0x443   : > { %2339 = vst.msk [vmem:[%s3208_s10 + $0x48] sm:$0xff] %vm2329_vm3, %v2300_v9 }
 0x451   : > { %v2298_v23 = vpop.permute.xlu0 %2297 }
 0x452   : > { %2338 = vst.msk [vmem:[%s3208_s10 + $0x40] sm:$0xff] %vm2329_vm3, %v2298_v23 }
 0x45e   : > { %v2304_v39 = vpop.permute.xlu1 %2303 }
 0x45f   : > { %2341 = vst.msk [vmem:[%s3208_s10 + $0x58] sm:$0xff] %vm2329_vm3, %v2304_v39 }
 0x46c   : > { %v2302_v18 = vpop.permute.xlu0 %2301 }
 0x46d   : > { %2340 = vst.msk [vmem:[%s3208_s10 + $0x50] sm:$0xff] %vm2329_vm3, %v2302_v18 }
 0x47a   : > { %v2308_v52 = vpop.permute.xlu1 %2307 }
 0x47b   : > { %2343 = vst.msk [vmem:[%s3208_s10 + $0x68] sm:$0xff] %vm2329_vm3, %v2308_v52 }
 0x488   : > { %v2306_v22 = vpop.permute.xlu0 %2305 }
 0x489   : > { %2342 = vst.msk [vmem:[%s3208_s10 + $0x60] sm:$0xff] %vm2329_vm3, %v2306_v22 }
 0x496   : > { %v2312_v56 = vpop.permute.xlu1 %2311 }
 0x497   : > { %2345 = vst.msk [vmem:[%s3208_s10 + $0x78] sm:$0xff] %vm2329_vm3, %v2312_v56 }
 0x4a4   : > { %v2310_v10 = vpop.permute.xlu0 %2309 }
 0x4a5   : > { %2344 = vst.msk [vmem:[%s3208_s10 + $0x70] sm:$0xff] %vm2329_vm3, %v2310_v10 }
 0x4a6 PF: > { %s18_s25 = sadd.s32 1, %s2979_s25   ;;  %s5286_s18 = smov %s2955_s19 }
 0x4a7   : > { %p15_p8 = scmp.ge.s32.totalorder %s18_s25, 6   ;;  %s5287_s19 = smov %s2959_s20 }
 0x4a8   : > { %s5288_s20 = smov %s3081_s11  ;;  %s5289_s21 = smov %s2971_s23 }
 0x4a9   : > { %s5290_s22 = smov %s2975_s24  ;;  %s5291_s23 = smov %s5294_s27 }
 0x4aa   : > { %s5292_s24 = smov %s5298_s28  ;;  %17 = sbr.rel (!%p15_p8) target bundleno = 5 (0x5), region = 96 }
 0x4b1   :  { %2378 = vsyncpa [#allocation4], 1 }
 0x4b2   :  { %2380 = vsyncpa [#allocation4 + $0x1], 1 }

</bundles_post_ra>
